<compile_context>
chip_gen: v7x
topology: tpu7x:2x2x1
jax: 0.10.0
libtpu: 0.0.40
codegen_flags: <defaults>
</compile_context>

<pallas_src>
import functools
import numpy as np
import jax
import jax.numpy as jnp
from jax.experimental import pallas as pl
from jax.experimental.pallas import tpu as pltpu

# ----------------------- small synthetic model config ------------------------
BATCH = 2
IN_CHANS = 4
NUM_FRAMES = 1          # temporal_step
TUBELET = 1
IMG_SIZE = 16
PATCH = 4
EMBED_DIM = 32
DEPTH = 2
NUM_HEADS = 4
HEAD_DIM = EMBED_DIM // NUM_HEADS
MLP_DIM = 4 * EMBED_DIM
NUM_CLASSES = 2

GT = NUM_FRAMES // TUBELET
GH = IMG_SIZE // PATCH
GW = IMG_SIZE // PATCH
NUM_TOKENS = GT * GH * GW
SEQ = NUM_TOKENS + 1    # + cls token


# ------------------------- in-kernel math helpers -----------------------------
def _ln_2d(x, g, b, eps):
    """LayerNorm over the last dim of a 2-D f32 array; g/b are [1, D]."""
    mean = jnp.mean(x, axis=-1, keepdims=True)
    xc = x - mean
    var = jnp.mean(xc * xc, axis=-1, keepdims=True)
    return xc * jax.lax.rsqrt(var + eps) * g + b


def _erf_f32(x):
    # Abramowitz & Stegun 7.1.26 rational approximation, |err| <= 1.5e-7
    # (float32-accurate); avoids relying on a native erf lowering in Mosaic.
    a1, a2, a3, a4, a5 = (0.254829592, -0.284496736, 1.421413741,
                          -1.453152027, 1.061405429)
    p = 0.3275911
    sgn = jnp.where(x >= 0.0, 1.0, -1.0)
    ax = jnp.abs(x)
    t = 1.0 / (1.0 + p * ax)
    poly = ((((a5 * t + a4) * t + a3) * t + a2) * t + a1) * t
    return sgn * (1.0 - poly * jnp.exp(-ax * ax))


def _gelu_exact(x):
    return 0.5 * x * (1.0 + _erf_f32(x * 0.7071067811865476))


# ----------------------- fused ViT encoder block kernel ------------------------
def _vit_block_kernel(x_ref, n1g_ref, n1b_ref, qkvw_ref, qkvb_ref,
                      projw_ref, projb_ref, n2g_ref, n2b_ref,
                      fc1w_ref, fc1b_ref, fc2w_ref, fc2b_ref, o_ref,
                      *, num_heads, head_dim, eps):
    x = x_ref[0].astype(jnp.float32)                     # [S, D]
    S, D = x.shape
    scale = float(head_dim) ** -0.5

    # ---- attention branch ----
    h = _ln_2d(x, n1g_ref[...], n1b_ref[...], eps)
    qkv = jnp.dot(h, qkvw_ref[...],
                  preferred_element_type=jnp.float32) + qkvb_ref[...]   # [S, 3D]

    attn_proj = jnp.zeros((S, D), jnp.float32)
    for hh in range(num_heads):
        lo, hi = hh * head_dim, (hh + 1) * head_dim
        q = qkv[:, lo:hi]
        k = qkv[:, D + lo:D + hi]
        v = qkv[:, 2 * D + lo:2 * D + hi]
        s = jax.lax.dot_general(q, k, (((1,), (1,)), ((), ())),
                                preferred_element_type=jnp.float32) * scale
        s = s - jnp.max(s, axis=-1, keepdims=True)
        p = jnp.exp(s)
        p = p * pl.reciprocal(jnp.sum(p, axis=-1, keepdims=True), approx=True)
        a_h = jnp.dot(p, v, preferred_element_type=jnp.float32)         # [S, hd]
        # fold head output straight into the projection (== concat @ Wproj)
        attn_proj = attn_proj + jnp.dot(a_h, projw_ref[lo:hi, :],
                                        preferred_element_type=jnp.float32)
    x = x + attn_proj + projb_ref[...]

    # ---- MLP branch ----
    h = _ln_2d(x, n2g_ref[...], n2b_ref[...], eps)
    h = jnp.dot(h, fc1w_ref[...], preferred_element_type=jnp.float32) + fc1b_ref[...]
    h = _gelu_exact(h)
    h = jnp.dot(h, fc2w_ref[...], preferred_element_type=jnp.float32) + fc2b_ref[...]
    o_ref[0] = (x + h).astype(o_ref.dtype)


def vit_block_fused(x, p):
    """One fused pallas_call per transformer block; grid over batch."""
    B, S, D = x.shape
    args = [
        x,
        p['norm1_g'].reshape(1, D), p['norm1_b'].reshape(1, D),
        p['qkv_w'].T, p['qkv_b'].reshape(1, 3 * D),
        p['proj_w'].T, p['proj_b'].reshape(1, D),
        p['norm2_g'].reshape(1, D), p['norm2_b'].reshape(1, D),
        p['fc1_w'].T, p['fc1_b'].reshape(1, MLP_DIM),
        p['fc2_w'].T, p['fc2_b'].reshape(1, D),
    ]
    in_specs = [pl.BlockSpec((1, S, D), lambda i: (i, 0, 0))]
    for a in args[1:]:
        in_specs.append(pl.BlockSpec(a.shape, lambda i: (0, 0)))
    return pl.pallas_call(
        functools.partial(_vit_block_kernel, num_heads=NUM_HEADS,
                          head_dim=HEAD_DIM, eps=1e-6),
        out_shape=jax.ShapeDtypeStruct((B, S, D), jnp.float32),
        grid=(B,),
        in_specs=in_specs,
        out_specs=pl.BlockSpec((1, S, D), lambda i: (i, 0, 0)),
        compiler_params=pltpu.CompilerParams(dimension_semantics=("parallel",)),
    )(*args)


# ------------------------------- LayerNorm kernel ------------------------------
def _layernorm_kernel(x_ref, g_ref, b_ref, o_ref, *, eps):
    x = x_ref[0].astype(jnp.float32)
    o_ref[0] = _ln_2d(x, g_ref[...], b_ref[...], eps).astype(o_ref.dtype)


def layernorm_tokens(x, g, b, eps=1e-6):
    """Final encoder norm on [B, S, D]; grid over batch (>=2 parallel steps)."""
    B, S, D = x.shape
    return pl.pallas_call(
        functools.partial(_layernorm_kernel, eps=eps),
        out_shape=jax.ShapeDtypeStruct((B, S, D), jnp.float32),
        grid=(B,),
        in_specs=[
            pl.BlockSpec((1, S, D), lambda i: (i, 0, 0)),
            pl.BlockSpec((1, D), lambda i: (0, 0)),
            pl.BlockSpec((1, D), lambda i: (0, 0)),
        ],
        out_specs=pl.BlockSpec((1, S, D), lambda i: (i, 0, 0)),
        compiler_params=pltpu.CompilerParams(dimension_semantics=("parallel",)),
    )(x, g.reshape(1, D), b.reshape(1, D))


# ------------------------ matmul (+bias, optional ReLU) -------------------------
def _matmul_kernel(a_ref, w_ref, b_ref, o_ref, *, relu):
    acc = jnp.dot(a_ref[...], w_ref[...],
                  preferred_element_type=jnp.float32) + b_ref[...]
    if relu:
        acc = jnp.maximum(acc, 0.0)
    o_ref[...] = acc.astype(o_ref.dtype)


def matmul_bias(a, w, b, *, relu=False, max_tm=1024):
    """(a @ w) + b (+ReLU) with a:[M,K], w:[K,N], b:[N] -> [M,N].

    Narrow N is zero-padded to 128 lanes inside the call (unmasked lane-dense
    stores) and sliced off afterwards; the row dim is tiled with >=2 parallel
    grid steps so both v7x TensorCores stay busy.
    """
    M, K = a.shape
    K2, N = w.shape
    assert K == K2
    Np = N if N % 128 == 0 else ((N + 127) // 128) * 128
    if Np != N:
        w = jnp.pad(w, ((0, 0), (0, Np - N)))
        b = jnp.pad(b, (0, Np - N))
    nt = max(2, -(-M // max_tm))                 # number of row tiles (>= 2)
    TM = ((-(-M // nt)) + 7) // 8 * 8            # tile rows, multiple of 8
    Mpad = nt * TM
    a_p = jnp.pad(a, ((0, Mpad - M), (0, 0))) if Mpad != M else a
    out = pl.pallas_call(
        functools.partial(_matmul_kernel, relu=relu),
        out_shape=jax.ShapeDtypeStruct((Mpad, Np), jnp.float32),
        grid=(nt,),
        in_specs=[
            pl.BlockSpec((TM, K), lambda i: (i, 0)),
            pl.BlockSpec((K, Np), lambda i: (0, 0)),
            pl.BlockSpec((1, Np), lambda i: (0, 0)),
        ],
        out_specs=pl.BlockSpec((TM, Np), lambda i: (i, 0)),
        compiler_params=pltpu.CompilerParams(dimension_semantics=("parallel",)),
    )(a_p, w, b.reshape(1, Np))
    out = out[:M]
    if Np != N:
        out = out[:, :N]
    return out


# ------------------------- conv glue (im2col -> Pallas) ------------------------
def _im2col3x3(xp, Ho, Wo):
    B, _, _, C = xp.shape
    cols = jnp.stack(
        [xp[:, kh:kh + Ho, kw:kw + Wo, :] for kh in range(3) for kw in range(3)],
        axis=3)                                    # [B, Ho, Wo, 9, C]
    return cols.reshape(B * Ho * Wo, 9 * C)


def conv2d_3x3_bn_relu(x, w, b, bn_g, bn_b, bn_mean, bn_var, eps=1e-5):
    """Conv2d(3x3, pad=1) + BatchNorm2d(inference) + ReLU, fused into one matmul.

    BN running statistics are folded into the conv weight/bias; ReLU is the
    matmul epilogue.  # TODO(synk): train-mode batch statistics not modeled.
    """
    B, H, W, Cin = x.shape
    Cout = w.shape[0]
    s = bn_g * jax.lax.rsqrt(bn_var + eps)
    w_f = w * s[:, None, None, None]
    b_f = b * s + bn_b - bn_mean * s
    xp = jnp.pad(x, ((0, 0), (1, 1), (1, 1), (0, 0)))
    wm = jnp.transpose(w_f, (2, 3, 1, 0)).reshape(9 * Cin, Cout)
    y = matmul_bias(_im2col3x3(xp, H, W), wm, b_f, relu=True)
    return y.reshape(B, H, W, Cout)


def conv_transpose2d_s2(x, w_t, b):
    # ConvTranspose2d(k=3, stride=2, padding=1, output_padding=1), NHWC.
    # Equivalent to zero-insert upsample + pad(1,2) + correlation with the
    # spatially flipped kernel (in/out channels swapped).  w_t: [Cin, Cout, 3, 3].
    B, H, W, Cin = x.shape
    Cout = w_t.shape[1]
    Ho, Wo = 2 * H, 2 * W
    xu = jnp.zeros((B, 2 * H - 1, 2 * W - 1, Cin), x.dtype).at[:, ::2, ::2, :].set(x)
    xp = jnp.pad(xu, ((0, 0), (1, 2), (1, 2), (0, 0)))
    w = jnp.flip(w_t, axis=(2, 3))
    wm = jnp.transpose(w, (2, 3, 0, 1)).reshape(9 * Cin, Cout)
    y = matmul_bias(_im2col3x3(xp, Ho, Wo), wm, b)
    return y.reshape(B, Ho, Wo, Cout)


def conv2d_1x1(x, w, b):
    B, H, W, Cin = x.shape
    Cout = w.shape[0]
    y = matmul_bias(x.reshape(B * H * W, Cin), w.reshape(Cout, Cin).T, b)
    return y.reshape(B, H, W, Cout)


# ---------------------------------- forward ------------------------------------
def prithvi_seg_forward(img, params):
    """img: [B, C, T, H, W] (PyTorch layout).  Returns NCHW logits."""
    B, C, T, H, W = img.shape
    # Patch embedding: Conv3d(kernel=stride=(tub,p,p)) == patch-flatten + matmul.
    x = img.reshape(B, C, GT, TUBELET, GH, PATCH, GW, PATCH)
    x = jnp.transpose(x, (0, 2, 4, 6, 1, 3, 5, 7)).reshape(
        B * NUM_TOKENS, C * TUBELET * PATCH * PATCH)
    w_pe = params['patch_w'].reshape(EMBED_DIM, -1).T
    tok = matmul_bias(x, w_pe, params['patch_b']).reshape(B, NUM_TOKENS, EMBED_DIM)

    pos = params['pos_embed']                                  # [1, 1+L, D]
    tok = tok + pos[:, 1:, :]
    cls = jnp.broadcast_to(params['cls_token'] + pos[:, :1, :], (B, 1, EMBED_DIM))
    x = jnp.concatenate([cls, tok], axis=1)                    # [B, 1+L, D]

    for blk in params['blocks']:
        x = vit_block_fused(x, blk)                            # one kernel / block
    x = layernorm_tokens(x, params['norm_g'], params['norm_b'])

    # Tokens -> feature image (mirrors the PyTorch permute/reshape exactly).
    feat = x[:, 1:, :]                                         # [B, L, D]
    fs = int(np.sqrt(feat.shape[1] // NUM_FRAMES))
    feat = jnp.transpose(feat, (0, 2, 1)).reshape(B, -1, fs, fs)   # NCHW
    y = jnp.transpose(feat, (0, 2, 3, 1))                      # NHWC for conv kernels

    for up in params['ups']:
        y = conv_transpose2d_s2(y, up['tconv_w'], up['tconv_b'])
        y = conv2d_3x3_bn_relu(y, up['conv_w'], up['conv_b'],
                               up['bn_g'], up['bn_b'], up['bn_mean'], up['bn_var'])
    y = conv2d_1x1(y, params['head_w'], params['head_b'])
    return jnp.transpose(y, (0, 3, 1, 2))                      # NCHW output


# ------------------------ sincos pos-embed + param init ------------------------
def _get_1d_sincos(embed_dim, pos):
    omega = np.arange(embed_dim // 2, dtype=np.float64)
    omega /= embed_dim / 2.0
    omega = 1.0 / 10000 ** omega
    out = np.einsum('m,d->md', pos.reshape(-1).astype(np.float64), omega)
    return np.concatenate([np.sin(out), np.cos(out)], axis=1)


def get_3d_sincos_pos_embed(embed_dim, grid_size, cls_token=False):
    t, h, w = grid_size
    w_dim = embed_dim // 16 * 6
    h_dim = embed_dim // 16 * 6
    t_dim = embed_dim // 16 * 4
    w_pe = _get_1d_sincos(w_dim, np.arange(w))
    h_pe = _get_1d_sincos(h_dim, np.arange(h))
    t_pe = _get_1d_sincos(t_dim, np.arange(t))
    w_pe = np.tile(w_pe, (t * h, 1))
    h_pe = np.tile(np.repeat(h_pe, w, axis=0), (t, 1))
    t_pe = np.repeat(t_pe, h * w, axis=0)
    pe = np.concatenate([w_pe, h_pe, t_pe], axis=1)
    if cls_token:
        pe = np.concatenate([np.zeros((1, embed_dim)), pe], axis=0)
    return pe.astype(np.float32)


def init_params(key):
    # TODO(synk): pretrained Prithvi checkpoint/config download is not modeled;
    #             random weights with the same shapes are used instead.
    keys = iter(jax.random.split(key, 128))

    def rand(shape, scale=0.02):
        return scale * jax.random.normal(next(keys), shape, jnp.float32)

    p = {
        'patch_w': rand((EMBED_DIM, IN_CHANS, TUBELET, PATCH, PATCH)),
        'patch_b': rand((EMBED_DIM,)),
        'cls_token': rand((1, 1, EMBED_DIM)),
        'pos_embed': jnp.asarray(
            get_3d_sincos_pos_embed(EMBED_DIM, (GT, GH, GW), cls_token=True))[None],
        'norm_g': jnp.ones((EMBED_DIM,), jnp.float32),
        'norm_b': jnp.zeros((EMBED_DIM,), jnp.float32),
    }
    p['blocks'] = []
    for _ in range(DEPTH):
        p['blocks'].append(dict(
            norm1_g=jnp.ones((EMBED_DIM,), jnp.float32),
            norm1_b=jnp.zeros((EMBED_DIM,), jnp.float32),
            qkv_w=rand((3 * EMBED_DIM, EMBED_DIM)),
            qkv_b=rand((3 * EMBED_DIM,)),
            proj_w=rand((EMBED_DIM, EMBED_DIM)),
            proj_b=rand((EMBED_DIM,)),
            norm2_g=jnp.ones((EMBED_DIM,), jnp.float32),
            norm2_b=jnp.zeros((EMBED_DIM,), jnp.float32),
            fc1_w=rand((MLP_DIM, EMBED_DIM)),
            fc1_b=rand((MLP_DIM,)),
            fc2_w=rand((EMBED_DIM, MLP_DIM)),
            fc2_b=rand((EMBED_DIM,)),
        ))
    dims = [EMBED_DIM * NUM_FRAMES // (2 ** i) for i in range(5)]
    p['ups'] = []
    for i in range(4):
        cin, cout = dims[i], dims[i + 1]
        p['ups'].append(dict(
            tconv_w=rand((cin, cout, 3, 3)),
            tconv_b=rand((cout,)),
            conv_w=rand((cout, cout, 3, 3)),
            conv_b=rand((cout,)),
            bn_g=1.0 + rand((cout,), 0.1),
            bn_b=rand((cout,), 0.1),
            bn_mean=jnp.zeros((cout,), jnp.float32),
            bn_var=jnp.ones((cout,), jnp.float32),
        ))
    p['head_w'] = rand((NUM_CLASSES, dims[4], 1, 1))
    p['head_b'] = rand((NUM_CLASSES,))
    return p


# ------------------------------------ main -------------------------------------
if __name__ == "__main__":
    key = jax.random.PRNGKey(0)
    pkey, xkey = jax.random.split(key)
    params = init_params(pkey)
    img = jax.random.normal(
        xkey, (BATCH, IN_CHANS, NUM_FRAMES, IMG_SIZE, IMG_SIZE), jnp.float32)

    forward = jax.jit(prithvi_seg_forward)
    out = forward(img, params)
    out = jax.block_until_ready(out)

    expected = (BATCH, NUM_CLASSES, GH * 16, GW * 16)   # 4 upscaling blocks -> 16x
    assert out.shape == expected, (out.shape, expected)
    assert bool(jnp.all(jnp.isfinite(out)))
    print("KERNEL_OK")
</pallas_src>

<mosaic_0001>
module attributes {stable_mosaic.version = 11 : i64} {
  func.func @_matmul_kernel(%arg0: i32, %arg1: memref<16x64xf32, #tpu.memory_space<vmem>>, %arg2: memref<64x128xf32, #tpu.memory_space<vmem>>, %arg3: memref<1x128xf32, #tpu.memory_space<vmem>>, %arg4: memref<16x128xf32, #tpu.memory_space<vmem>>) attributes {dimension_semantics = [#tpu.dimension_semantics<parallel>], iteration_bounds = array<i64: 2>, scalar_prefetch = 0 : i64, scratch_operands = 0 : i64, tpu.core_type = #tpu.core_type<tc>, window_params = [{transform_indices = @transform_0, window_bounds = array<i64: 16, 64>}, {pipeline_mode = #tpu.pipeline_mode<synchronous>, transform_indices = @transform_1, window_bounds = array<i64: 64, 128>}, {pipeline_mode = #tpu.pipeline_mode<synchronous>, transform_indices = @transform_2, window_bounds = array<i64: 1, 128>}, {transform_indices = @transform_3, window_bounds = array<i64: 16, 128>}]} {
    %c0 = arith.constant 0 : index
    %c0_0 = arith.constant 0 : index
    %0 = vector.load %arg1[%c0, %c0_0] : memref<16x64xf32, #tpu.memory_space<vmem>>, vector<16x64xf32>
    %c0_1 = arith.constant 0 : index
    %c0_2 = arith.constant 0 : index
    %1 = vector.load %arg2[%c0_1, %c0_2] : memref<64x128xf32, #tpu.memory_space<vmem>>, vector<64x128xf32>
    %cst = arith.constant dense<0.000000e+00> : vector<16x128xf32>
    %2 = tpu.matmul %0, %1, %cst {dimension_numbers = #tpu.dot_dimension_numbers<[1], [0], [0], [1], [0, 0, 1, 1], [], []>} : vector<16x64xf32>, vector<64x128xf32>, vector<16x128xf32> -> vector<16x128xf32>
    %c0_3 = arith.constant 0 : index
    %c0_4 = arith.constant 0 : index
    %3 = vector.load %arg3[%c0_3, %c0_4] : memref<1x128xf32, #tpu.memory_space<vmem>>, vector<1x128xf32>
    %4 = vector.broadcast %3 : vector<1x128xf32> to vector<16x128xf32>
    %5 = arith.addf %2, %4 : vector<16x128xf32>
    %c0_5 = arith.constant 0 : index
    %c0_6 = arith.constant 0 : index
    %6 = vector.load %arg4[%c0_5, %c0_6] : memref<16x128xf32, #tpu.memory_space<vmem>>, vector<16x128xf32>
    tpu.vector_store %arg4[%c0_5, %c0_6], %5 {strides = array<i32>} : memref<16x128xf32, #tpu.memory_space<vmem>>, vector<16x128xf32>,
    return
  }
  func.func @transform_0(%arg0: i32) -> (i32, i32) {
    %c0_i32 = arith.constant 0 : i32
    %c0_i32_0 = arith.constant 0 : i32
    return %arg0, %c0_i32 : i32, i32
  }
  func.func @transform_1(%arg0: i32) -> (i32, i32) {
    %c0_i32 = arith.constant 0 : i32
    %c0_i32_0 = arith.constant 0 : i32
    %c0_i32_1 = arith.constant 0 : i32
    return %c0_i32, %c0_i32_0 : i32, i32
  }
  func.func @transform_2(%arg0: i32) -> (i32, i32) {
    %c0_i32 = arith.constant 0 : i32
    %c0_i32_0 = arith.constant 0 : i32
    %c0_i32_1 = arith.constant 0 : i32
    return %c0_i32, %c0_i32_0 : i32, i32
  }
  func.func @transform_3(%arg0: i32) -> (i32, i32) {
    %c0_i32 = arith.constant 0 : i32
    %c0_i32_0 = arith.constant 0 : i32
    return %arg0, %c0_i32 : i32, i32
  }
}

module attributes {stable_mosaic.version = 11 : i64} {
  func.func @_layernorm_kernel(%arg0: i32, %arg1: memref<1x17x32xf32, #tpu.memory_space<vmem>>, %arg2: memref<1x32xf32, #tpu.memory_space<vmem>>, %arg3: memref<1x32xf32, #tpu.memory_space<vmem>>, %arg4: memref<1x17x32xf32, #tpu.memory_space<vmem>>) attributes {dimension_semantics = [#tpu.dimension_semantics<parallel>], iteration_bounds = array<i64: 2>, scalar_prefetch = 0 : i64, scratch_operands = 0 : i64, tpu.core_type = #tpu.core_type<tc>, window_params = [{transform_indices = @transform_0, window_bounds = array<i64: 1, 17, 32>}, {pipeline_mode = #tpu.pipeline_mode<synchronous>, transform_indices = @transform_1, window_bounds = array<i64: 1, 32>}, {pipeline_mode = #tpu.pipeline_mode<synchronous>, transform_indices = @transform_2, window_bounds = array<i64: 1, 32>}, {transform_indices = @transform_3, window_bounds = array<i64: 1, 17, 32>}]} {
    %c0 = arith.constant 0 : index
    %c0_0 = arith.constant 0 : index
    %c0_1 = arith.constant 0 : index
    %0 = vector.load %arg1[%c0, %c0_0, %c0_1] : memref<1x17x32xf32, #tpu.memory_space<vmem>>, vector<1x17x32xf32>
    %1 = vector.shape_cast %0 : vector<1x17x32xf32> to vector<17x32xf32>
    %c0_2 = arith.constant 0 : index
    %c0_3 = arith.constant 0 : index
    %2 = vector.load %arg2[%c0_2, %c0_3] : memref<1x32xf32, #tpu.memory_space<vmem>>, vector<1x32xf32>
    %c0_4 = arith.constant 0 : index
    %c0_5 = arith.constant 0 : index
    %3 = vector.load %arg3[%c0_4, %c0_5] : memref<1x32xf32, #tpu.memory_space<vmem>>, vector<1x32xf32>
    %cst = arith.constant dense<0.000000e+00> : vector<17xf32>
    %4 = vector.multi_reduction <add>, %1, %cst [1] : vector<17x32xf32> to vector<17xf32>
    %5 = vector.shape_cast %4 : vector<17xf32> to vector<17x1xf32>
    %cst_6 = arith.constant 3.200000e+01 : f32
    %6 = vector.broadcast %cst_6 : f32 to vector<17x1xf32>
    %7 = arith.divf %5, %6 : vector<17x1xf32>
    %8 = vector.broadcast %7 : vector<17x1xf32> to vector<17x32xf32>
    %9 = arith.subf %1, %8 : vector<17x32xf32>
    %10 = arith.mulf %9, %9 : vector<17x32xf32>
    %cst_7 = arith.constant dense<0.000000e+00> : vector<17xf32>
    %11 = vector.multi_reduction <add>, %10, %cst_7 [1] : vector<17x32xf32> to vector<17xf32>
    %12 = vector.shape_cast %11 : vector<17xf32> to vector<17x1xf32>
    %cst_8 = arith.constant 3.200000e+01 : f32
    %13 = vector.broadcast %cst_8 : f32 to vector<17x1xf32>
    %14 = arith.divf %12, %13 : vector<17x1xf32>
    %cst_9 = arith.constant 9.99999997E-7 : f32
    %15 = vector.broadcast %cst_9 : f32 to vector<17x1xf32>
    %16 = arith.addf %14, %15 : vector<17x1xf32>
    %17 = math.rsqrt %16 : vector<17x1xf32>
    %18 = vector.broadcast %17 : vector<17x1xf32> to vector<17x32xf32>
    %19 = arith.mulf %9, %18 : vector<17x32xf32>
    %20 = vector.broadcast %2 : vector<1x32xf32> to vector<17x32xf32>
    %21 = arith.mulf %19, %20 : vector<17x32xf32>
    %22 = vector.broadcast %3 : vector<1x32xf32> to vector<17x32xf32>
    %23 = arith.addf %21, %22 : vector<17x32xf32>
    %c0_10 = arith.constant 0 : index
    %c0_11 = arith.constant 0 : index
    %c0_12 = arith.constant 0 : index
    %24 = vector.load %arg4[%c0_10, %c0_11, %c0_12] : memref<1x17x32xf32, #tpu.memory_space<vmem>>, vector<1x17x32xf32>
    %25 = vector.shape_cast %24 : vector<1x17x32xf32> to vector<17x32xf32>
    %26 = vector.shape_cast %23 : vector<17x32xf32> to vector<1x17x32xf32>
    tpu.vector_store %arg4[%c0_10, %c0_11, %c0_12], %26 {strides = array<i32>} : memref<1x17x32xf32, #tpu.memory_space<vmem>>, vector<1x17x32xf32>,
    return
  }
  func.func @transform_0(%arg0: i32) -> (i32, i32, i32) {
    %c0_i32 = arith.constant 0 : i32
    %c0_i32_0 = arith.constant 0 : i32
    %c0_i32_1 = arith.constant 0 : i32
    return %arg0, %c0_i32, %c0_i32_0 : i32, i32, i32
  }
  func.func @transform_1(%arg0: i32) -> (i32, i32) {
    %c0_i32 = arith.constant 0 : i32
    %c0_i32_0 = arith.constant 0 : i32
    %c0_i32_1 = arith.constant 0 : i32
    return %c0_i32, %c0_i32_0 : i32, i32
  }
  func.func @transform_2(%arg0: i32) -> (i32, i32) {
    %c0_i32 = arith.constant 0 : i32
    %c0_i32_0 = arith.constant 0 : i32
    %c0_i32_1 = arith.constant 0 : i32
    return %c0_i32, %c0_i32_0 : i32, i32
  }
  func.func @transform_3(%arg0: i32) -> (i32, i32, i32) {
    %c0_i32 = arith.constant 0 : i32
    %c0_i32_0 = arith.constant 0 : i32
    %c0_i32_1 = arith.constant 0 : i32
    return %arg0, %c0_i32, %c0_i32_0 : i32, i32, i32
  }
}

module attributes {stable_mosaic.version = 11 : i64} {
  func.func @_vit_block_kernel(%arg0: i32, %arg1: memref<1x17x32xf32, #tpu.memory_space<vmem>>, %arg2: memref<1x32xf32, #tpu.memory_space<vmem>>, %arg3: memref<1x32xf32, #tpu.memory_space<vmem>>, %arg4: memref<32x96xf32, #tpu.memory_space<vmem>>, %arg5: memref<1x96xf32, #tpu.memory_space<vmem>>, %arg6: memref<32x32xf32, #tpu.memory_space<vmem>>, %arg7: memref<1x32xf32, #tpu.memory_space<vmem>>, %arg8: memref<1x32xf32, #tpu.memory_space<vmem>>, %arg9: memref<1x32xf32, #tpu.memory_space<vmem>>, %arg10: memref<32x128xf32, #tpu.memory_space<vmem>>, %arg11: memref<1x128xf32, #tpu.memory_space<vmem>>, %arg12: memref<128x32xf32, #tpu.memory_space<vmem>>, %arg13: memref<1x32xf32, #tpu.memory_space<vmem>>, %arg14: memref<1x17x32xf32, #tpu.memory_space<vmem>>) attributes {dimension_semantics = [#tpu.dimension_semantics<parallel>], iteration_bounds = array<i64: 2>, scalar_prefetch = 0 : i64, scratch_operands = 0 : i64, tpu.core_type = #tpu.core_type<tc>, window_params = [{transform_indices = @transform_0, window_bounds = array<i64: 1, 17, 32>}, {pipeline_mode = #tpu.pipeline_mode<synchronous>, transform_indices = @transform_1, window_bounds = array<i64: 1, 32>}, {pipeline_mode = #tpu.pipeline_mode<synchronous>, transform_indices = @transform_2, window_bounds = array<i64: 1, 32>}, {pipeline_mode = #tpu.pipeline_mode<synchronous>, transform_indices = @transform_3, window_bounds = array<i64: 32, 96>}, {pipeline_mode = #tpu.pipeline_mode<synchronous>, transform_indices = @transform_4, window_bounds = array<i64: 1, 96>}, {pipeline_mode = #tpu.pipeline_mode<synchronous>, transform_indices = @transform_5, window_bounds = array<i64: 32, 32>}, {pipeline_mode = #tpu.pipeline_mode<synchronous>, transform_indices = @transform_6, window_bounds = array<i64: 1, 32>}, {pipeline_mode = #tpu.pipeline_mode<synchronous>, transform_indices = @transform_7, window_bounds = array<i64: 1, 32>}, {pipeline_mode = #tpu.pipeline_mode<synchronous>, transform_indices = @transform_8, window_bounds = array<i64: 1, 32>}, {pipeline_mode = #tpu.pipeline_mode<synchronous>, transform_indices = @transform_9, window_bounds = array<i64: 32, 128>}, {pipeline_mode = #tpu.pipeline_mode<synchronous>, transform_indices = @transform_10, window_bounds = array<i64: 1, 128>}, {pipeline_mode = #tpu.pipeline_mode<synchronous>, transform_indices = @transform_11, window_bounds = array<i64: 128, 32>}, {pipeline_mode = #tpu.pipeline_mode<synchronous>, transform_indices = @transform_12, window_bounds = array<i64: 1, 32>}, {transform_indices = @transform_13, window_bounds = array<i64: 1, 17, 32>}]} {
    %c0 = arith.constant 0 : index
    %c0_0 = arith.constant 0 : index
    %c0_1 = arith.constant 0 : index
    %0 = vector.load %arg1[%c0, %c0_0, %c0_1] : memref<1x17x32xf32, #tpu.memory_space<vmem>>, vector<1x17x32xf32>
    %1 = vector.shape_cast %0 : vector<1x17x32xf32> to vector<17x32xf32>
    %c0_2 = arith.constant 0 : index
    %c0_3 = arith.constant 0 : index
    %2 = vector.load %arg2[%c0_2, %c0_3] : memref<1x32xf32, #tpu.memory_space<vmem>>, vector<1x32xf32>
    %c0_4 = arith.constant 0 : index
    %c0_5 = arith.constant 0 : index
    %3 = vector.load %arg3[%c0_4, %c0_5] : memref<1x32xf32, #tpu.memory_space<vmem>>, vector<1x32xf32>
    %cst = arith.constant dense<0.000000e+00> : vector<17xf32>
    %4 = vector.multi_reduction <add>, %1, %cst [1] : vector<17x32xf32> to vector<17xf32>
    %5 = vector.shape_cast %4 : vector<17xf32> to vector<17x1xf32>
    %cst_6 = arith.constant 3.200000e+01 : f32
    %6 = vector.broadcast %cst_6 : f32 to vector<17x1xf32>
    %7 = arith.divf %5, %6 : vector<17x1xf32>
    %8 = vector.broadcast %7 : vector<17x1xf32> to vector<17x32xf32>
    %9 = arith.subf %1, %8 : vector<17x32xf32>
    %10 = arith.mulf %9, %9 : vector<17x32xf32>
    %cst_7 = arith.constant dense<0.000000e+00> : vector<17xf32>
    %11 = vector.multi_reduction <add>, %10, %cst_7 [1] : vector<17x32xf32> to vector<17xf32>
    %12 = vector.shape_cast %11 : vector<17xf32> to vector<17x1xf32>
    %cst_8 = arith.constant 3.200000e+01 : f32
    %13 = vector.broadcast %cst_8 : f32 to vector<17x1xf32>
    %14 = arith.divf %12, %13 : vector<17x1xf32>
    %cst_9 = arith.constant 9.99999997E-7 : f32
    %15 = vector.broadcast %cst_9 : f32 to vector<17x1xf32>
    %16 = arith.addf %14, %15 : vector<17x1xf32>
    %17 = math.rsqrt %16 : vector<17x1xf32>
    %18 = vector.broadcast %17 : vector<17x1xf32> to vector<17x32xf32>
    %19 = arith.mulf %9, %18 : vector<17x32xf32>
    %20 = vector.broadcast %2 : vector<1x32xf32> to vector<17x32xf32>
    %21 = arith.mulf %19, %20 : vector<17x32xf32>
    %22 = vector.broadcast %3 : vector<1x32xf32> to vector<17x32xf32>
    %23 = arith.addf %21, %22 : vector<17x32xf32>
    %c0_10 = arith.constant 0 : index
    %c0_11 = arith.constant 0 : index
    %24 = vector.load %arg4[%c0_10, %c0_11] : memref<32x96xf32, #tpu.memory_space<vmem>>, vector<32x96xf32>
    %cst_12 = arith.constant dense<0.000000e+00> : vector<17x96xf32>
    %25 = tpu.matmul %23, %24, %cst_12 {dimension_numbers = #tpu.dot_dimension_numbers<[1], [0], [0], [1], [0, 0, 1, 1], [], []>} : vector<17x32xf32>, vector<32x96xf32>, vector<17x96xf32> -> vector<17x96xf32>
    %c0_13 = arith.constant 0 : index
    %c0_14 = arith.constant 0 : index
    %26 = vector.load %arg5[%c0_13, %c0_14] : memref<1x96xf32, #tpu.memory_space<vmem>>, vector<1x96xf32>
    %27 = vector.broadcast %26 : vector<1x96xf32> to vector<17x96xf32>
    %28 = arith.addf %25, %27 : vector<17x96xf32>
    %cst_15 = arith.constant 0.000000e+00 : f32
    %29 = vector.broadcast %cst_15 : f32 to vector<17x32xf32>
    %30 = vector.extract_strided_slice %28 {offsets = [0, 0], sizes = [17, 8], strides = [1, 1]} : vector<17x96xf32> to vector<17x8xf32>
    %31 = vector.extract_strided_slice %28 {offsets = [0, 32], sizes = [17, 8], strides = [1, 1]} : vector<17x96xf32> to vector<17x8xf32>
    %32 = vector.extract_strided_slice %28 {offsets = [0, 64], sizes = [17, 8], strides = [1, 1]} : vector<17x96xf32> to vector<17x8xf32>
    %cst_16 = arith.constant dense<0.000000e+00> : vector<17x17xf32>
    %33 = tpu.matmul %30, %31, %cst_16 {dimension_numbers = #tpu.dot_dimension_numbers<[1], [1], [0], [0], [0, 0, 1, 0], [], []>} : vector<17x8xf32>, vector<17x8xf32>, vector<17x17xf32> -> vector<17x17xf32>
    %cst_17 = arith.constant 0.353553385 : f32
    %34 = vector.broadcast %cst_17 : f32 to vector<17x17xf32>
    %35 = arith.mulf %33, %34 : vector<17x17xf32>
    %cst_18 = arith.constant dense<0xFF800000> : vector<17xf32>
    %36 = vector.multi_reduction <maximumf>, %35, %cst_18 [1] : vector<17x17xf32> to vector<17xf32>
    %37 = vector.shape_cast %36 : vector<17xf32> to vector<17x1xf32>
    %38 = vector.broadcast %37 : vector<17x1xf32> to vector<17x17xf32>
    %39 = arith.subf %35, %38 : vector<17x17xf32>
    %40 = math.exp %39 : vector<17x17xf32>
    %cst_19 = arith.constant dense<0.000000e+00> : vector<17xf32>
    %41 = vector.multi_reduction <add>, %40, %cst_19 [1] : vector<17x17xf32> to vector<17xf32>
    %42 = vector.shape_cast %41 : vector<17xf32> to vector<17x1xf32>
    %43 = tpu.reciprocal %42 {approx = true} : vector<17x1xf32> -> vector<17x1xf32>
    %44 = vector.broadcast %43 : vector<17x1xf32> to vector<17x17xf32>
    %45 = arith.mulf %40, %44 : vector<17x17xf32>
    %cst_20 = arith.constant dense<0.000000e+00> : vector<17x8xf32>
    %46 = tpu.matmul %45, %32, %cst_20 {dimension_numbers = #tpu.dot_dimension_numbers<[1], [0], [0], [1], [0, 0, 1, 1], [], []>} : vector<17x17xf32>, vector<17x8xf32>, vector<17x8xf32> -> vector<17x8xf32>
    %c0_21 = arith.constant 0 : index
    %c0_22 = arith.constant 0 : index
    %47 = vector.load %arg6[%c0_21, %c0_22] : memref<32x32xf32, #tpu.memory_space<vmem>>, vector<8x32xf32>
    %cst_23 = arith.constant dense<0.000000e+00> : vector<17x32xf32>
    %48 = tpu.matmul %46, %47, %cst_23 {dimension_numbers = #tpu.dot_dimension_numbers<[1], [0], [0], [1], [0, 0, 1, 1], [], []>} : vector<17x8xf32>, vector<8x32xf32>, vector<17x32xf32> -> vector<17x32xf32>
    %49 = arith.addf %29, %48 : vector<17x32xf32>
    %50 = vector.extract_strided_slice %28 {offsets = [0, 8], sizes = [17, 8], strides = [1, 1]} : vector<17x96xf32> to vector<17x8xf32>
    %51 = vector.extract_strided_slice %28 {offsets = [0, 40], sizes = [17, 8], strides = [1, 1]} : vector<17x96xf32> to vector<17x8xf32>
    %52 = vector.extract_strided_slice %28 {offsets = [0, 72], sizes = [17, 8], strides = [1, 1]} : vector<17x96xf32> to vector<17x8xf32>
    %cst_24 = arith.constant dense<0.000000e+00> : vector<17x17xf32>
    %53 = tpu.matmul %50, %51, %cst_24 {dimension_numbers = #tpu.dot_dimension_numbers<[1], [1], [0], [0], [0, 0, 1, 0], [], []>} : vector<17x8xf32>, vector<17x8xf32>, vector<17x17xf32> -> vector<17x17xf32>
    %cst_25 = arith.constant 0.353553385 : f32
    %54 = vector.broadcast %cst_25 : f32 to vector<17x17xf32>
    %55 = arith.mulf %53, %54 : vector<17x17xf32>
    %cst_26 = arith.constant dense<0xFF800000> : vector<17xf32>
    %56 = vector.multi_reduction <maximumf>, %55, %cst_26 [1] : vector<17x17xf32> to vector<17xf32>
    %57 = vector.shape_cast %56 : vector<17xf32> to vector<17x1xf32>
    %58 = vector.broadcast %57 : vector<17x1xf32> to vector<17x17xf32>
    %59 = arith.subf %55, %58 : vector<17x17xf32>
    %60 = math.exp %59 : vector<17x17xf32>
    %cst_27 = arith.constant dense<0.000000e+00> : vector<17xf32>
    %61 = vector.multi_reduction <add>, %60, %cst_27 [1] : vector<17x17xf32> to vector<17xf32>
    %62 = vector.shape_cast %61 : vector<17xf32> to vector<17x1xf32>
    %63 = tpu.reciprocal %62 {approx = true} : vector<17x1xf32> -> vector<17x1xf32>
    %64 = vector.broadcast %63 : vector<17x1xf32> to vector<17x17xf32>
    %65 = arith.mulf %60, %64 : vector<17x17xf32>
    %cst_28 = arith.constant dense<0.000000e+00> : vector<17x8xf32>
    %66 = tpu.matmul %65, %52, %cst_28 {dimension_numbers = #tpu.dot_dimension_numbers<[1], [0], [0], [1], [0, 0, 1, 1], [], []>} : vector<17x17xf32>, vector<17x8xf32>, vector<17x8xf32> -> vector<17x8xf32>
    %c8 = arith.constant 8 : index
    %c0_29 = arith.constant 0 : index
    %67 = vector.load %arg6[%c8, %c0_29] : memref<32x32xf32, #tpu.memory_space<vmem>>, vector<8x32xf32>
    %cst_30 = arith.constant dense<0.000000e+00> : vector<17x32xf32>
    %68 = tpu.matmul %66, %67, %cst_30 {dimension_numbers = #tpu.dot_dimension_numbers<[1], [0], [0], [1], [0, 0, 1, 1], [], []>} : vector<17x8xf32>, vector<8x32xf32>, vector<17x32xf32> -> vector<17x32xf32>
    %69 = arith.addf %49, %68 : vector<17x32xf32>
    %70 = vector.extract_strided_slice %28 {offsets = [0, 16], sizes = [17, 8], strides = [1, 1]} : vector<17x96xf32> to vector<17x8xf32>
    %71 = vector.extract_strided_slice %28 {offsets = [0, 48], sizes = [17, 8], strides = [1, 1]} : vector<17x96xf32> to vector<17x8xf32>
    %72 = vector.extract_strided_slice %28 {offsets = [0, 80], sizes = [17, 8], strides = [1, 1]} : vector<17x96xf32> to vector<17x8xf32>
    %cst_31 = arith.constant dense<0.000000e+00> : vector<17x17xf32>
    %73 = tpu.matmul %70, %71, %cst_31 {dimension_numbers = #tpu.dot_dimension_numbers<[1], [1], [0], [0], [0, 0, 1, 0], [], []>} : vector<17x8xf32>, vector<17x8xf32>, vector<17x17xf32> -> vector<17x17xf32>
    %cst_32 = arith.constant 0.353553385 : f32
    %74 = vector.broadcast %cst_32 : f32 to vector<17x17xf32>
    %75 = arith.mulf %73, %74 : vector<17x17xf32>
    %cst_33 = arith.constant dense<0xFF800000> : vector<17xf32>
    %76 = vector.multi_reduction <maximumf>, %75, %cst_33 [1] : vector<17x17xf32> to vector<17xf32>
    %77 = vector.shape_cast %76 : vector<17xf32> to vector<17x1xf32>
    %78 = vector.broadcast %77 : vector<17x1xf32> to vector<17x17xf32>
    %79 = arith.subf %75, %78 : vector<17x17xf32>
    %80 = math.exp %79 : vector<17x17xf32>
    %cst_34 = arith.constant dense<0.000000e+00> : vector<17xf32>
    %81 = vector.multi_reduction <add>, %80, %cst_34 [1] : vector<17x17xf32> to vector<17xf32>
    %82 = vector.shape_cast %81 : vector<17xf32> to vector<17x1xf32>
    %83 = tpu.reciprocal %82 {approx = true} : vector<17x1xf32> -> vector<17x1xf32>
    %84 = vector.broadcast %83 : vector<17x1xf32> to vector<17x17xf32>
    %85 = arith.mulf %80, %84 : vector<17x17xf32>
    %cst_35 = arith.constant dense<0.000000e+00> : vector<17x8xf32>
    %86 = tpu.matmul %85, %72, %cst_35 {dimension_numbers = #tpu.dot_dimension_numbers<[1], [0], [0], [1], [0, 0, 1, 1], [], []>} : vector<17x17xf32>, vector<17x8xf32>, vector<17x8xf32> -> vector<17x8xf32>
    %c16 = arith.constant 16 : index
    %c0_36 = arith.constant 0 : index
    %87 = vector.load %arg6[%c16, %c0_36] : memref<32x32xf32, #tpu.memory_space<vmem>>, vector<8x32xf32>
    %cst_37 = arith.constant dense<0.000000e+00> : vector<17x32xf32>
    %88 = tpu.matmul %86, %87, %cst_37 {dimension_numbers = #tpu.dot_dimension_numbers<[1], [0], [0], [1], [0, 0, 1, 1], [], []>} : vector<17x8xf32>, vector<8x32xf32>, vector<17x32xf32> -> vector<17x32xf32>
    %89 = arith.addf %69, %88 : vector<17x32xf32>
    %90 = vector.extract_strided_slice %28 {offsets = [0, 24], sizes = [17, 8], strides = [1, 1]} : vector<17x96xf32> to vector<17x8xf32>
    %91 = vector.extract_strided_slice %28 {offsets = [0, 56], sizes = [17, 8], strides = [1, 1]} : vector<17x96xf32> to vector<17x8xf32>
    %92 = vector.extract_strided_slice %28 {offsets = [0, 88], sizes = [17, 8], strides = [1, 1]} : vector<17x96xf32> to vector<17x8xf32>
    %cst_38 = arith.constant dense<0.000000e+00> : vector<17x17xf32>
    %93 = tpu.matmul %90, %91, %cst_38 {dimension_numbers = #tpu.dot_dimension_numbers<[1], [1], [0], [0], [0, 0, 1, 0], [], []>} : vector<17x8xf32>, vector<17x8xf32>, vector<17x17xf32> -> vector<17x17xf32>
    %cst_39 = arith.constant 0.353553385 : f32
    %94 = vector.broadcast %cst_39 : f32 to vector<17x17xf32>
    %95 = arith.mulf %93, %94 : vector<17x17xf32>
    %cst_40 = arith.constant dense<0xFF800000> : vector<17xf32>
    %96 = vector.multi_reduction <maximumf>, %95, %cst_40 [1] : vector<17x17xf32> to vector<17xf32>
    %97 = vector.shape_cast %96 : vector<17xf32> to vector<17x1xf32>
    %98 = vector.broadcast %97 : vector<17x1xf32> to vector<17x17xf32>
    %99 = arith.subf %95, %98 : vector<17x17xf32>
    %100 = math.exp %99 : vector<17x17xf32>
    %cst_41 = arith.constant dense<0.000000e+00> : vector<17xf32>
    %101 = vector.multi_reduction <add>, %100, %cst_41 [1] : vector<17x17xf32> to vector<17xf32>
    %102 = vector.shape_cast %101 : vector<17xf32> to vector<17x1xf32>
    %103 = tpu.reciprocal %102 {approx = true} : vector<17x1xf32> -> vector<17x1xf32>
    %104 = vector.broadcast %103 : vector<17x1xf32> to vector<17x17xf32>
    %105 = arith.mulf %100, %104 : vector<17x17xf32>
    %cst_42 = arith.constant dense<0.000000e+00> : vector<17x8xf32>
    %106 = tpu.matmul %105, %92, %cst_42 {dimension_numbers = #tpu.dot_dimension_numbers<[1], [0], [0], [1], [0, 0, 1, 1], [], []>} : vector<17x17xf32>, vector<17x8xf32>, vector<17x8xf32> -> vector<17x8xf32>
    %c24 = arith.constant 24 : index
    %c0_43 = arith.constant 0 : index
    %107 = vector.load %arg6[%c24, %c0_43] : memref<32x32xf32, #tpu.memory_space<vmem>>, vector<8x32xf32>
    %cst_44 = arith.constant dense<0.000000e+00> : vector<17x32xf32>
    %108 = tpu.matmul %106, %107, %cst_44 {dimension_numbers = #tpu.dot_dimension_numbers<[1], [0], [0], [1], [0, 0, 1, 1], [], []>} : vector<17x8xf32>, vector<8x32xf32>, vector<17x32xf32> -> vector<17x32xf32>
    %109 = arith.addf %89, %108 : vector<17x32xf32>
    %110 = arith.addf %1, %109 : vector<17x32xf32>
    %c0_45 = arith.constant 0 : index
    %c0_46 = arith.constant 0 : index
    %111 = vector.load %arg7[%c0_45, %c0_46] : memref<1x32xf32, #tpu.memory_space<vmem>>, vector<1x32xf32>
    %112 = vector.broadcast %111 : vector<1x32xf32> to vector<17x32xf32>
    %113 = arith.addf %110, %112 : vector<17x32xf32>
    %c0_47 = arith.constant 0 : index
    %c0_48 = arith.constant 0 : index
    %114 = vector.load %arg8[%c0_47, %c0_48] : memref<1x32xf32, #tpu.memory_space<vmem>>, vector<1x32xf32>
    %c0_49 = arith.constant 0 : index
    %c0_50 = arith.constant 0 : index
    %115 = vector.load %arg9[%c0_49, %c0_50] : memref<1x32xf32, #tpu.memory_space<vmem>>, vector<1x32xf32>
    %cst_51 = arith.constant dense<0.000000e+00> : vector<17xf32>
    %116 = vector.multi_reduction <add>, %113, %cst_51 [1] : vector<17x32xf32> to vector<17xf32>
    %117 = vector.shape_cast %116 : vector<17xf32> to vector<17x1xf32>
    %cst_52 = arith.constant 3.200000e+01 : f32
    %118 = vector.broadcast %cst_52 : f32 to vector<17x1xf32>
    %119 = arith.divf %117, %118 : vector<17x1xf32>
    %120 = vector.broadcast %119 : vector<17x1xf32> to vector<17x32xf32>
    %121 = arith.subf %113, %120 : vector<17x32xf32>
    %122 = arith.mulf %121, %121 : vector<17x32xf32>
    %cst_53 = arith.constant dense<0.000000e+00> : vector<17xf32>
    %123 = vector.multi_reduction <add>, %122, %cst_53 [1] : vector<17x32xf32> to vector<17xf32>
    %124 = vector.shape_cast %123 : vector<17xf32> to vector<17x1xf32>
    %cst_54 = arith.constant 3.200000e+01 : f32
    %125 = vector.broadcast %cst_54 : f32 to vector<17x1xf32>
    %126 = arith.divf %124, %125 : vector<17x1xf32>
    %cst_55 = arith.constant 9.99999997E-7 : f32
    %127 = vector.broadcast %cst_55 : f32 to vector<17x1xf32>
    %128 = arith.addf %126, %127 : vector<17x1xf32>
    %129 = math.rsqrt %128 : vector<17x1xf32>
    %130 = vector.broadcast %129 : vector<17x1xf32> to vector<17x32xf32>
    %131 = arith.mulf %121, %130 : vector<17x32xf32>
    %132 = vector.broadcast %114 : vector<1x32xf32> to vector<17x32xf32>
    %133 = arith.mulf %131, %132 : vector<17x32xf32>
    %134 = vector.broadcast %115 : vector<1x32xf32> to vector<17x32xf32>
    %135 = arith.addf %133, %134 : vector<17x32xf32>
    %c0_56 = arith.constant 0 : index
    %c0_57 = arith.constant 0 : index
    %136 = vector.load %arg10[%c0_56, %c0_57] : memref<32x128xf32, #tpu.memory_space<vmem>>, vector<32x128xf32>
    %cst_58 = arith.constant dense<0.000000e+00> : vector<17x128xf32>
    %137 = tpu.matmul %135, %136, %cst_58 {dimension_numbers = #tpu.dot_dimension_numbers<[1], [0], [0], [1], [0, 0, 1, 1], [], []>} : vector<17x32xf32>, vector<32x128xf32>, vector<17x128xf32> -> vector<17x128xf32>
    %c0_59 = arith.constant 0 : index
    %c0_60 = arith.constant 0 : index
    %138 = vector.load %arg11[%c0_59, %c0_60] : memref<1x128xf32, #tpu.memory_space<vmem>>, vector<1x128xf32>
    %139 = vector.broadcast %138 : vector<1x128xf32> to vector<17x128xf32>
    %140 = arith.addf %137, %139 : vector<17x128xf32>
    %cst_61 = arith.constant 5.000000e-01 : f32
    %141 = vector.broadcast %cst_61 : f32 to vector<17x128xf32>
    %142 = arith.mulf %141, %140 : vector<17x128xf32>
    %cst_62 = arith.constant 0.707106769 : f32
    %143 = vector.broadcast %cst_62 : f32 to vector<17x128xf32>
    %144 = arith.mulf %140, %143 : vector<17x128xf32>
    %cst_63 = arith.constant 0.000000e+00 : f32
    %145 = vector.broadcast %cst_63 : f32 to vector<17x128xf32>
    %146 = arith.cmpf oge, %144, %145 : vector<17x128xf32>
    %cst_64 = arith.constant 1.000000e+00 : f32
    %cst_65 = arith.constant -1.000000e+00 : f32
    %147 = vector.broadcast %cst_64 : f32 to vector<17x128xf32>
    %148 = vector.broadcast %cst_65 : f32 to vector<17x128xf32>
    %149 = arith.select %146, %147, %148 : vector<17x128xi1>, vector<17x128xf32>
    %150 = math.absf %144 : vector<17x128xf32>
    %cst_66 = arith.constant 0.327591091 : f32
    %151 = vector.broadcast %cst_66 : f32 to vector<17x128xf32>
    %152 = arith.mulf %151, %150 : vector<17x128xf32>
    %cst_67 = arith.constant 1.000000e+00 : f32
    %153 = vector.broadcast %cst_67 : f32 to vector<17x128xf32>
    %154 = arith.addf %153, %152 : vector<17x128xf32>
    %cst_68 = arith.constant 1.000000e+00 : f32
    %155 = vector.broadcast %cst_68 : f32 to vector<17x128xf32>
    %156 = arith.divf %155, %154 : vector<17x128xf32>
    %cst_69 = arith.constant 1.06140542 : f32
    %157 = vector.broadcast %cst_69 : f32 to vector<17x128xf32>
    %158 = arith.mulf %157, %156 : vector<17x128xf32>
    %cst_70 = arith.constant -1.45315206 : f32
    %159 = vector.broadcast %cst_70 : f32 to vector<17x128xf32>
    %160 = arith.addf %158, %159 : vector<17x128xf32>
    %161 = arith.mulf %160, %156 : vector<17x128xf32>
    %cst_71 = arith.constant 1.42141378 : f32
    %162 = vector.broadcast %cst_71 : f32 to vector<17x128xf32>
    %163 = arith.addf %161, %162 : vector<17x128xf32>
    %164 = arith.mulf %163, %156 : vector<17x128xf32>
    %cst_72 = arith.constant -0.284496725 : f32
    %165 = vector.broadcast %cst_72 : f32 to vector<17x128xf32>
    %166 = arith.addf %164, %165 : vector<17x128xf32>
    %167 = arith.mulf %166, %156 : vector<17x128xf32>
    %cst_73 = arith.constant 0.254829586 : f32
    %168 = vector.broadcast %cst_73 : f32 to vector<17x128xf32>
    %169 = arith.addf %167, %168 : vector<17x128xf32>
    %170 = arith.mulf %169, %156 : vector<17x128xf32>
    %cst_74 = arith.constant 0.000000e+00 : f32
    %171 = vector.broadcast %cst_74 : f32 to vector<17x128xf32>
    %172 = arith.subf %171, %150 : vector<17x128xf32>
    %173 = arith.mulf %172, %150 : vector<17x128xf32>
    %174 = math.exp %173 : vector<17x128xf32>
    %175 = arith.mulf %170, %174 : vector<17x128xf32>
    %cst_75 = arith.constant 1.000000e+00 : f32
    %176 = vector.broadcast %cst_75 : f32 to vector<17x128xf32>
    %177 = arith.subf %176, %175 : vector<17x128xf32>
    %178 = arith.mulf %149, %177 : vector<17x128xf32>
    %cst_76 = arith.constant 1.000000e+00 : f32
    %179 = vector.broadcast %cst_76 : f32 to vector<17x128xf32>
    %180 = arith.addf %179, %178 : vector<17x128xf32>
    %181 = arith.mulf %142, %180 : vector<17x128xf32>
    %c0_77 = arith.constant 0 : index
    %c0_78 = arith.constant 0 : index
    %182 = vector.load %arg12[%c0_77, %c0_78] : memref<128x32xf32, #tpu.memory_space<vmem>>, vector<128x32xf32>
    %cst_79 = arith.constant dense<0.000000e+00> : vector<17x32xf32>
    %183 = tpu.matmul %181, %182, %cst_79 {dimension_numbers = #tpu.dot_dimension_numbers<[1], [0], [0], [1], [0, 0, 1, 1], [], []>} : vector<17x128xf32>, vector<128x32xf32>, vector<17x32xf32> -> vector<17x32xf32>
    %c0_80 = arith.constant 0 : index
    %c0_81 = arith.constant 0 : index
    %184 = vector.load %arg13[%c0_80, %c0_81] : memref<1x32xf32, #tpu.memory_space<vmem>>, vector<1x32xf32>
    %185 = vector.broadcast %184 : vector<1x32xf32> to vector<17x32xf32>
    %186 = arith.addf %183, %185 : vector<17x32xf32>
    %187 = arith.addf %113, %186 : vector<17x32xf32>
    %c0_82 = arith.constant 0 : index
    %c0_83 = arith.constant 0 : index
    %c0_84 = arith.constant 0 : index
    %188 = vector.load %arg14[%c0_82, %c0_83, %c0_84] : memref<1x17x32xf32, #tpu.memory_space<vmem>>, vector<1x17x32xf32>
    %189 = vector.shape_cast %188 : vector<1x17x32xf32> to vector<17x32xf32>
    %190 = vector.shape_cast %187 : vector<17x32xf32> to vector<1x17x32xf32>
    tpu.vector_store %arg14[%c0_82, %c0_83, %c0_84], %190 {strides = array<i32>} : memref<1x17x32xf32, #tpu.memory_space<vmem>>, vector<1x17x32xf32>,
    return
  }
  func.func @transform_0(%arg0: i32) -> (i32, i32, i32) {
    %c0_i32 = arith.constant 0 : i32
    %c0_i32_0 = arith.constant 0 : i32
    %c0_i32_1 = arith.constant 0 : i32
    return %arg0, %c0_i32, %c0_i32_0 : i32, i32, i32
  }
  func.func @transform_1(%arg0: i32) -> (i32, i32) {
    %c0_i32 = arith.constant 0 : i32
    %c0_i32_0 = arith.constant 0 : i32
    %c0_i32_1 = arith.constant 0 : i32
    return %c0_i32, %c0_i32_0 : i32, i32
  }
  func.func @transform_2(%arg0: i32) -> (i32, i32) {
    %c0_i32 = arith.constant 0 : i32
    %c0_i32_0 = arith.constant 0 : i32
    %c0_i32_1 = arith.constant 0 : i32
    return %c0_i32, %c0_i32_0 : i32, i32
  }
  func.func @transform_3(%arg0: i32) -> (i32, i32) {
    %c0_i32 = arith.constant 0 : i32
    %c0_i32_0 = arith.constant 0 : i32
    %c0_i32_1 = arith.constant 0 : i32
    return %c0_i32, %c0_i32_0 : i32, i32
  }
  func.func @transform_4(%arg0: i32) -> (i32, i32) {
    %c0_i32 = arith.constant 0 : i32
    %c0_i32_0 = arith.constant 0 : i32
    %c0_i32_1 = arith.constant 0 : i32
    return %c0_i32, %c0_i32_0 : i32, i32
  }
  func.func @transform_5(%arg0: i32) -> (i32, i32) {
    %c0_i32 = arith.constant 0 : i32
    %c0_i32_0 = arith.constant 0 : i32
    %c0_i32_1 = arith.constant 0 : i32
    return %c0_i32, %c0_i32_0 : i32, i32
  }
  func.func @transform_6(%arg0: i32) -> (i32, i32) {
    %c0_i32 = arith.constant 0 : i32
    %c0_i32_0 = arith.constant 0 : i32
    %c0_i32_1 = arith.constant 0 : i32
    return %c0_i32, %c0_i32_0 : i32, i32
  }
  func.func @transform_7(%arg0: i32) -> (i32, i32) {
    %c0_i32 = arith.constant 0 : i32
    %c0_i32_0 = arith.constant 0 : i32
    %c0_i32_1 = arith.constant 0 : i32
    return %c0_i32, %c0_i32_0 : i32, i32
  }
  func.func @transform_8(%arg0: i32) -> (i32, i32) {
    %c0_i32 = arith.constant 0 : i32
    %c0_i32_0 = arith.constant 0 : i32
    %c0_i32_1 = arith.constant 0 : i32
    return %c0_i32, %c0_i32_0 : i32, i32
  }
  func.func @transform_9(%arg0: i32) -> (i32, i32) {
    %c0_i32 = arith.constant 0 : i32
    %c0_i32_0 = arith.constant 0 : i32
    %c0_i32_1 = arith.constant 0 : i32
    return %c0_i32, %c0_i32_0 : i32, i32
  }
  func.func @transform_10(%arg0: i32) -> (i32, i32) {
    %c0_i32 = arith.constant 0 : i32
    %c0_i32_0 = arith.constant 0 : i32
    %c0_i32_1 = arith.constant 0 : i32
    return %c0_i32, %c0_i32_0 : i32, i32
  }
  func.func @transform_11(%arg0: i32) -> (i32, i32) {
    %c0_i32 = arith.constant 0 : i32
    %c0_i32_0 = arith.constant 0 : i32
    %c0_i32_1 = arith.constant 0 : i32
    return %c0_i32, %c0_i32_0 : i32, i32
  }
  func.func @transform_12(%arg0: i32) -> (i32, i32) {
    %c0_i32 = arith.constant 0 : i32
    %c0_i32_0 = arith.constant 0 : i32
    %c0_i32_1 = arith.constant 0 : i32
    return %c0_i32, %c0_i32_0 : i32, i32
  }
  func.func @transform_13(%arg0: i32) -> (i32, i32, i32) {
    %c0_i32 = arith.constant 0 : i32
    %c0_i32_0 = arith.constant 0 : i32
    %c0_i32_1 = arith.constant 0 : i32
    return %arg0, %c0_i32, %c0_i32_0 : i32, i32, i32
  }
}

module attributes {stable_mosaic.version = 11 : i64} {
  func.func @_matmul_kernel(%arg0: i32, %arg1: memref<64x288xf32, #tpu.memory_space<vmem>>, %arg2: memref<288x128xf32, #tpu.memory_space<vmem>>, %arg3: memref<1x128xf32, #tpu.memory_space<vmem>>, %arg4: memref<64x128xf32, #tpu.memory_space<vmem>>) attributes {dimension_semantics = [#tpu.dimension_semantics<parallel>], iteration_bounds = array<i64: 2>, scalar_prefetch = 0 : i64, scratch_operands = 0 : i64, tpu.core_type = #tpu.core_type<tc>, window_params = [{transform_indices = @transform_0, window_bounds = array<i64: 64, 288>}, {pipeline_mode = #tpu.pipeline_mode<synchronous>, transform_indices = @transform_1, window_bounds = array<i64: 288, 128>}, {pipeline_mode = #tpu.pipeline_mode<synchronous>, transform_indices = @transform_2, window_bounds = array<i64: 1, 128>}, {transform_indices = @transform_3, window_bounds = array<i64: 64, 128>}]} {
    %c0 = arith.constant 0 : index
    %c0_0 = arith.constant 0 : index
    %0 = vector.load %arg1[%c0, %c0_0] : memref<64x288xf32, #tpu.memory_space<vmem>>, vector<64x288xf32>
    %c0_1 = arith.constant 0 : index
    %c0_2 = arith.constant 0 : index
    %1 = vector.load %arg2[%c0_1, %c0_2] : memref<288x128xf32, #tpu.memory_space<vmem>>, vector<288x128xf32>
    %cst = arith.constant dense<0.000000e+00> : vector<64x128xf32>
    %2 = tpu.matmul %0, %1, %cst {dimension_numbers = #tpu.dot_dimension_numbers<[1], [0], [0], [1], [0, 0, 1, 1], [], []>} : vector<64x288xf32>, vector<288x128xf32>, vector<64x128xf32> -> vector<64x128xf32>
    %c0_3 = arith.constant 0 : index
    %c0_4 = arith.constant 0 : index
    %3 = vector.load %arg3[%c0_3, %c0_4] : memref<1x128xf32, #tpu.memory_space<vmem>>, vector<1x128xf32>
    %4 = vector.broadcast %3 : vector<1x128xf32> to vector<64x128xf32>
    %5 = arith.addf %2, %4 : vector<64x128xf32>
    %c0_5 = arith.constant 0 : index
    %c0_6 = arith.constant 0 : index
    %6 = vector.load %arg4[%c0_5, %c0_6] : memref<64x128xf32, #tpu.memory_space<vmem>>, vector<64x128xf32>
    tpu.vector_store %arg4[%c0_5, %c0_6], %5 {strides = array<i32>} : memref<64x128xf32, #tpu.memory_space<vmem>>, vector<64x128xf32>,
    return
  }
  func.func @transform_0(%arg0: i32) -> (i32, i32) {
    %c0_i32 = arith.constant 0 : i32
    %c0_i32_0 = arith.constant 0 : i32
    return %arg0, %c0_i32 : i32, i32
  }
  func.func @transform_1(%arg0: i32) -> (i32, i32) {
    %c0_i32 = arith.constant 0 : i32
    %c0_i32_0 = arith.constant 0 : i32
    %c0_i32_1 = arith.constant 0 : i32
    return %c0_i32, %c0_i32_0 : i32, i32
  }
  func.func @transform_2(%arg0: i32) -> (i32, i32) {
    %c0_i32 = arith.constant 0 : i32
    %c0_i32_0 = arith.constant 0 : i32
    %c0_i32_1 = arith.constant 0 : i32
    return %c0_i32, %c0_i32_0 : i32, i32
  }
  func.func @transform_3(%arg0: i32) -> (i32, i32) {
    %c0_i32 = arith.constant 0 : i32
    %c0_i32_0 = arith.constant 0 : i32
    return %arg0, %c0_i32 : i32, i32
  }
}

module attributes {stable_mosaic.version = 11 : i64} {
  func.func @_matmul_kernel(%arg0: i32, %arg1: memref<64x144xf32, #tpu.memory_space<vmem>>, %arg2: memref<144x128xf32, #tpu.memory_space<vmem>>, %arg3: memref<1x128xf32, #tpu.memory_space<vmem>>, %arg4: memref<64x128xf32, #tpu.memory_space<vmem>>) attributes {dimension_semantics = [#tpu.dimension_semantics<parallel>], iteration_bounds = array<i64: 2>, scalar_prefetch = 0 : i64, scratch_operands = 0 : i64, tpu.core_type = #tpu.core_type<tc>, window_params = [{transform_indices = @transform_0, window_bounds = array<i64: 64, 144>}, {pipeline_mode = #tpu.pipeline_mode<synchronous>, transform_indices = @transform_1, window_bounds = array<i64: 144, 128>}, {pipeline_mode = #tpu.pipeline_mode<synchronous>, transform_indices = @transform_2, window_bounds = array<i64: 1, 128>}, {transform_indices = @transform_3, window_bounds = array<i64: 64, 128>}]} {
    %c0 = arith.constant 0 : index
    %c0_0 = arith.constant 0 : index
    %0 = vector.load %arg1[%c0, %c0_0] : memref<64x144xf32, #tpu.memory_space<vmem>>, vector<64x144xf32>
    %c0_1 = arith.constant 0 : index
    %c0_2 = arith.constant 0 : index
    %1 = vector.load %arg2[%c0_1, %c0_2] : memref<144x128xf32, #tpu.memory_space<vmem>>, vector<144x128xf32>
    %cst = arith.constant dense<0.000000e+00> : vector<64x128xf32>
    %2 = tpu.matmul %0, %1, %cst {dimension_numbers = #tpu.dot_dimension_numbers<[1], [0], [0], [1], [0, 0, 1, 1], [], []>} : vector<64x144xf32>, vector<144x128xf32>, vector<64x128xf32> -> vector<64x128xf32>
    %c0_3 = arith.constant 0 : index
    %c0_4 = arith.constant 0 : index
    %3 = vector.load %arg3[%c0_3, %c0_4] : memref<1x128xf32, #tpu.memory_space<vmem>>, vector<1x128xf32>
    %4 = vector.broadcast %3 : vector<1x128xf32> to vector<64x128xf32>
    %5 = arith.addf %2, %4 : vector<64x128xf32>
    %cst_5 = arith.constant 0.000000e+00 : f32
    %6 = vector.broadcast %cst_5 : f32 to vector<64x128xf32>
    %7 = arith.maximumf %5, %6 : vector<64x128xf32>
    %c0_6 = arith.constant 0 : index
    %c0_7 = arith.constant 0 : index
    %8 = vector.load %arg4[%c0_6, %c0_7] : memref<64x128xf32, #tpu.memory_space<vmem>>, vector<64x128xf32>
    tpu.vector_store %arg4[%c0_6, %c0_7], %7 {strides = array<i32>} : memref<64x128xf32, #tpu.memory_space<vmem>>, vector<64x128xf32>,
    return
  }
  func.func @transform_0(%arg0: i32) -> (i32, i32) {
    %c0_i32 = arith.constant 0 : i32
    %c0_i32_0 = arith.constant 0 : i32
    return %arg0, %c0_i32 : i32, i32
  }
  func.func @transform_1(%arg0: i32) -> (i32, i32) {
    %c0_i32 = arith.constant 0 : i32
    %c0_i32_0 = arith.constant 0 : i32
    %c0_i32_1 = arith.constant 0 : i32
    return %c0_i32, %c0_i32_0 : i32, i32
  }
  func.func @transform_2(%arg0: i32) -> (i32, i32) {
    %c0_i32 = arith.constant 0 : i32
    %c0_i32_0 = arith.constant 0 : i32
    %c0_i32_1 = arith.constant 0 : i32
    return %c0_i32, %c0_i32_0 : i32, i32
  }
  func.func @transform_3(%arg0: i32) -> (i32, i32) {
    %c0_i32 = arith.constant 0 : i32
    %c0_i32_0 = arith.constant 0 : i32
    return %arg0, %c0_i32 : i32, i32
  }
}

module attributes {stable_mosaic.version = 11 : i64} {
  func.func @_matmul_kernel(%arg0: i32, %arg1: memref<256x144xf32, #tpu.memory_space<vmem>>, %arg2: memref<144x128xf32, #tpu.memory_space<vmem>>, %arg3: memref<1x128xf32, #tpu.memory_space<vmem>>, %arg4: memref<256x128xf32, #tpu.memory_space<vmem>>) attributes {dimension_semantics = [#tpu.dimension_semantics<parallel>], iteration_bounds = array<i64: 2>, scalar_prefetch = 0 : i64, scratch_operands = 0 : i64, tpu.core_type = #tpu.core_type<tc>, window_params = [{transform_indices = @transform_0, window_bounds = array<i64: 256, 144>}, {pipeline_mode = #tpu.pipeline_mode<synchronous>, transform_indices = @transform_1, window_bounds = array<i64: 144, 128>}, {pipeline_mode = #tpu.pipeline_mode<synchronous>, transform_indices = @transform_2, window_bounds = array<i64: 1, 128>}, {transform_indices = @transform_3, window_bounds = array<i64: 256, 128>}]} {
    %c0 = arith.constant 0 : index
    %c0_0 = arith.constant 0 : index
    %0 = vector.load %arg1[%c0, %c0_0] : memref<256x144xf32, #tpu.memory_space<vmem>>, vector<256x144xf32>
    %c0_1 = arith.constant 0 : index
    %c0_2 = arith.constant 0 : index
    %1 = vector.load %arg2[%c0_1, %c0_2] : memref<144x128xf32, #tpu.memory_space<vmem>>, vector<144x128xf32>
    %cst = arith.constant dense<0.000000e+00> : vector<256x128xf32>
    %2 = tpu.matmul %0, %1, %cst {dimension_numbers = #tpu.dot_dimension_numbers<[1], [0], [0], [1], [0, 0, 1, 1], [], []>} : vector<256x144xf32>, vector<144x128xf32>, vector<256x128xf32> -> vector<256x128xf32>
    %c0_3 = arith.constant 0 : index
    %c0_4 = arith.constant 0 : index
    %3 = vector.load %arg3[%c0_3, %c0_4] : memref<1x128xf32, #tpu.memory_space<vmem>>, vector<1x128xf32>
    %4 = vector.broadcast %3 : vector<1x128xf32> to vector<256x128xf32>
    %5 = arith.addf %2, %4 : vector<256x128xf32>
    %c0_5 = arith.constant 0 : index
    %c0_6 = arith.constant 0 : index
    %6 = vector.load %arg4[%c0_5, %c0_6] : memref<256x128xf32, #tpu.memory_space<vmem>>, vector<256x128xf32>
    tpu.vector_store %arg4[%c0_5, %c0_6], %5 {strides = array<i32>} : memref<256x128xf32, #tpu.memory_space<vmem>>, vector<256x128xf32>,
    return
  }
  func.func @transform_0(%arg0: i32) -> (i32, i32) {
    %c0_i32 = arith.constant 0 : i32
    %c0_i32_0 = arith.constant 0 : i32
    return %arg0, %c0_i32 : i32, i32
  }
  func.func @transform_1(%arg0: i32) -> (i32, i32) {
    %c0_i32 = arith.constant 0 : i32
    %c0_i32_0 = arith.constant 0 : i32
    %c0_i32_1 = arith.constant 0 : i32
    return %c0_i32, %c0_i32_0 : i32, i32
  }
  func.func @transform_2(%arg0: i32) -> (i32, i32) {
    %c0_i32 = arith.constant 0 : i32
    %c0_i32_0 = arith.constant 0 : i32
    %c0_i32_1 = arith.constant 0 : i32
    return %c0_i32, %c0_i32_0 : i32, i32
  }
  func.func @transform_3(%arg0: i32) -> (i32, i32) {
    %c0_i32 = arith.constant 0 : i32
    %c0_i32_0 = arith.constant 0 : i32
    return %arg0, %c0_i32 : i32, i32
  }
}

module attributes {stable_mosaic.version = 11 : i64} {
  func.func @_matmul_kernel(%arg0: i32, %arg1: memref<256x72xf32, #tpu.memory_space<vmem>>, %arg2: memref<72x128xf32, #tpu.memory_space<vmem>>, %arg3: memref<1x128xf32, #tpu.memory_space<vmem>>, %arg4: memref<256x128xf32, #tpu.memory_space<vmem>>) attributes {dimension_semantics = [#tpu.dimension_semantics<parallel>], iteration_bounds = array<i64: 2>, scalar_prefetch = 0 : i64, scratch_operands = 0 : i64, tpu.core_type = #tpu.core_type<tc>, window_params = [{transform_indices = @transform_0, window_bounds = array<i64: 256, 72>}, {pipeline_mode = #tpu.pipeline_mode<synchronous>, transform_indices = @transform_1, window_bounds = array<i64: 72, 128>}, {pipeline_mode = #tpu.pipeline_mode<synchronous>, transform_indices = @transform_2, window_bounds = array<i64: 1, 128>}, {transform_indices = @transform_3, window_bounds = array<i64: 256, 128>}]} {
    %c0 = arith.constant 0 : index
    %c0_0 = arith.constant 0 : index
    %0 = vector.load %arg1[%c0, %c0_0] : memref<256x72xf32, #tpu.memory_space<vmem>>, vector<256x72xf32>
    %c0_1 = arith.constant 0 : index
    %c0_2 = arith.constant 0 : index
    %1 = vector.load %arg2[%c0_1, %c0_2] : memref<72x128xf32, #tpu.memory_space<vmem>>, vector<72x128xf32>
    %cst = arith.constant dense<0.000000e+00> : vector<256x128xf32>
    %2 = tpu.matmul %0, %1, %cst {dimension_numbers = #tpu.dot_dimension_numbers<[1], [0], [0], [1], [0, 0, 1, 1], [], []>} : vector<256x72xf32>, vector<72x128xf32>, vector<256x128xf32> -> vector<256x128xf32>
    %c0_3 = arith.constant 0 : index
    %c0_4 = arith.constant 0 : index
    %3 = vector.load %arg3[%c0_3, %c0_4] : memref<1x128xf32, #tpu.memory_space<vmem>>, vector<1x128xf32>
    %4 = vector.broadcast %3 : vector<1x128xf32> to vector<256x128xf32>
    %5 = arith.addf %2, %4 : vector<256x128xf32>
    %cst_5 = arith.constant 0.000000e+00 : f32
    %6 = vector.broadcast %cst_5 : f32 to vector<256x128xf32>
    %7 = arith.maximumf %5, %6 : vector<256x128xf32>
    %c0_6 = arith.constant 0 : index
    %c0_7 = arith.constant 0 : index
    %8 = vector.load %arg4[%c0_6, %c0_7] : memref<256x128xf32, #tpu.memory_space<vmem>>, vector<256x128xf32>
    tpu.vector_store %arg4[%c0_6, %c0_7], %7 {strides = array<i32>} : memref<256x128xf32, #tpu.memory_space<vmem>>, vector<256x128xf32>,
    return
  }
  func.func @transform_0(%arg0: i32) -> (i32, i32) {
    %c0_i32 = arith.constant 0 : i32
    %c0_i32_0 = arith.constant 0 : i32
    return %arg0, %c0_i32 : i32, i32
  }
  func.func @transform_1(%arg0: i32) -> (i32, i32) {
    %c0_i32 = arith.constant 0 : i32
    %c0_i32_0 = arith.constant 0 : i32
    %c0_i32_1 = arith.constant 0 : i32
    return %c0_i32, %c0_i32_0 : i32, i32
  }
  func.func @transform_2(%arg0: i32) -> (i32, i32) {
    %c0_i32 = arith.constant 0 : i32
    %c0_i32_0 = arith.constant 0 : i32
    %c0_i32_1 = arith.constant 0 : i32
    return %c0_i32, %c0_i32_0 : i32, i32
  }
  func.func @transform_3(%arg0: i32) -> (i32, i32) {
    %c0_i32 = arith.constant 0 : i32
    %c0_i32_0 = arith.constant 0 : i32
    return %arg0, %c0_i32 : i32, i32
  }
}

module attributes {stable_mosaic.version = 11 : i64} {
  func.func @_matmul_kernel(%arg0: i32, %arg1: memref<1024x72xf32, #tpu.memory_space<vmem>>, %arg2: memref<72x128xf32, #tpu.memory_space<vmem>>, %arg3: memref<1x128xf32, #tpu.memory_space<vmem>>, %arg4: memref<1024x128xf32, #tpu.memory_space<vmem>>) attributes {dimension_semantics = [#tpu.dimension_semantics<parallel>], iteration_bounds = array<i64: 2>, scalar_prefetch = 0 : i64, scratch_operands = 0 : i64, tpu.core_type = #tpu.core_type<tc>, window_params = [{transform_indices = @transform_0, window_bounds = array<i64: 1024, 72>}, {pipeline_mode = #tpu.pipeline_mode<synchronous>, transform_indices = @transform_1, window_bounds = array<i64: 72, 128>}, {pipeline_mode = #tpu.pipeline_mode<synchronous>, transform_indices = @transform_2, window_bounds = array<i64: 1, 128>}, {transform_indices = @transform_3, window_bounds = array<i64: 1024, 128>}]} {
    %c0 = arith.constant 0 : index
    %c0_0 = arith.constant 0 : index
    %0 = vector.load %arg1[%c0, %c0_0] : memref<1024x72xf32, #tpu.memory_space<vmem>>, vector<1024x72xf32>
    %c0_1 = arith.constant 0 : index
    %c0_2 = arith.constant 0 : index
    %1 = vector.load %arg2[%c0_1, %c0_2] : memref<72x128xf32, #tpu.memory_space<vmem>>, vector<72x128xf32>
    %cst = arith.constant dense<0.000000e+00> : vector<1024x128xf32>
    %2 = tpu.matmul %0, %1, %cst {dimension_numbers = #tpu.dot_dimension_numbers<[1], [0], [0], [1], [0, 0, 1, 1], [], []>} : vector<1024x72xf32>, vector<72x128xf32>, vector<1024x128xf32> -> vector<1024x128xf32>
    %c0_3 = arith.constant 0 : index
    %c0_4 = arith.constant 0 : index
    %3 = vector.load %arg3[%c0_3, %c0_4] : memref<1x128xf32, #tpu.memory_space<vmem>>, vector<1x128xf32>
    %4 = vector.broadcast %3 : vector<1x128xf32> to vector<1024x128xf32>
    %5 = arith.addf %2, %4 : vector<1024x128xf32>
    %c0_5 = arith.constant 0 : index
    %c0_6 = arith.constant 0 : index
    %6 = vector.load %arg4[%c0_5, %c0_6] : memref<1024x128xf32, #tpu.memory_space<vmem>>, vector<1024x128xf32>
    tpu.vector_store %arg4[%c0_5, %c0_6], %5 {strides = array<i32>} : memref<1024x128xf32, #tpu.memory_space<vmem>>, vector<1024x128xf32>,
    return
  }
  func.func @transform_0(%arg0: i32) -> (i32, i32) {
    %c0_i32 = arith.constant 0 : i32
    %c0_i32_0 = arith.constant 0 : i32
    return %arg0, %c0_i32 : i32, i32
  }
  func.func @transform_1(%arg0: i32) -> (i32, i32) {
    %c0_i32 = arith.constant 0 : i32
    %c0_i32_0 = arith.constant 0 : i32
    %c0_i32_1 = arith.constant 0 : i32
    return %c0_i32, %c0_i32_0 : i32, i32
  }
  func.func @transform_2(%arg0: i32) -> (i32, i32) {
    %c0_i32 = arith.constant 0 : i32
    %c0_i32_0 = arith.constant 0 : i32
    %c0_i32_1 = arith.constant 0 : i32
    return %c0_i32, %c0_i32_0 : i32, i32
  }
  func.func @transform_3(%arg0: i32) -> (i32, i32) {
    %c0_i32 = arith.constant 0 : i32
    %c0_i32_0 = arith.constant 0 : i32
    return %arg0, %c0_i32 : i32, i32
  }
}

module attributes {stable_mosaic.version = 11 : i64} {
  func.func @_matmul_kernel(%arg0: i32, %arg1: memref<1024x36xf32, #tpu.memory_space<vmem>>, %arg2: memref<36x128xf32, #tpu.memory_space<vmem>>, %arg3: memref<1x128xf32, #tpu.memory_space<vmem>>, %arg4: memref<1024x128xf32, #tpu.memory_space<vmem>>) attributes {dimension_semantics = [#tpu.dimension_semantics<parallel>], iteration_bounds = array<i64: 2>, scalar_prefetch = 0 : i64, scratch_operands = 0 : i64, tpu.core_type = #tpu.core_type<tc>, window_params = [{transform_indices = @transform_0, window_bounds = array<i64: 1024, 36>}, {pipeline_mode = #tpu.pipeline_mode<synchronous>, transform_indices = @transform_1, window_bounds = array<i64: 36, 128>}, {pipeline_mode = #tpu.pipeline_mode<synchronous>, transform_indices = @transform_2, window_bounds = array<i64: 1, 128>}, {transform_indices = @transform_3, window_bounds = array<i64: 1024, 128>}]} {
    %c0 = arith.constant 0 : index
    %c0_0 = arith.constant 0 : index
    %0 = vector.load %arg1[%c0, %c0_0] : memref<1024x36xf32, #tpu.memory_space<vmem>>, vector<1024x36xf32>
    %c0_1 = arith.constant 0 : index
    %c0_2 = arith.constant 0 : index
    %1 = vector.load %arg2[%c0_1, %c0_2] : memref<36x128xf32, #tpu.memory_space<vmem>>, vector<36x128xf32>
    %cst = arith.constant dense<0.000000e+00> : vector<1024x128xf32>
    %2 = tpu.matmul %0, %1, %cst {dimension_numbers = #tpu.dot_dimension_numbers<[1], [0], [0], [1], [0, 0, 1, 1], [], []>} : vector<1024x36xf32>, vector<36x128xf32>, vector<1024x128xf32> -> vector<1024x128xf32>
    %c0_3 = arith.constant 0 : index
    %c0_4 = arith.constant 0 : index
    %3 = vector.load %arg3[%c0_3, %c0_4] : memref<1x128xf32, #tpu.memory_space<vmem>>, vector<1x128xf32>
    %4 = vector.broadcast %3 : vector<1x128xf32> to vector<1024x128xf32>
    %5 = arith.addf %2, %4 : vector<1024x128xf32>
    %cst_5 = arith.constant 0.000000e+00 : f32
    %6 = vector.broadcast %cst_5 : f32 to vector<1024x128xf32>
    %7 = arith.maximumf %5, %6 : vector<1024x128xf32>
    %c0_6 = arith.constant 0 : index
    %c0_7 = arith.constant 0 : index
    %8 = vector.load %arg4[%c0_6, %c0_7] : memref<1024x128xf32, #tpu.memory_space<vmem>>, vector<1024x128xf32>
    tpu.vector_store %arg4[%c0_6, %c0_7], %7 {strides = array<i32>} : memref<1024x128xf32, #tpu.memory_space<vmem>>, vector<1024x128xf32>,
    return
  }
  func.func @transform_0(%arg0: i32) -> (i32, i32) {
    %c0_i32 = arith.constant 0 : i32
    %c0_i32_0 = arith.constant 0 : i32
    return %arg0, %c0_i32 : i32, i32
  }
  func.func @transform_1(%arg0: i32) -> (i32, i32) {
    %c0_i32 = arith.constant 0 : i32
    %c0_i32_0 = arith.constant 0 : i32
    %c0_i32_1 = arith.constant 0 : i32
    return %c0_i32, %c0_i32_0 : i32, i32
  }
  func.func @transform_2(%arg0: i32) -> (i32, i32) {
    %c0_i32 = arith.constant 0 : i32
    %c0_i32_0 = arith.constant 0 : i32
    %c0_i32_1 = arith.constant 0 : i32
    return %c0_i32, %c0_i32_0 : i32, i32
  }
  func.func @transform_3(%arg0: i32) -> (i32, i32) {
    %c0_i32 = arith.constant 0 : i32
    %c0_i32_0 = arith.constant 0 : i32
    return %arg0, %c0_i32 : i32, i32
  }
}

module attributes {stable_mosaic.version = 11 : i64} {
  func.func @_matmul_kernel(%arg0: i32, %arg1: memref<1024x36xf32, #tpu.memory_space<vmem>>, %arg2: memref<36x128xf32, #tpu.memory_space<vmem>>, %arg3: memref<1x128xf32, #tpu.memory_space<vmem>>, %arg4: memref<1024x128xf32, #tpu.memory_space<vmem>>) attributes {dimension_semantics = [#tpu.dimension_semantics<parallel>], iteration_bounds = array<i64: 8>, scalar_prefetch = 0 : i64, scratch_operands = 0 : i64, tpu.core_type = #tpu.core_type<tc>, window_params = [{transform_indices = @transform_0, window_bounds = array<i64: 1024, 36>}, {pipeline_mode = #tpu.pipeline_mode<synchronous>, transform_indices = @transform_1, window_bounds = array<i64: 36, 128>}, {pipeline_mode = #tpu.pipeline_mode<synchronous>, transform_indices = @transform_2, window_bounds = array<i64: 1, 128>}, {transform_indices = @transform_3, window_bounds = array<i64: 1024, 128>}]} {
    %c0 = arith.constant 0 : index
    %c0_0 = arith.constant 0 : index
    %0 = vector.load %arg1[%c0, %c0_0] : memref<1024x36xf32, #tpu.memory_space<vmem>>, vector<1024x36xf32>
    %c0_1 = arith.constant 0 : index
    %c0_2 = arith.constant 0 : index
    %1 = vector.load %arg2[%c0_1, %c0_2] : memref<36x128xf32, #tpu.memory_space<vmem>>, vector<36x128xf32>
    %cst = arith.constant dense<0.000000e+00> : vector<1024x128xf32>
    %2 = tpu.matmul %0, %1, %cst {dimension_numbers = #tpu.dot_dimension_numbers<[1], [0], [0], [1], [0, 0, 1, 1], [], []>} : vector<1024x36xf32>, vector<36x128xf32>, vector<1024x128xf32> -> vector<1024x128xf32>
    %c0_3 = arith.constant 0 : index
    %c0_4 = arith.constant 0 : index
    %3 = vector.load %arg3[%c0_3, %c0_4] : memref<1x128xf32, #tpu.memory_space<vmem>>, vector<1x128xf32>
    %4 = vector.broadcast %3 : vector<1x128xf32> to vector<1024x128xf32>
    %5 = arith.addf %2, %4 : vector<1024x128xf32>
    %c0_5 = arith.constant 0 : index
    %c0_6 = arith.constant 0 : index
    %6 = vector.load %arg4[%c0_5, %c0_6] : memref<1024x128xf32, #tpu.memory_space<vmem>>, vector<1024x128xf32>
    tpu.vector_store %arg4[%c0_5, %c0_6], %5 {strides = array<i32>} : memref<1024x128xf32, #tpu.memory_space<vmem>>, vector<1024x128xf32>,
    return
  }
  func.func @transform_0(%arg0: i32) -> (i32, i32) {
    %c0_i32 = arith.constant 0 : i32
    %c0_i32_0 = arith.constant 0 : i32
    return %arg0, %c0_i32 : i32, i32
  }
  func.func @transform_1(%arg0: i32) -> (i32, i32) {
    %c0_i32 = arith.constant 0 : i32
    %c0_i32_0 = arith.constant 0 : i32
    %c0_i32_1 = arith.constant 0 : i32
    return %c0_i32, %c0_i32_0 : i32, i32
  }
  func.func @transform_2(%arg0: i32) -> (i32, i32) {
    %c0_i32 = arith.constant 0 : i32
    %c0_i32_0 = arith.constant 0 : i32
    %c0_i32_1 = arith.constant 0 : i32
    return %c0_i32, %c0_i32_0 : i32, i32
  }
  func.func @transform_3(%arg0: i32) -> (i32, i32) {
    %c0_i32 = arith.constant 0 : i32
    %c0_i32_0 = arith.constant 0 : i32
    return %arg0, %c0_i32 : i32, i32
  }
}

module attributes {stable_mosaic.version = 11 : i64} {
  func.func @_matmul_kernel(%arg0: i32, %arg1: memref<1024x18xf32, #tpu.memory_space<vmem>>, %arg2: memref<18x128xf32, #tpu.memory_space<vmem>>, %arg3: memref<1x128xf32, #tpu.memory_space<vmem>>, %arg4: memref<1024x128xf32, #tpu.memory_space<vmem>>) attributes {dimension_semantics = [#tpu.dimension_semantics<parallel>], iteration_bounds = array<i64: 8>, scalar_prefetch = 0 : i64, scratch_operands = 0 : i64, tpu.core_type = #tpu.core_type<tc>, window_params = [{transform_indices = @transform_0, window_bounds = array<i64: 1024, 18>}, {pipeline_mode = #tpu.pipeline_mode<synchronous>, transform_indices = @transform_1, window_bounds = array<i64: 18, 128>}, {pipeline_mode = #tpu.pipeline_mode<synchronous>, transform_indices = @transform_2, window_bounds = array<i64: 1, 128>}, {transform_indices = @transform_3, window_bounds = array<i64: 1024, 128>}]} {
    %c0 = arith.constant 0 : index
    %c0_0 = arith.constant 0 : index
    %0 = vector.load %arg1[%c0, %c0_0] : memref<1024x18xf32, #tpu.memory_space<vmem>>, vector<1024x18xf32>
    %c0_1 = arith.constant 0 : index
    %c0_2 = arith.constant 0 : index
    %1 = vector.load %arg2[%c0_1, %c0_2] : memref<18x128xf32, #tpu.memory_space<vmem>>, vector<18x128xf32>
    %cst = arith.constant dense<0.000000e+00> : vector<1024x128xf32>
    %2 = tpu.matmul %0, %1, %cst {dimension_numbers = #tpu.dot_dimension_numbers<[1], [0], [0], [1], [0, 0, 1, 1], [], []>} : vector<1024x18xf32>, vector<18x128xf32>, vector<1024x128xf32> -> vector<1024x128xf32>
    %c0_3 = arith.constant 0 : index
    %c0_4 = arith.constant 0 : index
    %3 = vector.load %arg3[%c0_3, %c0_4] : memref<1x128xf32, #tpu.memory_space<vmem>>, vector<1x128xf32>
    %4 = vector.broadcast %3 : vector<1x128xf32> to vector<1024x128xf32>
    %5 = arith.addf %2, %4 : vector<1024x128xf32>
    %cst_5 = arith.constant 0.000000e+00 : f32
    %6 = vector.broadcast %cst_5 : f32 to vector<1024x128xf32>
    %7 = arith.maximumf %5, %6 : vector<1024x128xf32>
    %c0_6 = arith.constant 0 : index
    %c0_7 = arith.constant 0 : index
    %8 = vector.load %arg4[%c0_6, %c0_7] : memref<1024x128xf32, #tpu.memory_space<vmem>>, vector<1024x128xf32>
    tpu.vector_store %arg4[%c0_6, %c0_7], %7 {strides = array<i32>} : memref<1024x128xf32, #tpu.memory_space<vmem>>, vector<1024x128xf32>,
    return
  }
  func.func @transform_0(%arg0: i32) -> (i32, i32) {
    %c0_i32 = arith.constant 0 : i32
    %c0_i32_0 = arith.constant 0 : i32
    return %arg0, %c0_i32 : i32, i32
  }
  func.func @transform_1(%arg0: i32) -> (i32, i32) {
    %c0_i32 = arith.constant 0 : i32
    %c0_i32_0 = arith.constant 0 : i32
    %c0_i32_1 = arith.constant 0 : i32
    return %c0_i32, %c0_i32_0 : i32, i32
  }
  func.func @transform_2(%arg0: i32) -> (i32, i32) {
    %c0_i32 = arith.constant 0 : i32
    %c0_i32_0 = arith.constant 0 : i32
    %c0_i32_1 = arith.constant 0 : i32
    return %c0_i32, %c0_i32_0 : i32, i32
  }
  func.func @transform_3(%arg0: i32) -> (i32, i32) {
    %c0_i32 = arith.constant 0 : i32
    %c0_i32_0 = arith.constant 0 : i32
    return %arg0, %c0_i32 : i32, i32
  }
}

module attributes {stable_mosaic.version = 11 : i64} {
  func.func @_matmul_kernel(%arg0: i32, %arg1: memref<1024x2xf32, #tpu.memory_space<vmem>>, %arg2: memref<2x128xf32, #tpu.memory_space<vmem>>, %arg3: memref<1x128xf32, #tpu.memory_space<vmem>>, %arg4: memref<1024x128xf32, #tpu.memory_space<vmem>>) attributes {dimension_semantics = [#tpu.dimension_semantics<parallel>], iteration_bounds = array<i64: 8>, scalar_prefetch = 0 : i64, scratch_operands = 0 : i64, tpu.core_type = #tpu.core_type<tc>, window_params = [{transform_indices = @transform_0, window_bounds = array<i64: 1024, 2>}, {pipeline_mode = #tpu.pipeline_mode<synchronous>, transform_indices = @transform_1, window_bounds = array<i64: 2, 128>}, {pipeline_mode = #tpu.pipeline_mode<synchronous>, transform_indices = @transform_2, window_bounds = array<i64: 1, 128>}, {transform_indices = @transform_3, window_bounds = array<i64: 1024, 128>}]} {
    %c0 = arith.constant 0 : index
    %c0_0 = arith.constant 0 : index
    %0 = vector.load %arg1[%c0, %c0_0] : memref<1024x2xf32, #tpu.memory_space<vmem>>, vector<1024x2xf32>
    %c0_1 = arith.constant 0 : index
    %c0_2 = arith.constant 0 : index
    %1 = vector.load %arg2[%c0_1, %c0_2] : memref<2x128xf32, #tpu.memory_space<vmem>>, vector<2x128xf32>
    %cst = arith.constant dense<0.000000e+00> : vector<1024x128xf32>
    %2 = tpu.matmul %0, %1, %cst {dimension_numbers = #tpu.dot_dimension_numbers<[1], [0], [0], [1], [0, 0, 1, 1], [], []>} : vector<1024x2xf32>, vector<2x128xf32>, vector<1024x128xf32> -> vector<1024x128xf32>
    %c0_3 = arith.constant 0 : index
    %c0_4 = arith.constant 0 : index
    %3 = vector.load %arg3[%c0_3, %c0_4] : memref<1x128xf32, #tpu.memory_space<vmem>>, vector<1x128xf32>
    %4 = vector.broadcast %3 : vector<1x128xf32> to vector<1024x128xf32>
    %5 = arith.addf %2, %4 : vector<1024x128xf32>
    %c0_5 = arith.constant 0 : index
    %c0_6 = arith.constant 0 : index
    %6 = vector.load %arg4[%c0_5, %c0_6] : memref<1024x128xf32, #tpu.memory_space<vmem>>, vector<1024x128xf32>
    tpu.vector_store %arg4[%c0_5, %c0_6], %5 {strides = array<i32>} : memref<1024x128xf32, #tpu.memory_space<vmem>>, vector<1024x128xf32>,
    return
  }
  func.func @transform_0(%arg0: i32) -> (i32, i32) {
    %c0_i32 = arith.constant 0 : i32
    %c0_i32_0 = arith.constant 0 : i32
    return %arg0, %c0_i32 : i32, i32
  }
  func.func @transform_1(%arg0: i32) -> (i32, i32) {
    %c0_i32 = arith.constant 0 : i32
    %c0_i32_0 = arith.constant 0 : i32
    %c0_i32_1 = arith.constant 0 : i32
    return %c0_i32, %c0_i32_0 : i32, i32
  }
  func.func @transform_2(%arg0: i32) -> (i32, i32) {
    %c0_i32 = arith.constant 0 : i32
    %c0_i32_0 = arith.constant 0 : i32
    %c0_i32_1 = arith.constant 0 : i32
    return %c0_i32, %c0_i32_0 : i32, i32
  }
  func.func @transform_3(%arg0: i32) -> (i32, i32) {
    %c0_i32 = arith.constant 0 : i32
    %c0_i32_0 = arith.constant 0 : i32
    return %arg0, %c0_i32 : i32, i32
  }
}

</mosaic_0001>

<bundles_post_ra>
// kernel: prithvi_seg_forward.16
= control target key start
LH: loop header
LB: loop body
LE: loop exit
PB: predicated region body
PF: predicated region fallthrough
CT: control target
= control target key end

     0   :  { %8 = vsyncpa [#allocation3], 0  ;;  %s597_s0 = inlined_call_operand.vmem [shape: f32[2,17,32], index: 0, kind: input, shape index: {}]   ;;  %s598_s1 = inlined_call_operand.hbm [shape: f32[1,32], index: 1, kind: input, shape index: {}]   ;;  %s599_s2 = inlined_call_operand.hbm [shape: f32[1,32], index: 2, kind: input, shape index: {}]   ;;  %s600_s3 = inlined_call_operand.vmem [shape: f32[2,17,32], index: 3, kind: output, shape index: {}]  }
   0x1   :  { %9 = vsyncpa [#allocation5], 0  ;;  %s487_s12 = smov 0  }
   0x2 LB: > { %s493_s13 = sadd.s32 4294967295, %s463_s12   ;;  %p344_p0 = scmp.ge.s32.totalorder %s463_s12, 1  ;;  %s463_s12 = sphi %s487_s12, %s15_s12  }
   0x3   : > { %p114_p1 = scmp.lt.s32.totalorder %s463_s12, 3  ;;  %p601_p2 = scmp.eq.s32.totalorder %s493_s13, 0 }
   0x4   : > { %s465_s15 = smov [#allocation2]   ;;  %s466_s17 = smov [#allocation4]  }
   0x5   : > { %p498_p3 = pnand %p344_p0, %p114_p1  ;;  %s127_s16 = sshll.u32 %s465_s15, 4  ;;  %s128_s16 = int_to_ptr.vmem [resolvable:$true] %s127_s16 }
   0x6   : > { %s138_s18 = sshll.u32 %s466_s17, 4  ;;  %s393_s22 = scalar_lea.hbm %s598_s1, 16  ;;  %s510_s18 = int_to_ptr.vmem [resolvable:$true] %s138_s18 }
   0x7   : > { %s603_s14 = scalar_select %p498_p3, 1, 0 }
   0x8   : > { %p366_p4 = pneg %p498_p3  ;;  %p394_p6 = scmp.ne.s32.totalorder %s598_s1, %s393_s22 }
   0x9   : > { %p400_p10 = scmp.lt.u32.totalorder %s393_s22, %s598_s1 }
   0xa   : > { %p506_p5 = pnand %p601_p2, %p366_p4 }
   0xc   : > { %p395_p7 = pneg %p506_p5 }
   0xe   : > { %p396_p8 = pnand %p395_p7, %p394_p6 }
  0x10   : > { %p397_p9 = pneg %p396_p8 }
  0x12   : > { %p402_p11 = pnand %p400_p10, %p397_p9 }
  0x14   : > { %405 = shalt.err (!%p402_p11)
}
  0x15   : > { %s406_s27 = scalar_lea.vmem %s128_s16, 16  ;;  %s413_s28 = scalar_lea.vmem %s128_s16, 32 }
  0x16   : > { %p407_p12 = scmp.ne.s32.totalorder %s128_s16, %s406_s27  ;;  %p414_p1 = scmp.lt.s32.totalorder %s128_s16, %s128_s16 }
  0x17   : > { %p415_p4 = scmp.lt.s32.totalorder %s413_s28, %s406_s27 }
  0x18   : > { %p409_p13 = pnand %p407_p12, %p395_p7 }
  0x19   : > { %p416_p2 = por %p415_p4, %p414_p1 }
  0x1a   : > { %p410_p0 = pneg %p409_p13 }
  0x1c   : > { %p417_p3 = pnand %p416_p2, %p410_p0 }
  0x1e   : > { %420 = shalt.err (!%p417_p3)
}
  0x1f   : > { %369 = dma.hbm_to_vmem [thread:$0]  (!%p506_p5), %s598_s1, 16, %s128_s16, [#allocation3]  }
  0x20   : > { %s421_s6 = scalar_lea.hbm %s599_s2, 16 }
  0x21   : > { %p422_p6 = scmp.ne.s32.totalorder %s599_s2, %s421_s6  ;;  %p428_p3 = scmp.lt.u32.totalorder %s421_s6, %s599_s2 }
  0x23   : > { %p424_p8 = pnand %p422_p6, %p395_p7 }
  0x25   : > { %p425_p2 = pneg %p424_p8 }
  0x27   : > { %p430_p9 = pnand %p428_p3, %p425_p2 }
  0x29   : > { %433 = shalt.err (!%p430_p9)
}
  0x2a   : > { %s434_s11 = scalar_lea.vmem %s510_s18, 16  ;;  %s441_s15 = scalar_lea.vmem %s510_s18, 32 }
  0x2b   : > { %p435_p10 = scmp.ne.s32.totalorder %s510_s18, %s434_s11  ;;  %p442_p13 = scmp.lt.s32.totalorder %s510_s18, %s510_s18 }
  0x2c   : > { %p443_p0 = scmp.lt.s32.totalorder %s441_s15, %s434_s11 }
  0x2d   : > { %p437_p11 = pnand %p435_p10, %p395_p7 }
  0x2e   : > { %p444_p1 = por %p443_p0, %p442_p13 }
  0x2f   : > { %p438_p12 = pneg %p437_p11 }
  0x31   : > { %p445_p4 = pnand %p444_p1, %p438_p12 }
  0x33   : > { %448 = shalt.err (!%p445_p4)
}
  0x34   : > { %372 = dma.hbm_to_vmem [thread:$0]  (!%p506_p5), %s599_s2, 16, %s510_s18, [#allocation5]  }
  0x35   : > { %p605_p6 = scmp.ne.s32.totalorder %s603_s14, 0 }
  0x36   : > { %p606_p7 = scmp.eq.s32.totalorder (!%p605_p6), %s493_s13, 0 }
  0x37   : > { %159 = sbr.rel (%p605_p6) target bundleno = 392 (0x188), region = 32 }
  0x3e   : > { %454 = dma.done.wait (%p606_p7), [#allocation3], 16   ;;  %p607_p8 = pmov %p606_p7 }
  0x3f   : > { %p608_p2 = pmov %p606_p7 }
  0x40   : > { %456 = vsyncadd (%p607_p8), [#allocation3], 4294967280 }
  0x41   : > { %458 = dma.done.wait (%p608_p2), [#allocation5], 16   ;;  %p609_p3 = pmov %p608_p2 }
  0x42   : > { %p187_p9 = scmp.lt.s32.totalorder %s493_s13, 1  ;;  %vm202_vm0 = vcmask 261120   ;;  %vm209_vm1 = vcmask 253952   ;;  %v353_v31 = vld [vmem:[#allocation2] ss:$0 sm:$0xff] }
  0x43   : > { %460 = vsyncadd (%p609_p3), [#allocation5], 4294967280  ;;  %v354_v33 = vld [vmem:[#allocation4] ss:$0 sm:$0xff] }
  0x44   : > { %s611_s13 = smov (!%p187_p9, %s493_s13), 1 }
  0x45   : > { %s357_s14 = smul.u32 24, %s611_s13 }
  0x47   : > { %s191_s20 = scalar_lea.vmem %s597_s0, %s357_s14  ;;  %s196_s23 = scalar_lea.vmem %s600_s3, %s357_s14 }
  0x48   : > { %v197_v0 = vld [vmem:[%s191_s20] sm:$0xff]  ;;  %v199_v1 = vld [vmem:[%s191_s20 + $0x10] sm:$0x1]  ;;  %v198_v2 = vld [vmem:[%s191_s20 + $0x8] sm:$0xff] }
  0x49   : > { %v203_v3 = vsel %vm202_vm0, %v197_v0, 0.0  ;;  %v210_v4 = vsel %vm209_vm1, %v199_v1, 0.0  ;;  %v206_v5 = vsel %vm202_vm0, %v198_v2, 0.0 }
  0x4a   : > { %204 = vadd.xlane.f32.xlu0 %v203_v3  ;;  %211 = vadd.xlane.f32.xlu1 %v210_v4 }
  0x4e   : > { %207 = vadd.xlane.f32.xlu0 %v206_v5 }
  0xd7   : > { %v205_v6 = vpop.xlane.xlu0 %204  ;;  %v212_v7 = vpop.xlane.xlu1 %211 }
  0xd8   : > { %v214_v8 = vmul.f32 0.03125, %v205_v6  ;;  %v216_v9 = vmul.f32 0.03125, %v212_v7 }
  0xda   : > { %v217_v10 = vsub.f32 %v197_v0, %v214_v8  ;;  %v219_v11 = vsub.f32 %v199_v1, %v216_v9 }
  0xdb   : > { %v208_v12 = vpop.xlane.xlu0 %207 }
  0xdc   : > { %v215_v13 = vmul.f32 0.03125, %v208_v12  ;;  %v220_v14 = vmul.f32 %v217_v10, %v217_v10  ;;  %v222_v15 = vmul.f32 %v219_v11, %v219_v11 }
  0xde   : > { %v218_v16 = vsub.f32 %v198_v2, %v215_v13  ;;  %v223_v17 = vsel %vm202_vm0, %v220_v14, 0.0  ;;  %v229_v18 = vsel %vm209_vm1, %v222_v15, 0.0 }
  0xdf   : > { %224 = vadd.xlane.f32.xlu1 %v223_v17 }
  0xe0   : > { %v221_v19 = vmul.f32 %v218_v16, %v218_v16 }
  0xe2   : > { %v226_v20 = vsel %vm202_vm0, %v221_v19, 0.0 }
  0xe3   : > { %230 = vadd.xlane.f32.xlu1 %v229_v18  ;;  %227 = vadd.xlane.f32.xlu0 %v226_v20 }
 0x16c   : > { %v225_v21 = vpop.xlane.xlu1 %224 }
 0x16d   : > { %v232_v22 = vmul.f32 0.03125, %v225_v21 }
 0x16f   : > { %v235_v23 = vadd.f32 1e-06, %v232_v22 }
 0x170   : > { %v231_v24 = vpop.xlane.xlu1 %230  ;;  %v228_v25 = vpop.xlane.xlu0 %227 }
 0x171   : > { %387 = vrsqrt.f32 %v235_v23  ;;  %v234_v26 = vmul.f32 0.03125, %v231_v24  ;;  %v233_v27 = vmul.f32 0.03125, %v228_v25 }
 0x173   : > { %v237_v28 = vadd.f32 1e-06, %v234_v26  ;;  %v236_v29 = vadd.f32 1e-06, %v233_v27 }
 0x175   : > { %389 = vrsqrt.f32 %v237_v28 }
 0x176   : > { %391 = vrsqrt.f32 %v236_v29 }
 0x17b   : > { %v388_v30 = vpop.eup %387 }
 0x17c   : > { %v241_v32 = vmul.f32 %v388_v30, %v217_v10 }
 0x17e   : > { %v250_v34 = vmul.f32 %v353_v31, %v241_v32 }
 0x17f   : > { %v390_v35 = vpop.eup %389 }
 0x180   : > { %v392_v36 = vpop.eup %391  ;;  %v259_v37 = vadd.f32 %v354_v33, %v250_v34  ;;  %v243_v38 = vmul.f32 %v390_v35, %v219_v11 }
 0x181   : > { %v242_v39 = vmul.f32 %v392_v36, %v218_v16 }
 0x182   : > { %262 = vst.msk [vmem:[%s196_s23] sm:$0xff] %vm202_vm0, %v259_v37  ;;  %v252_v40 = vmul.f32 %v353_v31, %v243_v38 }
 0x183   : > { %v251_v41 = vmul.f32 %v353_v31, %v242_v39 }
 0x184   : > { %v261_v42 = vadd.f32 %v354_v33, %v252_v40 }
 0x185   : > { %v260_v43 = vadd.f32 %v354_v33, %v251_v41 }
 0x186   : > { %264 = vst.msk [vmem:[%s196_s23 + $0x10] sm:$0x1] %vm209_vm1, %v261_v42 }
 0x187   : > { %263 = vst.msk [vmem:[%s196_s23 + $0x8] sm:$0xff] %vm202_vm0, %v260_v43 }
 0x188 PF: > { %s15_s12 = sadd.s32 1, %s463_s12  }
 0x189   : > { %p12_p5 = scmp.ge.s32.totalorder %s15_s12, 4  }
 0x18b   :  { %14 = sbr.rel (!%p12_p5) target bundleno = 2 (0x2), region = 71 }
 0x192   :  { %286 = vsyncpa [#allocation3], 1 }
 0x193   :  { %288 = vsyncpa [#allocation3 + $0x1], 1 }
 0x194   :  { %289 = vsyncpa [#allocation5], 1 }

// kernel: prithvi_seg_forward.13
= control target key start
LH: loop header
LB: loop body
LE: loop exit
PB: predicated region body
PF: predicated region fallthrough
CT: control target
= control target key end

     0   :  { %s426_s12 = smov 0   ;;  %s470_s0 = inlined_call_operand.vmem [shape: f32[32,64], index: 0, kind: input, shape index: {}]   ;;  %s471_s1 = inlined_call_operand.vmem [shape: f32[64,128], index: 1, kind: input, shape index: {}]   ;;  %s472_s2 = inlined_call_operand.vmem [shape: f32[1,128], index: 2, kind: input, shape index: {}]   ;;  %s473_s3 = inlined_call_operand.vmem [shape: f32[32,128], index: 3, kind: output, shape index: {}]  }
   0x1 LB: > { %s331_s13 = sadd.s32 4294967295, %s404_s12   ;;  %p335_p0 = scmp.ge.s32.totalorder %s404_s12, 1  ;;  %s404_s12 = sphi %s426_s12, %s13_s12  }
   0x2   : > { %p138_p1 = scmp.lt.s32.totalorder %s404_s12, 3 }
   0x4   : > { %p139_p2 = pnand %p335_p0, %p138_p1 }
   0x5   : > { %v176_v0 = vld [vmem:[%s471_s1] sm:$0xff] (!%p139_p2)  ;;  %v177_v1 = vld [vmem:[%s471_s1 + $0x8] sm:$0xff] (!%p139_p2)  ;;  %v178_v2 = vld [vmem:[%s471_s1 + $0x10] sm:$0xff] (!%p139_p2)  ;;  %s336_s20 = sshll.u32 (!%p139_p2), %s331_s13, 1  ;;  %vm191_vm0 = vcmask (!%p139_p2), 523264  }
   0x6   : > { %142 = sbr.rel (%p139_p2) target bundleno = 240 (0xf0), region = 32  ;;  %v374_v3 = vpack.c.bf16 (!%p139_p2), %v177_v1, %v176_v0  ;;  %v179_v4 = vld [vmem:[%s471_s1 + $0x18] sm:$0xff] (!%p139_p2)  ;;  %p163_p3 = scmp.lt.s32.totalorder (!%p139_p2), %s336_s20, 3  ;;  %v180_v6 = vld [vmem:[%s471_s1 + $0x20] sm:$0xff] (!%p139_p2)  ;;  %v181_v7 = vld [vmem:[%s471_s1 + $0x28] sm:$0xff] (!%p139_p2) }
   0x7   : > { %v378_v5 = vpack.c.bf16 (!%p139_p2), %v179_v4, %v178_v2  ;;  %v382_v8 = vpack.c.bf16 (!%p139_p2), %v181_v7, %v180_v6  ;;  %v182_v9 = vld [vmem:[%s471_s1 + $0x30] sm:$0xff] (!%p139_p2)  ;;  %v183_v10 = vld [vmem:[%s471_s1 + $0x38] sm:$0xff] (!%p139_p2)  ;;  %v340_v14 = vld [vmem:[%s472_s2] ss:$0 sm:$0xff] (!%p139_p2) }
   0x8   : > { %375 = vmatprep.subr.bf16.mxu0 (!%p139_p2), %v374_v3  ;;  %v386_v12 = vpack.c.bf16 (!%p139_p2), %v183_v10, %v182_v9 }
   0x9   : > { %377 = vmatpush3.bf16.msra.mxu0 (!%p139_p2), %v374_v3 }
   0xa   : > { %379 = vmatprep.subr.bf16.mxu0 (!%p139_p2), %v378_v5 }
   0xd   : > { %s475_s20 = smov (!%p163_p3, %s336_s20), 3  ;;  %381 = vmatpush3.bf16.msra.mxu0 %v378_v5 }
   0xe   : > { %s337_s27 = sshll.u32 %s475_s20, 3  ;;  %383 = vmatprep.subr.bf16.mxu0 %v382_v8 }
   0xf   : > { %s166_s7 = scalar_lea.vmem %s470_s0, %s337_s27  ;;  %s172_s13 = scalar_lea.vmem %s473_s3, %s337_s27 }
  0x10   : > { %v174_v11 = vld [vmem:[%s166_s7] sm:$0xff]  ;;  %v175_v13 = vld [vmem:[%s166_s7 + $0x8] sm:$0xff] }
  0x11   : > { %371 = vmatprep.mubr.msk.f32.mxu0 %vm191_vm0, %v174_v11  ;;  %385 = vmatpush3.bf16.msra.mxu0 %v382_v8 }
  0x12   : > { %387 = vmatprep.subr.bf16.mxu0 %v386_v12 }
  0x15   : > { %389 = vmatpush3.bf16.msra.mxu0 %v386_v12 }
  0x18   : > { %372 = vmatmul.mubr.msk.f32.vlgmr.msra.gmra.mrb[0].mxu0 %vm191_vm0, %v175_v13 }
  0xeb   : > { %v373_v15 = vpop.f32.mrb[0].mxu0 }
  0xec   : > { %v264_v16 = vpop.f32.mrb[1].mxu0  ;;  %v270_v18 = vadd.f32 %v373_v15, %v340_v14 }
  0xed   : > { %v265_v17 = vadd.f32 %v340_v14, %v264_v16 }
  0xee   : > { %274 = vst [vmem:[%s172_s13 + $0x8] sm:$0xff] %v270_v18 }
  0xef   : > { %273 = vst [vmem:[%s172_s13] sm:$0xff] %v265_v17 }
  0xf0 PF: > { %s13_s12 = sadd.s32 1, %s404_s12  }
  0xf1   : > { %p10_p4 = scmp.ge.s32.totalorder %s13_s12, 4  }
  0xf3   :  { %12 = sbr.rel (!%p10_p4) target bundleno = 1 (0x1), region = 62 }

// kernel: prithvi_seg_forward.14
= control target key start
LH: loop header
LB: loop body
LE: loop exit
PB: predicated region body
PF: predicated region fallthrough
CT: control target
= control target key end

     0   :  { %s4385_s0 = inlined_call_operand.vmem [shape: f32[2,17,32], index: 0, kind: input, shape index: {}]   ;;  %s4386_s1 = inlined_call_operand.hbm [shape: f32[1,32], index: 1, kind: input, shape index: {}]   ;;  %s4387_s2 = inlined_call_operand.hbm [shape: f32[1,32], index: 2, kind: input, shape index: {}]   ;;  %s4388_s3 = inlined_call_operand.hbm [shape: f32[32,96], index: 3, kind: input, shape index: {}]   ;;  %s4389_s4 = inlined_call_operand.hbm [shape: f32[1,96], index: 4, kind: input, shape index: {}]   ;;  %s4390_s5 = inlined_call_operand.vmem [shape: f32[32,32], index: 5, kind: input, shape index: {}]   ;;  %s4391_s6 = inlined_call_operand.hbm [shape: f32[1,32], index: 6, kind: input, shape index: {}]   ;;  %s4392_s7 = inlined_call_operand.hbm [shape: f32[1,32], index: 7, kind: input, shape index: {}]   ;;  %s4393_s8 = inlined_call_operand.hbm [shape: f32[1,32], index: 8, kind: input, shape index: {}]   ;;  %s4394_s9 = inlined_call_operand.hbm [shape: f32[32,128], index: 9, kind: input, shape index: {}]   ;;  %s4395_s10 = inlined_call_operand.hbm [shape: f32[1,128], index: 10, kind: input, shape index: {}]   ;;  %s4396_s11 = inlined_call_operand.vmem [shape: f32[128,32], index: 11, kind: input, shape index: {}]   ;;  %s4397_s12 = inlined_call_operand.hbm [shape: f32[1,32], index: 12, kind: input, shape index: {}]   ;;  %s4398_s13 = inlined_call_operand.vmem [shape: f32[2,17,32], index: 13, kind: output, shape index: {}]  }
   0x1   :  { %4402 = sst [smem:[#allocation25_spill]] %s4387_s2 }
   0x2   :  { %4403 = sst [smem:[#allocation26_spill]] %s4389_s4 }
   0x3   :  { %4404 = sst [smem:[#allocation27_spill]] %s4392_s7 }
   0x4   :  { %18 = vsyncpa [#allocation3], 0 }
   0x5   :  { %19 = vsyncpa [#allocation5], 0 }
   0x6   :  { %20 = vsyncpa [#allocation8], 0 }
   0x7   :  { %21 = vsyncpa [#allocation11], 0 }
   0x8   :  { %22 = vsyncpa [#allocation14], 0 }
   0x9   :  { %23 = vsyncpa [#allocation17], 0  ;;  %s3720_s25 = smov 0  }
   0xa LB: > { %4405 = sst [smem:[#allocation24_spill]] %s3621_s25  ;;  %s3623_s26 = smov [#allocation4]   ;;  %s3621_s25 = sphi %s3720_s25, %s29_s25  }
   0xb   : > { %s362_s27 = sshll.u32 %s3623_s26, 4  ;;  %s3726_s28 = sadd.s32 4294967295, %s3621_s25   ;;  %s3731_s27 = int_to_ptr.vmem [resolvable:$true] %s362_s27 }
   0xc   : > { %p2576_p0 = scmp.ge.s32.totalorder %s3621_s25, 1  ;;  %p338_p1 = scmp.lt.s32.totalorder %s3621_s25, 3 }
   0xd   : > { %p4400_p2 = scmp.eq.s32.totalorder %s3726_s28, 0  ;;  %s3624_s30 = smov [#allocation7]  }
   0xe   : > { %p3733_p3 = pnand %p2576_p0, %p338_p1  ;;  %s386_s14 = sshll.u32 %s3624_s30, 4  ;;  %s3739_s14 = int_to_ptr.vmem [resolvable:$true] %s386_s14 }
   0xf   : > { %s3625_s15 = smov [#allocation10]   ;;  %s3626_s18 = smov [#allocation13]  }
  0x10   : > { %s4406_s29 = scalar_select %p3733_p3, 1, 0 }
  0x11   : > { %p3110_p4 = pneg %p3733_p3  ;;  %s411_s16 = sshll.u32 %s3625_s15, 4  ;;  %s3747_s16 = int_to_ptr.vmem [resolvable:$true] %s411_s16 }
  0x12   : > { %s3749_s19 = sshll.u32 %s3626_s18, 4  ;;  %s4408_s2 = sld [smem:[#allocation25_spill]]  ;;  %s433_s19 = int_to_ptr.vmem [resolvable:$true] %s3749_s19 }
  0x13   : > { %p3743_p5 = pnand %p4400_p2, %p3110_p4 }
  0x15   : > { %p3759_p7 = pneg %p3743_p5 }
  0x18   : > { %s3311_s22 = scalar_lea.hbm %s4408_s2, 16 }
  0x19   : > { %p3312_p6 = scmp.ne.s32.totalorder %s4408_s2, %s3311_s22  ;;  %p3318_p10 = scmp.lt.u32.totalorder %s3311_s22, %s4408_s2 }
  0x1b   : > { %p3314_p8 = pnand %p3759_p7, %p3312_p6 }
  0x1d   : > { %p3315_p9 = pneg %p3314_p8 }
  0x1f   : > { %p3320_p11 = pnand %p3318_p10, %p3315_p9 }
  0x21   : > { %3323 = shalt.err (!%p3320_p11)
}
  0x22   : > { %s3324_s18 = scalar_lea.vmem %s3731_s27, 16  ;;  %s3331_s20 = scalar_lea.vmem %s3731_s27, 32 }
  0x23   : > { %p3325_p12 = scmp.ne.s32.totalorder %s3731_s27, %s3324_s18  ;;  %p3332_p1 = scmp.lt.s32.totalorder %s3731_s27, %s3731_s27 }
  0x24   : > { %p3333_p4 = scmp.lt.s32.totalorder %s3331_s20, %s3324_s18 }
  0x25   : > { %p3327_p13 = pnand %p3325_p12, %p3759_p7 }
  0x26   : > { %p3334_p6 = por %p3333_p4, %p3332_p1 }
  0x27   : > { %p3328_p0 = pneg %p3327_p13 }
  0x29   : > { %p3335_p8 = pnand %p3334_p6, %p3328_p0 }
  0x2b   : > { %3338 = shalt.err (!%p3335_p8)
}
  0x2c   : > { %3116 = dma.hbm_to_vmem [thread:$0]  (!%p3743_p5), %s4408_s2, 16, %s3731_s27, [#allocation5]  }
  0x2d   : > { %s4410_s4 = sld [smem:[#allocation26_spill]] }
  0x33   : > { %s3339_s30 = scalar_lea.hbm %s4410_s4, 16 }
  0x34   : > { %p3340_p9 = scmp.ne.s32.totalorder %s4410_s4, %s3339_s30  ;;  %p3346_p12 = scmp.lt.u32.totalorder %s3339_s30, %s4410_s4 }
  0x36   : > { %p3342_p10 = pnand %p3340_p9, %p3759_p7 }
  0x38   : > { %p3343_p11 = pneg %p3342_p10 }
  0x3a   : > { %p3348_p13 = pnand %p3346_p12, %p3343_p11 }
  0x3c   : > { %3351 = shalt.err (!%p3348_p13)
}
  0x3d   : > { %s3352_s27 = scalar_lea.vmem %s3739_s14, 16  ;;  %s3359_s25 = scalar_lea.vmem %s3739_s14, 32 }
  0x3e   : > { %p3353_p0 = scmp.ne.s32.totalorder %s3739_s14, %s3352_s27  ;;  %p3360_p6 = scmp.lt.s32.totalorder %s3739_s14, %s3739_s14 }
  0x3f   : > { %p3361_p8 = scmp.lt.s32.totalorder %s3359_s25, %s3352_s27 }
  0x40   : > { %p3355_p1 = pnand %p3353_p0, %p3759_p7 }
  0x41   : > { %p3362_p9 = por %p3361_p8, %p3360_p6 }
  0x42   : > { %p3356_p4 = pneg %p3355_p1 }
  0x44   : > { %p3363_p10 = pnand %p3362_p9, %p3356_p4 }
  0x46   : > { %3366 = shalt.err (!%p3363_p10)
}
  0x47   : > { %3122 = dma.hbm_to_vmem [thread:$0]  (!%p3743_p5), %s4410_s4, 16, %s3739_s14, [#allocation8]  }
  0x48   : > { %s4411_s7 = sld [smem:[#allocation27_spill]] }
  0x4e   : > { %s3367_s30 = scalar_lea.hbm %s4411_s7, 16 }
  0x4f   : > { %p3368_p11 = scmp.ne.s32.totalorder %s4411_s7, %s3367_s30  ;;  %p3374_p0 = scmp.lt.u32.totalorder %s3367_s30, %s4411_s7 }
  0x51   : > { %p3370_p12 = pnand %p3368_p11, %p3759_p7 }
  0x53   : > { %p3371_p13 = pneg %p3370_p12 }
  0x55   : > { %p3376_p1 = pnand %p3374_p0, %p3371_p13 }
  0x57   : > { %3379 = shalt.err (!%p3376_p1)
}
  0x58   : > { %s3380_s14 = scalar_lea.vmem %s3747_s16, 16  ;;  %s3387_s25 = scalar_lea.vmem %s3747_s16, 32 }
  0x59   : > { %p3381_p4 = scmp.ne.s32.totalorder %s3747_s16, %s3380_s14  ;;  %p3388_p9 = scmp.lt.s32.totalorder %s3747_s16, %s3747_s16 }
  0x5a   : > { %p3389_p10 = scmp.lt.s32.totalorder %s3387_s25, %s3380_s14 }
  0x5b   : > { %p3383_p6 = pnand %p3381_p4, %p3759_p7 }
  0x5c   : > { %p3390_p11 = por %p3389_p10, %p3388_p9 }
  0x5d   : > { %p3384_p8 = pneg %p3383_p6 }
  0x5f   : > { %p3391_p12 = pnand %p3390_p11, %p3384_p8 }
  0x61   : > { %3394 = shalt.err (!%p3391_p12)
}
  0x62   : > { %3128 = dma.hbm_to_vmem [thread:$0]  (!%p3743_p5), %s4411_s7, 16, %s3747_s16, [#allocation11]  }
  0x63   : > { %s3395_s30 = scalar_lea.hbm %s4394_s9, 512 }
  0x64   : > { %p3396_p13 = scmp.ne.s32.totalorder %s4394_s9, %s3395_s30  ;;  %p3402_p4 = scmp.lt.u32.totalorder %s3395_s30, %s4394_s9 }
  0x66   : > { %p3398_p0 = pnand %p3396_p13, %p3759_p7 }
  0x68   : > { %p3399_p1 = pneg %p3398_p0 }
  0x6a   : > { %p3404_p6 = pnand %p3402_p4, %p3399_p1 }
  0x6c   : > { %3407 = shalt.err (!%p3404_p6)
}
  0x6d   : > { %s3408_s14 = scalar_lea.vmem %s433_s19, 512  ;;  %p3416_p11 = scmp.lt.s32.totalorder %s433_s19, %s433_s19 }
  0x6e   : > { %p3409_p8 = scmp.ne.s32.totalorder %s433_s19, %s3408_s14  ;;  %p3417_p12 = scmp.lt.s32.totalorder %s3408_s14, %s3408_s14 }
  0x70   : > { %p3411_p9 = pnand %p3409_p8, %p3759_p7  ;;  %p3418_p2 = por %p3417_p12, %p3416_p11 }
  0x72   : > { %p3412_p10 = pneg %p3411_p9 }
  0x74   : > { %p3419_p3 = pnand %p3418_p2, %p3412_p10 }
  0x76   : > { %3422 = shalt.err (!%p3419_p3)
}
  0x77   : > { %s3627_s16 = smov 128   ;;  %s3628_s25 = smov 8  }
  0x78   : > { %3134 = dma.hbm_to_vmem [thread:$0]  (!%p3743_p5), %s4394_s9, 512, %s433_s19, [#allocation14], %s3627_s16, %s3627_s16, %s3628_s25  }
  0x79   : > { %s3629_s23 = smov [#allocation2]   ;;  %s3630_s30 = smov [#allocation6]  }
  0x7a   : > { %s351_s24 = sshll.u32 %s3629_s23, 4  ;;  %s372_s15 = sshll.u32 %s3630_s30, 4  ;;  %s352_s24 = int_to_ptr.vmem [resolvable:$true] %s351_s24  ;;  %s373_s15 = int_to_ptr.vmem [resolvable:$true] %s372_s15 }
  0x7b   : > { %s3423_s27 = scalar_lea.hbm %s4386_s1, 16 }
  0x7c   : > { %p3424_p2 = scmp.ne.s32.totalorder %s4386_s1, %s3423_s27  ;;  %p3430_p0 = scmp.lt.u32.totalorder %s3423_s27, %s4386_s1 }
  0x7e   : > { %p3426_p3 = pnand %p3424_p2, %p3759_p7 }
  0x80   : > { %p3427_p13 = pneg %p3426_p3 }
  0x82   : > { %p3432_p1 = pnand %p3430_p0, %p3427_p13 }
  0x84   : > { %3435 = shalt.err (!%p3432_p1)
}
  0x85   : > { %s3436_s19 = scalar_lea.vmem %s352_s24, 16  ;;  %s3443_s21 = scalar_lea.vmem %s352_s24, 32 }
  0x86   : > { %p3437_p4 = scmp.ne.s32.totalorder %s352_s24, %s3436_s19  ;;  %p3444_p9 = scmp.lt.s32.totalorder %s352_s24, %s352_s24 }
  0x87   : > { %p3445_p10 = scmp.lt.s32.totalorder %s3443_s21, %s3436_s19 }
  0x88   : > { %p3439_p6 = pnand %p3437_p4, %p3759_p7 }
  0x89   : > { %p3446_p11 = por %p3445_p10, %p3444_p9 }
  0x8a   : > { %p3440_p8 = pneg %p3439_p6 }
  0x8c   : > { %p3447_p12 = pnand %p3446_p11, %p3440_p8 }
  0x8e   : > { %3450 = shalt.err (!%p3447_p12)
}
  0x8f   : > { %3113 = dma.hbm_to_vmem [thread:$0]  (!%p3743_p5), %s4386_s1, 16, %s352_s24, [#allocation3]  }
  0x90   : > { %s3451_s23 = scalar_lea.hbm %s4388_s3, 512 }
  0x91   : > { %p3452_p2 = scmp.ne.s32.totalorder %s4388_s3, %s3451_s23  ;;  %p3458_p0 = scmp.lt.u32.totalorder %s3451_s23, %s4388_s3 }
  0x93   : > { %p3454_p3 = pnand %p3452_p2, %p3759_p7 }
  0x95   : > { %p3455_p13 = pneg %p3454_p3 }
  0x97   : > { %p3460_p1 = pnand %p3458_p0, %p3455_p13 }
  0x99   : > { %3463 = shalt.err (!%p3460_p1)
}
  0x9a   : > { %s3464_s14 = scalar_lea.vmem %s373_s15, 512  ;;  %p3472_p9 = scmp.lt.s32.totalorder %s373_s15, %s373_s15 }
  0x9b   : > { %p3465_p4 = scmp.ne.s32.totalorder %s373_s15, %s3464_s14  ;;  %p3473_p10 = scmp.lt.s32.totalorder %s3464_s14, %s3464_s14 }
  0x9d   : > { %p3467_p6 = pnand %p3465_p4, %p3759_p7  ;;  %p3474_p11 = por %p3473_p10, %p3472_p9 }
  0x9f   : > { %p3468_p8 = pneg %p3467_p6 }
  0xa1   : > { %p3475_p12 = pnand %p3474_p11, %p3468_p8 }
  0xa3   : > { %3478 = shalt.err (!%p3475_p12)
}
  0xa4   : > { %3119 = dma.hbm_to_vmem [thread:$0]  (!%p3743_p5), %s4388_s3, 512, %s373_s15, [#allocation5], %s3627_s16, %s3627_s16, %s3628_s25  }
  0xa5   : > { %s3631_s21 = smov [#allocation9]   ;;  %s3632_s22 = smov [#allocation12]  }
  0xa6   : > { %s400_s2 = sshll.u32 %s3631_s21, 4  ;;  %s422_s4 = sshll.u32 %s3632_s22, 4  ;;  %s401_s2 = int_to_ptr.vmem [resolvable:$true] %s400_s2  ;;  %s423_s4 = int_to_ptr.vmem [resolvable:$true] %s422_s4 }
  0xa7   : > { %s3479_s30 = scalar_lea.hbm %s4391_s6, 16 }
  0xa8   : > { %p3480_p2 = scmp.ne.s32.totalorder %s4391_s6, %s3479_s30  ;;  %p3486_p0 = scmp.lt.u32.totalorder %s3479_s30, %s4391_s6 }
  0xaa   : > { %p3482_p3 = pnand %p3480_p2, %p3759_p7 }
  0xac   : > { %p3483_p13 = pneg %p3482_p3 }
  0xae   : > { %p3488_p1 = pnand %p3486_p0, %p3483_p13 }
  0xb0   : > { %3491 = shalt.err (!%p3488_p1)
}
  0xb1   : > { %s3492_s16 = scalar_lea.vmem %s401_s2, 16  ;;  %s3499_s25 = scalar_lea.vmem %s401_s2, 32 }
  0xb2   : > { %p3493_p4 = scmp.ne.s32.totalorder %s401_s2, %s3492_s16  ;;  %p3500_p9 = scmp.lt.s32.totalorder %s401_s2, %s401_s2 }
  0xb3   : > { %p3501_p10 = scmp.lt.s32.totalorder %s3499_s25, %s3492_s16 }
  0xb4   : > { %p3495_p6 = pnand %p3493_p4, %p3759_p7 }
  0xb5   : > { %p3502_p11 = por %p3501_p10, %p3500_p9 }
  0xb6   : > { %p3496_p8 = pneg %p3495_p6 }
  0xb8   : > { %p3503_p12 = pnand %p3502_p11, %p3496_p8 }
  0xba   : > { %3506 = shalt.err (!%p3503_p12)
}
  0xbb   : > { %3125 = dma.hbm_to_vmem [thread:$0]  (!%p3743_p5), %s4391_s6, 16, %s401_s2, [#allocation8]  }
  0xbc   : > { %s3507_s22 = scalar_lea.hbm %s4393_s8, 16 }
  0xbd   : > { %p3508_p2 = scmp.ne.s32.totalorder %s4393_s8, %s3507_s22  ;;  %p3514_p0 = scmp.lt.u32.totalorder %s3507_s22, %s4393_s8 }
  0xbf   : > { %p3510_p3 = pnand %p3508_p2, %p3759_p7 }
  0xc1   : > { %p3511_p13 = pneg %p3510_p3 }
  0xc3   : > { %p3516_p1 = pnand %p3514_p0, %p3511_p13 }
  0xc5   : > { %3519 = shalt.err (!%p3516_p1)
}
  0xc6   : > { %s3520_s20 = scalar_lea.vmem %s423_s4, 16  ;;  %s3527_s2 = scalar_lea.vmem %s423_s4, 32 }
  0xc7   : > { %p3521_p4 = scmp.ne.s32.totalorder %s423_s4, %s3520_s20  ;;  %p3528_p9 = scmp.lt.s32.totalorder %s423_s4, %s423_s4 }
  0xc8   : > { %p3529_p10 = scmp.lt.s32.totalorder %s3527_s2, %s3520_s20 }
  0xc9   : > { %p3523_p6 = pnand %p3521_p4, %p3759_p7 }
  0xca   : > { %p3530_p11 = por %p3529_p10, %p3528_p9 }
  0xcb   : > { %p3524_p8 = pneg %p3523_p6 }
  0xcd   : > { %p3531_p12 = pnand %p3530_p11, %p3524_p8 }
  0xcf   : > { %3534 = shalt.err (!%p3531_p12)
}
  0xd0   : > { %3131 = dma.hbm_to_vmem [thread:$0]  (!%p3743_p5), %s4393_s8, 16, %s423_s4, [#allocation11]  }
  0xd1   : > { %s3633_s16 = smov [#allocation15]   ;;  %s3634_s15 = smov [#allocation16]  }
  0xd2   : > { %s446_s25 = sshll.u32 %s3633_s16, 4  ;;  %s460_s24 = sshll.u32 %s3634_s15, 4  ;;  %s447_s25 = int_to_ptr.vmem [resolvable:$true] %s446_s25  ;;  %s461_s24 = int_to_ptr.vmem [resolvable:$true] %s460_s24 }
  0xd3   : > { %s3535_s22 = scalar_lea.hbm %s4395_s10, 16 }
  0xd4   : > { %p3536_p2 = scmp.ne.s32.totalorder %s4395_s10, %s3535_s22  ;;  %p3542_p0 = scmp.lt.u32.totalorder %s3535_s22, %s4395_s10 }
  0xd6   : > { %p3538_p3 = pnand %p3536_p2, %p3759_p7 }
  0xd8   : > { %p3539_p13 = pneg %p3538_p3 }
  0xda   : > { %p3544_p1 = pnand %p3542_p0, %p3539_p13 }
  0xdc   : > { %3547 = shalt.err (!%p3544_p1)
}
  0xdd   : > { %s3548_s4 = scalar_lea.vmem %s447_s25, 16  ;;  %s3555_s20 = scalar_lea.vmem %s447_s25, 32 }
  0xde   : > { %p3549_p4 = scmp.ne.s32.totalorder %s447_s25, %s3548_s4  ;;  %p3556_p9 = scmp.lt.s32.totalorder %s447_s25, %s447_s25 }
  0xdf   : > { %p3557_p10 = scmp.lt.s32.totalorder %s3555_s20, %s3548_s4 }
  0xe0   : > { %p3551_p6 = pnand %p3549_p4, %p3759_p7 }
  0xe1   : > { %p3558_p11 = por %p3557_p10, %p3556_p9 }
  0xe2   : > { %p3552_p8 = pneg %p3551_p6 }
  0xe4   : > { %p3559_p12 = pnand %p3558_p11, %p3552_p8 }
  0xe6   : > { %3562 = shalt.err (!%p3559_p12)
}
  0xe7   : > { %3137 = dma.hbm_to_vmem [thread:$0]  (!%p3743_p5), %s4395_s10, 16, %s447_s25, [#allocation14]  }
  0xe8   : > { %s3563_s15 = scalar_lea.hbm %s4397_s12, 16 }
  0xe9   : > { %p3564_p2 = scmp.ne.s32.totalorder %s4397_s12, %s3563_s15  ;;  %p3570_p0 = scmp.lt.u32.totalorder %s3563_s15, %s4397_s12 }
  0xeb   : > { %p3566_p3 = pnand %p3564_p2, %p3759_p7 }
  0xed   : > { %p3567_p13 = pneg %p3566_p3 }
  0xef   : > { %p3572_p1 = pnand %p3570_p0, %p3567_p13 }
  0xf1   : > { %3575 = shalt.err (!%p3572_p1)
}
  0xf2   : > { %s3576_s23 = scalar_lea.vmem %s461_s24, 16  ;;  %s3583_s25 = scalar_lea.vmem %s461_s24, 32 }
  0xf3   : > { %p3577_p4 = scmp.ne.s32.totalorder %s461_s24, %s3576_s23  ;;  %p3584_p9 = scmp.lt.s32.totalorder %s461_s24, %s461_s24 }
  0xf4   : > { %p3585_p10 = scmp.lt.s32.totalorder %s3583_s25, %s3576_s23 }
  0xf5   : > { %p3579_p6 = pnand %p3577_p4, %p3759_p7 }
  0xf6   : > { %p3586_p11 = por %p3585_p10, %p3584_p9 }
  0xf7   : > { %p3580_p8 = pneg %p3579_p6 }
  0xf9   : > { %p3587_p12 = pnand %p3586_p11, %p3580_p8 }
  0xfb   : > { %3590 = shalt.err (!%p3587_p12)
}
  0xfc   : > { %3140 = dma.hbm_to_vmem [thread:$0]  (!%p3743_p5), %s4397_s12, 16, %s461_s24, [#allocation17]  }
  0xfd   : > { %p4412_p2 = scmp.ne.s32.totalorder %s4406_s29, 0 }
  0xfe   : > { %p4413_p3 = scmp.eq.s32.totalorder (!%p4412_p2), %s3726_s28, 0 }
  0xff   : > { %481 = sbr.rel (%p4412_p2) target bundleno = 4032 (0xfc0), region = 72 }
 0x106   : > { %3596 = dma.done.wait (%p4413_p3), [#allocation3], 16   ;;  %p4414_p7 = pmov %p4413_p3 }
 0x107   : > { %p4415_p13 = pmov %p4413_p3 }
 0x108   : > { %3598 = vsyncadd (%p4414_p7), [#allocation3], 4294967280 }
 0x109   : > { %3600 = dma.done.wait (%p4415_p13), [#allocation5], 528   ;;  %p4416_p0 = pmov %p4413_p3 }
 0x10b   : > { %3602 = vsyncadd (%p4416_p0), [#allocation5], 4294966768  ;;  %p4417_p1 = pmov %p4416_p0 }
 0x10c   : > { %p4418_p5 = pmov %p4416_p0 }
 0x10d   : > { %3604 = dma.done.wait (%p4417_p1), [#allocation8], 32  }
 0x10e   : > { %3606 = vsyncadd (%p4418_p5), [#allocation8], 4294967264  ;;  %p4419_p4 = pmov %p4416_p0 }
 0x10f   : > { %p4420_p6 = pmov %p4416_p0 }
 0x110   : > { %3608 = dma.done.wait (%p4419_p4), [#allocation11], 32  }
 0x111   : > { %3610 = vsyncadd (%p4420_p6), [#allocation11], 4294967264  ;;  %p4421_p8 = pmov %p4416_p0 }
 0x112   : > { %p4422_p9 = pmov %p4416_p0 }
 0x113   : > { %3612 = dma.done.wait (%p4421_p8), [#allocation14], 528  }
 0x114   : > { %3614 = vsyncadd (%p4422_p9), [#allocation14], 4294966768  ;;  %p4423_p10 = pmov %p4416_p0 }
 0x115   : > { %p4424_p11 = pmov %p4416_p0 }
 0x116   : > { %3616 = dma.done.wait (%p4423_p10), [#allocation17], 16  }
 0x117   : > { %3618 = vsyncadd (%p4424_p11), [#allocation17], 4294967280  ;;  %p561_p12 = scmp.lt.s32.totalorder %s3726_s28, 1  ;;  %vm576_vm0 = vcmask 261120   ;;  %vm583_vm1 = vcmask 253952   ;;  %v636_v21 = vld [vmem:[#allocation6] sm:$0xff] }
 0x118   : > { %v637_v22 = vld [vmem:[#allocation6 + $0x8] sm:$0xff]  ;;  %v638_v23 = vld [vmem:[#allocation6 + $0x10] sm:$0xff]  ;;  %v3635_v24 = vmov 0.0|0.0   ;;  %v639_v26 = vld [vmem:[#allocation6 + $0x18] sm:$0xff]  ;;  %vm3636_vm2 = vmmov 0   ;;  %v3637_v27 = vmov 0.0  }
 0x119   : > { %s4429_s28 = smov (!%p561_p12, %s3726_s28), 1  ;;  %3005 = vmatprep.subr.bf16.mxu1 %v3635_v24  ;;  %v3006_v25 = vpack.c.bf16 %v637_v22, %v636_v21  ;;  %2774 = vmatprep.mubr.msk.f32.mxu1 %vm3636_vm2, %v3637_v27  ;;  %v3009_v28 = vpack.c.bf16 %v639_v26, %v638_v23  ;;  %v2601_v39 = vld [vmem:[#allocation2] ss:$0 sm:$0xff]  ;;  %v2602_v41 = vld [vmem:[#allocation4] ss:$0 sm:$0xff]  ;;  %s3638_s4 = smov 96  }
 0x11a   : > { %s3069_s29 = smul.u32 24, %s4429_s28  ;;  %3015 = vmatprep.subr.bf16.mxu0 %v3635_v24  ;;  %2804 = vmatprep.mubr.msk.f32.mxu0 %vm3636_vm2, %v3637_v27  ;;  %v2603_v54 = vld [vmem:[#allocation7] ss:$0 sm:$0xff]  ;;  %s3639_s20 = smov 120   ;;  %vm745_vm3 = vcmask 64512   ;;  %vm841_vm5 = vcmask 138240  }
 0x11b   : > { %3007 = vmatpush3.bf16.msra.mxu1 %v3006_v25  ;;  %s3640_s2 = smov 88   ;;  %vm4045_vm4 = vmpackc.low %vm745_vm3, %vm745_vm3  ;;  %vm848_vm6 = vcmask 131072   ;;  %s3641_s27 = smov 64   ;;  %vm893_vm7 = vcmask 1040384  }
 0x11c   : > { %s3998_s24 = scalar_lea.vmem %s4385_s0, %s3069_s29  ;;  %3008 = vmatprep.subr.bf16.mxu1 %v3635_v24  ;;  %s3642_s14 = smov 56  }
 0x11d   : > { %v571_v0 = vld [vmem:[%s3998_s24] sm:$0xff]  ;;  %v573_v1 = vld [vmem:[%s3998_s24 + $0x10] sm:$0x1]  ;;  %v572_v2 = vld [vmem:[%s3998_s24 + $0x8] sm:$0xff]  ;;  %s3643_s16 = smov 80   ;;  %s3644_s15 = smov 112  }
 0x11e   : > { %v577_v3 = vsel %vm576_vm0, %v571_v0, 0.0  ;;  %v584_v4 = vsel %vm583_vm1, %v573_v1, 0.0  ;;  %v580_v5 = vsel %vm576_vm0, %v572_v2, 0.0  ;;  %s3645_s23 = smov 48   ;;  %s3646_s25 = smov 72  }
 0x11f   : > { %578 = vadd.xlane.f32.xlu0 %v577_v3  ;;  %585 = vadd.xlane.f32.xlu1 %v584_v4  ;;  %s3647_s30 = smov 104   ;;  %s3648_s26 = smov 40  }
 0x120   : > { %3010 = vmatpush3.bf16.msra.mxu1 %v3009_v28 }
 0x121   : > { %3011 = vmatprep.subr.bf16.mxu1 %v3635_v24 }
 0x123   : > { %581 = vadd.xlane.f32.xlu0 %v580_v5 }
 0x1ac   : > { %v579_v6 = vpop.xlane.xlu0 %578  ;;  %v586_v7 = vpop.xlane.xlu1 %585 }
 0x1ad   : > { %v588_v8 = vmul.f32 0.03125, %v579_v6  ;;  %v590_v9 = vmul.f32 0.03125, %v586_v7 }
 0x1af   : > { %v591_v10 = vsub.f32 %v571_v0, %v588_v8  ;;  %v593_v11 = vsub.f32 %v573_v1, %v590_v9 }
 0x1b0   : > { %v582_v12 = vpop.xlane.xlu0 %581 }
 0x1b1   : > { %v589_v13 = vmul.f32 0.03125, %v582_v12  ;;  %v594_v14 = vmul.f32 %v591_v10, %v591_v10  ;;  %v596_v15 = vmul.f32 %v593_v11, %v593_v11 }
 0x1b3   : > { %v592_v16 = vsub.f32 %v572_v2, %v589_v13  ;;  %v597_v17 = vsel %vm576_vm0, %v594_v14, 0.0  ;;  %v603_v18 = vsel %vm583_vm1, %v596_v15, 0.0 }
 0x1b4   : > { %598 = vadd.xlane.f32.xlu1 %v597_v17 }
 0x1b5   : > { %v595_v19 = vmul.f32 %v592_v16, %v592_v16 }
 0x1b7   : > { %v600_v20 = vsel %vm576_vm0, %v595_v19, 0.0 }
 0x1b8   : > { %604 = vadd.xlane.f32.xlu1 %v603_v18  ;;  %601 = vadd.xlane.f32.xlu0 %v600_v20 }
 0x241   : > { %v599_v29 = vpop.xlane.xlu1 %598 }
 0x242   : > { %v606_v30 = vmul.f32 0.03125, %v599_v29 }
 0x244   : > { %v609_v31 = vadd.f32 1e-06, %v606_v30 }
 0x245   : > { %v605_v32 = vpop.xlane.xlu1 %604  ;;  %v602_v33 = vpop.xlane.xlu0 %601 }
 0x246   : > { %3236 = vrsqrt.f32 %v609_v31  ;;  %v608_v34 = vmul.f32 0.03125, %v605_v32  ;;  %v607_v35 = vmul.f32 0.03125, %v602_v33 }
 0x248   : > { %v611_v36 = vadd.f32 1e-06, %v608_v34  ;;  %v610_v37 = vadd.f32 1e-06, %v607_v35 }
 0x24a   : > { %3238 = vrsqrt.f32 %v611_v36 }
 0x24b   : > { %3240 = vrsqrt.f32 %v610_v37 }
 0x250   : > { %v3237_v38 = vpop.eup %3236 }
 0x251   : > { %v615_v40 = vmul.f32 %v3237_v38, %v591_v10 }
 0x253   : > { %v624_v42 = vmul.f32 %v2601_v39, %v615_v40 }
 0x254   : > { %v3239_v43 = vpop.eup %3238 }
 0x255   : > { %v3241_v44 = vpop.eup %3240  ;;  %v633_v45 = vadd.f32 %v2602_v41, %v624_v42  ;;  %v617_v47 = vmul.f32 %v3239_v43, %v593_v11 }
 0x256   : > { %v616_v46 = vmul.f32 %v3241_v44, %v592_v16 }
 0x257   : > { %2775 = vmatmul.mubr.msk.f32.vlgmr.msra.gmra.mrb[0].mxu1 %vm576_vm0, %v633_v45  ;;  %v626_v50 = vmul.f32 %v2601_v39, %v617_v47 }
 0x258   : > { %2777 = vmatprep.mubr.msk.f32.mxu1 %vm3636_vm2, %v3637_v27  ;;  %v625_v48 = vmul.f32 %v2601_v39, %v616_v46 }
 0x259   : > { %v635_v51 = vadd.f32 %v2602_v41, %v626_v50 }
 0x25a   : > { %v634_v49 = vadd.f32 %v2602_v41, %v625_v48 }
 0x25c   : > { %2778 = vmatmul.mubr.msk.f32.gmra.mrb[2].mxu1 %vm576_vm0, %v634_v49 }
 0x25d   : > { %2780 = vmatprep.mubr.msk.f32.mxu1 %vm3636_vm2, %v3637_v27 }
 0x260   : > { %2781 = vmatmul.mubr.msk.f32.gmra.mrb[4].mxu1 %vm576_vm0, %v635_v51 }
 0x261   : > { %2789 = vmatprep.mubr.msk.f32.mxu1 %vm3636_vm2, %v3637_v27 }
 0x32a   : > { %v722_v52 = vpop.f32.mrb[0].mxu1 }
 0x32b   : > { %v2776_v53 = vpop.f32.mrb[1].mxu1  ;;  %v4026_v56 = vadd.f32 %v2603_v54, %v722_v52 }
 0x32f   : > { %v727_v55 = vpop.f32.mrb[2].mxu1 }
 0x330   : > { %v4028_v57 = vadd.f32 %v2603_v54, %v727_v55  ;;  %v2779_v58 = vpop.f32.mrb[3].mxu1 }
 0x332   : > { %v4032_v59 = vpack.i.bf16 %v4028_v57, %v4026_v56 }
 0x333   : > { %v732_v60 = vpop.f32.mrb[4].mxu1 }
 0x334   : > { %v4034_v61 = vadd.f32 %v2603_v54, %v732_v60  ;;  %3197 = vrot.lane.b32.xlu0 %v4032_v59, %s3638_s4  ;;  %v2782_v62 = vpop.f32.mrb[5].mxu1 }
 0x336   : > { %743 = vrot.lane.b32.xlu1 %v4034_v61, %s3638_s4  ;;  %s570_s4 = scalar_lea.vmem %s4398_s13, %s3069_s29 }
 0x338   : > { %977 = vrot.lane.b32.xlu0 %v4026_v56, %s3639_s20 }
 0x33a   : > { %3202 = vrot.lane.b32.xlu1 %v4032_v59, %s3640_s2 }
 0x33c   : > { %981 = vrot.lane.b32.xlu0 %v4034_v61, %s3639_s20 }
 0x33e   : > { %987 = vrot.lane.b32.xlu1 %v4034_v61, %s3640_s2 }
 0x342   : > { %979 = vrot.lane.b32.xlu1 %v4028_v57, %s3639_s20 }
 0x3a6   : > { %v3198_v63 = vpop.permute.xlu0 %3197 }
 0x3a7   : > { %v3200_v0 = vunpack.i.h.bf16 %v3198_v63  ;;  %v3199_v1 = vunpack.i.l.bf16 %v3198_v63 }
 0x3a8   : > { %v744_v2 = vpop.permute.xlu1 %743 }
 0x3a9   : > { %v3012_v4 = vpack.c.bf16 %v3200_v0, %v3199_v1 }
 0x3aa   : > { %v978_v10 = vpop.permute.xlu0 %977 }
 0x3ab   : > { %3014 = vmatpush3.bf16.xpose.msk.msra.mxu1 %vm4045_vm4, %v3012_v4 }
 0x3ac   : > { %2787 = vmatprep.subr.mxu1 %v3637_v27  ;;  %v3203_v5 = vpop.permute.xlu1 %3202 }
 0x3ad   : > { %v3205_v6 = vunpack.i.h.bf16 %v3203_v5  ;;  %v3204_v7 = vunpack.i.l.bf16 %v3203_v5 }
 0x3ae   : > { %v982_v12 = vpop.permute.xlu0 %981 }
 0x3af   : > { %v3019_v8 = vpack.c.bf16 %v3205_v6, %v3204_v7 }
 0x3b0   : > { %v988_v9 = vpop.permute.xlu1 %987 }
 0x3b3   : > { %2788 = vmatpush3.xpose.msk.msra.mxu1 %vm745_vm3, %v744_v2 }
 0x3b4   : > { %3018 = vmatprep.subr.bf16.mxu1 %v3635_v24  ;;  %v980_v11 = vpop.permute.xlu1 %979 }
 0x3b6   : > { %2790 = vmatmul.mubr.msk.f32.vlgmr.msra.gmra.mrb[6].mxu1 %vm745_vm3, %v4026_v56 }
 0x3b7   : > { %3021 = vmatpush3.bf16.xpose.msk.msra.mxu1 %vm4045_vm4, %v3019_v8  ;;  %2792 = vmatprep.mubr.msk.f32.mxu1 %vm3636_vm2, %v3637_v27 }
 0x3b8   : > { %2817 = vmatprep.subr.mxu1 %v3637_v27 }
 0x3ba   : > { %2793 = vmatmul.mubr.msk.f32.gmra.mrb[8].mxu1 %vm745_vm3, %v4028_v57 }
 0x3bb   : > { %2795 = vmatprep.mubr.msk.f32.mxu1 %vm3636_vm2, %v3637_v27 }
 0x3be   : > { %2796 = vmatmul.mubr.msk.f32.gmra.mrb[10].mxu1 %vm745_vm3, %v4034_v61 }
 0x3bf   : > { %2818 = vmatpush3.xpose.msk.msra.mxu1 %vm745_vm3, %v988_v9  ;;  %2819 = vmatprep.mubr.msk.f32.mxu1 %vm3636_vm2, %v3637_v27 }
 0x3c0   : > { %2843 = vmatprep.subr.mxu1 %v3637_v27 }
 0x3c2   : > { %2820 = vmatmul.mubr.msk.f32.vlgmr.msra.gmra.mrb[12].mxu1 %vm745_vm3, %v978_v10 }
 0x3c3   : > { %2822 = vmatprep.mubr.msk.f32.mxu1 %vm3636_vm2, %v3637_v27 }
 0x3c6   : > { %2823 = vmatmul.mubr.msk.f32.gmra.mrb[14].mxu1 %vm745_vm3, %v980_v11 }
 0x3c7   : > { %2825 = vmatprep.mubr.msk.f32.mxu1 %vm3636_vm2, %v3637_v27 }
 0x3ca   : > { %2826 = vmatmul.mubr.msk.f32.gmra.mrb[16].mxu1 %vm745_vm3, %v982_v12 }
 0x3cb   : > { %2845 = vmatprep.mubr.msk.f32.mxu1 %vm3636_vm2, %v3637_v27 }
 0x489   : > { %v824_v13 = vpop.f32.mrb[6].mxu1 }
 0x48a   : > { %v838_v14 = vmul.f32 0.35355338, %v824_v13  ;;  %v2791_v15 = vpop.f32.mrb[7].mxu1 }
 0x48c   : > { %v842_v16 = vsel %vm841_vm5, %v838_v14, -inf }
 0x48d   : > { %843 = vmax.xlane.f32.xlu1 %v842_v16  ;;  %v829_v17 = vpop.f32.mrb[8].mxu1 }
 0x48e   : > { %v839_v18 = vmul.f32 0.35355338, %v829_v17  ;;  %v2794_v19 = vpop.f32.mrb[9].mxu1 }
 0x490   : > { %v845_v20 = vsel %vm841_vm5, %v839_v18, -inf }
 0x491   : > { %846 = vmax.xlane.f32.xlu0 %v845_v20  ;;  %v834_v21 = vpop.f32.mrb[10].mxu1 }
 0x492   : > { %v840_v22 = vmul.f32 0.35355338, %v834_v21  ;;  %v2797_v23 = vpop.f32.mrb[11].mxu1 }
 0x494   : > { %v849_v25 = vsel %vm848_vm6, %v840_v22, -inf }
 0x495   : > { %850 = vmax.xlane.f32.xlu0 %v849_v25  ;;  %v1067_v26 = vpop.f32.mrb[12].mxu1 }
 0x496   : > { %v1081_v28 = vmul.f32 0.35355338, %v1067_v26  ;;  %v2821_v29 = vpop.f32.mrb[13].mxu1 }
 0x498   : > { %v1084_v30 = vsel %vm841_vm5, %v1081_v28, -inf }
 0x499   : > { %1085 = vmax.xlane.f32.xlu0 %v1084_v30  ;;  %v1072_v31 = vpop.f32.mrb[14].mxu1 }
 0x49a   : > { %v1082_v32 = vmul.f32 0.35355338, %v1072_v31  ;;  %v2824_v33 = vpop.f32.mrb[15].mxu1 }
 0x49c   : > { %v1087_v34 = vsel %vm841_vm5, %v1082_v32, -inf }
 0x49d   : > { %1088 = vmax.xlane.f32.xlu1 %v1087_v34  ;;  %v1077_v35 = vpop.f32.mrb[16].mxu1 }
 0x49e   : > { %v1083_v36 = vmul.f32 0.35355338, %v1077_v35  ;;  %v2827_v37 = vpop.f32.mrb[17].mxu1 }
 0x4a0   : > { %v1090_v38 = vsel %vm848_vm6, %v1083_v36, -inf }
 0x4a1   : > { %1091 = vmax.xlane.f32.xlu0 %v1090_v38 }
 0x4ae   : > { %880 = vrot.lane.b32.xlu1 %v4034_v61, %s3641_s27 }
 0x4b7   : > { %3207 = vrot.lane.b32.xlu0 %v4032_v59, %s3641_s27 }
 0x51a   : > { %v844_v39 = vpop.xlane.xlu1 %843 }
 0x51b   : > { %v852_v40 = vsub.f32 %v838_v14, %v844_v39 }
 0x51d   : > { %v855_v41 = vmul.f32 1.442695, %v852_v40  ;;  %v976_v40 = vld [vmem:[%s4390_s5] sm:$0xff] }
 0x51e   : > { %v847_v42 = vpop.xlane.xlu0 %846 }
 0x51f   : > { %3242 = vpow2.f32 %v855_v41  ;;  %v853_v43 = vsub.f32 %v839_v18, %v847_v42  ;;  %v1216_v41 = vld [vmem:[%s4390_s5 + $0x8] sm:$0xff] }
 0x520   : > { %2844 = vmatpush3.msra.mxu1 %v1216_v41 }
 0x521   : > { %v857_v44 = vmul.f32 1.442695, %v853_v43  ;;  %3025 = vmatprep.subr.bf16.mxu1 %v3635_v24 }
 0x522   : > { %v851_v45 = vpop.xlane.xlu0 %850 }
 0x523   : > { %3244 = vpow2.f32 %v857_v44  ;;  %v854_v46 = vsub.f32 %v840_v22, %v851_v45 }
 0x525   : > { %v859_v47 = vmul.f32 1.442695, %v854_v46 }
 0x526   : > { %v1086_v48 = vpop.xlane.xlu0 %1085 }
 0x527   : > { %3246 = vpow2.f32 %v859_v47  ;;  %v1093_v49 = vsub.f32 %v1081_v28, %v1086_v48 }
 0x529   : > { %v3243_v50 = vpop.eup %3242  ;;  %v1096_v51 = vmul.f32 1.442695, %v1093_v49 }
 0x52a   : > { %v1089_v52 = vpop.xlane.xlu1 %1088  ;;  %v861_v53 = vsel %vm841_vm5, %v3243_v50, 0.0 }
 0x52b   : > { %3248 = vpow2.f32 %v1096_v51  ;;  %v1094_v54 = vsub.f32 %v1082_v32, %v1089_v52  ;;  %862 = vadd.xlane.f32.xlu1 %v861_v53 }
 0x52d   : > { %v3245_v55 = vpop.eup %3244  ;;  %v1098_v58 = vmul.f32 1.442695, %v1094_v54 }
 0x52e   : > { %v1092_v60 = vpop.xlane.xlu0 %1091  ;;  %v864_v62 = vsel %vm841_vm5, %v3245_v55, 0.0  ;;  %v881_v11 = vpop.permute.xlu1 %880 }
 0x52f   : > { %3250 = vpow2.f32 %v1098_v58  ;;  %v1095_v63 = vsub.f32 %v1083_v36, %v1092_v60  ;;  %865 = vadd.xlane.f32.xlu0 %v864_v62 }
 0x531   : > { %v3247_v0 = vpop.eup %3246  ;;  %v1100_v1 = vmul.f32 1.442695, %v1095_v63 }
 0x532   : > { %v3208_v2 = vpop.permute.xlu0 %3207  ;;  %v867_v4 = vsel %vm848_vm6, %v3247_v0, 0.0 }
 0x533   : > { %3252 = vpow2.f32 %v1100_v1  ;;  %v3210_v5 = vunpack.i.h.bf16 %v3208_v2  ;;  %v3209_v6 = vunpack.i.l.bf16 %v3208_v2  ;;  %868 = vadd.xlane.f32.xlu1 %v867_v4 }
 0x535   : > { %v3249_v7 = vpop.eup %3248  ;;  %v3016_v8 = vpack.c.bf16 %v3210_v5, %v3209_v6 }
 0x536   : > { %v1102_v9 = vsel %vm841_vm5, %v3249_v7, 0.0 }
 0x537   : > { %1103 = vadd.xlane.f32.xlu0 %v1102_v9  ;;  %3017 = vmatpush3.bf16.msra.mxu0 %v3016_v8 }
 0x538   : > { %2802 = vmatprep.subr.mxu0 %v3637_v27 }
 0x539   : > { %v3251_v10 = vpop.eup %3250 }
 0x53a   : > { %v1105_v12 = vsel %vm841_vm5, %v3251_v10, 0.0 }
 0x53b   : > { %1106 = vadd.xlane.f32.xlu1 %v1105_v12  ;;  %2803 = vmatpush3.msk.msra.mxu0 %vm893_vm7, %v881_v11 }
 0x53c   : > { %3022 = vmatprep.subr.bf16.mxu0 %v3635_v24 }
 0x53d   : > { %v3253_v13 = vpop.eup %3252 }
 0x53e   : > { %v1108_v14 = vsel %vm848_vm6, %v3253_v13, 0.0 }
 0x53f   : > { %1109 = vadd.xlane.f32.xlu1 %v1108_v14 }
 0x54d   : > { %1121 = vrot.lane.b32.xlu0 %v4034_v61, %s3642_s14 }
 0x550   : > { %3212 = vrot.lane.b32.xlu1 %v4032_v59, %s3642_s14 }
 0x551   : > { %1405 = vrot.lane.b32.xlu0 %v4034_v61, %s3643_s16 }
 0x554   : > { %3217 = vrot.lane.b32.xlu1 %v4032_v59, %s3643_s16 }
 0x555   : > { %1397 = vrot.lane.b32.xlu0 %v4028_v57, %s3644_s15 }
 0x558   : > { %1395 = vrot.lane.b32.xlu1 %v4026_v56, %s3644_s15 }
 0x55c   : > { %1399 = vrot.lane.b32.xlu1 %v4034_v61, %s3644_s15 }
 0x5b8   : > { %v863_v15 = vpop.xlane.xlu1 %862 }
 0x5b9   : > { %3254 = vrcp.f32 %v863_v15 }
 0x5bc   : > { %v866_v16 = vpop.xlane.xlu0 %865 }
 0x5bd   : > { %3256 = vrcp.f32 %v866_v16 }
 0x5c0   : > { %v869_v17 = vpop.xlane.xlu1 %868 }
 0x5c1   : > { %3258 = vrcp.f32 %v869_v17 }
 0x5c3   : > { %v3255_v18 = vpop.eup %3254 }
 0x5c4   : > { %v873_v19 = vmul.f32 %v3255_v18, %v3243_v50  ;;  %v1104_v21 = vpop.xlane.xlu0 %1103 }
 0x5c5   : > { %3260 = vrcp.f32 %v1104_v21 }
 0x5c6   : > { %2805 = vmatmul.mubr.msk.f32.vlgmr.msra.gmra.mrb[0].mxu0 %vm841_vm5, %v873_v19 }
 0x5c7   : > { %v3257_v20 = vpop.eup %3256  ;;  %2807 = vmatprep.mubr.msk.f32.mxu0 %vm3636_vm2, %v3637_v27 }
 0x5c8   : > { %v1107_v22 = vpop.xlane.xlu1 %1106  ;;  %v874_v23 = vmul.f32 %v3257_v20, %v3245_v55  ;;  %v1122_v35 = vpop.permute.xlu0 %1121 }
 0x5c9   : > { %3262 = vrcp.f32 %v1107_v22 }
 0x5ca   : > { %2808 = vmatmul.mubr.msk.f32.gmra.mrb[2].mxu0 %vm841_vm5, %v874_v23 }
 0x5cb   : > { %v3259_v25 = vpop.eup %3258  ;;  %2810 = vmatprep.mubr.msk.f32.mxu0 %vm3636_vm2, %v3637_v27 }
 0x5cc   : > { %v1110_v26 = vpop.xlane.xlu1 %1109  ;;  %v875_v28 = vmul.f32 %v3259_v25, %v3247_v0  ;;  %v1406_v60 = vpop.permute.xlu0 %1405 }
 0x5cd   : > { %3264 = vrcp.f32 %v1110_v26 }
 0x5ce   : > { %2811 = vmatmul.mubr.msk.f32.gmra.mrb[4].mxu0 %vm841_vm5, %v875_v28 }
 0x5cf   : > { %2834 = vmatprep.mubr.msk.f32.mxu0 %vm3636_vm2, %v3637_v27  ;;  %v3261_v33 = vpop.eup %3260 }
 0x5d0   : > { %v3213_v29 = vpop.permute.xlu1 %3212  ;;  %v1114_v34 = vmul.f32 %v3261_v33, %v3249_v7  ;;  %v1398_v0 = vpop.permute.xlu0 %1397 }
 0x5d1   : > { %v3215_v30 = vunpack.i.h.bf16 %v3213_v29  ;;  %v3214_v31 = vunpack.i.l.bf16 %v3213_v29 }
 0x5d3   : > { %v3023_v32 = vpack.c.bf16 %v3215_v30, %v3214_v31  ;;  %v3263_v36 = vpop.eup %3262 }
 0x5d4   : > { %v1115_v37 = vmul.f32 %v3263_v36, %v3251_v10  ;;  %v3218_v48 = vpop.permute.xlu1 %3217 }
 0x5d5   : > { %3024 = vmatpush3.bf16.msra.mxu0 %v3023_v32  ;;  %v3220_v49 = vunpack.i.h.bf16 %v3218_v48  ;;  %v3219_v50 = vunpack.i.l.bf16 %v3218_v48 }
 0x5d6   : > { %2832 = vmatprep.subr.mxu0 %v3637_v27 }
 0x5d7   : > { %v3265_v38 = vpop.eup %3264  ;;  %v3026_v51 = vpack.c.bf16 %v3220_v49, %v3219_v50 }
 0x5d8   : > { %v1116_v39 = vmul.f32 %v3265_v38, %v3253_v13  ;;  %v1396_v63 = vpop.permute.xlu1 %1395 }
 0x5d9   : > { %2833 = vmatpush3.msk.msra.mxu0 %vm893_vm7, %v1122_v35 }
 0x5da   : > { %2835 = vmatmul.mubr.msk.f32.vlgmr.msra.gmra.mrb[6].mxu0 %vm841_vm5, %v1114_v34  ;;  %2854 = vmatprep.subr.mxu0 %v3637_v27 }
 0x5db   : > { %2837 = vmatprep.mubr.msk.f32.mxu0 %vm3636_vm2, %v3637_v27  ;;  %2855 = vmatpush3.msra.mxu0 %v976_v40 }
 0x5dc   : > { %3029 = vmatprep.subr.bf16.mxu0 %v3635_v24  ;;  %v1400_v1 = vpop.permute.xlu1 %1399 }
 0x5de   : > { %2838 = vmatmul.mubr.msk.f32.gmra.mrb[8].mxu0 %vm841_vm5, %v1115_v37 }
 0x5df   : > { %2840 = vmatprep.mubr.msk.f32.mxu0 %vm3636_vm2, %v3637_v27 }
 0x5e2   : > { %2841 = vmatmul.mubr.msk.f32.gmra.mrb[10].mxu0 %vm841_vm5, %v1116_v39 }
 0x5e3   : > { %2856 = vmatprep.mubr.msk.f32.mxu0 %vm3636_vm2, %v3637_v27 }
 0x699   : > { %v962_v42 = vpop.f32.mrb[0].mxu0 }
 0x69a   : > { %v2806_v43 = vpop.f32.mrb[1].mxu0  ;;  %2857 = vmatmul.mubr.msk.f32.vlgmr.msra.gmra.mrb[12].mxu0 %vm745_vm3, %v962_v42 }
 0x69b   : > { %2859 = vmatprep.mubr.msk.f32.mxu0 %vm3636_vm2, %v3637_v27 }
 0x69d   : > { %v967_v44 = vpop.f32.mrb[2].mxu0 }
 0x69e   : > { %v2809_v45 = vpop.f32.mrb[3].mxu0  ;;  %2860 = vmatmul.mubr.msk.f32.gmra.mrb[14].mxu0 %vm745_vm3, %v967_v44 }
 0x69f   : > { %2862 = vmatprep.mubr.msk.f32.mxu0 %vm3636_vm2, %v3637_v27 }
 0x6a1   : > { %v972_v46 = vpop.f32.mrb[4].mxu0 }
 0x6a2   : > { %v2812_v47 = vpop.f32.mrb[5].mxu0  ;;  %2863 = vmatmul.mubr.msk.f32.gmra.mrb[16].mxu0 %vm745_vm3, %v972_v46 }
 0x6a3   : > { %2886 = vmatprep.mubr.msk.f32.mxu0 %vm3636_vm2, %v3637_v27 }
 0x6ad   : > { %v1202_v52 = vpop.f32.mrb[6].mxu0 }
 0x6ae   : > { %v2836_v53 = vpop.f32.mrb[7].mxu0  ;;  %2846 = vmatmul.mubr.msk.f32.vlgmr.msra.gmra.mrb[18].mxu1 %vm745_vm3, %v1202_v52 }
 0x6af   : > { %3028 = vmatpush3.bf16.xpose.msk.msra.mxu1 %vm4045_vm4, %v3026_v51  ;;  %2848 = vmatprep.mubr.msk.f32.mxu1 %vm3636_vm2, %v3637_v27 }
 0x6b0   : > { %2869 = vmatprep.subr.mxu1 %v3637_v27 }
 0x6b1   : > { %v1207_v54 = vpop.f32.mrb[8].mxu0 }
 0x6b2   : > { %v2839_v55 = vpop.f32.mrb[9].mxu0  ;;  %2849 = vmatmul.mubr.msk.f32.gmra.mrb[20].mxu1 %vm745_vm3, %v1207_v54 }
 0x6b3   : > { %2851 = vmatprep.mubr.msk.f32.mxu1 %vm3636_vm2, %v3637_v27 }
 0x6b5   : > { %v1212_v58 = vpop.f32.mrb[10].mxu0 }
 0x6b6   : > { %v2842_v62 = vpop.f32.mrb[11].mxu0  ;;  %2852 = vmatmul.mubr.msk.f32.gmra.mrb[22].mxu1 %vm745_vm3, %v1212_v58 }
 0x6b7   : > { %2870 = vmatpush3.xpose.msk.msra.mxu1 %vm745_vm3, %v1406_v60  ;;  %2871 = vmatprep.mubr.msk.f32.mxu1 %vm3636_vm2, %v3637_v27 }
 0x6b8   : > { %2895 = vmatprep.subr.mxu1 %v3637_v27 }
 0x6ba   : > { %2872 = vmatmul.mubr.msk.f32.vlgmr.msra.gmra.mrb[24].mxu1 %vm745_vm3, %v1396_v63 }
 0x6bb   : > { %2874 = vmatprep.mubr.msk.f32.mxu1 %vm3636_vm2, %v3637_v27 }
 0x6be   : > { %2875 = vmatmul.mubr.msk.f32.gmra.mrb[26].mxu1 %vm745_vm3, %v1398_v0 }
 0x6bf   : > { %2877 = vmatprep.mubr.msk.f32.mxu1 %vm3636_vm2, %v3637_v27 }
 0x6c2   : > { %2878 = vmatmul.mubr.msk.f32.gmra.mrb[28].mxu1 %vm745_vm3, %v1400_v1 }
 0x6c3   : > { %2897 = vmatprep.mubr.msk.f32.mxu1 %vm3636_vm2, %v3637_v27 }
 0x76d   : > { %v1381_v2 = vpop.f32.mrb[12].mxu0 }
 0x76e   : > { %v2858_v4 = vpop.f32.mrb[13].mxu0 }
 0x771   : > { %v1386_v5 = vpop.f32.mrb[14].mxu0 }
 0x772   : > { %v2861_v6 = vpop.f32.mrb[15].mxu0 }
 0x775   : > { %v1391_v7 = vpop.f32.mrb[16].mxu0 }
 0x776   : > { %v2864_v8 = vpop.f32.mrb[17].mxu0 }
 0x781   : > { %v1292_v9 = vpop.f32.mrb[18].mxu1 }
 0x782   : > { %v4165_v10 = vadd.f32 %v1381_v2, %v1292_v9  ;;  %v2847_v11 = vpop.f32.mrb[19].mxu1 }
 0x785   : > { %v1297_v12 = vpop.f32.mrb[20].mxu1 }
 0x786   : > { %v4167_v13 = vadd.f32 %v1386_v5, %v1297_v12  ;;  %v2850_v14 = vpop.f32.mrb[21].mxu1 }
 0x789   : > { %v1302_v15 = vpop.f32.mrb[22].mxu1 }
 0x78a   : > { %v4169_v16 = vadd.f32 %v1391_v7, %v1302_v15  ;;  %v2853_v17 = vpop.f32.mrb[23].mxu1  ;;  %v1634_v7 = vld [vmem:[%s4390_s5 + $0x10] sm:$0xff] }
 0x78b   : > { %2896 = vmatpush3.msra.mxu1 %v1634_v7 }
 0x78c   : > { %3036 = vmatprep.subr.bf16.mxu1 %v3635_v24 }
 0x78d   : > { %v1485_v18 = vpop.f32.mrb[24].mxu1 }
 0x78e   : > { %v1499_v19 = vmul.f32 0.35355338, %v1485_v18  ;;  %v2873_v20 = vpop.f32.mrb[25].mxu1 }
 0x790   : > { %v1502_v21 = vsel %vm841_vm5, %v1499_v19, -inf }
 0x791   : > { %1503 = vmax.xlane.f32.xlu0 %v1502_v21  ;;  %v1490_v22 = vpop.f32.mrb[26].mxu1 }
 0x792   : > { %v1500_v23 = vmul.f32 0.35355338, %v1490_v22  ;;  %v2876_v25 = vpop.f32.mrb[27].mxu1 }
 0x794   : > { %v1505_v26 = vsel %vm841_vm5, %v1500_v23, -inf }
 0x795   : > { %1506 = vmax.xlane.f32.xlu1 %v1505_v26  ;;  %v1495_v28 = vpop.f32.mrb[28].mxu1 }
 0x796   : > { %v1501_v29 = vmul.f32 0.35355338, %v1495_v28  ;;  %v2879_v30 = vpop.f32.mrb[29].mxu1 }
 0x798   : > { %v1508_v31 = vsel %vm848_vm6, %v1501_v29, -inf }
 0x799   : > { %1509 = vmax.xlane.f32.xlu0 %v1508_v31 }
 0x7a6   : > { %1539 = vrot.lane.b32.xlu1 %v4034_v61, %s3645_s23 }
 0x7aa   : > { %3227 = vrot.lane.b32.xlu1 %v4032_v59, %s3646_s25 }
 0x7ae   : > { %1737 = vrot.lane.b32.xlu1 %v4034_v61, %s3646_s25 }
 0x81e   : > { %v1504_v32 = vpop.xlane.xlu0 %1503 }
 0x81f   : > { %v1511_v33 = vsub.f32 %v1499_v19, %v1504_v32 }
 0x821   : > { %v1514_v34 = vmul.f32 1.442695, %v1511_v33 }
 0x822   : > { %v1507_v35 = vpop.xlane.xlu1 %1506 }
 0x823   : > { %3266 = vpow2.f32 %v1514_v34  ;;  %v1512_v36 = vsub.f32 %v1500_v23, %v1507_v35 }
 0x825   : > { %v1516_v37 = vmul.f32 1.442695, %v1512_v36 }
 0x826   : > { %v1510_v38 = vpop.xlane.xlu0 %1509  ;;  %v1540_v47 = vpop.permute.xlu1 %1539 }
 0x827   : > { %3268 = vpow2.f32 %v1516_v37  ;;  %v1513_v39 = vsub.f32 %v1501_v29, %v1510_v38 }
 0x829   : > { %v1518_v40 = vmul.f32 1.442695, %v1513_v39 }
 0x82a   : > { %v3228_v48 = vpop.permute.xlu1 %3227 }
 0x82b   : > { %3270 = vpow2.f32 %v1518_v40  ;;  %v3230_v62 = vunpack.i.h.bf16 %v3228_v48  ;;  %v3229_v63 = vunpack.i.l.bf16 %v3228_v48 }
 0x82d   : > { %v3267_v41 = vpop.eup %3266  ;;  %v3033_v2 = vpack.c.bf16 %v3230_v62, %v3229_v63 }
 0x82e   : > { %v1520_v42 = vsel %vm841_vm5, %v3267_v41, 0.0  ;;  %v1738_v50 = vpop.permute.xlu1 %1737 }
 0x82f   : > { %1521 = vadd.xlane.f32.xlu0 %v1520_v42 }
 0x831   : > { %v3269_v43 = vpop.eup %3268 }
 0x832   : > { %v1523_v44 = vsel %vm841_vm5, %v3269_v43, 0.0 }
 0x833   : > { %1524 = vadd.xlane.f32.xlu0 %v1523_v44 }
 0x835   : > { %v3271_v45 = vpop.eup %3270 }
 0x836   : > { %v1526_v46 = vsel %vm848_vm6, %v3271_v45, 0.0 }
 0x837   : > { %1527 = vadd.xlane.f32.xlu1 %v1526_v46 }
 0x848   : > { %1729 = vrot.lane.b32.xlu1 %v4028_v57, %s3647_s30 }
 0x849   : > { %3222 = vrot.lane.b32.xlu0 %v4032_v59, %s3645_s23 }
 0x84d   : > { %1727 = vrot.lane.b32.xlu0 %v4026_v56, %s3647_s30 }
 0x851   : > { %1731 = vrot.lane.b32.xlu0 %v4034_v61, %s3647_s30 }
 0x8bc   : > { %v1522_v49 = vpop.xlane.xlu0 %1521 }
 0x8bd   : > { %3272 = vrcp.f32 %v1522_v49 }
 0x8c0   : > { %v1525_v51 = vpop.xlane.xlu0 %1524 }
 0x8c1   : > { %3274 = vrcp.f32 %v1525_v51 }
 0x8c4   : > { %v1528_v52 = vpop.xlane.xlu1 %1527  ;;  %v3223_v53 = vpop.permute.xlu0 %3222 }
 0x8c5   : > { %v3225_v54 = vunpack.i.h.bf16 %v3223_v53  ;;  %v3224_v55 = vunpack.i.l.bf16 %v3223_v53  ;;  %3276 = vrcp.f32 %v1528_v52  ;;  %v1966_v52 = vld [vmem:[%s4390_s5 + $0x18] sm:$0xff] }
 0x8c7   : > { %v3030_v58 = vpack.c.bf16 %v3225_v54, %v3224_v55  ;;  %v3273_v57 = vpop.eup %3272 }
 0x8c8   : > { %v1532_v56 = vmul.f32 %v3273_v57, %v3267_v41  ;;  %v1728_v5 = vpop.permute.xlu0 %1727  ;;  %v1730_v3 = vpop.permute.xlu1 %1729 }
 0x8c9   : > { %3031 = vmatpush3.bf16.msra.mxu0 %v3030_v58 }
 0x8ca   : > { %2884 = vmatprep.subr.mxu0 %v3637_v27 }
 0x8cb   : > { %v3275_v60 = vpop.eup %3274 }
 0x8cc   : > { %v1533_v0 = vmul.f32 %v3275_v60, %v3269_v43  ;;  %v1732_v6 = vpop.permute.xlu0 %1731 }
 0x8cd   : > { %2885 = vmatpush3.msk.msra.mxu0 %vm893_vm7, %v1540_v47 }
 0x8ce   : > { %2887 = vmatmul.mubr.msk.f32.vlgmr.msra.gmra.mrb[18].mxu0 %vm841_vm5, %v1532_v56  ;;  %3032 = vmatprep.subr.bf16.mxu0 %v3635_v24 }
 0x8cf   : > { %2889 = vmatprep.mubr.msk.f32.mxu0 %vm3636_vm2, %v3637_v27  ;;  %v3277_v1 = vpop.eup %3276 }
 0x8d0   : > { %v1534_v4 = vmul.f32 %v3277_v1, %v3271_v45 }
 0x8d2   : > { %2890 = vmatmul.mubr.msk.f32.gmra.mrb[20].mxu0 %vm841_vm5, %v1533_v0 }
 0x8d3   : > { %2892 = vmatprep.mubr.msk.f32.mxu0 %vm3636_vm2, %v3637_v27 }
 0x8d4   : > { %3035 = vmatpush3.bf16.xpose.msk.msra.mxu0 %vm4045_vm4, %v3033_v2 }
 0x8d5   : > { %2910 = vmatprep.subr.mxu0 %v3637_v27 }
 0x8d6   : > { %2893 = vmatmul.mubr.msk.f32.gmra.mrb[22].mxu0 %vm841_vm5, %v1534_v4 }
 0x8d7   : > { %2912 = vmatprep.mubr.msk.f32.mxu0 %vm3636_vm2, %v3637_v27 }
 0x8dc   : > { %2911 = vmatpush3.xpose.msk.msra.mxu0 %vm745_vm3, %v1738_v50 }
 0x8dd   : > { %2936 = vmatprep.subr.mxu0 %v3637_v27 }
 0x8df   : > { %2913 = vmatmul.mubr.msk.f32.vlgmr.msra.gmra.mrb[24].mxu0 %vm745_vm3, %v1728_v5 }
 0x8e0   : > { %2915 = vmatprep.mubr.msk.f32.mxu0 %vm3636_vm2, %v3637_v27  ;;  %2937 = vmatpush3.msra.mxu0 %v1966_v52  ;;  %v2132_v52 = vld [vmem:[#allocation13 + $0x8] sm:$0xff] }
 0x8e1   : > { %3045 = vmatprep.subr.bf16.mxu0 %v3635_v24 }
 0x8e3   : > { %2916 = vmatmul.mubr.msk.f32.gmra.mrb[26].mxu0 %vm745_vm3, %v1730_v3 }
 0x8e4   : > { %2918 = vmatprep.mubr.msk.f32.mxu0 %vm3636_vm2, %v3637_v27 }
 0x8e7   : > { %2919 = vmatmul.mubr.msk.f32.gmra.mrb[28].mxu0 %vm745_vm3, %v1732_v6 }
 0x8e8   : > { %2938 = vmatprep.mubr.msk.f32.mxu0 %vm3636_vm2, %v3637_v27 }
 0x9a1   : > { %v1620_v8 = vpop.f32.mrb[18].mxu0 }
 0x9a2   : > { %v2888_v9 = vpop.f32.mrb[19].mxu0  ;;  %2898 = vmatmul.mubr.msk.f32.vlgmr.msra.gmra.mrb[30].mxu1 %vm745_vm3, %v1620_v8 }
 0x9a3   : > { %2900 = vmatprep.mubr.msk.f32.mxu1 %vm3636_vm2, %v3637_v27 }
 0x9a5   : > { %v1625_v11 = vpop.f32.mrb[20].mxu0 }
 0x9a6   : > { %v2891_v12 = vpop.f32.mrb[21].mxu0  ;;  %2901 = vmatmul.mubr.msk.f32.gmra.mrb[32].mxu1 %vm745_vm3, %v1625_v11 }
 0x9a7   : > { %2903 = vmatprep.mubr.msk.f32.mxu1 %vm3636_vm2, %v3637_v27 }
 0x9a9   : > { %v1630_v14 = vpop.f32.mrb[22].mxu0 }
 0x9aa   : > { %v2894_v15 = vpop.f32.mrb[23].mxu0  ;;  %2904 = vmatmul.mubr.msk.f32.gmra.mrb[34].mxu1 %vm745_vm3, %v1630_v14  ;;  %v2659_v14 = vld [vmem:[#allocation9] ss:$0 sm:$0xff] }
 0x9ab   : > { %2927 = vmatprep.mubr.msk.f32.mxu1 %vm3636_vm2, %v3637_v27  ;;  %v3308_v15 = vld [vmem:[%s3998_s24] sm:$0xff] }
 0x9b2   : > { %v1817_v17 = vpop.f32.mrb[24].mxu0 }
 0x9b3   : > { %v1831_v18 = vmul.f32 0.35355338, %v1817_v17  ;;  %v2914_v19 = vpop.f32.mrb[25].mxu0 }
 0x9b5   : > { %v1834_v20 = vsel %vm841_vm5, %v1831_v18, -inf }
 0x9b6   : > { %1835 = vmax.xlane.f32.xlu1 %v1834_v20  ;;  %v1822_v21 = vpop.f32.mrb[26].mxu0 }
 0x9b7   : > { %v1832_v22 = vmul.f32 0.35355338, %v1822_v21  ;;  %v2917_v23 = vpop.f32.mrb[27].mxu0 }
 0x9b9   : > { %v1837_v25 = vsel %vm841_vm5, %v1832_v22, -inf }
 0x9ba   : > { %1838 = vmax.xlane.f32.xlu0 %v1837_v25  ;;  %v1827_v26 = vpop.f32.mrb[28].mxu0 }
 0x9bb   : > { %v1833_v28 = vmul.f32 0.35355338, %v1827_v26  ;;  %v2920_v29 = vpop.f32.mrb[29].mxu0 }
 0x9bd   : > { %v1840_v30 = vsel %vm848_vm6, %v1833_v28, -inf }
 0x9be   : > { %1841 = vmax.xlane.f32.xlu0 %v1840_v30 }
 0xa43   : > { %v1836_v31 = vpop.xlane.xlu1 %1835 }
 0xa44   : > { %v1843_v32 = vsub.f32 %v1831_v18, %v1836_v31  ;;  %v3310_v31 = vld [vmem:[%s3998_s24 + $0x10] sm:$0x1] }
 0xa46   : > { %v1846_v33 = vmul.f32 1.442695, %v1843_v32 }
 0xa47   : > { %v1839_v34 = vpop.xlane.xlu0 %1838 }
 0xa48   : > { %3278 = vpow2.f32 %v1846_v33  ;;  %v1844_v35 = vsub.f32 %v1832_v22, %v1839_v34  ;;  %v3309_v22 = vld [vmem:[%s3998_s24 + $0x8] sm:$0xff] }
 0xa4a   : > { %v1848_v36 = vmul.f32 1.442695, %v1844_v35 }
 0xa4b   : > { %v1842_v37 = vpop.xlane.xlu0 %1841 }
 0xa4c   : > { %3280 = vpow2.f32 %v1848_v36  ;;  %v1845_v38 = vsub.f32 %v1833_v28, %v1842_v37 }
 0xa4e   : > { %v1850_v39 = vmul.f32 1.442695, %v1845_v38 }
 0xa50   : > { %3282 = vpow2.f32 %v1850_v39 }
 0xa52   : > { %v3279_v40 = vpop.eup %3278 }
 0xa53   : > { %v1852_v41 = vsel %vm841_vm5, %v3279_v40, 0.0 }
 0xa54   : > { %1853 = vadd.xlane.f32.xlu0 %v1852_v41 }
 0xa56   : > { %v3281_v42 = vpop.eup %3280 }
 0xa57   : > { %v1855_v43 = vsel %vm841_vm5, %v3281_v42, 0.0 }
 0xa58   : > { %1856 = vadd.xlane.f32.xlu1 %v1855_v43 }
 0xa5a   : > { %v3283_v44 = vpop.eup %3282 }
 0xa5b   : > { %v1858_v45 = vsel %vm848_vm6, %v3283_v44, 0.0 }
 0xa5c   : > { %1859 = vadd.xlane.f32.xlu0 %v1858_v45 }
 0xa69   : > { %3232 = vrot.lane.b32.xlu1 %v4032_v59, %s3648_s26 }
 0xa72   : > { %1871 = vrot.lane.b32.xlu0 %v4034_v61, %s3648_s26 }
 0xa75   : > { %v1710_v46 = vpop.f32.mrb[30].mxu1 }
 0xa76   : > { %v1724_v47 = vadd.f32 %v1710_v46, %v4165_v10  ;;  %v2899_v48 = vpop.f32.mrb[31].mxu1 }
 0xa79   : > { %v1715_v49 = vpop.f32.mrb[32].mxu1 }
 0xa7a   : > { %v1725_v50 = vadd.f32 %v1715_v49, %v4167_v13  ;;  %v2902_v51 = vpop.f32.mrb[33].mxu1 }
 0xa7b   : > { %v2131_v51 = vld [vmem:[#allocation13] sm:$0xff] }
 0xa7d   : > { %v1720_v53 = vpop.f32.mrb[34].mxu1 }
 0xa7e   : > { %v1726_v59 = vadd.f32 %v1720_v53, %v4169_v16  ;;  %v2905_v54 = vpop.f32.mrb[35].mxu1  ;;  %v3040_v53 = vpack.c.bf16 %v2132_v52, %v2131_v51 }
 0xa7f   : > { %v2134_v54 = vld [vmem:[#allocation13 + $0x18] sm:$0xff] }
 0xae1   : > { %v1854_v61 = vpop.xlane.xlu0 %1853 }
 0xae2   : > { %3284 = vrcp.f32 %v1854_v61 }
 0xae5   : > { %v1857_v55 = vpop.xlane.xlu1 %1856 }
 0xae6   : > { %3286 = vrcp.f32 %v1857_v55 }
 0xae9   : > { %v3233_v10 = vpop.permute.xlu1 %3232  ;;  %v1860_v58 = vpop.xlane.xlu0 %1859 }
 0xaea   : > { %v3235_v57 = vunpack.i.h.bf16 %v3233_v10  ;;  %v3234_v13 = vunpack.i.l.bf16 %v3233_v10  ;;  %3288 = vrcp.f32 %v1860_v58 }
 0xaec   : > { %v3037_v56 = vpack.c.bf16 %v3235_v57, %v3234_v13  ;;  %v3285_v60 = vpop.eup %3284 }
 0xaed   : > { %v1864_v62 = vmul.f32 %v3285_v60, %v3279_v40  ;;  %v1872_v63 = vpop.permute.xlu0 %1871 }
 0xaee   : > { %3038 = vmatpush3.bf16.msra.mxu1 %v3037_v56 }
 0xaef   : > { %2925 = vmatprep.subr.mxu1 %v3637_v27 }
 0xaf0   : > { %v3287_v0 = vpop.eup %3286 }
 0xaf1   : > { %v1865_v16 = vmul.f32 %v3287_v0, %v3281_v42 }
 0xaf2   : > { %2926 = vmatpush3.msk.msra.mxu1 %vm893_vm7, %v1872_v63 }
 0xaf3   : > { %2928 = vmatmul.mubr.msk.f32.vlgmr.msra.gmra.mrb[36].mxu1 %vm841_vm5, %v1864_v62  ;;  %3039 = vmatprep.subr.bf16.mxu1 %v3635_v24 }
 0xaf4   : > { %2930 = vmatprep.mubr.msk.f32.mxu1 %vm3636_vm2, %v3637_v27  ;;  %v3289_v1 = vpop.eup %3288  ;;  %3041 = vmatpush3.bf16.msra.mxu1 %v3040_v53 }
 0xaf5   : > { %v1866_v2 = vmul.f32 %v3289_v1, %v3283_v44  ;;  %3042 = vmatprep.subr.bf16.mxu1 %v3635_v24 }
 0xaf7   : > { %2931 = vmatmul.mubr.msk.f32.gmra.mrb[38].mxu1 %vm841_vm5, %v1865_v16  ;;  %v2660_v16 = vld [vmem:[#allocation10] ss:$0 sm:$0xff] }
 0xaf8   : > { %2933 = vmatprep.mubr.msk.f32.mxu1 %vm3636_vm2, %v3637_v27 }
 0xafb   : > { %2934 = vmatmul.mubr.msk.f32.gmra.mrb[40].mxu1 %vm841_vm5, %v1866_v2  ;;  %v2661_v2 = vld [vmem:[#allocation12] ss:$0 sm:$0xff] }
 0xafc   : > { %2955 = vmatprep.mubr.msk.f32.mxu1 %vm3636_vm2, %v3637_v27 }
 0xbc6   : > { %v1952_v4 = vpop.f32.mrb[36].mxu1 }
 0xbc7   : > { %v2929_v5 = vpop.f32.mrb[37].mxu1  ;;  %2939 = vmatmul.mubr.msk.f32.vlgmr.msra.gmra.mrb[30].mxu0 %vm745_vm3, %v1952_v4 }
 0xbc8   : > { %2941 = vmatprep.mubr.msk.f32.mxu0 %vm3636_vm2, %v3637_v27 }
 0xbca   : > { %v1957_v3 = vpop.f32.mrb[38].mxu1 }
 0xbcb   : > { %v2932_v6 = vpop.f32.mrb[39].mxu1  ;;  %2942 = vmatmul.mubr.msk.f32.gmra.mrb[32].mxu0 %vm745_vm3, %v1957_v3 }
 0xbcc   : > { %2944 = vmatprep.mubr.msk.f32.mxu0 %vm3636_vm2, %v3637_v27 }
 0xbce   : > { %v1962_v7 = vpop.f32.mrb[40].mxu1 }
 0xbcf   : > { %v2935_v8 = vpop.f32.mrb[41].mxu1  ;;  %2945 = vmatmul.mubr.msk.f32.gmra.mrb[34].mxu0 %vm745_vm3, %v1962_v7 }
 0xbd0   : > { %2996 = vmatprep.mubr.msk.f32.mxu0 %vm3636_vm2, %v3637_v27 }
 0xc9a   : > { %v2042_v9 = vpop.f32.mrb[30].mxu0 }
 0xc9b   : > { %v2056_v11 = vadd.f32 %v2042_v9, %v1724_v47  ;;  %v2940_v12 = vpop.f32.mrb[31].mxu0 }
 0xc9d   : > { %v2059_v17 = vadd.f32 %v3308_v15, %v2056_v11  ;;  %v2312_v15 = vld [vmem:[%s4396_s11] sm:$0xff] }
 0xc9e   : > { %v2047_v18 = vpop.f32.mrb[32].mxu0 }
 0xc9f   : > { %v4260_v19 = vadd.f32 %v2659_v14, %v2059_v17  ;;  %v2057_v20 = vadd.f32 %v2047_v18, %v1725_v50  ;;  %v2943_v21 = vpop.f32.mrb[33].mxu0  ;;  %v2313_v17 = vld [vmem:[%s4396_s11 + $0x8] sm:$0xff] }
 0xca0   : > { %v3046_v18 = vpack.c.bf16 %v2313_v17, %v2312_v15  ;;  %v2315_v21 = vld [vmem:[%s4396_s11 + $0x18] sm:$0xff] }
 0xca1   : > { %v2060_v23 = vadd.f32 %v3309_v22, %v2057_v20  ;;  %v2074_v25 = vsel %vm576_vm0, %v4260_v19, 0.0  ;;  %v2314_v20 = vld [vmem:[%s4396_s11 + $0x10] sm:$0xff] }
 0xca2   : > { %2075 = vadd.xlane.f32.xlu1 %v2074_v25  ;;  %v2052_v26 = vpop.f32.mrb[34].mxu0  ;;  %3047 = vmatpush3.bf16.msra.mxu0 %v3046_v18  ;;  %v3049_v22 = vpack.c.bf16 %v2315_v21, %v2314_v20  ;;  %v2317_v25 = vld [vmem:[%s4396_s11 + $0x28] sm:$0xff] }
 0xca3   : > { %v4265_v28 = vadd.f32 %v2659_v14, %v2060_v23  ;;  %v2058_v29 = vadd.f32 %v2052_v26, %v1726_v59  ;;  %v2946_v30 = vpop.f32.mrb[35].mxu0  ;;  %v2133_v59 = vld [vmem:[#allocation13 + $0x10] sm:$0xff]  ;;  %3048 = vmatprep.subr.bf16.mxu0 %v3635_v24 }
 0xca4   : > { %v3043_v61 = vpack.c.bf16 %v2134_v54, %v2133_v59  ;;  %v2316_v23 = vld [vmem:[%s4396_s11 + $0x20] sm:$0xff]  ;;  %v2319_v30 = vld [vmem:[%s4396_s11 + $0x38] sm:$0xff] }
 0xca5   : > { %v2061_v32 = vadd.f32 %v3310_v31, %v2058_v29  ;;  %v2077_v33 = vsel %vm576_vm0, %v4265_v28, 0.0  ;;  %v3052_v26 = vpack.c.bf16 %v2317_v25, %v2316_v23  ;;  %v2318_v29 = vld [vmem:[%s4396_s11 + $0x30] sm:$0xff] }
 0xca6   : > { %2078 = vadd.xlane.f32.xlu0 %v2077_v33  ;;  %3044 = vmatpush3.bf16.msra.mxu1 %v3043_v61  ;;  %v3055_v31 = vpack.c.bf16 %v2319_v30, %v2318_v29  ;;  %v2321_v33 = vld [vmem:[%s4396_s11 + $0x48] sm:$0xff] }
 0xca7   : > { %v4270_v34 = vadd.f32 %v2659_v14, %v2061_v32  ;;  %3050 = vmatpush3.bf16.msra.mxu0 %v3049_v22  ;;  %v2320_v32 = vld [vmem:[%s4396_s11 + $0x40] sm:$0xff] }
 0xca8   : > { %3051 = vmatprep.subr.bf16.mxu0 %v3635_v24 }
 0xca9   : > { %v2080_v35 = vsel %vm583_vm1, %v4270_v34, 0.0 }
 0xcaa   : > { %2081 = vadd.xlane.f32.xlu1 %v2080_v35  ;;  %v3058_v35 = vpack.c.bf16 %v2321_v33, %v2320_v32 }
 0xcab   : > { %3053 = vmatpush3.bf16.msra.mxu0 %v3052_v26 }
 0xcac   : > { %3054 = vmatprep.subr.bf16.mxu0 %v3635_v24 }
 0xcaf   : > { %3056 = vmatpush3.bf16.msra.mxu0 %v3055_v31 }
 0xcb0   : > { %3057 = vmatprep.subr.bf16.mxu0 %v3635_v24 }
 0xcb3   : > { %3059 = vmatpush3.bf16.msra.mxu0 %v3058_v35 }
 0xcb4   : > { %3060 = vmatprep.subr.bf16.mxu0 %v3635_v24 }
 0xd2f   : > { %v2076_v36 = vpop.xlane.xlu1 %2075 }
 0xd30   : > { %v2083_v37 = vmul.f32 0.03125, %v2076_v36  ;;  %v2322_v36 = vld [vmem:[%s4396_s11 + $0x50] sm:$0xff] }
 0xd32   : > { %v2086_v38 = vsub.f32 %v4260_v19, %v2083_v37  ;;  %v2323_v37 = vld [vmem:[%s4396_s11 + $0x58] sm:$0xff] }
 0xd33   : > { %v2079_v39 = vpop.xlane.xlu0 %2078 }
 0xd34   : > { %v2084_v40 = vmul.f32 0.03125, %v2079_v39  ;;  %v2089_v41 = vmul.f32 %v2086_v38, %v2086_v38  ;;  %v2324_v39 = vld [vmem:[%s4396_s11 + $0x60] sm:$0xff] }
 0xd36   : > { %v2087_v42 = vsub.f32 %v4265_v28, %v2084_v40  ;;  %v2092_v43 = vsel %vm576_vm0, %v2089_v41, 0.0  ;;  %v2325_v40 = vld [vmem:[%s4396_s11 + $0x68] sm:$0xff] }
 0xd37   : > { %2093 = vadd.xlane.f32.xlu0 %v2092_v43  ;;  %v2082_v44 = vpop.xlane.xlu1 %2081  ;;  %v3064_v41 = vpack.c.bf16 %v2325_v40, %v2324_v39  ;;  %v2327_v43 = vld [vmem:[%s4396_s11 + $0x78] sm:$0xff] }
 0xd38   : > { %v2085_v45 = vmul.f32 0.03125, %v2082_v44  ;;  %v2090_v46 = vmul.f32 %v2087_v42, %v2087_v42 }
 0xd3a   : > { %v2088_v47 = vsub.f32 %v4270_v34, %v2085_v45  ;;  %v2095_v48 = vsel %vm576_vm0, %v2090_v46, 0.0  ;;  %v2662_v45 = vld [vmem:[#allocation15] ss:$0 sm:$0xff] }
 0xd3b   : > { %2096 = vadd.xlane.f32.xlu1 %v2095_v48 }
 0xd3c   : > { %v2091_v49 = vmul.f32 %v2088_v47, %v2088_v47 }
 0xd3e   : > { %v2098_v50 = vsel %vm583_vm1, %v2091_v49, 0.0 }
 0xd3f   : > { %2099 = vadd.xlane.f32.xlu0 %v2098_v50 }
 0xdc4   : > { %v2094_v55 = vpop.xlane.xlu0 %2093 }
 0xdc5   : > { %v2101_v10 = vmul.f32 0.03125, %v2094_v55 }
 0xdc7   : > { %v2104_v58 = vadd.f32 1e-06, %v2101_v10 }
 0xdc8   : > { %v2097_v57 = vpop.xlane.xlu1 %2096 }
 0xdc9   : > { %3290 = vrsqrt.f32 %v2104_v58  ;;  %v2102_v13 = vmul.f32 0.03125, %v2097_v57 }
 0xdcb   : > { %v2105_v56 = vadd.f32 1e-06, %v2102_v13 }
 0xdcc   : > { %v2100_v60 = vpop.xlane.xlu0 %2099 }
 0xdcd   : > { %3292 = vrsqrt.f32 %v2105_v56  ;;  %v2103_v62 = vmul.f32 0.03125, %v2100_v60 }
 0xdcf   : > { %v2106_v63 = vadd.f32 1e-06, %v2103_v62 }
 0xdd1   : > { %3294 = vrsqrt.f32 %v2106_v63 }
 0xdd3   : > { %v3291_v0 = vpop.eup %3290 }
 0xdd4   : > { %v2110_v1 = vmul.f32 %v3291_v0, %v2086_v38  ;;  %v3061_v38 = vpack.c.bf16 %v2323_v37, %v2322_v36 }
 0xdd6   : > { %v2119_v4 = vmul.f32 %v2660_v16, %v2110_v1  ;;  %3062 = vmatpush3.bf16.msra.mxu0 %v3061_v38 }
 0xdd7   : > { %v3293_v5 = vpop.eup %3292  ;;  %3063 = vmatprep.subr.bf16.mxu0 %v3635_v24 }
 0xdd8   : > { %v2128_v3 = vadd.f32 %v2661_v2, %v2119_v4  ;;  %v2111_v6 = vmul.f32 %v3293_v5, %v2087_v42  ;;  %v2326_v42 = vld [vmem:[%s4396_s11 + $0x70] sm:$0xff] }
 0xdd9   : > { %v3067_v44 = vpack.c.bf16 %v2327_v43, %v2326_v42 }
 0xdda   : > { %2956 = vmatmul.mubr.msk.f32.vlgmr.msra.gmra.mrb[42].mxu1 %vm576_vm0, %v2128_v3  ;;  %v2120_v7 = vmul.f32 %v2660_v16, %v2111_v6  ;;  %3065 = vmatpush3.bf16.msra.mxu0 %v3064_v41 }
 0xddb   : > { %v3295_v8 = vpop.eup %3294  ;;  %2958 = vmatprep.mubr.msk.f32.mxu1 %vm3636_vm2, %v3637_v27  ;;  %3066 = vmatprep.subr.bf16.mxu0 %v3635_v24 }
 0xddc   : > { %v2129_v9 = vadd.f32 %v2661_v2, %v2120_v7  ;;  %v2112_v11 = vmul.f32 %v3295_v8, %v2088_v47 }
 0xdde   : > { %2959 = vmatmul.mubr.msk.f32.gmra.mrb[44].mxu1 %vm576_vm0, %v2129_v9  ;;  %v2121_v12 = vmul.f32 %v2660_v16, %v2112_v11  ;;  %3068 = vmatpush3.bf16.msra.mxu0 %v3067_v44 }
 0xddf   : > { %2961 = vmatprep.mubr.msk.f32.mxu1 %vm3636_vm2, %v3637_v27 }
 0xde0   : > { %v2130_v14 = vadd.f32 %v2661_v2, %v2121_v12 }
 0xde2   : > { %2962 = vmatmul.mubr.msk.f32.gmra.mrb[46].mxu1 %vm576_vm0, %v2130_v14 }
 0xead   : > { %v2217_v46 = vpop.f32.mrb[42].mxu1 }
 0xeae   : > { %v4343_v47 = vadd.f32 %v2662_v45, %v2217_v46  ;;  %v2957_v48 = vpop.f32.mrb[43].mxu1 }
 0xeaf   : > { %v3649_v48 = vmov -1.0  }
 0xeb0   : > { %v4346_v49 = vmul.f32 0.70710677, %v4343_v47 }
 0xeb1   : > { %v2222_v50 = vpop.f32.mrb[44].mxu1 }
 0xeb2   : > { %v2243_v24 = vand.u32 2147483647, %v4346_v49  ;;  %v4349_v51 = vadd.f32 %v2662_v45, %v2222_v50  ;;  %v2960_v52 = vpop.f32.mrb[45].mxu1  ;;  %vm2237_vm8 = vcmp.ge.f32.partialorder %v4346_v49, 0.0 }
 0xeb3   : > { %v2240_v50 = vsel %vm2237_vm8, 1.0, %v3649_v48 }
 0xeb4   : > { %v2246_v53 = vmul.f32 0.3275911, %v2243_v24  ;;  %v4352_v59 = vmul.f32 0.70710677, %v4349_v51  ;;  %v2285_v63 = vsub.f32 0.0, %v2243_v24 }
 0xeb5   : > { %v2227_v54 = vpop.f32.mrb[46].mxu1 }
 0xeb6   : > { %v2249_v61 = vadd.f32 1.0, %v2246_v53  ;;  %v2244_v55 = vand.u32 2147483647, %v4352_v59  ;;  %v2963_v10 = vpop.f32.mrb[47].mxu1  ;;  %v4355_v58 = vadd.f32 %v2662_v45, %v2227_v54  ;;  %v2288_v1 = vmul.f32 %v2285_v63, %v2243_v24 }
 0xeb7   : > { %vm2238_vm9 = vcmp.ge.f32.partialorder %v4352_v59, 0.0 }
 0xeb8   : > { %3296 = vrcp.f32 %v2249_v61  ;;  %v2247_v57 = vmul.f32 0.3275911, %v2244_v55  ;;  %v4358_v13 = vmul.f32 0.70710677, %v4355_v58  ;;  %v2286_v2 = vsub.f32 0.0, %v2244_v55 }
 0xeb9   : > { %v2291_v6 = vmul.f32 1.442695, %v2288_v1  ;;  %v2231_v61 = vmul.f32 0.5, %v4343_v47 }
 0xeba   : > { %v2250_v56 = vadd.f32 1.0, %v2247_v57  ;;  %v2245_v60 = vand.u32 2147483647, %v4358_v13  ;;  %v2289_v7 = vmul.f32 %v2286_v2, %v2244_v55  ;;  %v2241_v57 = vsel %vm2238_vm9, 1.0, %v3649_v48 }
 0xebb   : > { %vm2239_vm10 = vcmp.ge.f32.partialorder %v4358_v13, 0.0 }
 0xebc   : > { %3298 = vrcp.f32 %v2250_v56  ;;  %v2248_v62 = vmul.f32 0.3275911, %v2245_v60  ;;  %v2287_v9 = vsub.f32 0.0, %v2245_v60  ;;  %v2293_v15 = vmul.f32 1.442695, %v2289_v7 }
 0xebd   : > { %v2242_v47 = vsel %vm2239_vm10, 1.0, %v3649_v48 }
 0xebe   : > { %v2251_v0 = vadd.f32 1.0, %v2248_v62  ;;  %v2290_v20 = vmul.f32 %v2287_v9, %v2245_v60 }
 0xec0   : > { %3300 = vrcp.f32 %v2251_v0  ;;  %v2295_v30 = vmul.f32 1.442695, %v2290_v20  ;;  %v2232_v0 = vmul.f32 0.5, %v4349_v51  ;;  %v2666_v51 = vld [vmem:[#allocation16] ss:$0 sm:$0xff] }
 0xec1   : > { %3302 = vpow2.f32 %v2291_v6 }
 0xec2   : > { %v3297_v16 = vpop.eup %3296  ;;  %3304 = vpow2.f32 %v2293_v15 }
 0xec3   : > { %v2258_v4 = vmul.f32 1.0614054, %v3297_v16  ;;  %3306 = vpow2.f32 %v2295_v30 }
 0xec5   : > { %v2261_v5 = vadd.f32 -1.4531521, %v2258_v4  ;;  %v2233_v4 = vmul.f32 0.5, %v4355_v58 }
 0xec6   : > { %v3299_v3 = vpop.eup %3298 }
 0xec7   : > { %v2264_v8 = vmul.f32 %v3297_v16, %v2261_v5  ;;  %v2259_v11 = vmul.f32 1.0614054, %v3299_v3 }
 0xec9   : > { %v2267_v12 = vadd.f32 1.4214138, %v2264_v8  ;;  %v2262_v14 = vadd.f32 -1.4531521, %v2259_v11 }
 0xeca   : > { %v3301_v17 = vpop.eup %3300 }
 0xecb   : > { %v2270_v18 = vmul.f32 %v3297_v16, %v2267_v12  ;;  %v2265_v21 = vmul.f32 %v3299_v3, %v2262_v14  ;;  %v2260_v22 = vmul.f32 1.0614054, %v3301_v17  ;;  %v3303_v39 = vpop.eup %3302 }
 0xecc   : > { %v3305_v46 = vpop.eup %3304 }
 0xecd   : > { %v2273_v23 = vadd.f32 -0.28449672, %v2270_v18  ;;  %v2268_v25 = vadd.f32 1.4214138, %v2265_v21  ;;  %v2263_v26 = vadd.f32 -1.4531521, %v2260_v22  ;;  %v3307_v56 = vpop.eup %3306 }
 0xecf   : > { %v2276_v29 = vmul.f32 %v3297_v16, %v2273_v23  ;;  %v2271_v31 = vmul.f32 %v3299_v3, %v2268_v25  ;;  %v2266_v32 = vmul.f32 %v3301_v17, %v2263_v26 }
 0xed1   : > { %v2279_v33 = vadd.f32 0.2548296, %v2276_v29  ;;  %v2274_v35 = vadd.f32 -0.28449672, %v2271_v31  ;;  %v2269_v36 = vadd.f32 1.4214138, %v2266_v32 }
 0xed3   : > { %v2282_v37 = vmul.f32 %v3297_v16, %v2279_v33  ;;  %v2277_v38 = vmul.f32 %v3299_v3, %v2274_v35  ;;  %v2272_v40 = vmul.f32 %v3301_v17, %v2269_v36 }
 0xed5   : > { %v2297_v41 = vmul.f32 %v3303_v39, %v2282_v37  ;;  %v2280_v42 = vadd.f32 0.2548296, %v2277_v38  ;;  %v2275_v43 = vadd.f32 -0.28449672, %v2272_v40 }
 0xed7   : > { %v2300_v44 = vsub.f32 1.0, %v2297_v41  ;;  %v2283_v45 = vmul.f32 %v3299_v3, %v2280_v42  ;;  %v2278_v24 = vmul.f32 %v3301_v17, %v2275_v43 }
 0xed9   : > { %v2303_v52 = vmul.f32 %v2300_v44, %v2240_v50  ;;  %v2298_v53 = vmul.f32 %v3305_v46, %v2283_v45  ;;  %v2281_v54 = vadd.f32 0.2548296, %v2278_v24 }
 0xedb   : > { %v2306_v55 = vadd.f32 1.0, %v2303_v52  ;;  %v2301_v10 = vsub.f32 1.0, %v2298_v53  ;;  %v2284_v49 = vmul.f32 %v3301_v17, %v2281_v54 }
 0xedd   : > { %v2309_v60 = vmul.f32 %v2306_v55, %v2231_v61  ;;  %v2304_v62 = vmul.f32 %v2301_v10, %v2241_v57  ;;  %v2299_v63 = vmul.f32 %v3307_v56, %v2284_v49 }
 0xedf   : > { %2997 = vmatmul.mubr.f32.vlgmr.msra.gmra.mrb[36].mxu0 %v2309_v60  ;;  %v2307_v16 = vadd.f32 1.0, %v2304_v62  ;;  %v2302_v59 = vsub.f32 1.0, %v2299_v63 }
 0xee0   : > { %2999 = vmatprep.mubr.msk.f32.mxu0 %vm3636_vm2, %v3637_v27 }
 0xee1   : > { %v2310_v1 = vmul.f32 %v2307_v16, %v2232_v0  ;;  %v2305_v2 = vmul.f32 %v2302_v59, %v2242_v47 }
 0xee3   : > { %3000 = vmatmul.mubr.f32.gmra.mrb[38].mxu0 %v2310_v1  ;;  %v2308_v13 = vadd.f32 1.0, %v2305_v2 }
 0xee4   : > { %3002 = vmatprep.mubr.msk.f32.mxu0 %vm3636_vm2, %v3637_v27 }
 0xee5   : > { %v2311_v5 = vmul.f32 %v2308_v13, %v2233_v4 }
 0xee7   : > { %3003 = vmatmul.mubr.f32.gmra.mrb[40].mxu0 %v2311_v5 }
 0xfb2   : > { %v2401_v3 = vpop.f32.mrb[36].mxu0 }
 0xfb3   : > { %v2402_v6 = vadd.f32 %v2666_v51, %v2401_v3  ;;  %v2998_v7 = vpop.f32.mrb[37].mxu0 }
 0xfb5   : > { %v2415_v8 = vadd.f32 %v2402_v6, %v4260_v19 }
 0xfb6   : > { %v2406_v9 = vpop.f32.mrb[38].mxu0 }
 0xfb7   : > { %2418 = vst.msk [vmem:[%s570_s4] sm:$0xff] %vm576_vm0, %v2415_v8  ;;  %v2407_v58 = vadd.f32 %v2666_v51, %v2406_v9  ;;  %v3001_v11 = vpop.f32.mrb[39].mxu0 }
 0xfb9   : > { %v2416_v27 = vadd.f32 %v2407_v58, %v4265_v28 }
 0xfba   : > { %v2411_v12 = vpop.f32.mrb[40].mxu0 }
 0xfbb   : > { %2419 = vst.msk [vmem:[%s570_s4 + $0x8] sm:$0xff] %vm576_vm0, %v2416_v27  ;;  %v2412_v14 = vadd.f32 %v2666_v51, %v2411_v12  ;;  %v3004_v15 = vpop.f32.mrb[41].mxu0 }
 0xfbd   : > { %v2417_v17 = vadd.f32 %v2412_v14, %v4270_v34 }
 0xfbf   : > { %2420 = vst.msk [vmem:[%s570_s4 + $0x10] sm:$0x1] %vm583_vm1, %v2417_v17 }
 0xfc0 PF: > { %s4427_s28 = sld [smem:[#allocation24_spill]] }
 0xfc6   : > { %s29_s25 = sadd.s32 1, %s4427_s28  }
 0xfc7   : > { %p26_p2 = scmp.ge.s32.totalorder %s29_s25, 4  }
 0xfc9   :  { %28 = sbr.rel (!%p26_p2) target bundleno = 10 (0xa), region = 143 }
 0xfd0   :  { %2442 = vsyncpa [#allocation3], 1 }
 0xfd1   :  { %2444 = vsyncpa [#allocation3 + $0x1], 1 }
 0xfd2   :  { %2445 = vsyncpa [#allocation5], 1 }
 0xfd3   :  { %2446 = vsyncpa [#allocation8], 1 }
 0xfd4   :  { %2447 = vsyncpa [#allocation11], 1 }
 0xfd5   :  { %2448 = vsyncpa [#allocation14], 1 }
 0xfd6   :  { %2449 = vsyncpa [#allocation17], 1 }

// kernel: prithvi_seg_forward.17
= control target key start
LH: loop header
LB: loop body
LE: loop exit
PB: predicated region body
PF: predicated region fallthrough
CT: control target
= control target key end

     0   :  { %s744_s12 = smov 0   ;;  %s920_s0 = inlined_call_operand.vmem [shape: f32[128,288], index: 0, kind: input, shape index: {}]   ;;  %s921_s1 = inlined_call_operand.vmem [shape: f32[288,128], index: 1, kind: input, shape index: {}]   ;;  %s922_s2 = inlined_call_operand.vmem [shape: f32[1,128], index: 2, kind: input, shape index: {}]   ;;  %s923_s3 = inlined_call_operand.vmem [shape: f32[128,128], index: 3, kind: output, shape index: {}]  }
   0x1 LB: > { %s543_s13 = sadd.s32 4294967295, %s722_s12   ;;  %p547_p0 = scmp.ge.s32.totalorder %s722_s12, 1  ;;  %s722_s12 = sphi %s744_s12, %s13_s12  }
   0x2   : > { %p139_p1 = scmp.lt.s32.totalorder %s722_s12, 3 }
   0x4   : > { %p140_p2 = pnand %p547_p0, %p139_p1 }
   0x5   : > { %v217_v0 = vld [vmem:[%s921_s1 + $0x80] sm:$0xff] (!%p140_p2)  ;;  %v218_v1 = vld [vmem:[%s921_s1 + $0x88] sm:$0xff] (!%p140_p2)  ;;  %s548_s20 = sshll.u32 (!%p140_p2), %s543_s13, 3  ;;  %v219_v5 = vld [vmem:[%s921_s1 + $0x90] sm:$0xff] (!%p140_p2)  ;;  %vm244_vm0 = vcmask (!%p140_p2), 261120  }
   0x6   : > { %143 = sbr.rel (%p140_p2) target bundleno = 280 (0x118), region = 32  ;;  %v201_v2 = vld [vmem:[%s921_s1] sm:$0xff] (!%p140_p2)  ;;  %v651_v3 = vpack.c.bf16 (!%p140_p2), %v218_v1, %v217_v0  ;;  %v202_v4 = vld [vmem:[%s921_s1 + $0x8] sm:$0xff] (!%p140_p2)  ;;  %v220_v6 = vld [vmem:[%s921_s1 + $0x98] sm:$0xff] (!%p140_p2)  ;;  %p165_p3 = scmp.lt.s32.totalorder (!%p140_p2), %s548_s20, 15 }
   0x7   : > { %v653_v7 = vpack.c.bf16 (!%p140_p2), %v202_v4, %v201_v2  ;;  %v655_v8 = vpack.c.bf16 (!%p140_p2), %v220_v6, %v219_v5  ;;  %v203_v9 = vld [vmem:[%s921_s1 + $0x10] sm:$0xff] (!%p140_p2)  ;;  %v204_v10 = vld [vmem:[%s921_s1 + $0x18] sm:$0xff] (!%p140_p2)  ;;  %v221_v11 = vld [vmem:[%s921_s1 + $0xa0] sm:$0xff] (!%p140_p2) }
   0x8   : > { %652 = vmatprep.subr.bf16.mxu0 (!%p140_p2), %v651_v3  ;;  %691 = vmatprep.subr.bf16.mxu1 (!%p140_p2), %v651_v3  ;;  %v222_v12 = vld [vmem:[%s921_s1 + $0xa8] sm:$0xff] (!%p140_p2)  ;;  %v657_v13 = vpack.c.bf16 (!%p140_p2), %v204_v10, %v203_v9  ;;  %v205_v15 = vld [vmem:[%s921_s1 + $0x20] sm:$0xff] (!%p140_p2)  ;;  %v223_v17 = vld [vmem:[%s921_s1 + $0xb0] sm:$0xff] (!%p140_p2) }
   0x9   : > { %654 = vmatpush3.bf16.msra.mxu0 (!%p140_p2), %v653_v7  ;;  %699 = vmatpush3.bf16.msra.mxu1 (!%p140_p2), %v653_v7  ;;  %v659_v14 = vpack.c.bf16 (!%p140_p2), %v222_v12, %v221_v11  ;;  %v206_v16 = vld [vmem:[%s921_s1 + $0x28] sm:$0xff] (!%p140_p2)  ;;  %v224_v18 = vld [vmem:[%s921_s1 + $0xb8] sm:$0xff] (!%p140_p2)  ;;  %v207_v21 = vld [vmem:[%s921_s1 + $0x30] sm:$0xff] (!%p140_p2) }
   0xa   : > { %656 = vmatprep.subr.bf16.mxu0 (!%p140_p2), %v655_v8  ;;  %692 = vmatprep.subr.bf16.mxu1 (!%p140_p2), %v655_v8  ;;  %v661_v19 = vpack.c.bf16 (!%p140_p2), %v206_v16, %v205_v15  ;;  %v663_v20 = vpack.c.bf16 (!%p140_p2), %v224_v18, %v223_v17  ;;  %v208_v22 = vld [vmem:[%s921_s1 + $0x38] sm:$0xff] (!%p140_p2)  ;;  %v225_v23 = vld [vmem:[%s921_s1 + $0xc0] sm:$0xff] (!%p140_p2)  ;;  %v226_v24 = vld [vmem:[%s921_s1 + $0xc8] sm:$0xff] (!%p140_p2) }
   0xb   : > { %v665_v27 = vpack.c.bf16 (!%p140_p2), %v208_v22, %v207_v21  ;;  %v667_v28 = vpack.c.bf16 (!%p140_p2), %v226_v24, %v225_v23  ;;  %v209_v29 = vld [vmem:[%s921_s1 + $0x40] sm:$0xff] (!%p140_p2)  ;;  %v210_v30 = vld [vmem:[%s921_s1 + $0x48] sm:$0xff] (!%p140_p2)  ;;  %v227_v31 = vld [vmem:[%s921_s1 + $0xd0] sm:$0xff] (!%p140_p2) }
   0xc   : > { %v228_v32 = vld [vmem:[%s921_s1 + $0xd8] sm:$0xff] (!%p140_p2)  ;;  %v669_v33 = vpack.c.bf16 (!%p140_p2), %v210_v30, %v209_v29  ;;  %v211_v35 = vld [vmem:[%s921_s1 + $0x50] sm:$0xff] (!%p140_p2)  ;;  %v229_v37 = vld [vmem:[%s921_s1 + $0xe0] sm:$0xff] (!%p140_p2) }
   0xd   : > { %s925_s20 = smov (!%p165_p3, %s548_s20), 15  ;;  %658 = vmatpush3.bf16.msra.mxu0 %v657_v13  ;;  %700 = vmatpush3.bf16.msra.mxu1 %v657_v13  ;;  %v671_v34 = vpack.c.bf16 %v228_v32, %v227_v31  ;;  %v212_v36 = vld [vmem:[%s921_s1 + $0x58] sm:$0xff]  ;;  %v230_v38 = vld [vmem:[%s921_s1 + $0xe8] sm:$0xff]  ;;  %v213_v41 = vld [vmem:[%s921_s1 + $0x60] sm:$0xff] }
   0xe   : > { %s707_s13 = smul.u32 24, %s925_s20  ;;  %660 = vmatprep.subr.bf16.mxu0 %v659_v14  ;;  %693 = vmatprep.subr.bf16.mxu1 %v659_v14  ;;  %v673_v39 = vpack.c.bf16 %v212_v36, %v211_v35  ;;  %v675_v40 = vpack.c.bf16 %v230_v38, %v229_v37  ;;  %v214_v42 = vld [vmem:[%s921_s1 + $0x68] sm:$0xff]  ;;  %v231_v43 = vld [vmem:[%s921_s1 + $0xf0] sm:$0xff]  ;;  %v232_v44 = vld [vmem:[%s921_s1 + $0xf8] sm:$0xff] }
   0xf   : > { %v677_v45 = vpack.c.bf16 %v214_v42, %v213_v41  ;;  %v679_v46 = vpack.c.bf16 %v232_v44, %v231_v43  ;;  %v215_v47 = vld [vmem:[%s921_s1 + $0x70] sm:$0xff]  ;;  %v216_v48 = vld [vmem:[%s921_s1 + $0x78] sm:$0xff]  ;;  %v233_v49 = vld [vmem:[%s921_s1 + $0x100] sm:$0xff] }
  0x10   : > { %s800_s21 = scalar_lea.vmem %s920_s0, %s707_s13  ;;  %v234_v50 = vld [vmem:[%s921_s1 + $0x108] sm:$0xff]  ;;  %v681_v51 = vpack.c.bf16 %v216_v48, %v215_v47  ;;  %v235_v53 = vld [vmem:[%s921_s1 + $0x110] sm:$0xff]  ;;  %v236_v54 = vld [vmem:[%s921_s1 + $0x118] sm:$0xff] }
  0x11   : > { %v178_v25 = vld [vmem:[%s800_s21 + $0x8] sm:$0xff]  ;;  %v196_v26 = vld [vmem:[%s800_s21 + $0x98] sm:$0xff]  ;;  %662 = vmatpush3.bf16.msra.mxu0 %v661_v19  ;;  %701 = vmatpush3.bf16.msra.mxu1 %v661_v19  ;;  %v683_v52 = vpack.c.bf16 %v234_v50, %v233_v49  ;;  %v177_v55 = vld [vmem:[%s800_s21] sm:$0xff]  ;;  %v687_v58 = vpack.c.bf16 %v236_v54, %v235_v53 }
  0x12   : > { %333 = vmatprep.mubr.f32.mxu0 %v178_v25  ;;  %664 = vmatprep.subr.bf16.mxu0 %v663_v20  ;;  %v195_v56 = vld [vmem:[%s800_s21 + $0x90] sm:$0xff]  ;;  %v181_v57 = vld [vmem:[%s800_s21 + $0x20] sm:$0xff]  ;;  %v180_v60 = vld [vmem:[%s800_s21 + $0x18] sm:$0xff] }
  0x13   : > { %694 = vmatprep.subr.bf16.mxu1 %v663_v20  ;;  %363 = vmatprep.mubr.f32.mxu1 %v196_v26  ;;  %v199_v59 = vld [vmem:[%s800_s21 + $0xb0] sm:$0xff]  ;;  %v198_v61 = vld [vmem:[%s800_s21 + $0xa8] sm:$0xff]  ;;  %v184_v62 = vld [vmem:[%s800_s21 + $0x38] sm:$0xff] }
  0x14   : > { %v179_v63 = vld [vmem:[%s800_s21 + $0x10] sm:$0xff]  ;;  %v182_v1 = vld [vmem:[%s800_s21 + $0x28] sm:$0xff]  ;;  %v185_v3 = vld [vmem:[%s800_s21 + $0x40] sm:$0xff] }
  0x15   : > { %666 = vmatpush3.bf16.msra.mxu0 %v665_v27  ;;  %702 = vmatpush3.bf16.msra.mxu1 %v665_v27  ;;  %v183_v0 = vld [vmem:[%s800_s21 + $0x30] sm:$0xff]  ;;  %v186_v4 = vld [vmem:[%s800_s21 + $0x48] sm:$0xff]  ;;  %v188_v5 = vld [vmem:[%s800_s21 + $0x58] sm:$0xff] }
  0x16   : > { %668 = vmatprep.subr.bf16.mxu0 %v667_v28  ;;  %695 = vmatprep.subr.bf16.mxu1 %v667_v28  ;;  %v187_v2 = vld [vmem:[%s800_s21 + $0x50] sm:$0xff]  ;;  %v190_v6 = vld [vmem:[%s800_s21 + $0x68] sm:$0xff]  ;;  %v189_v8 = vld [vmem:[%s800_s21 + $0x60] sm:$0xff] }
  0x17   : > { %v191_v7 = vld [vmem:[%s800_s21 + $0x70] sm:$0xff]  ;;  %v194_v9 = vld [vmem:[%s800_s21 + $0x88] sm:$0xff]  ;;  %v193_v10 = vld [vmem:[%s800_s21 + $0x80] sm:$0xff] }
  0x18   : > { %v197_v11 = vld [vmem:[%s800_s21 + $0xa0] sm:$0xff]  ;;  %v192_v12 = vld [vmem:[%s800_s21 + $0x78] sm:$0xff] }
  0x19   : > { %670 = vmatpush3.bf16.msra.mxu0 %v669_v33  ;;  %703 = vmatpush3.bf16.msra.mxu1 %v669_v33  ;;  %v200_v13 = vld [vmem:[%s800_s21 + $0xb8] sm:$0xff]  ;;  %v552_v24 = vld [vmem:[%s922_s2] ss:$0 sm:$0xff]  ;;  %s551_s21 = sshll.u32 %s925_s20, 3 }
  0x1a   : > { %672 = vmatprep.subr.bf16.mxu0 %v671_v34  ;;  %696 = vmatprep.subr.bf16.mxu1 %v671_v34  ;;  %s907_s22 = scalar_lea.vmem %s923_s3, %s551_s21 }
  0x1d   : > { %674 = vmatpush3.bf16.msra.mxu0 %v673_v39  ;;  %704 = vmatpush3.bf16.msra.mxu1 %v673_v39 }
  0x1e   : > { %676 = vmatprep.subr.bf16.mxu0 %v675_v40  ;;  %697 = vmatprep.subr.bf16.mxu1 %v675_v40 }
  0x21   : > { %678 = vmatpush3.bf16.msra.mxu0 %v677_v45  ;;  %705 = vmatpush3.bf16.msra.mxu1 %v677_v45 }
  0x22   : > { %680 = vmatprep.subr.bf16.mxu0 %v679_v46  ;;  %698 = vmatprep.subr.bf16.mxu1 %v679_v46 }
  0x25   : > { %682 = vmatpush3.bf16.msra.mxu0 %v681_v51  ;;  %706 = vmatpush3.bf16.msra.mxu1 %v681_v51 }
  0x26   : > { %684 = vmatprep.subr.bf16.mxu1 %v683_v52 }
  0x28   : > { %334 = vmatmul.mubr.f32.vlgmr.msra.gmra.mrb[0].mxu0 %v177_v55  ;;  %364 = vmatmul.mubr.f32.vlgmr.msra.gmra.mrb[0].mxu1 %v195_v56 }
  0x29   : > { %686 = vmatpush3.bf16.msra.mxu1 %v683_v52  ;;  %338 = vmatprep.mubr.f32.mxu0 %v181_v57 }
  0x2a   : > { %368 = vmatprep.mubr.f32.mxu1 %v199_v59  ;;  %688 = vmatprep.subr.bf16.mxu1 %v687_v58 }
  0x2c   : > { %339 = vmatmul.mubr.f32.gmra.mrb[2].mxu0 %v180_v60  ;;  %369 = vmatmul.mubr.f32.gmra.mrb[2].mxu1 %v198_v61 }
  0x2d   : > { %690 = vmatpush3.bf16.msra.mxu1 %v687_v58  ;;  %343 = vmatprep.mubr.f32.mxu0 %v184_v62 }
  0x2e   : > { %639 = vmatprep.mubr.msk.f32.mxu1 %vm244_vm0, %v179_v63 }
  0x30   : > { %344 = vmatmul.mubr.f32.gmra.mrb[4].mxu0 %v183_v0  ;;  %640 = vmatmul.mubr.msk.f32.vlgmr.msra.gmra.mrb[4].mxu1 %vm244_vm0, %v182_v1 }
  0x31   : > { %348 = vmatprep.mubr.f32.mxu0 %v187_v2  ;;  %642 = vmatprep.mubr.msk.f32.mxu1 %vm244_vm0, %v185_v3 }
  0x34   : > { %349 = vmatmul.mubr.f32.gmra.mrb[6].mxu0 %v186_v4  ;;  %643 = vmatmul.mubr.msk.f32.gmra.mrb[6].mxu1 %vm244_vm0, %v188_v5 }
  0x35   : > { %353 = vmatprep.mubr.f32.mxu0 %v190_v6  ;;  %645 = vmatprep.mubr.msk.f32.mxu1 %vm244_vm0, %v191_v7 }
  0x38   : > { %354 = vmatmul.mubr.f32.gmra.mrb[8].mxu0 %v189_v8  ;;  %646 = vmatmul.mubr.msk.f32.gmra.mrb[8].mxu1 %vm244_vm0, %v194_v9 }
  0x39   : > { %358 = vmatprep.mubr.f32.mxu0 %v193_v10  ;;  %648 = vmatprep.mubr.msk.f32.mxu1 %vm244_vm0, %v197_v11 }
  0x3c   : > { %359 = vmatmul.mubr.f32.gmra.mrb[10].mxu0 %v192_v12  ;;  %649 = vmatmul.mubr.msk.f32.gmra.mrb[10].mxu1 %vm244_vm0, %v200_v13 }
  0xfb   : > { %v595_v14 = vpop.f32.mrb[0].mxu0  ;;  %v613_v15 = vpop.f32.mrb[0].mxu1 }
  0xfc   : > { %v596_v16 = vpop.f32.mrb[1].mxu0  ;;  %v614_v17 = vpop.f32.mrb[1].mxu1 }
  0xfd   : > { %v597_v18 = vadd.f32 %v596_v16, %v595_v14  ;;  %v615_v19 = vadd.f32 %v614_v17, %v613_v15 }
  0xff   : > { %v598_v20 = vpop.f32.mrb[2].mxu0  ;;  %v616_v21 = vpop.f32.mrb[2].mxu1  ;;  %v336_v30 = vadd.f32 %v597_v18, %v552_v24  ;;  %v366_v54 = vadd.f32 %v615_v19, %v552_v24 }
 0x100   : > { %v599_v22 = vpop.f32.mrb[3].mxu0  ;;  %v617_v23 = vpop.f32.mrb[3].mxu1 }
 0x101   : > { %v600_v25 = vadd.f32 %v599_v22, %v598_v20  ;;  %v618_v26 = vadd.f32 %v617_v23, %v616_v21 }
 0x103   : > { %v601_v27 = vpop.f32.mrb[4].mxu0  ;;  %v341_v28 = vadd.f32 %v600_v25, %v552_v24  ;;  %v641_v29 = vpop.f32.mrb[4].mxu1  ;;  %v371_v50 = vadd.f32 %v618_v26, %v552_v24 }
 0x104   : > { %v602_v31 = vpop.f32.mrb[5].mxu0  ;;  %v440_v32 = vpop.f32.mrb[5].mxu1 }
 0x105   : > { %v446_v33 = vadd.f32 %v641_v29, %v341_v28  ;;  %v603_v34 = vadd.f32 %v602_v31, %v601_v27  ;;  %v441_v35 = vadd.f32 %v440_v32, %v336_v30 }
 0x107   : > { %480 = vst [vmem:[%s907_s22 + $0x8] sm:$0xff] %v446_v33  ;;  %479 = vst [vmem:[%s907_s22] sm:$0xff] %v441_v35  ;;  %v604_v36 = vpop.f32.mrb[6].mxu0  ;;  %v644_v37 = vpop.f32.mrb[6].mxu1  ;;  %v346_v38 = vadd.f32 %v603_v34, %v552_v24 }
 0x108   : > { %v605_v39 = vpop.f32.mrb[7].mxu0  ;;  %v450_v40 = vpop.f32.mrb[7].mxu1 }
 0x109   : > { %v606_v41 = vadd.f32 %v605_v39, %v604_v36  ;;  %v451_v42 = vadd.f32 %v450_v40, %v346_v38 }
 0x10b   : > { %v351_v43 = vadd.f32 %v606_v41, %v552_v24  ;;  %481 = vst [vmem:[%s907_s22 + $0x10] sm:$0xff] %v451_v42  ;;  %v607_v44 = vpop.f32.mrb[8].mxu0  ;;  %v647_v45 = vpop.f32.mrb[8].mxu1 }
 0x10c   : > { %v608_v46 = vpop.f32.mrb[9].mxu0  ;;  %v460_v47 = vpop.f32.mrb[9].mxu1 }
 0x10d   : > { %v456_v48 = vadd.f32 %v644_v37, %v351_v43  ;;  %v609_v49 = vadd.f32 %v608_v46, %v607_v44 }
 0x10f   : > { %482 = vst [vmem:[%s907_s22 + $0x18] sm:$0xff] %v456_v48  ;;  %v356_v51 = vadd.f32 %v609_v49, %v552_v24  ;;  %v610_v52 = vpop.f32.mrb[10].mxu0  ;;  %v650_v53 = vpop.f32.mrb[10].mxu1 }
 0x110   : > { %v476_v55 = vadd.f32 %v650_v53, %v371_v50  ;;  %v611_v56 = vpop.f32.mrb[11].mxu0  ;;  %v470_v57 = vpop.f32.mrb[11].mxu1 }
 0x111   : > { %v461_v58 = vadd.f32 %v460_v47, %v356_v51  ;;  %v612_v59 = vadd.f32 %v611_v56, %v610_v52  ;;  %v471_v60 = vadd.f32 %v470_v57, %v366_v54 }
 0x112   : > { %486 = vst [vmem:[%s907_s22 + $0x38] sm:$0xff] %v476_v55 }
 0x113   : > { %483 = vst [vmem:[%s907_s22 + $0x20] sm:$0xff] %v461_v58  ;;  %v361_v61 = vadd.f32 %v612_v59, %v552_v24  ;;  %485 = vst [vmem:[%s907_s22 + $0x30] sm:$0xff] %v471_v60 }
 0x115   : > { %v466_v62 = vadd.f32 %v647_v45, %v361_v61 }
 0x117   : > { %484 = vst [vmem:[%s907_s22 + $0x28] sm:$0xff] %v466_v62 }
 0x118 PF: > { %s13_s12 = sadd.s32 1, %s722_s12  }
 0x119   : > { %p10_p4 = scmp.ge.s32.totalorder %s13_s12, 4  }
 0x11b   :  { %12 = sbr.rel (!%p10_p4) target bundleno = 1 (0x1), region = 62 }

// kernel: prithvi_seg_forward.18
= control target key start
LH: loop header
LB: loop body
LE: loop exit
PB: predicated region body
PF: predicated region fallthrough
CT: control target
= control target key end

     0   :  { %s525_s12 = smov 0   ;;  %s657_s0 = inlined_call_operand.vmem [shape: f32[128,144], index: 0, kind: input, shape index: {}]   ;;  %s658_s1 = inlined_call_operand.vmem [shape: f32[144,128], index: 1, kind: input, shape index: {}]   ;;  %s659_s2 = inlined_call_operand.vmem [shape: f32[1,128], index: 2, kind: input, shape index: {}]   ;;  %s660_s3 = inlined_call_operand.vmem [shape: f32[128,128], index: 3, kind: output, shape index: {}]  }
   0x1 LB: > { %s420_s13 = sadd.s32 4294967295, %s502_s12   ;;  %p424_p0 = scmp.ge.s32.totalorder %s502_s12, 1  ;;  %s502_s12 = sphi %s525_s12, %s13_s12  }
   0x2   : > { %p139_p1 = scmp.lt.s32.totalorder %s502_s12, 3 }
   0x4   : > { %p140_p2 = pnand %p424_p0, %p139_p1 }
   0x5   : > { %v193_v0 = vld [vmem:[%s658_s1] sm:$0xff] (!%p140_p2)  ;;  %v194_v1 = vld [vmem:[%s658_s1 + $0x8] sm:$0xff] (!%p140_p2)  ;;  %v195_v2 = vld [vmem:[%s658_s1 + $0x10] sm:$0xff] (!%p140_p2)  ;;  %s425_s20 = sshll.u32 (!%p140_p2), %s420_s13, 3  ;;  %v504_v3 = vmov (!%p140_p2), 0.0|0.0   ;;  %vm218_vm0 = vcmask (!%p140_p2), 130048  }
   0x6   : > { %143 = sbr.rel (%p140_p2) target bundleno = 272 (0x110), region = 32  ;;  %442 = vmatprep.subr.bf16.mxu0 (!%p140_p2), %v504_v3  ;;  %469 = vmatprep.subr.bf16.mxu1 (!%p140_p2), %v504_v3  ;;  %v443_v4 = vpack.c.bf16 (!%p140_p2), %v194_v1, %v193_v0  ;;  %v196_v5 = vld [vmem:[%s658_s1 + $0x18] sm:$0xff] (!%p140_p2)  ;;  %p165_p3 = scmp.lt.s32.totalorder (!%p140_p2), %s425_s20, 15  ;;  %v197_v7 = vld [vmem:[%s658_s1 + $0x20] sm:$0xff] (!%p140_p2)  ;;  %v198_v8 = vld [vmem:[%s658_s1 + $0x28] sm:$0xff] (!%p140_p2) }
   0x7   : > { %v446_v6 = vpack.c.bf16 (!%p140_p2), %v196_v5, %v195_v2  ;;  %v449_v9 = vpack.c.bf16 (!%p140_p2), %v198_v8, %v197_v7  ;;  %v199_v12 = vld [vmem:[%s658_s1 + $0x30] sm:$0xff] (!%p140_p2)  ;;  %v200_v13 = vld [vmem:[%s658_s1 + $0x38] sm:$0xff] (!%p140_p2)  ;;  %v201_v15 = vld [vmem:[%s658_s1 + $0x40] sm:$0xff] (!%p140_p2) }
   0x8   : > { %444 = vmatpush1.bf16.msra.mxu0 (!%p140_p2), %v443_v4  ;;  %478 = vmatpush1.bf16.msra.mxu1 (!%p140_p2), %v443_v4  ;;  %v452_v14 = vpack.c.bf16 (!%p140_p2), %v200_v13, %v199_v12  ;;  %v202_v16 = vld [vmem:[%s658_s1 + $0x48] sm:$0xff] (!%p140_p2)  ;;  %v203_v18 = vld [vmem:[%s658_s1 + $0x50] sm:$0xff] (!%p140_p2)  ;;  %v204_v19 = vld [vmem:[%s658_s1 + $0x58] sm:$0xff] (!%p140_p2) }
   0x9   : > { %445 = vmatprep.subr.bf16.mxu0 (!%p140_p2), %v504_v3  ;;  %470 = vmatprep.subr.bf16.mxu1 (!%p140_p2), %v504_v3  ;;  %v455_v17 = vpack.c.bf16 (!%p140_p2), %v202_v16, %v201_v15  ;;  %v458_v20 = vpack.c.bf16 (!%p140_p2), %v204_v19, %v203_v18  ;;  %v205_v21 = vld [vmem:[%s658_s1 + $0x60] sm:$0xff] (!%p140_p2)  ;;  %v206_v22 = vld [vmem:[%s658_s1 + $0x68] sm:$0xff] (!%p140_p2)  ;;  %v207_v24 = vld [vmem:[%s658_s1 + $0x70] sm:$0xff] (!%p140_p2) }
   0xa   : > { %v461_v23 = vpack.c.bf16 (!%p140_p2), %v206_v22, %v205_v21  ;;  %v208_v25 = vld [vmem:[%s658_s1 + $0x78] sm:$0xff] (!%p140_p2)  ;;  %v209_v27 = vld [vmem:[%s658_s1 + $0x80] sm:$0xff] (!%p140_p2)  ;;  %v210_v28 = vld [vmem:[%s658_s1 + $0x88] sm:$0xff] (!%p140_p2) }
   0xb   : > { %v464_v26 = vpack.c.bf16 (!%p140_p2), %v208_v25, %v207_v24  ;;  %v467_v29 = vpack.c.bf16 (!%p140_p2), %v210_v28, %v209_v27  ;;  %v430_v44 = vld [vmem:[%s659_s2] ss:$0 sm:$0xff] (!%p140_p2) }
   0xc   : > { %447 = vmatpush1.bf16.msra.mxu0 (!%p140_p2), %v446_v6  ;;  %479 = vmatpush1.bf16.msra.mxu1 (!%p140_p2), %v446_v6 }
   0xd   : > { %s662_s20 = smov (!%p165_p3, %s425_s20), 15  ;;  %448 = vmatprep.subr.bf16.mxu0 %v504_v3  ;;  %471 = vmatprep.subr.bf16.mxu1 %v504_v3 }
   0xe   : > { %s441_s27 = sshll.u32 %s662_s20, 4  ;;  %s429_s6 = sshll.u32 %s662_s20, 3 }
   0xf   : > { %s561_s30 = scalar_lea.vmem %s657_s0, %s441_s27  ;;  %s644_s9 = scalar_lea.vmem %s660_s3, %s429_s6 }
  0x10   : > { %v178_v10 = vld [vmem:[%s561_s30 + $0x8] sm:$0xff]  ;;  %450 = vmatpush1.bf16.msra.mxu0 %v449_v9  ;;  %480 = vmatpush1.bf16.msra.mxu1 %v449_v9  ;;  %v177_v30 = vld [vmem:[%s561_s30] sm:$0xff]  ;;  %v180_v32 = vld [vmem:[%s561_s30 + $0x18] sm:$0xff] }
  0x11   : > { %v186_v11 = vld [vmem:[%s561_s30 + $0x48] sm:$0xff]  ;;  %431 = vmatprep.mubr.msk.f32.mxu0 %vm218_vm0, %v178_v10  ;;  %451 = vmatprep.subr.bf16.mxu0 %v504_v3  ;;  %v185_v31 = vld [vmem:[%s561_s30 + $0x40] sm:$0xff]  ;;  %v188_v33 = vld [vmem:[%s561_s30 + $0x58] sm:$0xff] }
  0x12   : > { %435 = vmatprep.mubr.msk.f32.mxu1 %vm218_vm0, %v186_v11  ;;  %472 = vmatprep.subr.bf16.mxu1 %v504_v3  ;;  %v179_v34 = vld [vmem:[%s561_s30 + $0x10] sm:$0xff]  ;;  %v182_v36 = vld [vmem:[%s561_s30 + $0x28] sm:$0xff]  ;;  %v181_v38 = vld [vmem:[%s561_s30 + $0x20] sm:$0xff] }
  0x13   : > { %v187_v35 = vld [vmem:[%s561_s30 + $0x50] sm:$0xff]  ;;  %v190_v37 = vld [vmem:[%s561_s30 + $0x68] sm:$0xff]  ;;  %v189_v39 = vld [vmem:[%s561_s30 + $0x60] sm:$0xff] }
  0x14   : > { %453 = vmatpush1.bf16.msra.mxu0 %v452_v14  ;;  %481 = vmatpush1.bf16.msra.mxu1 %v452_v14  ;;  %v184_v40 = vld [vmem:[%s561_s30 + $0x38] sm:$0xff]  ;;  %v183_v42 = vld [vmem:[%s561_s30 + $0x30] sm:$0xff] }
  0x15   : > { %454 = vmatprep.subr.bf16.mxu0 %v504_v3  ;;  %473 = vmatprep.subr.bf16.mxu1 %v504_v3  ;;  %v192_v41 = vld [vmem:[%s561_s30 + $0x78] sm:$0xff]  ;;  %v191_v43 = vld [vmem:[%s561_s30 + $0x70] sm:$0xff] }
  0x18   : > { %456 = vmatpush1.bf16.msra.mxu0 %v455_v17  ;;  %482 = vmatpush1.bf16.msra.mxu1 %v455_v17 }
  0x19   : > { %457 = vmatprep.subr.bf16.mxu0 %v504_v3  ;;  %474 = vmatprep.subr.bf16.mxu1 %v504_v3 }
  0x1c   : > { %459 = vmatpush1.bf16.msra.mxu0 %v458_v20  ;;  %483 = vmatpush1.bf16.msra.mxu1 %v458_v20 }
  0x1d   : > { %460 = vmatprep.subr.bf16.mxu0 %v504_v3  ;;  %475 = vmatprep.subr.bf16.mxu1 %v504_v3 }
  0x20   : > { %462 = vmatpush1.bf16.msra.mxu0 %v461_v23  ;;  %484 = vmatpush1.bf16.msra.mxu1 %v461_v23 }
  0x21   : > { %463 = vmatprep.subr.bf16.mxu0 %v504_v3  ;;  %476 = vmatprep.subr.bf16.mxu1 %v504_v3 }
  0x24   : > { %465 = vmatpush1.bf16.msra.mxu0 %v464_v26  ;;  %485 = vmatpush1.bf16.msra.mxu1 %v464_v26 }
  0x25   : > { %466 = vmatprep.subr.bf16.mxu0 %v504_v3  ;;  %477 = vmatprep.subr.bf16.mxu1 %v504_v3 }
  0x28   : > { %468 = vmatpush1.bf16.msra.mxu0 %v467_v29  ;;  %486 = vmatpush1.bf16.msra.mxu1 %v467_v29 }
  0x2b   : > { %308 = vmatmul.mubr.f32.vlgmr.msra.gmra.mrb[0].mxu0 %v177_v30  ;;  %328 = vmatmul.mubr.f32.vlgmr.msra.gmra.mrb[0].mxu1 %v185_v31 }
  0x2c   : > { %432 = vmatprep.mubr.msk.f32.mxu0 %vm218_vm0, %v180_v32  ;;  %436 = vmatprep.mubr.msk.f32.mxu1 %vm218_vm0, %v188_v33 }
  0x2f   : > { %313 = vmatmul.mubr.f32.gmra.mrb[2].mxu0 %v179_v34  ;;  %333 = vmatmul.mubr.f32.gmra.mrb[2].mxu1 %v187_v35 }
  0x30   : > { %433 = vmatprep.mubr.msk.f32.mxu0 %vm218_vm0, %v182_v36  ;;  %437 = vmatprep.mubr.msk.f32.mxu1 %vm218_vm0, %v190_v37 }
  0x33   : > { %318 = vmatmul.mubr.f32.gmra.mrb[4].mxu0 %v181_v38  ;;  %338 = vmatmul.mubr.f32.gmra.mrb[4].mxu1 %v189_v39 }
  0x34   : > { %434 = vmatprep.mubr.msk.f32.mxu0 %vm218_vm0, %v184_v40  ;;  %438 = vmatprep.mubr.msk.f32.mxu1 %vm218_vm0, %v192_v41 }
  0x37   : > { %323 = vmatmul.mubr.f32.gmra.mrb[6].mxu0 %v183_v42  ;;  %343 = vmatmul.mubr.f32.gmra.mrb[6].mxu1 %v191_v43 }
  0xfe   : > { %v309_v45 = vpop.f32.mrb[0].mxu0  ;;  %v329_v46 = vpop.f32.mrb[0].mxu1 }
  0xff   : > { %v310_v47 = vadd.f32 %v430_v44, %v309_v45  ;;  %v330_v48 = vadd.f32 %v430_v44, %v329_v46  ;;  %v311_v49 = vpop.f32.mrb[1].mxu0  ;;  %v331_v50 = vpop.f32.mrb[1].mxu1 }
 0x101   : > { %v348_v51 = vmax.f32 %v310_v47, 0.0  ;;  %v352_v52 = vmax.f32 %v330_v48, 0.0 }
 0x102   : > { %v314_v53 = vpop.f32.mrb[2].mxu0  ;;  %v334_v54 = vpop.f32.mrb[2].mxu1 }
 0x103   : > { %356 = vst [vmem:[%s644_s9] sm:$0xff] %v348_v51  ;;  %360 = vst [vmem:[%s644_s9 + $0x20] sm:$0xff] %v352_v52  ;;  %v315_v55 = vadd.f32 %v430_v44, %v314_v53  ;;  %v335_v56 = vadd.f32 %v430_v44, %v334_v54  ;;  %v316_v57 = vpop.f32.mrb[3].mxu0  ;;  %v336_v58 = vpop.f32.mrb[3].mxu1 }
 0x105   : > { %v349_v59 = vmax.f32 %v315_v55, 0.0  ;;  %v353_v60 = vmax.f32 %v335_v56, 0.0 }
 0x106   : > { %v319_v61 = vpop.f32.mrb[4].mxu0  ;;  %v339_v62 = vpop.f32.mrb[4].mxu1 }
 0x107   : > { %357 = vst [vmem:[%s644_s9 + $0x8] sm:$0xff] %v349_v59  ;;  %361 = vst [vmem:[%s644_s9 + $0x28] sm:$0xff] %v353_v60  ;;  %v320_v63 = vadd.f32 %v430_v44, %v319_v61  ;;  %v340_v0 = vadd.f32 %v430_v44, %v339_v62  ;;  %v321_v1 = vpop.f32.mrb[5].mxu0  ;;  %v341_v2 = vpop.f32.mrb[5].mxu1 }
 0x109   : > { %v350_v3 = vmax.f32 %v320_v63, 0.0  ;;  %v354_v4 = vmax.f32 %v340_v0, 0.0 }
 0x10a   : > { %v324_v5 = vpop.f32.mrb[6].mxu0  ;;  %v344_v6 = vpop.f32.mrb[6].mxu1 }
 0x10b   : > { %358 = vst [vmem:[%s644_s9 + $0x10] sm:$0xff] %v350_v3  ;;  %362 = vst [vmem:[%s644_s9 + $0x30] sm:$0xff] %v354_v4  ;;  %v325_v7 = vadd.f32 %v430_v44, %v324_v5  ;;  %v345_v8 = vadd.f32 %v430_v44, %v344_v6  ;;  %v326_v9 = vpop.f32.mrb[7].mxu0  ;;  %v346_v10 = vpop.f32.mrb[7].mxu1 }
 0x10d   : > { %v351_v11 = vmax.f32 %v325_v7, 0.0  ;;  %v355_v12 = vmax.f32 %v345_v8, 0.0 }
 0x10f   : > { %359 = vst [vmem:[%s644_s9 + $0x18] sm:$0xff] %v351_v11  ;;  %363 = vst [vmem:[%s644_s9 + $0x38] sm:$0xff] %v355_v12 }
 0x110 PF: > { %s13_s12 = sadd.s32 1, %s502_s12  }
 0x111   : > { %p10_p4 = scmp.ge.s32.totalorder %s13_s12, 4  }
 0x113   :  { %12 = sbr.rel (!%p10_p4) target bundleno = 1 (0x1), region = 62 }

// kernel: prithvi_seg_forward.19
= control target key start
LH: loop header
LB: loop body
LE: loop exit
PB: predicated region body
PF: predicated region fallthrough
CT: control target
= control target key end

     0   :  { %s805_s12 = smov 0   ;;  %s1067_s0 = inlined_call_operand.vmem [shape: f32[512,144], index: 0, kind: input, shape index: {}]   ;;  %s1068_s1 = inlined_call_operand.vmem [shape: f32[144,128], index: 1, kind: input, shape index: {}]   ;;  %s1069_s2 = inlined_call_operand.vmem [shape: f32[1,128], index: 2, kind: input, shape index: {}]   ;;  %s1070_s3 = inlined_call_operand.vmem [shape: f32[512,128], index: 3, kind: output, shape index: {}]  }
   0x1 LB: > { %s676_s13 = sadd.s32 4294967295, %s782_s12   ;;  %p680_p0 = scmp.ge.s32.totalorder %s782_s12, 1  ;;  %s782_s12 = sphi %s805_s12, %s13_s12  }
   0x2   : > { %p139_p1 = scmp.lt.s32.totalorder %s782_s12, 3 }
   0x4   : > { %p140_p2 = pnand %p680_p0, %p139_p1 }
   0x5   : > { %v241_v0 = vld [vmem:[%s1068_s1] sm:$0xff] (!%p140_p2)  ;;  %v242_v1 = vld [vmem:[%s1068_s1 + $0x8] sm:$0xff] (!%p140_p2)  ;;  %v243_v2 = vld [vmem:[%s1068_s1 + $0x10] sm:$0xff] (!%p140_p2)  ;;  %s681_s20 = sshll.u32 (!%p140_p2), %s676_s13, 5  ;;  %v784_v3 = vmov (!%p140_p2), 0.0|0.0   ;;  %vm266_vm0 = vcmask (!%p140_p2), 130048  }
   0x6   : > { %143 = sbr.rel (%p140_p2) target bundleno = 318 (0x13e), region = 32  ;;  %722 = vmatprep.subr.bf16.mxu0 (!%p140_p2), %v784_v3  ;;  %749 = vmatprep.subr.bf16.mxu1 (!%p140_p2), %v784_v3  ;;  %v723_v4 = vpack.c.bf16 (!%p140_p2), %v242_v1, %v241_v0  ;;  %v244_v5 = vld [vmem:[%s1068_s1 + $0x18] sm:$0xff] (!%p140_p2)  ;;  %p165_p3 = scmp.lt.s32.totalorder (!%p140_p2), %s681_s20, 63  ;;  %v245_v7 = vld [vmem:[%s1068_s1 + $0x20] sm:$0xff] (!%p140_p2)  ;;  %v246_v8 = vld [vmem:[%s1068_s1 + $0x28] sm:$0xff] (!%p140_p2) }
   0x7   : > { %v726_v6 = vpack.c.bf16 (!%p140_p2), %v244_v5, %v243_v2  ;;  %v729_v9 = vpack.c.bf16 (!%p140_p2), %v246_v8, %v245_v7  ;;  %v247_v12 = vld [vmem:[%s1068_s1 + $0x30] sm:$0xff] (!%p140_p2)  ;;  %v248_v13 = vld [vmem:[%s1068_s1 + $0x38] sm:$0xff] (!%p140_p2)  ;;  %v249_v15 = vld [vmem:[%s1068_s1 + $0x40] sm:$0xff] (!%p140_p2) }
   0x8   : > { %724 = vmatpush1.bf16.msra.mxu0 (!%p140_p2), %v723_v4  ;;  %758 = vmatpush1.bf16.msra.mxu1 (!%p140_p2), %v723_v4  ;;  %v732_v14 = vpack.c.bf16 (!%p140_p2), %v248_v13, %v247_v12  ;;  %v250_v16 = vld [vmem:[%s1068_s1 + $0x48] sm:$0xff] (!%p140_p2)  ;;  %v251_v18 = vld [vmem:[%s1068_s1 + $0x50] sm:$0xff] (!%p140_p2)  ;;  %v252_v19 = vld [vmem:[%s1068_s1 + $0x58] sm:$0xff] (!%p140_p2) }
   0x9   : > { %725 = vmatprep.subr.bf16.mxu0 (!%p140_p2), %v784_v3  ;;  %750 = vmatprep.subr.bf16.mxu1 (!%p140_p2), %v784_v3  ;;  %v735_v17 = vpack.c.bf16 (!%p140_p2), %v250_v16, %v249_v15  ;;  %v738_v20 = vpack.c.bf16 (!%p140_p2), %v252_v19, %v251_v18  ;;  %v253_v21 = vld [vmem:[%s1068_s1 + $0x60] sm:$0xff] (!%p140_p2)  ;;  %v254_v22 = vld [vmem:[%s1068_s1 + $0x68] sm:$0xff] (!%p140_p2)  ;;  %v255_v24 = vld [vmem:[%s1068_s1 + $0x70] sm:$0xff] (!%p140_p2) }
   0xa   : > { %v741_v23 = vpack.c.bf16 (!%p140_p2), %v254_v22, %v253_v21  ;;  %v256_v25 = vld [vmem:[%s1068_s1 + $0x78] sm:$0xff] (!%p140_p2)  ;;  %v257_v27 = vld [vmem:[%s1068_s1 + $0x80] sm:$0xff] (!%p140_p2)  ;;  %v258_v28 = vld [vmem:[%s1068_s1 + $0x88] sm:$0xff] (!%p140_p2) }
   0xb   : > { %v744_v26 = vpack.c.bf16 (!%p140_p2), %v256_v25, %v255_v24  ;;  %v747_v29 = vpack.c.bf16 (!%p140_p2), %v258_v28, %v257_v27  ;;  %v993_v28 = vld [vmem:[%s1069_s2] ss:$0 sm:$0xff] (!%p140_p2) }
   0xc   : > { %727 = vmatpush1.bf16.msra.mxu0 (!%p140_p2), %v726_v6  ;;  %759 = vmatpush1.bf16.msra.mxu1 (!%p140_p2), %v726_v6 }
   0xd   : > { %s1072_s20 = smov (!%p165_p3, %s681_s20), 63  ;;  %728 = vmatprep.subr.bf16.mxu0 %v784_v3  ;;  %751 = vmatprep.subr.bf16.mxu1 %v784_v3 }
   0xe   : > { %s721_s27 = sshll.u32 %s1072_s20, 4  ;;  %s685_s4 = sshll.u32 %s1072_s20, 3 }
   0xf   : > { %s841_s30 = scalar_lea.vmem %s1067_s0, %s721_s27  ;;  %s998_s9 = scalar_lea.vmem %s1070_s3, %s685_s4 }
  0x10   : > { %v178_v10 = vld [vmem:[%s841_s30 + $0x8] sm:$0xff]  ;;  %730 = vmatpush1.bf16.msra.mxu0 %v729_v9  ;;  %760 = vmatpush1.bf16.msra.mxu1 %v729_v9  ;;  %v177_v30 = vld [vmem:[%s841_s30] sm:$0xff]  ;;  %v180_v32 = vld [vmem:[%s841_s30 + $0x18] sm:$0xff] }
  0x11   : > { %v210_v11 = vld [vmem:[%s841_s30 + $0x108] sm:$0xff]  ;;  %687 = vmatprep.mubr.msk.f32.mxu0 %vm266_vm0, %v178_v10  ;;  %731 = vmatprep.subr.bf16.mxu0 %v784_v3  ;;  %v209_v31 = vld [vmem:[%s841_s30 + $0x100] sm:$0xff]  ;;  %v212_v33 = vld [vmem:[%s841_s30 + $0x118] sm:$0xff] }
  0x12   : > { %703 = vmatprep.mubr.msk.f32.mxu1 %vm266_vm0, %v210_v11  ;;  %752 = vmatprep.subr.bf16.mxu1 %v784_v3  ;;  %v179_v34 = vld [vmem:[%s841_s30 + $0x10] sm:$0xff]  ;;  %v182_v36 = vld [vmem:[%s841_s30 + $0x28] sm:$0xff]  ;;  %v181_v38 = vld [vmem:[%s841_s30 + $0x20] sm:$0xff] }
  0x13   : > { %v211_v35 = vld [vmem:[%s841_s30 + $0x110] sm:$0xff]  ;;  %v214_v37 = vld [vmem:[%s841_s30 + $0x128] sm:$0xff]  ;;  %v213_v39 = vld [vmem:[%s841_s30 + $0x120] sm:$0xff] }
  0x14   : > { %733 = vmatpush1.bf16.msra.mxu0 %v732_v14  ;;  %761 = vmatpush1.bf16.msra.mxu1 %v732_v14  ;;  %v184_v40 = vld [vmem:[%s841_s30 + $0x38] sm:$0xff]  ;;  %v183_v42 = vld [vmem:[%s841_s30 + $0x30] sm:$0xff]  ;;  %v186_v44 = vld [vmem:[%s841_s30 + $0x48] sm:$0xff] }
  0x15   : > { %734 = vmatprep.subr.bf16.mxu0 %v784_v3  ;;  %753 = vmatprep.subr.bf16.mxu1 %v784_v3  ;;  %v216_v41 = vld [vmem:[%s841_s30 + $0x138] sm:$0xff]  ;;  %v215_v43 = vld [vmem:[%s841_s30 + $0x130] sm:$0xff]  ;;  %v218_v45 = vld [vmem:[%s841_s30 + $0x148] sm:$0xff] }
  0x16   : > { %v185_v46 = vld [vmem:[%s841_s30 + $0x40] sm:$0xff]  ;;  %v188_v48 = vld [vmem:[%s841_s30 + $0x58] sm:$0xff]  ;;  %v187_v50 = vld [vmem:[%s841_s30 + $0x50] sm:$0xff] }
  0x17   : > { %v217_v47 = vld [vmem:[%s841_s30 + $0x140] sm:$0xff]  ;;  %v220_v49 = vld [vmem:[%s841_s30 + $0x158] sm:$0xff]  ;;  %v219_v51 = vld [vmem:[%s841_s30 + $0x150] sm:$0xff] }
  0x18   : > { %736 = vmatpush1.bf16.msra.mxu0 %v735_v17  ;;  %762 = vmatpush1.bf16.msra.mxu1 %v735_v17  ;;  %v190_v52 = vld [vmem:[%s841_s30 + $0x68] sm:$0xff]  ;;  %v189_v54 = vld [vmem:[%s841_s30 + $0x60] sm:$0xff]  ;;  %v192_v56 = vld [vmem:[%s841_s30 + $0x78] sm:$0xff] }
  0x19   : > { %737 = vmatprep.subr.bf16.mxu0 %v784_v3  ;;  %754 = vmatprep.subr.bf16.mxu1 %v784_v3  ;;  %v222_v53 = vld [vmem:[%s841_s30 + $0x168] sm:$0xff]  ;;  %v221_v55 = vld [vmem:[%s841_s30 + $0x160] sm:$0xff]  ;;  %v224_v57 = vld [vmem:[%s841_s30 + $0x178] sm:$0xff] }
  0x1a   : > { %v191_v58 = vld [vmem:[%s841_s30 + $0x70] sm:$0xff]  ;;  %v194_v60 = vld [vmem:[%s841_s30 + $0x88] sm:$0xff]  ;;  %v193_v62 = vld [vmem:[%s841_s30 + $0x80] sm:$0xff] }
  0x1b   : > { %v223_v59 = vld [vmem:[%s841_s30 + $0x170] sm:$0xff]  ;;  %v226_v61 = vld [vmem:[%s841_s30 + $0x188] sm:$0xff]  ;;  %v225_v63 = vld [vmem:[%s841_s30 + $0x180] sm:$0xff] }
  0x1c   : > { %739 = vmatpush1.bf16.msra.mxu0 %v738_v20  ;;  %763 = vmatpush1.bf16.msra.mxu1 %v738_v20  ;;  %v196_v0 = vld [vmem:[%s841_s30 + $0x98] sm:$0xff]  ;;  %v195_v2 = vld [vmem:[%s841_s30 + $0x90] sm:$0xff]  ;;  %v198_v4 = vld [vmem:[%s841_s30 + $0xa8] sm:$0xff] }
  0x1d   : > { %740 = vmatprep.subr.bf16.mxu0 %v784_v3  ;;  %755 = vmatprep.subr.bf16.mxu1 %v784_v3  ;;  %v228_v1 = vld [vmem:[%s841_s30 + $0x198] sm:$0xff]  ;;  %v230_v5 = vld [vmem:[%s841_s30 + $0x1a8] sm:$0xff]  ;;  %v197_v6 = vld [vmem:[%s841_s30 + $0xa0] sm:$0xff] }
  0x1e   : > { %v229_v7 = vld [vmem:[%s841_s30 + $0x1a0] sm:$0xff]  ;;  %v200_v8 = vld [vmem:[%s841_s30 + $0xb8] sm:$0xff]  ;;  %v199_v10 = vld [vmem:[%s841_s30 + $0xb0] sm:$0xff] }
  0x1f   : > { %v232_v9 = vld [vmem:[%s841_s30 + $0x1b8] sm:$0xff]  ;;  %v231_v11 = vld [vmem:[%s841_s30 + $0x1b0] sm:$0xff]  ;;  %v202_v12 = vld [vmem:[%s841_s30 + $0xc8] sm:$0xff] }
  0x20   : > { %742 = vmatpush1.bf16.msra.mxu0 %v741_v23  ;;  %764 = vmatpush1.bf16.msra.mxu1 %v741_v23  ;;  %v234_v13 = vld [vmem:[%s841_s30 + $0x1c8] sm:$0xff]  ;;  %v201_v14 = vld [vmem:[%s841_s30 + $0xc0] sm:$0xff]  ;;  %v204_v16 = vld [vmem:[%s841_s30 + $0xd8] sm:$0xff] }
  0x21   : > { %743 = vmatprep.subr.bf16.mxu0 %v784_v3  ;;  %756 = vmatprep.subr.bf16.mxu1 %v784_v3  ;;  %v233_v15 = vld [vmem:[%s841_s30 + $0x1c0] sm:$0xff]  ;;  %v236_v17 = vld [vmem:[%s841_s30 + $0x1d8] sm:$0xff]  ;;  %v203_v18 = vld [vmem:[%s841_s30 + $0xd0] sm:$0xff] }
  0x22   : > { %v235_v19 = vld [vmem:[%s841_s30 + $0x1d0] sm:$0xff]  ;;  %v206_v20 = vld [vmem:[%s841_s30 + $0xe8] sm:$0xff]  ;;  %v205_v22 = vld [vmem:[%s841_s30 + $0xe0] sm:$0xff] }
  0x23   : > { %v238_v21 = vld [vmem:[%s841_s30 + $0x1e8] sm:$0xff]  ;;  %v237_v23 = vld [vmem:[%s841_s30 + $0x1e0] sm:$0xff]  ;;  %v208_v24 = vld [vmem:[%s841_s30 + $0xf8] sm:$0xff] }
  0x24   : > { %745 = vmatpush1.bf16.msra.mxu0 %v744_v26  ;;  %765 = vmatpush1.bf16.msra.mxu1 %v744_v26  ;;  %v240_v25 = vld [vmem:[%s841_s30 + $0x1f8] sm:$0xff]  ;;  %v207_v26 = vld [vmem:[%s841_s30 + $0xf0] sm:$0xff] }
  0x25   : > { %746 = vmatprep.subr.bf16.mxu0 %v784_v3  ;;  %757 = vmatprep.subr.bf16.mxu1 %v784_v3  ;;  %v227_v3 = vld [vmem:[%s841_s30 + $0x190] sm:$0xff] }
  0x26   : > { %v239_v27 = vld [vmem:[%s841_s30 + $0x1f0] sm:$0xff] }
  0x28   : > { %748 = vmatpush1.bf16.msra.mxu0 %v747_v29  ;;  %766 = vmatpush1.bf16.msra.mxu1 %v747_v29 }
  0x2b   : > { %428 = vmatmul.mubr.f32.vlgmr.msra.gmra.mrb[0].mxu0 %v177_v30  ;;  %508 = vmatmul.mubr.f32.vlgmr.msra.gmra.mrb[0].mxu1 %v209_v31 }
  0x2c   : > { %688 = vmatprep.mubr.msk.f32.mxu0 %vm266_vm0, %v180_v32  ;;  %704 = vmatprep.mubr.msk.f32.mxu1 %vm266_vm0, %v212_v33 }
  0x2f   : > { %433 = vmatmul.mubr.f32.gmra.mrb[2].mxu0 %v179_v34  ;;  %513 = vmatmul.mubr.f32.gmra.mrb[2].mxu1 %v211_v35 }
  0x30   : > { %689 = vmatprep.mubr.msk.f32.mxu0 %vm266_vm0, %v182_v36  ;;  %705 = vmatprep.mubr.msk.f32.mxu1 %vm266_vm0, %v214_v37 }
  0x33   : > { %438 = vmatmul.mubr.f32.gmra.mrb[4].mxu0 %v181_v38  ;;  %518 = vmatmul.mubr.f32.gmra.mrb[4].mxu1 %v213_v39 }
  0x34   : > { %690 = vmatprep.mubr.msk.f32.mxu0 %vm266_vm0, %v184_v40  ;;  %706 = vmatprep.mubr.msk.f32.mxu1 %vm266_vm0, %v216_v41 }
  0x37   : > { %443 = vmatmul.mubr.f32.gmra.mrb[6].mxu0 %v183_v42  ;;  %523 = vmatmul.mubr.f32.gmra.mrb[6].mxu1 %v215_v43 }
  0x38   : > { %691 = vmatprep.mubr.msk.f32.mxu0 %vm266_vm0, %v186_v44  ;;  %707 = vmatprep.mubr.msk.f32.mxu1 %vm266_vm0, %v218_v45 }
  0x3b   : > { %448 = vmatmul.mubr.f32.gmra.mrb[8].mxu0 %v185_v46  ;;  %528 = vmatmul.mubr.f32.gmra.mrb[8].mxu1 %v217_v47 }
  0x3c   : > { %692 = vmatprep.mubr.msk.f32.mxu0 %vm266_vm0, %v188_v48  ;;  %708 = vmatprep.mubr.msk.f32.mxu1 %vm266_vm0, %v220_v49 }
  0x3f   : > { %453 = vmatmul.mubr.f32.gmra.mrb[10].mxu0 %v187_v50  ;;  %533 = vmatmul.mubr.f32.gmra.mrb[10].mxu1 %v219_v51 }
  0x40   : > { %693 = vmatprep.mubr.msk.f32.mxu0 %vm266_vm0, %v190_v52  ;;  %709 = vmatprep.mubr.msk.f32.mxu1 %vm266_vm0, %v222_v53 }
  0x43   : > { %458 = vmatmul.mubr.f32.gmra.mrb[12].mxu0 %v189_v54  ;;  %538 = vmatmul.mubr.f32.gmra.mrb[12].mxu1 %v221_v55 }
  0x44   : > { %694 = vmatprep.mubr.msk.f32.mxu0 %vm266_vm0, %v192_v56  ;;  %710 = vmatprep.mubr.msk.f32.mxu1 %vm266_vm0, %v224_v57 }
  0x47   : > { %463 = vmatmul.mubr.f32.gmra.mrb[14].mxu0 %v191_v58  ;;  %543 = vmatmul.mubr.f32.gmra.mrb[14].mxu1 %v223_v59 }
  0x48   : > { %695 = vmatprep.mubr.msk.f32.mxu0 %vm266_vm0, %v194_v60  ;;  %711 = vmatprep.mubr.msk.f32.mxu1 %vm266_vm0, %v226_v61 }
  0x4b   : > { %468 = vmatmul.mubr.f32.gmra.mrb[16].mxu0 %v193_v62  ;;  %548 = vmatmul.mubr.f32.gmra.mrb[16].mxu1 %v225_v63 }
  0x4c   : > { %696 = vmatprep.mubr.msk.f32.mxu0 %vm266_vm0, %v196_v0  ;;  %712 = vmatprep.mubr.msk.f32.mxu1 %vm266_vm0, %v228_v1 }
  0x4f   : > { %473 = vmatmul.mubr.f32.gmra.mrb[18].mxu0 %v195_v2  ;;  %553 = vmatmul.mubr.f32.gmra.mrb[18].mxu1 %v227_v3 }
  0x50   : > { %697 = vmatprep.mubr.msk.f32.mxu0 %vm266_vm0, %v198_v4  ;;  %713 = vmatprep.mubr.msk.f32.mxu1 %vm266_vm0, %v230_v5 }
  0x53   : > { %478 = vmatmul.mubr.f32.gmra.mrb[20].mxu0 %v197_v6  ;;  %558 = vmatmul.mubr.f32.gmra.mrb[20].mxu1 %v229_v7 }
  0x54   : > { %698 = vmatprep.mubr.msk.f32.mxu0 %vm266_vm0, %v200_v8  ;;  %714 = vmatprep.mubr.msk.f32.mxu1 %vm266_vm0, %v232_v9 }
  0x57   : > { %483 = vmatmul.mubr.f32.gmra.mrb[22].mxu0 %v199_v10  ;;  %563 = vmatmul.mubr.f32.gmra.mrb[22].mxu1 %v231_v11 }
  0x58   : > { %699 = vmatprep.mubr.msk.f32.mxu0 %vm266_vm0, %v202_v12  ;;  %715 = vmatprep.mubr.msk.f32.mxu1 %vm266_vm0, %v234_v13 }
  0x5b   : > { %488 = vmatmul.mubr.f32.gmra.mrb[24].mxu0 %v201_v14  ;;  %568 = vmatmul.mubr.f32.gmra.mrb[24].mxu1 %v233_v15 }
  0x5c   : > { %700 = vmatprep.mubr.msk.f32.mxu0 %vm266_vm0, %v204_v16  ;;  %716 = vmatprep.mubr.msk.f32.mxu1 %vm266_vm0, %v236_v17 }
  0x5f   : > { %493 = vmatmul.mubr.f32.gmra.mrb[26].mxu0 %v203_v18  ;;  %573 = vmatmul.mubr.f32.gmra.mrb[26].mxu1 %v235_v19 }
  0x60   : > { %701 = vmatprep.mubr.msk.f32.mxu0 %vm266_vm0, %v206_v20  ;;  %717 = vmatprep.mubr.msk.f32.mxu1 %vm266_vm0, %v238_v21 }
  0x63   : > { %498 = vmatmul.mubr.f32.gmra.mrb[28].mxu0 %v205_v22  ;;  %578 = vmatmul.mubr.f32.gmra.mrb[28].mxu1 %v237_v23 }
  0x64   : > { %702 = vmatprep.mubr.msk.f32.mxu0 %vm266_vm0, %v208_v24  ;;  %718 = vmatprep.mubr.msk.f32.mxu1 %vm266_vm0, %v240_v25 }
  0x67   : > { %503 = vmatmul.mubr.f32.gmra.mrb[30].mxu0 %v207_v26  ;;  %583 = vmatmul.mubr.f32.gmra.mrb[30].mxu1 %v239_v27 }
  0xfe   : > { %v429_v29 = vpop.f32.mrb[0].mxu0  ;;  %v509_v30 = vpop.f32.mrb[0].mxu1 }
  0xff   : > { %v430_v31 = vadd.f32 %v993_v28, %v429_v29  ;;  %v510_v32 = vadd.f32 %v993_v28, %v509_v30  ;;  %v431_v33 = vpop.f32.mrb[1].mxu0  ;;  %v511_v34 = vpop.f32.mrb[1].mxu1 }
 0x101   : > { %588 = vst [vmem:[%s998_s9] sm:$0xff] %v430_v31  ;;  %604 = vst [vmem:[%s998_s9 + $0x80] sm:$0xff] %v510_v32 }
 0x102   : > { %v434_v35 = vpop.f32.mrb[2].mxu0  ;;  %v514_v36 = vpop.f32.mrb[2].mxu1 }
 0x103   : > { %v435_v37 = vadd.f32 %v993_v28, %v434_v35  ;;  %v515_v38 = vadd.f32 %v993_v28, %v514_v36  ;;  %v436_v39 = vpop.f32.mrb[3].mxu0  ;;  %v516_v40 = vpop.f32.mrb[3].mxu1 }
 0x105   : > { %589 = vst [vmem:[%s998_s9 + $0x8] sm:$0xff] %v435_v37  ;;  %605 = vst [vmem:[%s998_s9 + $0x88] sm:$0xff] %v515_v38 }
 0x106   : > { %v439_v41 = vpop.f32.mrb[4].mxu0  ;;  %v519_v42 = vpop.f32.mrb[4].mxu1 }
 0x107   : > { %v440_v43 = vadd.f32 %v993_v28, %v439_v41  ;;  %v520_v44 = vadd.f32 %v993_v28, %v519_v42  ;;  %v441_v45 = vpop.f32.mrb[5].mxu0  ;;  %v521_v46 = vpop.f32.mrb[5].mxu1 }
 0x109   : > { %590 = vst [vmem:[%s998_s9 + $0x10] sm:$0xff] %v440_v43  ;;  %606 = vst [vmem:[%s998_s9 + $0x90] sm:$0xff] %v520_v44 }
 0x10a   : > { %v444_v47 = vpop.f32.mrb[6].mxu0  ;;  %v524_v48 = vpop.f32.mrb[6].mxu1 }
 0x10b   : > { %v445_v49 = vadd.f32 %v993_v28, %v444_v47  ;;  %v525_v50 = vadd.f32 %v993_v28, %v524_v48  ;;  %v446_v51 = vpop.f32.mrb[7].mxu0  ;;  %v526_v52 = vpop.f32.mrb[7].mxu1 }
 0x10d   : > { %591 = vst [vmem:[%s998_s9 + $0x18] sm:$0xff] %v445_v49  ;;  %607 = vst [vmem:[%s998_s9 + $0x98] sm:$0xff] %v525_v50 }
 0x10e   : > { %v449_v53 = vpop.f32.mrb[8].mxu0  ;;  %v529_v54 = vpop.f32.mrb[8].mxu1 }
 0x10f   : > { %v450_v55 = vadd.f32 %v993_v28, %v449_v53  ;;  %v530_v56 = vadd.f32 %v993_v28, %v529_v54  ;;  %v451_v57 = vpop.f32.mrb[9].mxu0  ;;  %v531_v58 = vpop.f32.mrb[9].mxu1 }
 0x111   : > { %592 = vst [vmem:[%s998_s9 + $0x20] sm:$0xff] %v450_v55  ;;  %608 = vst [vmem:[%s998_s9 + $0xa0] sm:$0xff] %v530_v56 }
 0x112   : > { %v454_v59 = vpop.f32.mrb[10].mxu0  ;;  %v534_v60 = vpop.f32.mrb[10].mxu1 }
 0x113   : > { %v455_v61 = vadd.f32 %v993_v28, %v454_v59  ;;  %v535_v62 = vadd.f32 %v993_v28, %v534_v60  ;;  %v456_v63 = vpop.f32.mrb[11].mxu0  ;;  %v536_v0 = vpop.f32.mrb[11].mxu1 }
 0x115   : > { %593 = vst [vmem:[%s998_s9 + $0x28] sm:$0xff] %v455_v61  ;;  %609 = vst [vmem:[%s998_s9 + $0xa8] sm:$0xff] %v535_v62 }
 0x116   : > { %v459_v1 = vpop.f32.mrb[12].mxu0  ;;  %v539_v2 = vpop.f32.mrb[12].mxu1 }
 0x117   : > { %v460_v3 = vadd.f32 %v993_v28, %v459_v1  ;;  %v540_v4 = vadd.f32 %v993_v28, %v539_v2  ;;  %v461_v5 = vpop.f32.mrb[13].mxu0  ;;  %v541_v6 = vpop.f32.mrb[13].mxu1 }
 0x119   : > { %594 = vst [vmem:[%s998_s9 + $0x30] sm:$0xff] %v460_v3  ;;  %610 = vst [vmem:[%s998_s9 + $0xb0] sm:$0xff] %v540_v4 }
 0x11a   : > { %v464_v7 = vpop.f32.mrb[14].mxu0  ;;  %v544_v8 = vpop.f32.mrb[14].mxu1 }
 0x11b   : > { %v465_v9 = vadd.f32 %v993_v28, %v464_v7  ;;  %v545_v10 = vadd.f32 %v993_v28, %v544_v8  ;;  %v466_v11 = vpop.f32.mrb[15].mxu0  ;;  %v546_v12 = vpop.f32.mrb[15].mxu1 }
 0x11d   : > { %595 = vst [vmem:[%s998_s9 + $0x38] sm:$0xff] %v465_v9  ;;  %611 = vst [vmem:[%s998_s9 + $0xb8] sm:$0xff] %v545_v10 }
 0x11e   : > { %v469_v13 = vpop.f32.mrb[16].mxu0  ;;  %v549_v14 = vpop.f32.mrb[16].mxu1 }
 0x11f   : > { %v470_v15 = vadd.f32 %v993_v28, %v469_v13  ;;  %v550_v16 = vadd.f32 %v993_v28, %v549_v14  ;;  %v471_v17 = vpop.f32.mrb[17].mxu0  ;;  %v551_v18 = vpop.f32.mrb[17].mxu1 }
 0x121   : > { %596 = vst [vmem:[%s998_s9 + $0x40] sm:$0xff] %v470_v15  ;;  %612 = vst [vmem:[%s998_s9 + $0xc0] sm:$0xff] %v550_v16 }
 0x122   : > { %v474_v19 = vpop.f32.mrb[18].mxu0  ;;  %v554_v20 = vpop.f32.mrb[18].mxu1 }
 0x123   : > { %v475_v21 = vadd.f32 %v993_v28, %v474_v19  ;;  %v555_v22 = vadd.f32 %v993_v28, %v554_v20  ;;  %v476_v23 = vpop.f32.mrb[19].mxu0  ;;  %v556_v24 = vpop.f32.mrb[19].mxu1 }
 0x125   : > { %597 = vst [vmem:[%s998_s9 + $0x48] sm:$0xff] %v475_v21  ;;  %613 = vst [vmem:[%s998_s9 + $0xc8] sm:$0xff] %v555_v22 }
 0x126   : > { %v479_v25 = vpop.f32.mrb[20].mxu0  ;;  %v559_v26 = vpop.f32.mrb[20].mxu1 }
 0x127   : > { %v480_v27 = vadd.f32 %v993_v28, %v479_v25  ;;  %v560_v29 = vadd.f32 %v993_v28, %v559_v26  ;;  %v481_v30 = vpop.f32.mrb[21].mxu0  ;;  %v561_v31 = vpop.f32.mrb[21].mxu1 }
 0x129   : > { %598 = vst [vmem:[%s998_s9 + $0x50] sm:$0xff] %v480_v27  ;;  %614 = vst [vmem:[%s998_s9 + $0xd0] sm:$0xff] %v560_v29 }
 0x12a   : > { %v484_v32 = vpop.f32.mrb[22].mxu0  ;;  %v564_v33 = vpop.f32.mrb[22].mxu1 }
 0x12b   : > { %v485_v34 = vadd.f32 %v993_v28, %v484_v32  ;;  %v565_v35 = vadd.f32 %v993_v28, %v564_v33  ;;  %v486_v36 = vpop.f32.mrb[23].mxu0  ;;  %v566_v37 = vpop.f32.mrb[23].mxu1 }
 0x12d   : > { %599 = vst [vmem:[%s998_s9 + $0x58] sm:$0xff] %v485_v34  ;;  %615 = vst [vmem:[%s998_s9 + $0xd8] sm:$0xff] %v565_v35 }
 0x12e   : > { %v489_v38 = vpop.f32.mrb[24].mxu0  ;;  %v569_v39 = vpop.f32.mrb[24].mxu1 }
 0x12f   : > { %v490_v40 = vadd.f32 %v993_v28, %v489_v38  ;;  %v570_v41 = vadd.f32 %v993_v28, %v569_v39  ;;  %v491_v42 = vpop.f32.mrb[25].mxu0  ;;  %v571_v43 = vpop.f32.mrb[25].mxu1 }
 0x131   : > { %600 = vst [vmem:[%s998_s9 + $0x60] sm:$0xff] %v490_v40  ;;  %616 = vst [vmem:[%s998_s9 + $0xe0] sm:$0xff] %v570_v41 }
 0x132   : > { %v494_v44 = vpop.f32.mrb[26].mxu0  ;;  %v574_v45 = vpop.f32.mrb[26].mxu1 }
 0x133   : > { %v495_v46 = vadd.f32 %v993_v28, %v494_v44  ;;  %v575_v47 = vadd.f32 %v993_v28, %v574_v45  ;;  %v496_v48 = vpop.f32.mrb[27].mxu0  ;;  %v576_v49 = vpop.f32.mrb[27].mxu1 }
 0x135   : > { %601 = vst [vmem:[%s998_s9 + $0x68] sm:$0xff] %v495_v46  ;;  %617 = vst [vmem:[%s998_s9 + $0xe8] sm:$0xff] %v575_v47 }
 0x136   : > { %v499_v50 = vpop.f32.mrb[28].mxu0  ;;  %v579_v51 = vpop.f32.mrb[28].mxu1 }
 0x137   : > { %v500_v52 = vadd.f32 %v993_v28, %v499_v50  ;;  %v580_v53 = vadd.f32 %v993_v28, %v579_v51  ;;  %v501_v54 = vpop.f32.mrb[29].mxu0  ;;  %v581_v55 = vpop.f32.mrb[29].mxu1 }
 0x139   : > { %602 = vst [vmem:[%s998_s9 + $0x70] sm:$0xff] %v500_v52  ;;  %618 = vst [vmem:[%s998_s9 + $0xf0] sm:$0xff] %v580_v53 }
 0x13a   : > { %v504_v56 = vpop.f32.mrb[30].mxu0  ;;  %v584_v57 = vpop.f32.mrb[30].mxu1 }
 0x13b   : > { %v505_v58 = vadd.f32 %v993_v28, %v504_v56  ;;  %v585_v59 = vadd.f32 %v993_v28, %v584_v57  ;;  %v506_v60 = vpop.f32.mrb[31].mxu0  ;;  %v586_v61 = vpop.f32.mrb[31].mxu1 }
 0x13d   : > { %603 = vst [vmem:[%s998_s9 + $0x78] sm:$0xff] %v505_v58  ;;  %619 = vst [vmem:[%s998_s9 + $0xf8] sm:$0xff] %v585_v59 }
 0x13e PF: > { %s13_s12 = sadd.s32 1, %s782_s12  }
 0x13f   : > { %p10_p4 = scmp.ge.s32.totalorder %s13_s12, 4  }
 0x141   :  { %12 = sbr.rel (!%p10_p4) target bundleno = 1 (0x1), region = 62 }

// kernel: prithvi_seg_forward.20
= control target key start
LH: loop header
LB: loop body
LE: loop exit
PB: predicated region body
PF: predicated region fallthrough
CT: control target
= control target key end

     0   :  { %s877_s12 = smov 0   ;;  %s1065_s0 = inlined_call_operand.vmem [shape: f32[512,72], index: 0, kind: input, shape index: {}]   ;;  %s1066_s1 = inlined_call_operand.vmem [shape: f32[72,128], index: 1, kind: input, shape index: {}]   ;;  %s1067_s2 = inlined_call_operand.vmem [shape: f32[1,128], index: 2, kind: input, shape index: {}]   ;;  %s1068_s3 = inlined_call_operand.vmem [shape: f32[512,128], index: 3, kind: output, shape index: {}]  }
   0x1 LB: > { %s664_s13 = sadd.s32 4294967295, %s855_s12   ;;  %p668_p0 = scmp.ge.s32.totalorder %s855_s12, 1  ;;  %s855_s12 = sphi %s877_s12, %s13_s12  }
   0x2   : > { %p138_p1 = scmp.lt.s32.totalorder %s855_s12, 3 }
   0x4   : > { %p139_p2 = pnand %p668_p0, %p138_p1 }
   0x5   : > { %v206_v0 = vld [vmem:[%s1066_s1] sm:$0xff] (!%p139_p2)  ;;  %v207_v1 = vld [vmem:[%s1066_s1 + $0x8] sm:$0xff] (!%p139_p2)  ;;  %v208_v2 = vld [vmem:[%s1066_s1 + $0x10] sm:$0xff] (!%p139_p2)  ;;  %s669_s20 = sshll.u32 (!%p139_p2), %s664_s13, 5  ;;  %vm222_vm0 = vcmask (!%p139_p2), 588800  }
   0x6   : > { %142 = sbr.rel (%p139_p2) target bundleno = 273 (0x111), region = 32  ;;  %v815_v3 = vpack.c.bf16 (!%p139_p2), %v207_v1, %v206_v0  ;;  %v209_v4 = vld [vmem:[%s1066_s1 + $0x18] sm:$0xff] (!%p139_p2)  ;;  %p163_p3 = scmp.lt.s32.totalorder (!%p139_p2), %s669_s20, 63  ;;  %v210_v6 = vld [vmem:[%s1066_s1 + $0x20] sm:$0xff] (!%p139_p2)  ;;  %v211_v7 = vld [vmem:[%s1066_s1 + $0x28] sm:$0xff] (!%p139_p2) }
   0x7   : > { %v819_v5 = vpack.c.bf16 (!%p139_p2), %v209_v4, %v208_v2  ;;  %v823_v8 = vpack.c.bf16 (!%p139_p2), %v211_v7, %v210_v6  ;;  %v212_v9 = vld [vmem:[%s1066_s1 + $0x30] sm:$0xff] (!%p139_p2)  ;;  %v213_v10 = vld [vmem:[%s1066_s1 + $0x38] sm:$0xff] (!%p139_p2)  ;;  %v214_v14 = vld [vmem:[%s1066_s1 + $0x40] sm:$0xff] (!%p139_p2) }
   0x8   : > { %816 = vmatprep.subr.bf16.mxu0 (!%p139_p2), %v815_v3  ;;  %831 = vmatprep.subr.bf16.mxu1 (!%p139_p2), %v815_v3  ;;  %v827_v13 = vpack.c.bf16 (!%p139_p2), %v213_v10, %v212_v9  ;;  %v989_v45 = vld [vmem:[%s1067_s2] ss:$0 sm:$0xff] (!%p139_p2) }
   0x9   : > { %818 = vmatpush3.bf16.msra.mxu0 (!%p139_p2), %v815_v3  ;;  %836 = vmatpush3.bf16.msra.mxu1 (!%p139_p2), %v815_v3 }
   0xa   : > { %820 = vmatprep.subr.bf16.mxu0 (!%p139_p2), %v819_v5  ;;  %832 = vmatprep.subr.bf16.mxu1 (!%p139_p2), %v819_v5 }
   0xd   : > { %s1070_s20 = smov (!%p163_p3, %s669_s20), 63  ;;  %822 = vmatpush3.bf16.msra.mxu0 %v819_v5  ;;  %837 = vmatpush3.bf16.msra.mxu1 %v819_v5 }
   0xe   : > { %s670_s27 = sshll.u32 %s1070_s20, 3  ;;  %824 = vmatprep.subr.bf16.mxu0 %v823_v8  ;;  %833 = vmatprep.subr.bf16.mxu1 %v823_v8 }
   0xf   : > { %s917_s7 = scalar_lea.vmem %s1065_s0, %s670_s27  ;;  %s998_s15 = scalar_lea.vmem %s1068_s3, %s670_s27 }
  0x10   : > { %v174_v11 = vld [vmem:[%s917_s7] sm:$0xff]  ;;  %v175_v15 = vld [vmem:[%s917_s7 + $0x8] sm:$0xff]  ;;  %v176_v17 = vld [vmem:[%s917_s7 + $0x10] sm:$0xff] }
  0x11   : > { %v190_v12 = vld [vmem:[%s917_s7 + $0x80] sm:$0xff]  ;;  %767 = vmatprep.mubr.msk.f32.mxu0 %vm222_vm0, %v174_v11  ;;  %826 = vmatpush3.bf16.msra.mxu0 %v823_v8  ;;  %v191_v16 = vld [vmem:[%s917_s7 + $0x88] sm:$0xff]  ;;  %v192_v18 = vld [vmem:[%s917_s7 + $0x90] sm:$0xff] }
  0x12   : > { %791 = vmatprep.mubr.msk.f32.mxu1 %vm222_vm0, %v190_v12  ;;  %838 = vmatpush3.bf16.msra.mxu1 %v823_v8  ;;  %v177_v19 = vld [vmem:[%s917_s7 + $0x18] sm:$0xff]  ;;  %v178_v21 = vld [vmem:[%s917_s7 + $0x20] sm:$0xff]  ;;  %v179_v23 = vld [vmem:[%s917_s7 + $0x28] sm:$0xff] }
  0x13   : > { %828 = vmatprep.subr.bf16.mxu0 %v827_v13  ;;  %834 = vmatprep.subr.bf16.mxu1 %v827_v13  ;;  %v193_v20 = vld [vmem:[%s917_s7 + $0x98] sm:$0xff]  ;;  %v194_v22 = vld [vmem:[%s917_s7 + $0xa0] sm:$0xff]  ;;  %v195_v24 = vld [vmem:[%s917_s7 + $0xa8] sm:$0xff] }
  0x14   : > { %v180_v25 = vld [vmem:[%s917_s7 + $0x30] sm:$0xff]  ;;  %v181_v27 = vld [vmem:[%s917_s7 + $0x38] sm:$0xff]  ;;  %v182_v29 = vld [vmem:[%s917_s7 + $0x40] sm:$0xff] }
  0x15   : > { %830 = vmatpush3.bf16.msra.mxu0 %v827_v13  ;;  %v196_v26 = vld [vmem:[%s917_s7 + $0xb0] sm:$0xff]  ;;  %v197_v28 = vld [vmem:[%s917_s7 + $0xb8] sm:$0xff]  ;;  %v198_v30 = vld [vmem:[%s917_s7 + $0xc0] sm:$0xff] }
  0x16   : > { %839 = vmatpush3.bf16.msra.mxu1 %v827_v13  ;;  %765 = vmatprep.subr.mxu0 %v214_v14  ;;  %v183_v31 = vld [vmem:[%s917_s7 + $0x48] sm:$0xff]  ;;  %v184_v33 = vld [vmem:[%s917_s7 + $0x50] sm:$0xff]  ;;  %v185_v35 = vld [vmem:[%s917_s7 + $0x58] sm:$0xff] }
  0x17   : > { %835 = vmatprep.subr.mxu1 %v214_v14  ;;  %v199_v32 = vld [vmem:[%s917_s7 + $0xc8] sm:$0xff]  ;;  %v200_v34 = vld [vmem:[%s917_s7 + $0xd0] sm:$0xff]  ;;  %v201_v36 = vld [vmem:[%s917_s7 + $0xd8] sm:$0xff] }
  0x18   : > { %v186_v37 = vld [vmem:[%s917_s7 + $0x60] sm:$0xff]  ;;  %v187_v39 = vld [vmem:[%s917_s7 + $0x68] sm:$0xff]  ;;  %v188_v41 = vld [vmem:[%s917_s7 + $0x70] sm:$0xff] }
  0x19   : > { %766 = vmatpush3.msra.mxu0 %v214_v14  ;;  %v202_v38 = vld [vmem:[%s917_s7 + $0xe0] sm:$0xff]  ;;  %v203_v40 = vld [vmem:[%s917_s7 + $0xe8] sm:$0xff]  ;;  %v204_v42 = vld [vmem:[%s917_s7 + $0xf0] sm:$0xff] }
  0x1a   : > { %840 = vmatpush3.msra.mxu1 %v214_v14  ;;  %768 = vmatmul.mubr.msk.f32.vlgmr.msra.gmra.mrb[0].mxu0 %vm222_vm0, %v175_v15  ;;  %v189_v43 = vld [vmem:[%s917_s7 + $0x78] sm:$0xff] }
  0x1b   : > { %792 = vmatmul.mubr.msk.f32.vlgmr.msra.gmra.mrb[0].mxu1 %vm222_vm0, %v191_v16  ;;  %770 = vmatprep.mubr.msk.f32.mxu0 %vm222_vm0, %v176_v17  ;;  %v205_v44 = vld [vmem:[%s917_s7 + $0xf8] sm:$0xff] }
  0x1c   : > { %794 = vmatprep.mubr.msk.f32.mxu1 %vm222_vm0, %v192_v18 }
  0x1e   : > { %771 = vmatmul.mubr.msk.f32.gmra.mrb[2].mxu0 %vm222_vm0, %v177_v19 }
  0x1f   : > { %795 = vmatmul.mubr.msk.f32.gmra.mrb[2].mxu1 %vm222_vm0, %v193_v20  ;;  %773 = vmatprep.mubr.msk.f32.mxu0 %vm222_vm0, %v178_v21 }
  0x20   : > { %797 = vmatprep.mubr.msk.f32.mxu1 %vm222_vm0, %v194_v22 }
  0x22   : > { %774 = vmatmul.mubr.msk.f32.gmra.mrb[4].mxu0 %vm222_vm0, %v179_v23 }
  0x23   : > { %798 = vmatmul.mubr.msk.f32.gmra.mrb[4].mxu1 %vm222_vm0, %v195_v24  ;;  %776 = vmatprep.mubr.msk.f32.mxu0 %vm222_vm0, %v180_v25 }
  0x24   : > { %800 = vmatprep.mubr.msk.f32.mxu1 %vm222_vm0, %v196_v26 }
  0x26   : > { %777 = vmatmul.mubr.msk.f32.gmra.mrb[6].mxu0 %vm222_vm0, %v181_v27 }
  0x27   : > { %801 = vmatmul.mubr.msk.f32.gmra.mrb[6].mxu1 %vm222_vm0, %v197_v28  ;;  %779 = vmatprep.mubr.msk.f32.mxu0 %vm222_vm0, %v182_v29 }
  0x28   : > { %803 = vmatprep.mubr.msk.f32.mxu1 %vm222_vm0, %v198_v30 }
  0x2a   : > { %780 = vmatmul.mubr.msk.f32.gmra.mrb[8].mxu0 %vm222_vm0, %v183_v31 }
  0x2b   : > { %804 = vmatmul.mubr.msk.f32.gmra.mrb[8].mxu1 %vm222_vm0, %v199_v32  ;;  %782 = vmatprep.mubr.msk.f32.mxu0 %vm222_vm0, %v184_v33 }
  0x2c   : > { %806 = vmatprep.mubr.msk.f32.mxu1 %vm222_vm0, %v200_v34 }
  0x2e   : > { %783 = vmatmul.mubr.msk.f32.gmra.mrb[10].mxu0 %vm222_vm0, %v185_v35 }
  0x2f   : > { %807 = vmatmul.mubr.msk.f32.gmra.mrb[10].mxu1 %vm222_vm0, %v201_v36  ;;  %785 = vmatprep.mubr.msk.f32.mxu0 %vm222_vm0, %v186_v37 }
  0x30   : > { %809 = vmatprep.mubr.msk.f32.mxu1 %vm222_vm0, %v202_v38 }
  0x32   : > { %786 = vmatmul.mubr.msk.f32.gmra.mrb[12].mxu0 %vm222_vm0, %v187_v39 }
  0x33   : > { %810 = vmatmul.mubr.msk.f32.gmra.mrb[12].mxu1 %vm222_vm0, %v203_v40  ;;  %788 = vmatprep.mubr.msk.f32.mxu0 %vm222_vm0, %v188_v41 }
  0x34   : > { %812 = vmatprep.mubr.msk.f32.mxu1 %vm222_vm0, %v204_v42 }
  0x36   : > { %789 = vmatmul.mubr.msk.f32.gmra.mrb[14].mxu0 %vm222_vm0, %v189_v43 }
  0x37   : > { %813 = vmatmul.mubr.msk.f32.gmra.mrb[14].mxu1 %vm222_vm0, %v205_v44 }
  0xed   : > { %v769_v46 = vpop.f32.mrb[0].mxu0 }
  0xee   : > { %v793_v47 = vpop.f32.mrb[0].mxu1  ;;  %v391_v48 = vadd.f32 %v769_v46, %v989_v45  ;;  %v385_v50 = vpop.f32.mrb[1].mxu0 }
  0xef   : > { %v471_v49 = vadd.f32 %v793_v47, %v989_v45  ;;  %v465_v51 = vpop.f32.mrb[1].mxu1  ;;  %v386_v52 = vadd.f32 %v989_v45, %v385_v50 }
  0xf0   : > { %v466_v53 = vadd.f32 %v989_v45, %v465_v51  ;;  %v545_v54 = vmax.f32 %v391_v48, 0.0 }
  0xf1   : > { %v561_v55 = vmax.f32 %v471_v49, 0.0  ;;  %v544_v56 = vmax.f32 %v386_v52, 0.0  ;;  %v772_v58 = vpop.f32.mrb[2].mxu0 }
  0xf2   : > { %v560_v57 = vmax.f32 %v466_v53, 0.0  ;;  %v796_v59 = vpop.f32.mrb[2].mxu1  ;;  %577 = vst [vmem:[%s998_s15 + $0x8] sm:$0xff] %v545_v54  ;;  %v401_v60 = vadd.f32 %v772_v58, %v989_v45  ;;  %v395_v62 = vpop.f32.mrb[3].mxu0 }
  0xf3   : > { %593 = vst [vmem:[%s998_s15 + $0x88] sm:$0xff] %v561_v55  ;;  %v481_v61 = vadd.f32 %v796_v59, %v989_v45  ;;  %v475_v63 = vpop.f32.mrb[3].mxu1  ;;  %576 = vst [vmem:[%s998_s15] sm:$0xff] %v544_v56  ;;  %v396_v0 = vadd.f32 %v989_v45, %v395_v62 }
  0xf4   : > { %592 = vst [vmem:[%s998_s15 + $0x80] sm:$0xff] %v560_v57  ;;  %v476_v1 = vadd.f32 %v989_v45, %v475_v63  ;;  %v547_v2 = vmax.f32 %v401_v60, 0.0 }
  0xf5   : > { %v563_v3 = vmax.f32 %v481_v61, 0.0  ;;  %v546_v4 = vmax.f32 %v396_v0, 0.0  ;;  %v775_v6 = vpop.f32.mrb[4].mxu0 }
  0xf6   : > { %v562_v5 = vmax.f32 %v476_v1, 0.0  ;;  %v799_v7 = vpop.f32.mrb[4].mxu1  ;;  %579 = vst [vmem:[%s998_s15 + $0x18] sm:$0xff] %v547_v2  ;;  %v411_v8 = vadd.f32 %v775_v6, %v989_v45  ;;  %v405_v10 = vpop.f32.mrb[5].mxu0 }
  0xf7   : > { %595 = vst [vmem:[%s998_s15 + $0x98] sm:$0xff] %v563_v3  ;;  %v491_v9 = vadd.f32 %v799_v7, %v989_v45  ;;  %v485_v11 = vpop.f32.mrb[5].mxu1  ;;  %578 = vst [vmem:[%s998_s15 + $0x10] sm:$0xff] %v546_v4  ;;  %v406_v12 = vadd.f32 %v989_v45, %v405_v10 }
  0xf8   : > { %594 = vst [vmem:[%s998_s15 + $0x90] sm:$0xff] %v562_v5  ;;  %v486_v13 = vadd.f32 %v989_v45, %v485_v11  ;;  %v549_v14 = vmax.f32 %v411_v8, 0.0 }
  0xf9   : > { %v565_v15 = vmax.f32 %v491_v9, 0.0  ;;  %v548_v16 = vmax.f32 %v406_v12, 0.0  ;;  %v778_v18 = vpop.f32.mrb[6].mxu0 }
  0xfa   : > { %v564_v17 = vmax.f32 %v486_v13, 0.0  ;;  %v802_v19 = vpop.f32.mrb[6].mxu1  ;;  %581 = vst [vmem:[%s998_s15 + $0x28] sm:$0xff] %v549_v14  ;;  %v421_v20 = vadd.f32 %v778_v18, %v989_v45  ;;  %v415_v22 = vpop.f32.mrb[7].mxu0 }
  0xfb   : > { %597 = vst [vmem:[%s998_s15 + $0xa8] sm:$0xff] %v565_v15  ;;  %v501_v21 = vadd.f32 %v802_v19, %v989_v45  ;;  %v495_v23 = vpop.f32.mrb[7].mxu1  ;;  %580 = vst [vmem:[%s998_s15 + $0x20] sm:$0xff] %v548_v16  ;;  %v416_v24 = vadd.f32 %v989_v45, %v415_v22 }
  0xfc   : > { %596 = vst [vmem:[%s998_s15 + $0xa0] sm:$0xff] %v564_v17  ;;  %v496_v25 = vadd.f32 %v989_v45, %v495_v23  ;;  %v551_v26 = vmax.f32 %v421_v20, 0.0 }
  0xfd   : > { %v567_v27 = vmax.f32 %v501_v21, 0.0  ;;  %v550_v28 = vmax.f32 %v416_v24, 0.0  ;;  %v781_v30 = vpop.f32.mrb[8].mxu0 }
  0xfe   : > { %v566_v29 = vmax.f32 %v496_v25, 0.0  ;;  %v805_v31 = vpop.f32.mrb[8].mxu1  ;;  %583 = vst [vmem:[%s998_s15 + $0x38] sm:$0xff] %v551_v26  ;;  %v431_v32 = vadd.f32 %v781_v30, %v989_v45  ;;  %v425_v34 = vpop.f32.mrb[9].mxu0 }
  0xff   : > { %599 = vst [vmem:[%s998_s15 + $0xb8] sm:$0xff] %v567_v27  ;;  %v511_v33 = vadd.f32 %v805_v31, %v989_v45  ;;  %v505_v35 = vpop.f32.mrb[9].mxu1  ;;  %582 = vst [vmem:[%s998_s15 + $0x30] sm:$0xff] %v550_v28  ;;  %v426_v36 = vadd.f32 %v989_v45, %v425_v34 }
 0x100   : > { %598 = vst [vmem:[%s998_s15 + $0xb0] sm:$0xff] %v566_v29  ;;  %v506_v37 = vadd.f32 %v989_v45, %v505_v35  ;;  %v553_v38 = vmax.f32 %v431_v32, 0.0 }
 0x101   : > { %v569_v39 = vmax.f32 %v511_v33, 0.0  ;;  %v552_v40 = vmax.f32 %v426_v36, 0.0  ;;  %v784_v42 = vpop.f32.mrb[10].mxu0 }
 0x102   : > { %v568_v41 = vmax.f32 %v506_v37, 0.0  ;;  %v808_v43 = vpop.f32.mrb[10].mxu1  ;;  %585 = vst [vmem:[%s998_s15 + $0x48] sm:$0xff] %v553_v38  ;;  %v441_v44 = vadd.f32 %v784_v42, %v989_v45  ;;  %v435_v47 = vpop.f32.mrb[11].mxu0 }
 0x103   : > { %601 = vst [vmem:[%s998_s15 + $0xc8] sm:$0xff] %v569_v39  ;;  %v521_v46 = vadd.f32 %v808_v43, %v989_v45  ;;  %v515_v48 = vpop.f32.mrb[11].mxu1  ;;  %584 = vst [vmem:[%s998_s15 + $0x40] sm:$0xff] %v552_v40  ;;  %v436_v49 = vadd.f32 %v989_v45, %v435_v47 }
 0x104   : > { %600 = vst [vmem:[%s998_s15 + $0xc0] sm:$0xff] %v568_v41  ;;  %v516_v50 = vadd.f32 %v989_v45, %v515_v48  ;;  %v555_v51 = vmax.f32 %v441_v44, 0.0 }
 0x105   : > { %v571_v52 = vmax.f32 %v521_v46, 0.0  ;;  %v554_v53 = vmax.f32 %v436_v49, 0.0  ;;  %v787_v55 = vpop.f32.mrb[12].mxu0 }
 0x106   : > { %v570_v54 = vmax.f32 %v516_v50, 0.0  ;;  %v811_v56 = vpop.f32.mrb[12].mxu1  ;;  %587 = vst [vmem:[%s998_s15 + $0x58] sm:$0xff] %v555_v51  ;;  %v451_v57 = vadd.f32 %v787_v55, %v989_v45  ;;  %v445_v59 = vpop.f32.mrb[13].mxu0 }
 0x107   : > { %603 = vst [vmem:[%s998_s15 + $0xd8] sm:$0xff] %v571_v52  ;;  %v531_v58 = vadd.f32 %v811_v56, %v989_v45  ;;  %v525_v60 = vpop.f32.mrb[13].mxu1  ;;  %586 = vst [vmem:[%s998_s15 + $0x50] sm:$0xff] %v554_v53  ;;  %v446_v61 = vadd.f32 %v989_v45, %v445_v59 }
 0x108   : > { %602 = vst [vmem:[%s998_s15 + $0xd0] sm:$0xff] %v570_v54  ;;  %v526_v62 = vadd.f32 %v989_v45, %v525_v60  ;;  %v557_v63 = vmax.f32 %v451_v57, 0.0 }
 0x109   : > { %v573_v0 = vmax.f32 %v531_v58, 0.0  ;;  %v556_v1 = vmax.f32 %v446_v61, 0.0  ;;  %v790_v3 = vpop.f32.mrb[14].mxu0 }
 0x10a   : > { %v572_v2 = vmax.f32 %v526_v62, 0.0  ;;  %v814_v4 = vpop.f32.mrb[14].mxu1  ;;  %589 = vst [vmem:[%s998_s15 + $0x68] sm:$0xff] %v557_v63  ;;  %v461_v5 = vadd.f32 %v790_v3, %v989_v45  ;;  %v455_v7 = vpop.f32.mrb[15].mxu0 }
 0x10b   : > { %605 = vst [vmem:[%s998_s15 + $0xe8] sm:$0xff] %v573_v0  ;;  %v541_v6 = vadd.f32 %v814_v4, %v989_v45  ;;  %v535_v8 = vpop.f32.mrb[15].mxu1  ;;  %588 = vst [vmem:[%s998_s15 + $0x60] sm:$0xff] %v556_v1  ;;  %v456_v9 = vadd.f32 %v989_v45, %v455_v7 }
 0x10c   : > { %604 = vst [vmem:[%s998_s15 + $0xe0] sm:$0xff] %v572_v2  ;;  %v536_v10 = vadd.f32 %v989_v45, %v535_v8  ;;  %v559_v11 = vmax.f32 %v461_v5, 0.0 }
 0x10d   : > { %v575_v12 = vmax.f32 %v541_v6, 0.0  ;;  %v558_v13 = vmax.f32 %v456_v9, 0.0 }
 0x10e   : > { %v574_v14 = vmax.f32 %v536_v10, 0.0  ;;  %591 = vst [vmem:[%s998_s15 + $0x78] sm:$0xff] %v559_v11 }
 0x10f   : > { %607 = vst [vmem:[%s998_s15 + $0xf8] sm:$0xff] %v575_v12  ;;  %590 = vst [vmem:[%s998_s15 + $0x70] sm:$0xff] %v558_v13 }
 0x110   : > { %606 = vst [vmem:[%s998_s15 + $0xf0] sm:$0xff] %v574_v14 }
 0x111 PF: > { %s13_s12 = sadd.s32 1, %s855_s12  }
 0x112   : > { %p10_p4 = scmp.ge.s32.totalorder %s13_s12, 4  }
 0x114   :  { %12 = sbr.rel (!%p10_p4) target bundleno = 1 (0x1), region = 62 }

// kernel: prithvi_seg_forward.21
= control target key start
LH: loop header
LB: loop body
LE: loop exit
PB: predicated region body
PF: predicated region fallthrough
CT: control target
= control target key end

     0   :  { %s2141_s12 = smov 0   ;;  %s2713_s0 = inlined_call_operand.vmem [shape: f32[2048,72], index: 0, kind: input, shape index: {}]   ;;  %s2714_s1 = inlined_call_operand.vmem [shape: f32[72,128], index: 1, kind: input, shape index: {}]   ;;  %s2715_s2 = inlined_call_operand.vmem [shape: f32[1,128], index: 2, kind: input, shape index: {}]   ;;  %s2716_s3 = inlined_call_operand.vmem [shape: f32[2048,128], index: 3, kind: output, shape index: {}]  }
   0x1 LB: > { %s1592_s13 = sadd.s32 4294967295, %s2119_s12   ;;  %p1596_p0 = scmp.ge.s32.totalorder %s2119_s12, 1  ;;  %s2119_s12 = sphi %s2141_s12, %s13_s12  }
   0x2   : > { %p138_p1 = scmp.lt.s32.totalorder %s2119_s12, 3 }
   0x4   : > { %p139_p2 = pnand %p1596_p0, %p138_p1 }
   0x5   : > { %v302_v0 = vld [vmem:[%s2714_s1] sm:$0xff] (!%p139_p2)  ;;  %v303_v1 = vld [vmem:[%s2714_s1 + $0x8] sm:$0xff] (!%p139_p2)  ;;  %v304_v2 = vld [vmem:[%s2714_s1 + $0x10] sm:$0xff] (!%p139_p2)  ;;  %s1597_s20 = sshll.u32 (!%p139_p2), %s1592_s13, 7  ;;  %vm318_vm0 = vcmask (!%p139_p2), 588800  }
   0x6   : > { %142 = sbr.rel (%p139_p2) target bundleno = 367 (0x16f), region = 32  ;;  %v2079_v3 = vpack.c.bf16 (!%p139_p2), %v303_v1, %v302_v0  ;;  %v305_v4 = vld [vmem:[%s2714_s1 + $0x18] sm:$0xff] (!%p139_p2)  ;;  %p163_p3 = scmp.lt.s32.totalorder (!%p139_p2), %s1597_s20, 255  ;;  %v306_v6 = vld [vmem:[%s2714_s1 + $0x20] sm:$0xff] (!%p139_p2)  ;;  %v307_v7 = vld [vmem:[%s2714_s1 + $0x28] sm:$0xff] (!%p139_p2) }
   0x7   : > { %v2083_v5 = vpack.c.bf16 (!%p139_p2), %v305_v4, %v304_v2  ;;  %v2087_v8 = vpack.c.bf16 (!%p139_p2), %v307_v7, %v306_v6  ;;  %v308_v9 = vld [vmem:[%s2714_s1 + $0x30] sm:$0xff] (!%p139_p2)  ;;  %v309_v10 = vld [vmem:[%s2714_s1 + $0x38] sm:$0xff] (!%p139_p2)  ;;  %v310_v14 = vld [vmem:[%s2714_s1 + $0x40] sm:$0xff] (!%p139_p2) }
   0x8   : > { %2080 = vmatprep.subr.bf16.mxu0 (!%p139_p2), %v2079_v3  ;;  %2095 = vmatprep.subr.bf16.mxu1 (!%p139_p2), %v2079_v3  ;;  %v2091_v13 = vpack.c.bf16 (!%p139_p2), %v309_v10, %v308_v9 }
   0x9   : > { %2082 = vmatpush3.bf16.msra.mxu0 (!%p139_p2), %v2079_v3  ;;  %2100 = vmatpush3.bf16.msra.mxu1 (!%p139_p2), %v2079_v3 }
   0xa   : > { %2084 = vmatprep.subr.bf16.mxu0 (!%p139_p2), %v2083_v5  ;;  %2096 = vmatprep.subr.bf16.mxu1 (!%p139_p2), %v2083_v5 }
   0xd   : > { %s2718_s20 = smov (!%p163_p3, %s1597_s20), 255  ;;  %2086 = vmatpush3.bf16.msra.mxu0 %v2083_v5  ;;  %2101 = vmatpush3.bf16.msra.mxu1 %v2083_v5 }
   0xe   : > { %s1598_s27 = sshll.u32 %s2718_s20, 3  ;;  %2088 = vmatprep.subr.bf16.mxu0 %v2087_v8  ;;  %2097 = vmatprep.subr.bf16.mxu1 %v2087_v8 }
   0xf   : > { %s2181_s7 = scalar_lea.vmem %s2713_s0, %s1598_s27  ;;  %s2452_s15 = scalar_lea.vmem %s2716_s3, %s1598_s27 }
  0x10   : > { %v174_v11 = vld [vmem:[%s2181_s7] sm:$0xff]  ;;  %v175_v15 = vld [vmem:[%s2181_s7 + $0x8] sm:$0xff]  ;;  %v176_v17 = vld [vmem:[%s2181_s7 + $0x10] sm:$0xff] }
  0x11   : > { %v238_v12 = vld [vmem:[%s2181_s7 + $0x200] sm:$0xff]  ;;  %1887 = vmatprep.mubr.msk.f32.mxu0 %vm318_vm0, %v174_v11  ;;  %2090 = vmatpush3.bf16.msra.mxu0 %v2087_v8  ;;  %v239_v16 = vld [vmem:[%s2181_s7 + $0x208] sm:$0xff]  ;;  %v240_v18 = vld [vmem:[%s2181_s7 + $0x210] sm:$0xff] }
  0x12   : > { %1983 = vmatprep.mubr.msk.f32.mxu1 %vm318_vm0, %v238_v12  ;;  %2102 = vmatpush3.bf16.msra.mxu1 %v2087_v8  ;;  %v177_v19 = vld [vmem:[%s2181_s7 + $0x18] sm:$0xff]  ;;  %v178_v21 = vld [vmem:[%s2181_s7 + $0x20] sm:$0xff]  ;;  %v179_v23 = vld [vmem:[%s2181_s7 + $0x28] sm:$0xff] }
  0x13   : > { %2092 = vmatprep.subr.bf16.mxu0 %v2091_v13  ;;  %2098 = vmatprep.subr.bf16.mxu1 %v2091_v13  ;;  %v241_v20 = vld [vmem:[%s2181_s7 + $0x218] sm:$0xff]  ;;  %v242_v22 = vld [vmem:[%s2181_s7 + $0x220] sm:$0xff]  ;;  %v243_v24 = vld [vmem:[%s2181_s7 + $0x228] sm:$0xff] }
  0x14   : > { %v180_v25 = vld [vmem:[%s2181_s7 + $0x30] sm:$0xff]  ;;  %v181_v27 = vld [vmem:[%s2181_s7 + $0x38] sm:$0xff]  ;;  %v182_v29 = vld [vmem:[%s2181_s7 + $0x40] sm:$0xff] }
  0x15   : > { %2094 = vmatpush3.bf16.msra.mxu0 %v2091_v13  ;;  %v244_v26 = vld [vmem:[%s2181_s7 + $0x230] sm:$0xff]  ;;  %v245_v28 = vld [vmem:[%s2181_s7 + $0x238] sm:$0xff]  ;;  %v246_v30 = vld [vmem:[%s2181_s7 + $0x240] sm:$0xff] }
  0x16   : > { %2103 = vmatpush3.bf16.msra.mxu1 %v2091_v13  ;;  %1885 = vmatprep.subr.mxu0 %v310_v14  ;;  %v183_v31 = vld [vmem:[%s2181_s7 + $0x48] sm:$0xff]  ;;  %v184_v33 = vld [vmem:[%s2181_s7 + $0x50] sm:$0xff]  ;;  %v185_v35 = vld [vmem:[%s2181_s7 + $0x58] sm:$0xff] }
  0x17   : > { %2099 = vmatprep.subr.mxu1 %v310_v14  ;;  %v247_v32 = vld [vmem:[%s2181_s7 + $0x248] sm:$0xff]  ;;  %v248_v34 = vld [vmem:[%s2181_s7 + $0x250] sm:$0xff]  ;;  %v249_v36 = vld [vmem:[%s2181_s7 + $0x258] sm:$0xff] }
  0x18   : > { %v186_v37 = vld [vmem:[%s2181_s7 + $0x60] sm:$0xff]  ;;  %v187_v39 = vld [vmem:[%s2181_s7 + $0x68] sm:$0xff]  ;;  %v188_v41 = vld [vmem:[%s2181_s7 + $0x70] sm:$0xff] }
  0x19   : > { %1886 = vmatpush3.msra.mxu0 %v310_v14  ;;  %v250_v38 = vld [vmem:[%s2181_s7 + $0x260] sm:$0xff]  ;;  %v251_v40 = vld [vmem:[%s2181_s7 + $0x268] sm:$0xff]  ;;  %v252_v42 = vld [vmem:[%s2181_s7 + $0x270] sm:$0xff] }
  0x1a   : > { %2104 = vmatpush3.msra.mxu1 %v310_v14  ;;  %1888 = vmatmul.mubr.msk.f32.vlgmr.msra.gmra.mrb[0].mxu0 %vm318_vm0, %v175_v15  ;;  %v189_v43 = vld [vmem:[%s2181_s7 + $0x78] sm:$0xff]  ;;  %v190_v45 = vld [vmem:[%s2181_s7 + $0x80] sm:$0xff]  ;;  %v191_v47 = vld [vmem:[%s2181_s7 + $0x88] sm:$0xff] }
  0x1b   : > { %1984 = vmatmul.mubr.msk.f32.vlgmr.msra.gmra.mrb[0].mxu1 %vm318_vm0, %v239_v16  ;;  %1890 = vmatprep.mubr.msk.f32.mxu0 %vm318_vm0, %v176_v17  ;;  %v253_v44 = vld [vmem:[%s2181_s7 + $0x278] sm:$0xff]  ;;  %v254_v46 = vld [vmem:[%s2181_s7 + $0x280] sm:$0xff]  ;;  %v255_v48 = vld [vmem:[%s2181_s7 + $0x288] sm:$0xff] }
  0x1c   : > { %1986 = vmatprep.mubr.msk.f32.mxu1 %vm318_vm0, %v240_v18  ;;  %v192_v49 = vld [vmem:[%s2181_s7 + $0x90] sm:$0xff]  ;;  %v193_v51 = vld [vmem:[%s2181_s7 + $0x98] sm:$0xff]  ;;  %v194_v53 = vld [vmem:[%s2181_s7 + $0xa0] sm:$0xff] }
  0x1d   : > { %v256_v50 = vld [vmem:[%s2181_s7 + $0x290] sm:$0xff]  ;;  %v257_v52 = vld [vmem:[%s2181_s7 + $0x298] sm:$0xff]  ;;  %v258_v54 = vld [vmem:[%s2181_s7 + $0x2a0] sm:$0xff] }
  0x1e   : > { %1891 = vmatmul.mubr.msk.f32.gmra.mrb[2].mxu0 %vm318_vm0, %v177_v19  ;;  %v195_v55 = vld [vmem:[%s2181_s7 + $0xa8] sm:$0xff]  ;;  %v196_v57 = vld [vmem:[%s2181_s7 + $0xb0] sm:$0xff]  ;;  %v197_v59 = vld [vmem:[%s2181_s7 + $0xb8] sm:$0xff] }
  0x1f   : > { %1987 = vmatmul.mubr.msk.f32.gmra.mrb[2].mxu1 %vm318_vm0, %v241_v20  ;;  %1893 = vmatprep.mubr.msk.f32.mxu0 %vm318_vm0, %v178_v21  ;;  %v259_v56 = vld [vmem:[%s2181_s7 + $0x2a8] sm:$0xff]  ;;  %v260_v58 = vld [vmem:[%s2181_s7 + $0x2b0] sm:$0xff]  ;;  %v261_v60 = vld [vmem:[%s2181_s7 + $0x2b8] sm:$0xff] }
  0x20   : > { %1989 = vmatprep.mubr.msk.f32.mxu1 %vm318_vm0, %v242_v22  ;;  %v198_v61 = vld [vmem:[%s2181_s7 + $0xc0] sm:$0xff]  ;;  %v199_v63 = vld [vmem:[%s2181_s7 + $0xc8] sm:$0xff]  ;;  %v200_v1 = vld [vmem:[%s2181_s7 + $0xd0] sm:$0xff] }
  0x21   : > { %v262_v62 = vld [vmem:[%s2181_s7 + $0x2c0] sm:$0xff]  ;;  %v263_v0 = vld [vmem:[%s2181_s7 + $0x2c8] sm:$0xff]  ;;  %v264_v2 = vld [vmem:[%s2181_s7 + $0x2d0] sm:$0xff] }
  0x22   : > { %1894 = vmatmul.mubr.msk.f32.gmra.mrb[4].mxu0 %vm318_vm0, %v179_v23  ;;  %v201_v3 = vld [vmem:[%s2181_s7 + $0xd8] sm:$0xff]  ;;  %v202_v5 = vld [vmem:[%s2181_s7 + $0xe0] sm:$0xff]  ;;  %v203_v7 = vld [vmem:[%s2181_s7 + $0xe8] sm:$0xff] }
  0x23   : > { %1990 = vmatmul.mubr.msk.f32.gmra.mrb[4].mxu1 %vm318_vm0, %v243_v24  ;;  %1896 = vmatprep.mubr.msk.f32.mxu0 %vm318_vm0, %v180_v25  ;;  %v265_v4 = vld [vmem:[%s2181_s7 + $0x2d8] sm:$0xff]  ;;  %v266_v6 = vld [vmem:[%s2181_s7 + $0x2e0] sm:$0xff]  ;;  %v267_v8 = vld [vmem:[%s2181_s7 + $0x2e8] sm:$0xff] }
  0x24   : > { %1992 = vmatprep.mubr.msk.f32.mxu1 %vm318_vm0, %v244_v26  ;;  %v204_v9 = vld [vmem:[%s2181_s7 + $0xf0] sm:$0xff]  ;;  %v205_v11 = vld [vmem:[%s2181_s7 + $0xf8] sm:$0xff]  ;;  %v206_v13 = vld [vmem:[%s2181_s7 + $0x100] sm:$0xff] }
  0x25   : > { %v268_v10 = vld [vmem:[%s2181_s7 + $0x2f0] sm:$0xff]  ;;  %v269_v12 = vld [vmem:[%s2181_s7 + $0x2f8] sm:$0xff]  ;;  %v270_v14 = vld [vmem:[%s2181_s7 + $0x300] sm:$0xff] }
  0x26   : > { %1897 = vmatmul.mubr.msk.f32.gmra.mrb[6].mxu0 %vm318_vm0, %v181_v27  ;;  %v207_v15 = vld [vmem:[%s2181_s7 + $0x108] sm:$0xff]  ;;  %v208_v17 = vld [vmem:[%s2181_s7 + $0x110] sm:$0xff]  ;;  %v209_v19 = vld [vmem:[%s2181_s7 + $0x118] sm:$0xff] }
  0x27   : > { %1993 = vmatmul.mubr.msk.f32.gmra.mrb[6].mxu1 %vm318_vm0, %v245_v28  ;;  %1899 = vmatprep.mubr.msk.f32.mxu0 %vm318_vm0, %v182_v29  ;;  %v271_v16 = vld [vmem:[%s2181_s7 + $0x308] sm:$0xff]  ;;  %v272_v18 = vld [vmem:[%s2181_s7 + $0x310] sm:$0xff]  ;;  %v273_v20 = vld [vmem:[%s2181_s7 + $0x318] sm:$0xff] }
  0x28   : > { %1995 = vmatprep.mubr.msk.f32.mxu1 %vm318_vm0, %v246_v30  ;;  %v210_v21 = vld [vmem:[%s2181_s7 + $0x120] sm:$0xff]  ;;  %v211_v23 = vld [vmem:[%s2181_s7 + $0x128] sm:$0xff]  ;;  %v212_v25 = vld [vmem:[%s2181_s7 + $0x130] sm:$0xff] }
  0x29   : > { %v274_v22 = vld [vmem:[%s2181_s7 + $0x320] sm:$0xff]  ;;  %v275_v24 = vld [vmem:[%s2181_s7 + $0x328] sm:$0xff]  ;;  %v276_v26 = vld [vmem:[%s2181_s7 + $0x330] sm:$0xff] }
  0x2a   : > { %1900 = vmatmul.mubr.msk.f32.gmra.mrb[8].mxu0 %vm318_vm0, %v183_v31  ;;  %v213_v27 = vld [vmem:[%s2181_s7 + $0x138] sm:$0xff]  ;;  %v214_v29 = vld [vmem:[%s2181_s7 + $0x140] sm:$0xff]  ;;  %v215_v31 = vld [vmem:[%s2181_s7 + $0x148] sm:$0xff] }
  0x2b   : > { %1996 = vmatmul.mubr.msk.f32.gmra.mrb[8].mxu1 %vm318_vm0, %v247_v32  ;;  %1902 = vmatprep.mubr.msk.f32.mxu0 %vm318_vm0, %v184_v33  ;;  %v277_v28 = vld [vmem:[%s2181_s7 + $0x338] sm:$0xff]  ;;  %v278_v30 = vld [vmem:[%s2181_s7 + $0x340] sm:$0xff]  ;;  %v279_v32 = vld [vmem:[%s2181_s7 + $0x348] sm:$0xff] }
  0x2c   : > { %1998 = vmatprep.mubr.msk.f32.mxu1 %vm318_vm0, %v248_v34  ;;  %v216_v33 = vld [vmem:[%s2181_s7 + $0x150] sm:$0xff] }
  0x2d   : > { %v280_v34 = vld [vmem:[%s2181_s7 + $0x350] sm:$0xff] }
  0x2e   : > { %1903 = vmatmul.mubr.msk.f32.gmra.mrb[10].mxu0 %vm318_vm0, %v185_v35  ;;  %v217_v35 = vld [vmem:[%s2181_s7 + $0x158] sm:$0xff] }
  0x2f   : > { %1999 = vmatmul.mubr.msk.f32.gmra.mrb[10].mxu1 %vm318_vm0, %v249_v36  ;;  %1905 = vmatprep.mubr.msk.f32.mxu0 %vm318_vm0, %v186_v37  ;;  %v281_v36 = vld [vmem:[%s2181_s7 + $0x358] sm:$0xff]  ;;  %v218_v37 = vld [vmem:[%s2181_s7 + $0x160] sm:$0xff] }
  0x30   : > { %2001 = vmatprep.mubr.msk.f32.mxu1 %vm318_vm0, %v250_v38  ;;  %v282_v38 = vld [vmem:[%s2181_s7 + $0x360] sm:$0xff] }
  0x32   : > { %1906 = vmatmul.mubr.msk.f32.gmra.mrb[12].mxu0 %vm318_vm0, %v187_v39  ;;  %v219_v39 = vld [vmem:[%s2181_s7 + $0x168] sm:$0xff] }
  0x33   : > { %2002 = vmatmul.mubr.msk.f32.gmra.mrb[12].mxu1 %vm318_vm0, %v251_v40  ;;  %1908 = vmatprep.mubr.msk.f32.mxu0 %vm318_vm0, %v188_v41  ;;  %v283_v40 = vld [vmem:[%s2181_s7 + $0x368] sm:$0xff]  ;;  %v220_v41 = vld [vmem:[%s2181_s7 + $0x170] sm:$0xff] }
  0x34   : > { %2004 = vmatprep.mubr.msk.f32.mxu1 %vm318_vm0, %v252_v42  ;;  %v284_v42 = vld [vmem:[%s2181_s7 + $0x370] sm:$0xff] }
  0x36   : > { %1909 = vmatmul.mubr.msk.f32.gmra.mrb[14].mxu0 %vm318_vm0, %v189_v43  ;;  %v221_v43 = vld [vmem:[%s2181_s7 + $0x178] sm:$0xff] }
  0x37   : > { %2005 = vmatmul.mubr.msk.f32.gmra.mrb[14].mxu1 %vm318_vm0, %v253_v44  ;;  %1911 = vmatprep.mubr.msk.f32.mxu0 %vm318_vm0, %v190_v45  ;;  %v285_v44 = vld [vmem:[%s2181_s7 + $0x378] sm:$0xff]  ;;  %v222_v45 = vld [vmem:[%s2181_s7 + $0x180] sm:$0xff] }
  0x38   : > { %2007 = vmatprep.mubr.msk.f32.mxu1 %vm318_vm0, %v254_v46  ;;  %v286_v46 = vld [vmem:[%s2181_s7 + $0x380] sm:$0xff] }
  0x3a   : > { %1912 = vmatmul.mubr.msk.f32.gmra.mrb[16].mxu0 %vm318_vm0, %v191_v47  ;;  %v223_v47 = vld [vmem:[%s2181_s7 + $0x188] sm:$0xff] }
  0x3b   : > { %2008 = vmatmul.mubr.msk.f32.gmra.mrb[16].mxu1 %vm318_vm0, %v255_v48  ;;  %1914 = vmatprep.mubr.msk.f32.mxu0 %vm318_vm0, %v192_v49  ;;  %v287_v48 = vld [vmem:[%s2181_s7 + $0x388] sm:$0xff]  ;;  %v224_v49 = vld [vmem:[%s2181_s7 + $0x190] sm:$0xff] }
  0x3c   : > { %2010 = vmatprep.mubr.msk.f32.mxu1 %vm318_vm0, %v256_v50  ;;  %v288_v50 = vld [vmem:[%s2181_s7 + $0x390] sm:$0xff] }
  0x3e   : > { %1915 = vmatmul.mubr.msk.f32.gmra.mrb[18].mxu0 %vm318_vm0, %v193_v51  ;;  %v225_v51 = vld [vmem:[%s2181_s7 + $0x198] sm:$0xff] }
  0x3f   : > { %2011 = vmatmul.mubr.msk.f32.gmra.mrb[18].mxu1 %vm318_vm0, %v257_v52  ;;  %1917 = vmatprep.mubr.msk.f32.mxu0 %vm318_vm0, %v194_v53  ;;  %v289_v52 = vld [vmem:[%s2181_s7 + $0x398] sm:$0xff]  ;;  %v226_v53 = vld [vmem:[%s2181_s7 + $0x1a0] sm:$0xff] }
  0x40   : > { %2013 = vmatprep.mubr.msk.f32.mxu1 %vm318_vm0, %v258_v54  ;;  %v290_v54 = vld [vmem:[%s2181_s7 + $0x3a0] sm:$0xff] }
  0x42   : > { %1918 = vmatmul.mubr.msk.f32.gmra.mrb[20].mxu0 %vm318_vm0, %v195_v55  ;;  %v227_v55 = vld [vmem:[%s2181_s7 + $0x1a8] sm:$0xff] }
  0x43   : > { %2014 = vmatmul.mubr.msk.f32.gmra.mrb[20].mxu1 %vm318_vm0, %v259_v56  ;;  %1920 = vmatprep.mubr.msk.f32.mxu0 %vm318_vm0, %v196_v57  ;;  %v291_v56 = vld [vmem:[%s2181_s7 + $0x3a8] sm:$0xff]  ;;  %v228_v57 = vld [vmem:[%s2181_s7 + $0x1b0] sm:$0xff] }
  0x44   : > { %2016 = vmatprep.mubr.msk.f32.mxu1 %vm318_vm0, %v260_v58  ;;  %v292_v58 = vld [vmem:[%s2181_s7 + $0x3b0] sm:$0xff] }
  0x46   : > { %1921 = vmatmul.mubr.msk.f32.gmra.mrb[22].mxu0 %vm318_vm0, %v197_v59  ;;  %v229_v59 = vld [vmem:[%s2181_s7 + $0x1b8] sm:$0xff] }
  0x47   : > { %2017 = vmatmul.mubr.msk.f32.gmra.mrb[22].mxu1 %vm318_vm0, %v261_v60  ;;  %1923 = vmatprep.mubr.msk.f32.mxu0 %vm318_vm0, %v198_v61  ;;  %v293_v60 = vld [vmem:[%s2181_s7 + $0x3b8] sm:$0xff]  ;;  %v230_v61 = vld [vmem:[%s2181_s7 + $0x1c0] sm:$0xff] }
  0x48   : > { %2019 = vmatprep.mubr.msk.f32.mxu1 %vm318_vm0, %v262_v62  ;;  %v294_v62 = vld [vmem:[%s2181_s7 + $0x3c0] sm:$0xff] }
  0x4a   : > { %1924 = vmatmul.mubr.msk.f32.gmra.mrb[24].mxu0 %vm318_vm0, %v199_v63  ;;  %v231_v63 = vld [vmem:[%s2181_s7 + $0x1c8] sm:$0xff] }
  0x4b   : > { %2020 = vmatmul.mubr.msk.f32.gmra.mrb[24].mxu1 %vm318_vm0, %v263_v0  ;;  %1926 = vmatprep.mubr.msk.f32.mxu0 %vm318_vm0, %v200_v1  ;;  %v295_v0 = vld [vmem:[%s2181_s7 + $0x3c8] sm:$0xff]  ;;  %v232_v1 = vld [vmem:[%s2181_s7 + $0x1d0] sm:$0xff] }
  0x4c   : > { %2022 = vmatprep.mubr.msk.f32.mxu1 %vm318_vm0, %v264_v2  ;;  %v296_v2 = vld [vmem:[%s2181_s7 + $0x3d0] sm:$0xff] }
  0x4e   : > { %1927 = vmatmul.mubr.msk.f32.gmra.mrb[26].mxu0 %vm318_vm0, %v201_v3  ;;  %v233_v3 = vld [vmem:[%s2181_s7 + $0x1d8] sm:$0xff] }
  0x4f   : > { %2023 = vmatmul.mubr.msk.f32.gmra.mrb[26].mxu1 %vm318_vm0, %v265_v4  ;;  %1929 = vmatprep.mubr.msk.f32.mxu0 %vm318_vm0, %v202_v5  ;;  %v297_v4 = vld [vmem:[%s2181_s7 + $0x3d8] sm:$0xff]  ;;  %v234_v5 = vld [vmem:[%s2181_s7 + $0x1e0] sm:$0xff] }
  0x50   : > { %2025 = vmatprep.mubr.msk.f32.mxu1 %vm318_vm0, %v266_v6  ;;  %v298_v6 = vld [vmem:[%s2181_s7 + $0x3e0] sm:$0xff] }
  0x52   : > { %1930 = vmatmul.mubr.msk.f32.gmra.mrb[28].mxu0 %vm318_vm0, %v203_v7  ;;  %v235_v7 = vld [vmem:[%s2181_s7 + $0x1e8] sm:$0xff] }
  0x53   : > { %2026 = vmatmul.mubr.msk.f32.gmra.mrb[28].mxu1 %vm318_vm0, %v267_v8  ;;  %1932 = vmatprep.mubr.msk.f32.mxu0 %vm318_vm0, %v204_v9  ;;  %v299_v8 = vld [vmem:[%s2181_s7 + $0x3e8] sm:$0xff]  ;;  %v236_v9 = vld [vmem:[%s2181_s7 + $0x1f0] sm:$0xff] }
  0x54   : > { %2028 = vmatprep.mubr.msk.f32.mxu1 %vm318_vm0, %v268_v10  ;;  %v300_v10 = vld [vmem:[%s2181_s7 + $0x3f0] sm:$0xff] }
  0x56   : > { %1933 = vmatmul.mubr.msk.f32.gmra.mrb[30].mxu0 %vm318_vm0, %v205_v11  ;;  %v237_v11 = vld [vmem:[%s2181_s7 + $0x1f8] sm:$0xff] }
  0x57   : > { %2029 = vmatmul.mubr.msk.f32.gmra.mrb[30].mxu1 %vm318_vm0, %v269_v12  ;;  %1935 = vmatprep.mubr.msk.f32.mxu0 %vm318_vm0, %v206_v13  ;;  %v301_v12 = vld [vmem:[%s2181_s7 + $0x3f8] sm:$0xff]  ;;  %v2445_v13 = vld [vmem:[%s2715_s2] ss:$0 sm:$0xff] }
  0x58   : > { %2031 = vmatprep.mubr.msk.f32.mxu1 %vm318_vm0, %v270_v14 }
  0x5a   : > { %1936 = vmatmul.mubr.msk.f32.gmra.mrb[32].mxu0 %vm318_vm0, %v207_v15 }
  0x5b   : > { %2032 = vmatmul.mubr.msk.f32.gmra.mrb[32].mxu1 %vm318_vm0, %v271_v16  ;;  %1938 = vmatprep.mubr.msk.f32.mxu0 %vm318_vm0, %v208_v17 }
  0x5c   : > { %2034 = vmatprep.mubr.msk.f32.mxu1 %vm318_vm0, %v272_v18 }
  0x5e   : > { %1939 = vmatmul.mubr.msk.f32.gmra.mrb[34].mxu0 %vm318_vm0, %v209_v19 }
  0x5f   : > { %2035 = vmatmul.mubr.msk.f32.gmra.mrb[34].mxu1 %vm318_vm0, %v273_v20  ;;  %1941 = vmatprep.mubr.msk.f32.mxu0 %vm318_vm0, %v210_v21 }
  0x60   : > { %2037 = vmatprep.mubr.msk.f32.mxu1 %vm318_vm0, %v274_v22 }
  0x62   : > { %1942 = vmatmul.mubr.msk.f32.gmra.mrb[36].mxu0 %vm318_vm0, %v211_v23 }
  0x63   : > { %2038 = vmatmul.mubr.msk.f32.gmra.mrb[36].mxu1 %vm318_vm0, %v275_v24  ;;  %1944 = vmatprep.mubr.msk.f32.mxu0 %vm318_vm0, %v212_v25 }
  0x64   : > { %2040 = vmatprep.mubr.msk.f32.mxu1 %vm318_vm0, %v276_v26 }
  0x66   : > { %1945 = vmatmul.mubr.msk.f32.gmra.mrb[38].mxu0 %vm318_vm0, %v213_v27 }
  0x67   : > { %2041 = vmatmul.mubr.msk.f32.gmra.mrb[38].mxu1 %vm318_vm0, %v277_v28  ;;  %1947 = vmatprep.mubr.msk.f32.mxu0 %vm318_vm0, %v214_v29 }
  0x68   : > { %2043 = vmatprep.mubr.msk.f32.mxu1 %vm318_vm0, %v278_v30 }
  0x6a   : > { %1948 = vmatmul.mubr.msk.f32.gmra.mrb[40].mxu0 %vm318_vm0, %v215_v31 }
  0x6b   : > { %2044 = vmatmul.mubr.msk.f32.gmra.mrb[40].mxu1 %vm318_vm0, %v279_v32  ;;  %1950 = vmatprep.mubr.msk.f32.mxu0 %vm318_vm0, %v216_v33 }
  0x6c   : > { %2046 = vmatprep.mubr.msk.f32.mxu1 %vm318_vm0, %v280_v34 }
  0x6e   : > { %1951 = vmatmul.mubr.msk.f32.gmra.mrb[42].mxu0 %vm318_vm0, %v217_v35 }
  0x6f   : > { %2047 = vmatmul.mubr.msk.f32.gmra.mrb[42].mxu1 %vm318_vm0, %v281_v36  ;;  %1953 = vmatprep.mubr.msk.f32.mxu0 %vm318_vm0, %v218_v37 }
  0x70   : > { %2049 = vmatprep.mubr.msk.f32.mxu1 %vm318_vm0, %v282_v38 }
  0x72   : > { %1954 = vmatmul.mubr.msk.f32.gmra.mrb[44].mxu0 %vm318_vm0, %v219_v39 }
  0x73   : > { %2050 = vmatmul.mubr.msk.f32.gmra.mrb[44].mxu1 %vm318_vm0, %v283_v40  ;;  %1956 = vmatprep.mubr.msk.f32.mxu0 %vm318_vm0, %v220_v41 }
  0x74   : > { %2052 = vmatprep.mubr.msk.f32.mxu1 %vm318_vm0, %v284_v42 }
  0x76   : > { %1957 = vmatmul.mubr.msk.f32.gmra.mrb[46].mxu0 %vm318_vm0, %v221_v43 }
  0x77   : > { %2053 = vmatmul.mubr.msk.f32.gmra.mrb[46].mxu1 %vm318_vm0, %v285_v44  ;;  %1959 = vmatprep.mubr.msk.f32.mxu0 %vm318_vm0, %v222_v45 }
  0x78   : > { %2055 = vmatprep.mubr.msk.f32.mxu1 %vm318_vm0, %v286_v46 }
  0x7a   : > { %1960 = vmatmul.mubr.msk.f32.gmra.mrb[48].mxu0 %vm318_vm0, %v223_v47 }
  0x7b   : > { %2056 = vmatmul.mubr.msk.f32.gmra.mrb[48].mxu1 %vm318_vm0, %v287_v48  ;;  %1962 = vmatprep.mubr.msk.f32.mxu0 %vm318_vm0, %v224_v49 }
  0x7c   : > { %2058 = vmatprep.mubr.msk.f32.mxu1 %vm318_vm0, %v288_v50 }
  0x7e   : > { %1963 = vmatmul.mubr.msk.f32.gmra.mrb[50].mxu0 %vm318_vm0, %v225_v51 }
  0x7f   : > { %2059 = vmatmul.mubr.msk.f32.gmra.mrb[50].mxu1 %vm318_vm0, %v289_v52  ;;  %1965 = vmatprep.mubr.msk.f32.mxu0 %vm318_vm0, %v226_v53 }
  0x80   : > { %2061 = vmatprep.mubr.msk.f32.mxu1 %vm318_vm0, %v290_v54 }
  0x82   : > { %1966 = vmatmul.mubr.msk.f32.gmra.mrb[52].mxu0 %vm318_vm0, %v227_v55 }
  0x83   : > { %2062 = vmatmul.mubr.msk.f32.gmra.mrb[52].mxu1 %vm318_vm0, %v291_v56  ;;  %1968 = vmatprep.mubr.msk.f32.mxu0 %vm318_vm0, %v228_v57 }
  0x84   : > { %2064 = vmatprep.mubr.msk.f32.mxu1 %vm318_vm0, %v292_v58 }
  0x86   : > { %1969 = vmatmul.mubr.msk.f32.gmra.mrb[54].mxu0 %vm318_vm0, %v229_v59 }
  0x87   : > { %2065 = vmatmul.mubr.msk.f32.gmra.mrb[54].mxu1 %vm318_vm0, %v293_v60  ;;  %1971 = vmatprep.mubr.msk.f32.mxu0 %vm318_vm0, %v230_v61 }
  0x88   : > { %2067 = vmatprep.mubr.msk.f32.mxu1 %vm318_vm0, %v294_v62 }
  0x8a   : > { %1972 = vmatmul.mubr.msk.f32.gmra.mrb[56].mxu0 %vm318_vm0, %v231_v63 }
  0x8b   : > { %2068 = vmatmul.mubr.msk.f32.gmra.mrb[56].mxu1 %vm318_vm0, %v295_v0  ;;  %1974 = vmatprep.mubr.msk.f32.mxu0 %vm318_vm0, %v232_v1 }
  0x8c   : > { %2070 = vmatprep.mubr.msk.f32.mxu1 %vm318_vm0, %v296_v2 }
  0x8e   : > { %1975 = vmatmul.mubr.msk.f32.gmra.mrb[58].mxu0 %vm318_vm0, %v233_v3 }
  0x8f   : > { %2071 = vmatmul.mubr.msk.f32.gmra.mrb[58].mxu1 %vm318_vm0, %v297_v4  ;;  %1977 = vmatprep.mubr.msk.f32.mxu0 %vm318_vm0, %v234_v5 }
  0x90   : > { %2073 = vmatprep.mubr.msk.f32.mxu1 %vm318_vm0, %v298_v6 }
  0x92   : > { %1978 = vmatmul.mubr.msk.f32.gmra.mrb[60].mxu0 %vm318_vm0, %v235_v7 }
  0x93   : > { %2074 = vmatmul.mubr.msk.f32.gmra.mrb[60].mxu1 %vm318_vm0, %v299_v8  ;;  %1980 = vmatprep.mubr.msk.f32.mxu0 %vm318_vm0, %v236_v9 }
  0x94   : > { %2076 = vmatprep.mubr.msk.f32.mxu1 %vm318_vm0, %v300_v10 }
  0x96   : > { %1981 = vmatmul.mubr.msk.f32.gmra.mrb[62].mxu0 %vm318_vm0, %v237_v11 }
  0x97   : > { %2077 = vmatmul.mubr.msk.f32.gmra.mrb[62].mxu1 %vm318_vm0, %v301_v12 }
  0xed   : > { %v1889_v14 = vpop.f32.mrb[0].mxu0 }
  0xee   : > { %v1985_v15 = vpop.f32.mrb[0].mxu1  ;;  %v775_v16 = vadd.f32 %v1889_v14, %v2445_v13  ;;  %v769_v18 = vpop.f32.mrb[1].mxu0 }
  0xef   : > { %v1095_v17 = vadd.f32 %v1985_v15, %v2445_v13  ;;  %v1089_v19 = vpop.f32.mrb[1].mxu1  ;;  %v770_v20 = vadd.f32 %v2445_v13, %v769_v18 }
  0xf0   : > { %v1090_v21 = vadd.f32 %v2445_v13, %v1089_v19  ;;  %1409 = vst [vmem:[%s2452_s15 + $0x8] sm:$0xff] %v775_v16 }
  0xf1   : > { %1473 = vst [vmem:[%s2452_s15 + $0x208] sm:$0xff] %v1095_v17  ;;  %1408 = vst [vmem:[%s2452_s15] sm:$0xff] %v770_v20  ;;  %v1892_v22 = vpop.f32.mrb[2].mxu0 }
  0xf2   : > { %1472 = vst [vmem:[%s2452_s15 + $0x200] sm:$0xff] %v1090_v21  ;;  %v1988_v23 = vpop.f32.mrb[2].mxu1  ;;  %v785_v24 = vadd.f32 %v1892_v22, %v2445_v13  ;;  %v779_v26 = vpop.f32.mrb[3].mxu0 }
  0xf3   : > { %v1105_v25 = vadd.f32 %v1988_v23, %v2445_v13  ;;  %v1099_v27 = vpop.f32.mrb[3].mxu1  ;;  %v780_v28 = vadd.f32 %v2445_v13, %v779_v26 }
  0xf4   : > { %v1100_v29 = vadd.f32 %v2445_v13, %v1099_v27  ;;  %1411 = vst [vmem:[%s2452_s15 + $0x18] sm:$0xff] %v785_v24 }
  0xf5   : > { %1475 = vst [vmem:[%s2452_s15 + $0x218] sm:$0xff] %v1105_v25  ;;  %1410 = vst [vmem:[%s2452_s15 + $0x10] sm:$0xff] %v780_v28  ;;  %v1895_v30 = vpop.f32.mrb[4].mxu0 }
  0xf6   : > { %1474 = vst [vmem:[%s2452_s15 + $0x210] sm:$0xff] %v1100_v29  ;;  %v1991_v31 = vpop.f32.mrb[4].mxu1  ;;  %v795_v32 = vadd.f32 %v1895_v30, %v2445_v13  ;;  %v789_v34 = vpop.f32.mrb[5].mxu0 }
  0xf7   : > { %v1115_v33 = vadd.f32 %v1991_v31, %v2445_v13  ;;  %v1109_v35 = vpop.f32.mrb[5].mxu1  ;;  %v790_v36 = vadd.f32 %v2445_v13, %v789_v34 }
  0xf8   : > { %v1110_v37 = vadd.f32 %v2445_v13, %v1109_v35  ;;  %1413 = vst [vmem:[%s2452_s15 + $0x28] sm:$0xff] %v795_v32 }
  0xf9   : > { %1477 = vst [vmem:[%s2452_s15 + $0x228] sm:$0xff] %v1115_v33  ;;  %1412 = vst [vmem:[%s2452_s15 + $0x20] sm:$0xff] %v790_v36  ;;  %v1898_v38 = vpop.f32.mrb[6].mxu0 }
  0xfa   : > { %1476 = vst [vmem:[%s2452_s15 + $0x220] sm:$0xff] %v1110_v37  ;;  %v1994_v39 = vpop.f32.mrb[6].mxu1  ;;  %v805_v40 = vadd.f32 %v1898_v38, %v2445_v13  ;;  %v799_v42 = vpop.f32.mrb[7].mxu0 }
  0xfb   : > { %v1125_v41 = vadd.f32 %v1994_v39, %v2445_v13  ;;  %v1119_v43 = vpop.f32.mrb[7].mxu1  ;;  %v800_v44 = vadd.f32 %v2445_v13, %v799_v42 }
  0xfc   : > { %v1120_v45 = vadd.f32 %v2445_v13, %v1119_v43  ;;  %1415 = vst [vmem:[%s2452_s15 + $0x38] sm:$0xff] %v805_v40 }
  0xfd   : > { %1479 = vst [vmem:[%s2452_s15 + $0x238] sm:$0xff] %v1125_v41  ;;  %1414 = vst [vmem:[%s2452_s15 + $0x30] sm:$0xff] %v800_v44  ;;  %v1901_v46 = vpop.f32.mrb[8].mxu0 }
  0xfe   : > { %1478 = vst [vmem:[%s2452_s15 + $0x230] sm:$0xff] %v1120_v45  ;;  %v1997_v47 = vpop.f32.mrb[8].mxu1  ;;  %v815_v48 = vadd.f32 %v1901_v46, %v2445_v13  ;;  %v809_v50 = vpop.f32.mrb[9].mxu0 }
  0xff   : > { %v1135_v49 = vadd.f32 %v1997_v47, %v2445_v13  ;;  %v1129_v51 = vpop.f32.mrb[9].mxu1  ;;  %v810_v52 = vadd.f32 %v2445_v13, %v809_v50 }
 0x100   : > { %v1130_v53 = vadd.f32 %v2445_v13, %v1129_v51  ;;  %1417 = vst [vmem:[%s2452_s15 + $0x48] sm:$0xff] %v815_v48 }
 0x101   : > { %1481 = vst [vmem:[%s2452_s15 + $0x248] sm:$0xff] %v1135_v49  ;;  %1416 = vst [vmem:[%s2452_s15 + $0x40] sm:$0xff] %v810_v52  ;;  %v1904_v54 = vpop.f32.mrb[10].mxu0 }
 0x102   : > { %1480 = vst [vmem:[%s2452_s15 + $0x240] sm:$0xff] %v1130_v53  ;;  %v2000_v55 = vpop.f32.mrb[10].mxu1  ;;  %v825_v56 = vadd.f32 %v1904_v54, %v2445_v13  ;;  %v819_v58 = vpop.f32.mrb[11].mxu0 }
 0x103   : > { %v1145_v57 = vadd.f32 %v2000_v55, %v2445_v13  ;;  %v1139_v59 = vpop.f32.mrb[11].mxu1  ;;  %v820_v60 = vadd.f32 %v2445_v13, %v819_v58 }
 0x104   : > { %v1140_v61 = vadd.f32 %v2445_v13, %v1139_v59  ;;  %1419 = vst [vmem:[%s2452_s15 + $0x58] sm:$0xff] %v825_v56 }
 0x105   : > { %1483 = vst [vmem:[%s2452_s15 + $0x258] sm:$0xff] %v1145_v57  ;;  %1418 = vst [vmem:[%s2452_s15 + $0x50] sm:$0xff] %v820_v60  ;;  %v1907_v62 = vpop.f32.mrb[12].mxu0 }
 0x106   : > { %1482 = vst [vmem:[%s2452_s15 + $0x250] sm:$0xff] %v1140_v61  ;;  %v2003_v63 = vpop.f32.mrb[12].mxu1  ;;  %v835_v0 = vadd.f32 %v1907_v62, %v2445_v13  ;;  %v829_v2 = vpop.f32.mrb[13].mxu0 }
 0x107   : > { %v1155_v1 = vadd.f32 %v2003_v63, %v2445_v13  ;;  %v1149_v3 = vpop.f32.mrb[13].mxu1  ;;  %v830_v4 = vadd.f32 %v2445_v13, %v829_v2 }
 0x108   : > { %v1150_v5 = vadd.f32 %v2445_v13, %v1149_v3  ;;  %1421 = vst [vmem:[%s2452_s15 + $0x68] sm:$0xff] %v835_v0 }
 0x109   : > { %1485 = vst [vmem:[%s2452_s15 + $0x268] sm:$0xff] %v1155_v1  ;;  %1420 = vst [vmem:[%s2452_s15 + $0x60] sm:$0xff] %v830_v4  ;;  %v1910_v6 = vpop.f32.mrb[14].mxu0 }
 0x10a   : > { %1484 = vst [vmem:[%s2452_s15 + $0x260] sm:$0xff] %v1150_v5  ;;  %v2006_v7 = vpop.f32.mrb[14].mxu1  ;;  %v845_v8 = vadd.f32 %v1910_v6, %v2445_v13  ;;  %v839_v10 = vpop.f32.mrb[15].mxu0 }
 0x10b   : > { %v1165_v9 = vadd.f32 %v2006_v7, %v2445_v13  ;;  %v1159_v11 = vpop.f32.mrb[15].mxu1  ;;  %v840_v12 = vadd.f32 %v2445_v13, %v839_v10 }
 0x10c   : > { %v1160_v14 = vadd.f32 %v2445_v13, %v1159_v11  ;;  %1423 = vst [vmem:[%s2452_s15 + $0x78] sm:$0xff] %v845_v8 }
 0x10d   : > { %1487 = vst [vmem:[%s2452_s15 + $0x278] sm:$0xff] %v1165_v9  ;;  %1422 = vst [vmem:[%s2452_s15 + $0x70] sm:$0xff] %v840_v12  ;;  %v1913_v15 = vpop.f32.mrb[16].mxu0 }
 0x10e   : > { %1486 = vst [vmem:[%s2452_s15 + $0x270] sm:$0xff] %v1160_v14  ;;  %v2009_v16 = vpop.f32.mrb[16].mxu1  ;;  %v855_v17 = vadd.f32 %v1913_v15, %v2445_v13  ;;  %v849_v19 = vpop.f32.mrb[17].mxu0 }
 0x10f   : > { %v1175_v18 = vadd.f32 %v2009_v16, %v2445_v13  ;;  %v1169_v20 = vpop.f32.mrb[17].mxu1  ;;  %v850_v21 = vadd.f32 %v2445_v13, %v849_v19 }
 0x110   : > { %v1170_v22 = vadd.f32 %v2445_v13, %v1169_v20  ;;  %1425 = vst [vmem:[%s2452_s15 + $0x88] sm:$0xff] %v855_v17 }
 0x111   : > { %1489 = vst [vmem:[%s2452_s15 + $0x288] sm:$0xff] %v1175_v18  ;;  %1424 = vst [vmem:[%s2452_s15 + $0x80] sm:$0xff] %v850_v21  ;;  %v1916_v23 = vpop.f32.mrb[18].mxu0 }
 0x112   : > { %1488 = vst [vmem:[%s2452_s15 + $0x280] sm:$0xff] %v1170_v22  ;;  %v2012_v24 = vpop.f32.mrb[18].mxu1  ;;  %v865_v25 = vadd.f32 %v1916_v23, %v2445_v13  ;;  %v859_v27 = vpop.f32.mrb[19].mxu0 }
 0x113   : > { %v1185_v26 = vadd.f32 %v2012_v24, %v2445_v13  ;;  %v1179_v28 = vpop.f32.mrb[19].mxu1  ;;  %v860_v29 = vadd.f32 %v2445_v13, %v859_v27 }
 0x114   : > { %v1180_v30 = vadd.f32 %v2445_v13, %v1179_v28  ;;  %1427 = vst [vmem:[%s2452_s15 + $0x98] sm:$0xff] %v865_v25 }
 0x115   : > { %1491 = vst [vmem:[%s2452_s15 + $0x298] sm:$0xff] %v1185_v26  ;;  %1426 = vst [vmem:[%s2452_s15 + $0x90] sm:$0xff] %v860_v29  ;;  %v1919_v31 = vpop.f32.mrb[20].mxu0 }
 0x116   : > { %1490 = vst [vmem:[%s2452_s15 + $0x290] sm:$0xff] %v1180_v30  ;;  %v2015_v32 = vpop.f32.mrb[20].mxu1  ;;  %v875_v33 = vadd.f32 %v1919_v31, %v2445_v13  ;;  %v869_v35 = vpop.f32.mrb[21].mxu0 }
 0x117   : > { %v1195_v34 = vadd.f32 %v2015_v32, %v2445_v13  ;;  %v1189_v36 = vpop.f32.mrb[21].mxu1  ;;  %v870_v37 = vadd.f32 %v2445_v13, %v869_v35 }
 0x118   : > { %v1190_v38 = vadd.f32 %v2445_v13, %v1189_v36  ;;  %1429 = vst [vmem:[%s2452_s15 + $0xa8] sm:$0xff] %v875_v33 }
 0x119   : > { %1493 = vst [vmem:[%s2452_s15 + $0x2a8] sm:$0xff] %v1195_v34  ;;  %1428 = vst [vmem:[%s2452_s15 + $0xa0] sm:$0xff] %v870_v37  ;;  %v1922_v39 = vpop.f32.mrb[22].mxu0 }
 0x11a   : > { %1492 = vst [vmem:[%s2452_s15 + $0x2a0] sm:$0xff] %v1190_v38  ;;  %v2018_v40 = vpop.f32.mrb[22].mxu1  ;;  %v885_v41 = vadd.f32 %v1922_v39, %v2445_v13  ;;  %v879_v43 = vpop.f32.mrb[23].mxu0 }
 0x11b   : > { %v1205_v42 = vadd.f32 %v2018_v40, %v2445_v13  ;;  %v1199_v44 = vpop.f32.mrb[23].mxu1  ;;  %v880_v45 = vadd.f32 %v2445_v13, %v879_v43 }
 0x11c   : > { %v1200_v46 = vadd.f32 %v2445_v13, %v1199_v44  ;;  %1431 = vst [vmem:[%s2452_s15 + $0xb8] sm:$0xff] %v885_v41 }
 0x11d   : > { %1495 = vst [vmem:[%s2452_s15 + $0x2b8] sm:$0xff] %v1205_v42  ;;  %1430 = vst [vmem:[%s2452_s15 + $0xb0] sm:$0xff] %v880_v45  ;;  %v1925_v47 = vpop.f32.mrb[24].mxu0 }
 0x11e   : > { %1494 = vst [vmem:[%s2452_s15 + $0x2b0] sm:$0xff] %v1200_v46  ;;  %v2021_v48 = vpop.f32.mrb[24].mxu1  ;;  %v895_v49 = vadd.f32 %v1925_v47, %v2445_v13  ;;  %v889_v51 = vpop.f32.mrb[25].mxu0 }
 0x11f   : > { %v1215_v50 = vadd.f32 %v2021_v48, %v2445_v13  ;;  %v1209_v52 = vpop.f32.mrb[25].mxu1  ;;  %v890_v53 = vadd.f32 %v2445_v13, %v889_v51 }
 0x120   : > { %v1210_v54 = vadd.f32 %v2445_v13, %v1209_v52  ;;  %1433 = vst [vmem:[%s2452_s15 + $0xc8] sm:$0xff] %v895_v49 }
 0x121   : > { %1497 = vst [vmem:[%s2452_s15 + $0x2c8] sm:$0xff] %v1215_v50  ;;  %1432 = vst [vmem:[%s2452_s15 + $0xc0] sm:$0xff] %v890_v53  ;;  %v1928_v55 = vpop.f32.mrb[26].mxu0 }
 0x122   : > { %1496 = vst [vmem:[%s2452_s15 + $0x2c0] sm:$0xff] %v1210_v54  ;;  %v2024_v56 = vpop.f32.mrb[26].mxu1  ;;  %v905_v57 = vadd.f32 %v1928_v55, %v2445_v13  ;;  %v899_v59 = vpop.f32.mrb[27].mxu0 }
 0x123   : > { %v1225_v58 = vadd.f32 %v2024_v56, %v2445_v13  ;;  %v1219_v60 = vpop.f32.mrb[27].mxu1  ;;  %v900_v61 = vadd.f32 %v2445_v13, %v899_v59 }
 0x124   : > { %v1220_v62 = vadd.f32 %v2445_v13, %v1219_v60  ;;  %1435 = vst [vmem:[%s2452_s15 + $0xd8] sm:$0xff] %v905_v57 }
 0x125   : > { %1499 = vst [vmem:[%s2452_s15 + $0x2d8] sm:$0xff] %v1225_v58  ;;  %1434 = vst [vmem:[%s2452_s15 + $0xd0] sm:$0xff] %v900_v61  ;;  %v1931_v63 = vpop.f32.mrb[28].mxu0 }
 0x126   : > { %1498 = vst [vmem:[%s2452_s15 + $0x2d0] sm:$0xff] %v1220_v62  ;;  %v2027_v0 = vpop.f32.mrb[28].mxu1  ;;  %v915_v1 = vadd.f32 %v1931_v63, %v2445_v13  ;;  %v909_v3 = vpop.f32.mrb[29].mxu0 }
 0x127   : > { %v1235_v2 = vadd.f32 %v2027_v0, %v2445_v13  ;;  %v1229_v4 = vpop.f32.mrb[29].mxu1  ;;  %v910_v5 = vadd.f32 %v2445_v13, %v909_v3 }
 0x128   : > { %v1230_v6 = vadd.f32 %v2445_v13, %v1229_v4  ;;  %1437 = vst [vmem:[%s2452_s15 + $0xe8] sm:$0xff] %v915_v1 }
 0x129   : > { %1501 = vst [vmem:[%s2452_s15 + $0x2e8] sm:$0xff] %v1235_v2  ;;  %1436 = vst [vmem:[%s2452_s15 + $0xe0] sm:$0xff] %v910_v5  ;;  %v1934_v7 = vpop.f32.mrb[30].mxu0 }
 0x12a   : > { %1500 = vst [vmem:[%s2452_s15 + $0x2e0] sm:$0xff] %v1230_v6  ;;  %v2030_v8 = vpop.f32.mrb[30].mxu1  ;;  %v925_v9 = vadd.f32 %v1934_v7, %v2445_v13  ;;  %v919_v11 = vpop.f32.mrb[31].mxu0 }
 0x12b   : > { %v1245_v10 = vadd.f32 %v2030_v8, %v2445_v13  ;;  %v1239_v12 = vpop.f32.mrb[31].mxu1  ;;  %v920_v14 = vadd.f32 %v2445_v13, %v919_v11 }
 0x12c   : > { %v1240_v15 = vadd.f32 %v2445_v13, %v1239_v12  ;;  %1439 = vst [vmem:[%s2452_s15 + $0xf8] sm:$0xff] %v925_v9 }
 0x12d   : > { %1503 = vst [vmem:[%s2452_s15 + $0x2f8] sm:$0xff] %v1245_v10  ;;  %1438 = vst [vmem:[%s2452_s15 + $0xf0] sm:$0xff] %v920_v14  ;;  %v1937_v16 = vpop.f32.mrb[32].mxu0 }
 0x12e   : > { %1502 = vst [vmem:[%s2452_s15 + $0x2f0] sm:$0xff] %v1240_v15  ;;  %v2033_v17 = vpop.f32.mrb[32].mxu1  ;;  %v935_v18 = vadd.f32 %v1937_v16, %v2445_v13  ;;  %v929_v20 = vpop.f32.mrb[33].mxu0 }
 0x12f   : > { %v1255_v19 = vadd.f32 %v2033_v17, %v2445_v13  ;;  %v1249_v21 = vpop.f32.mrb[33].mxu1  ;;  %v930_v22 = vadd.f32 %v2445_v13, %v929_v20 }
 0x130   : > { %v1250_v23 = vadd.f32 %v2445_v13, %v1249_v21  ;;  %1441 = vst [vmem:[%s2452_s15 + $0x108] sm:$0xff] %v935_v18 }
 0x131   : > { %1505 = vst [vmem:[%s2452_s15 + $0x308] sm:$0xff] %v1255_v19  ;;  %1440 = vst [vmem:[%s2452_s15 + $0x100] sm:$0xff] %v930_v22  ;;  %v1940_v24 = vpop.f32.mrb[34].mxu0 }
 0x132   : > { %1504 = vst [vmem:[%s2452_s15 + $0x300] sm:$0xff] %v1250_v23  ;;  %v2036_v25 = vpop.f32.mrb[34].mxu1  ;;  %v945_v26 = vadd.f32 %v1940_v24, %v2445_v13  ;;  %v939_v28 = vpop.f32.mrb[35].mxu0 }
 0x133   : > { %v1265_v27 = vadd.f32 %v2036_v25, %v2445_v13  ;;  %v1259_v29 = vpop.f32.mrb[35].mxu1  ;;  %v940_v30 = vadd.f32 %v2445_v13, %v939_v28 }
 0x134   : > { %v1260_v31 = vadd.f32 %v2445_v13, %v1259_v29  ;;  %1443 = vst [vmem:[%s2452_s15 + $0x118] sm:$0xff] %v945_v26 }
 0x135   : > { %1507 = vst [vmem:[%s2452_s15 + $0x318] sm:$0xff] %v1265_v27  ;;  %1442 = vst [vmem:[%s2452_s15 + $0x110] sm:$0xff] %v940_v30  ;;  %v1943_v32 = vpop.f32.mrb[36].mxu0 }
 0x136   : > { %1506 = vst [vmem:[%s2452_s15 + $0x310] sm:$0xff] %v1260_v31  ;;  %v2039_v33 = vpop.f32.mrb[36].mxu1  ;;  %v955_v34 = vadd.f32 %v1943_v32, %v2445_v13  ;;  %v949_v36 = vpop.f32.mrb[37].mxu0 }
 0x137   : > { %v1275_v35 = vadd.f32 %v2039_v33, %v2445_v13  ;;  %v1269_v37 = vpop.f32.mrb[37].mxu1  ;;  %v950_v38 = vadd.f32 %v2445_v13, %v949_v36 }
 0x138   : > { %v1270_v39 = vadd.f32 %v2445_v13, %v1269_v37  ;;  %1445 = vst [vmem:[%s2452_s15 + $0x128] sm:$0xff] %v955_v34 }
 0x139   : > { %1509 = vst [vmem:[%s2452_s15 + $0x328] sm:$0xff] %v1275_v35  ;;  %1444 = vst [vmem:[%s2452_s15 + $0x120] sm:$0xff] %v950_v38  ;;  %v1946_v40 = vpop.f32.mrb[38].mxu0 }
 0x13a   : > { %1508 = vst [vmem:[%s2452_s15 + $0x320] sm:$0xff] %v1270_v39  ;;  %v2042_v41 = vpop.f32.mrb[38].mxu1  ;;  %v965_v42 = vadd.f32 %v1946_v40, %v2445_v13  ;;  %v959_v44 = vpop.f32.mrb[39].mxu0 }
 0x13b   : > { %v1285_v43 = vadd.f32 %v2042_v41, %v2445_v13  ;;  %v1279_v45 = vpop.f32.mrb[39].mxu1  ;;  %v960_v46 = vadd.f32 %v2445_v13, %v959_v44 }
 0x13c   : > { %v1280_v47 = vadd.f32 %v2445_v13, %v1279_v45  ;;  %1447 = vst [vmem:[%s2452_s15 + $0x138] sm:$0xff] %v965_v42 }
 0x13d   : > { %1511 = vst [vmem:[%s2452_s15 + $0x338] sm:$0xff] %v1285_v43  ;;  %1446 = vst [vmem:[%s2452_s15 + $0x130] sm:$0xff] %v960_v46  ;;  %v1949_v48 = vpop.f32.mrb[40].mxu0 }
 0x13e   : > { %1510 = vst [vmem:[%s2452_s15 + $0x330] sm:$0xff] %v1280_v47  ;;  %v2045_v49 = vpop.f32.mrb[40].mxu1  ;;  %v975_v50 = vadd.f32 %v1949_v48, %v2445_v13  ;;  %v969_v52 = vpop.f32.mrb[41].mxu0 }
 0x13f   : > { %v1295_v51 = vadd.f32 %v2045_v49, %v2445_v13  ;;  %v1289_v53 = vpop.f32.mrb[41].mxu1  ;;  %v970_v54 = vadd.f32 %v2445_v13, %v969_v52 }
 0x140   : > { %v1290_v55 = vadd.f32 %v2445_v13, %v1289_v53  ;;  %1449 = vst [vmem:[%s2452_s15 + $0x148] sm:$0xff] %v975_v50 }
 0x141   : > { %1513 = vst [vmem:[%s2452_s15 + $0x348] sm:$0xff] %v1295_v51  ;;  %1448 = vst [vmem:[%s2452_s15 + $0x140] sm:$0xff] %v970_v54  ;;  %v1952_v56 = vpop.f32.mrb[42].mxu0 }
 0x142   : > { %1512 = vst [vmem:[%s2452_s15 + $0x340] sm:$0xff] %v1290_v55  ;;  %v2048_v57 = vpop.f32.mrb[42].mxu1  ;;  %v985_v58 = vadd.f32 %v1952_v56, %v2445_v13  ;;  %v979_v60 = vpop.f32.mrb[43].mxu0 }
 0x143   : > { %v1305_v59 = vadd.f32 %v2048_v57, %v2445_v13  ;;  %v1299_v61 = vpop.f32.mrb[43].mxu1  ;;  %v980_v62 = vadd.f32 %v2445_v13, %v979_v60 }
 0x144   : > { %v1300_v63 = vadd.f32 %v2445_v13, %v1299_v61  ;;  %1451 = vst [vmem:[%s2452_s15 + $0x158] sm:$0xff] %v985_v58 }
 0x145   : > { %1515 = vst [vmem:[%s2452_s15 + $0x358] sm:$0xff] %v1305_v59  ;;  %1450 = vst [vmem:[%s2452_s15 + $0x150] sm:$0xff] %v980_v62  ;;  %v1955_v0 = vpop.f32.mrb[44].mxu0 }
 0x146   : > { %1514 = vst [vmem:[%s2452_s15 + $0x350] sm:$0xff] %v1300_v63  ;;  %v2051_v1 = vpop.f32.mrb[44].mxu1  ;;  %v995_v2 = vadd.f32 %v1955_v0, %v2445_v13  ;;  %v989_v4 = vpop.f32.mrb[45].mxu0 }
 0x147   : > { %v1315_v3 = vadd.f32 %v2051_v1, %v2445_v13  ;;  %v1309_v5 = vpop.f32.mrb[45].mxu1  ;;  %v990_v6 = vadd.f32 %v2445_v13, %v989_v4 }
 0x148   : > { %v1310_v7 = vadd.f32 %v2445_v13, %v1309_v5  ;;  %1453 = vst [vmem:[%s2452_s15 + $0x168] sm:$0xff] %v995_v2 }
 0x149   : > { %1517 = vst [vmem:[%s2452_s15 + $0x368] sm:$0xff] %v1315_v3  ;;  %1452 = vst [vmem:[%s2452_s15 + $0x160] sm:$0xff] %v990_v6  ;;  %v1958_v8 = vpop.f32.mrb[46].mxu0 }
 0x14a   : > { %1516 = vst [vmem:[%s2452_s15 + $0x360] sm:$0xff] %v1310_v7  ;;  %v2054_v9 = vpop.f32.mrb[46].mxu1  ;;  %v1005_v10 = vadd.f32 %v1958_v8, %v2445_v13  ;;  %v999_v12 = vpop.f32.mrb[47].mxu0 }
 0x14b   : > { %v1325_v11 = vadd.f32 %v2054_v9, %v2445_v13  ;;  %v1319_v14 = vpop.f32.mrb[47].mxu1  ;;  %v1000_v15 = vadd.f32 %v2445_v13, %v999_v12 }
 0x14c   : > { %v1320_v16 = vadd.f32 %v2445_v13, %v1319_v14  ;;  %1455 = vst [vmem:[%s2452_s15 + $0x178] sm:$0xff] %v1005_v10 }
 0x14d   : > { %1519 = vst [vmem:[%s2452_s15 + $0x378] sm:$0xff] %v1325_v11  ;;  %1454 = vst [vmem:[%s2452_s15 + $0x170] sm:$0xff] %v1000_v15  ;;  %v1961_v17 = vpop.f32.mrb[48].mxu0 }
 0x14e   : > { %1518 = vst [vmem:[%s2452_s15 + $0x370] sm:$0xff] %v1320_v16  ;;  %v2057_v18 = vpop.f32.mrb[48].mxu1  ;;  %v1015_v19 = vadd.f32 %v1961_v17, %v2445_v13  ;;  %v1009_v21 = vpop.f32.mrb[49].mxu0 }
 0x14f   : > { %v1335_v20 = vadd.f32 %v2057_v18, %v2445_v13  ;;  %v1329_v22 = vpop.f32.mrb[49].mxu1  ;;  %v1010_v23 = vadd.f32 %v2445_v13, %v1009_v21 }
 0x150   : > { %v1330_v24 = vadd.f32 %v2445_v13, %v1329_v22  ;;  %1457 = vst [vmem:[%s2452_s15 + $0x188] sm:$0xff] %v1015_v19 }
 0x151   : > { %1521 = vst [vmem:[%s2452_s15 + $0x388] sm:$0xff] %v1335_v20  ;;  %1456 = vst [vmem:[%s2452_s15 + $0x180] sm:$0xff] %v1010_v23  ;;  %v1964_v25 = vpop.f32.mrb[50].mxu0 }
 0x152   : > { %1520 = vst [vmem:[%s2452_s15 + $0x380] sm:$0xff] %v1330_v24  ;;  %v2060_v26 = vpop.f32.mrb[50].mxu1  ;;  %v1025_v27 = vadd.f32 %v1964_v25, %v2445_v13  ;;  %v1019_v29 = vpop.f32.mrb[51].mxu0 }
 0x153   : > { %v1345_v28 = vadd.f32 %v2060_v26, %v2445_v13  ;;  %v1339_v30 = vpop.f32.mrb[51].mxu1  ;;  %v1020_v31 = vadd.f32 %v2445_v13, %v1019_v29 }
 0x154   : > { %v1340_v32 = vadd.f32 %v2445_v13, %v1339_v30  ;;  %1459 = vst [vmem:[%s2452_s15 + $0x198] sm:$0xff] %v1025_v27 }
 0x155   : > { %1523 = vst [vmem:[%s2452_s15 + $0x398] sm:$0xff] %v1345_v28  ;;  %1458 = vst [vmem:[%s2452_s15 + $0x190] sm:$0xff] %v1020_v31  ;;  %v1967_v33 = vpop.f32.mrb[52].mxu0 }
 0x156   : > { %1522 = vst [vmem:[%s2452_s15 + $0x390] sm:$0xff] %v1340_v32  ;;  %v2063_v34 = vpop.f32.mrb[52].mxu1  ;;  %v1035_v35 = vadd.f32 %v1967_v33, %v2445_v13  ;;  %v1029_v37 = vpop.f32.mrb[53].mxu0 }
 0x157   : > { %v1355_v36 = vadd.f32 %v2063_v34, %v2445_v13  ;;  %v1349_v38 = vpop.f32.mrb[53].mxu1  ;;  %v1030_v39 = vadd.f32 %v2445_v13, %v1029_v37 }
 0x158   : > { %v1350_v40 = vadd.f32 %v2445_v13, %v1349_v38  ;;  %1461 = vst [vmem:[%s2452_s15 + $0x1a8] sm:$0xff] %v1035_v35 }
 0x159   : > { %1525 = vst [vmem:[%s2452_s15 + $0x3a8] sm:$0xff] %v1355_v36  ;;  %1460 = vst [vmem:[%s2452_s15 + $0x1a0] sm:$0xff] %v1030_v39  ;;  %v1970_v41 = vpop.f32.mrb[54].mxu0 }
 0x15a   : > { %1524 = vst [vmem:[%s2452_s15 + $0x3a0] sm:$0xff] %v1350_v40  ;;  %v2066_v42 = vpop.f32.mrb[54].mxu1  ;;  %v1045_v43 = vadd.f32 %v1970_v41, %v2445_v13  ;;  %v1039_v45 = vpop.f32.mrb[55].mxu0 }
 0x15b   : > { %v1365_v44 = vadd.f32 %v2066_v42, %v2445_v13  ;;  %v1359_v46 = vpop.f32.mrb[55].mxu1  ;;  %v1040_v47 = vadd.f32 %v2445_v13, %v1039_v45 }
 0x15c   : > { %v1360_v48 = vadd.f32 %v2445_v13, %v1359_v46  ;;  %1463 = vst [vmem:[%s2452_s15 + $0x1b8] sm:$0xff] %v1045_v43 }
 0x15d   : > { %1527 = vst [vmem:[%s2452_s15 + $0x3b8] sm:$0xff] %v1365_v44  ;;  %1462 = vst [vmem:[%s2452_s15 + $0x1b0] sm:$0xff] %v1040_v47  ;;  %v1973_v49 = vpop.f32.mrb[56].mxu0 }
 0x15e   : > { %1526 = vst [vmem:[%s2452_s15 + $0x3b0] sm:$0xff] %v1360_v48  ;;  %v2069_v50 = vpop.f32.mrb[56].mxu1  ;;  %v1055_v51 = vadd.f32 %v1973_v49, %v2445_v13  ;;  %v1049_v53 = vpop.f32.mrb[57].mxu0 }
 0x15f   : > { %v1375_v52 = vadd.f32 %v2069_v50, %v2445_v13  ;;  %v1369_v54 = vpop.f32.mrb[57].mxu1  ;;  %v1050_v55 = vadd.f32 %v2445_v13, %v1049_v53 }
 0x160   : > { %v1370_v56 = vadd.f32 %v2445_v13, %v1369_v54  ;;  %1465 = vst [vmem:[%s2452_s15 + $0x1c8] sm:$0xff] %v1055_v51 }
 0x161   : > { %1529 = vst [vmem:[%s2452_s15 + $0x3c8] sm:$0xff] %v1375_v52  ;;  %1464 = vst [vmem:[%s2452_s15 + $0x1c0] sm:$0xff] %v1050_v55  ;;  %v1976_v57 = vpop.f32.mrb[58].mxu0 }
 0x162   : > { %1528 = vst [vmem:[%s2452_s15 + $0x3c0] sm:$0xff] %v1370_v56  ;;  %v2072_v58 = vpop.f32.mrb[58].mxu1  ;;  %v1065_v59 = vadd.f32 %v1976_v57, %v2445_v13  ;;  %v1059_v61 = vpop.f32.mrb[59].mxu0 }
 0x163   : > { %v1385_v60 = vadd.f32 %v2072_v58, %v2445_v13  ;;  %v1379_v62 = vpop.f32.mrb[59].mxu1  ;;  %v1060_v63 = vadd.f32 %v2445_v13, %v1059_v61 }
 0x164   : > { %v1380_v0 = vadd.f32 %v2445_v13, %v1379_v62  ;;  %1467 = vst [vmem:[%s2452_s15 + $0x1d8] sm:$0xff] %v1065_v59 }
 0x165   : > { %1531 = vst [vmem:[%s2452_s15 + $0x3d8] sm:$0xff] %v1385_v60  ;;  %1466 = vst [vmem:[%s2452_s15 + $0x1d0] sm:$0xff] %v1060_v63  ;;  %v1979_v1 = vpop.f32.mrb[60].mxu0 }
 0x166   : > { %1530 = vst [vmem:[%s2452_s15 + $0x3d0] sm:$0xff] %v1380_v0  ;;  %v2075_v2 = vpop.f32.mrb[60].mxu1  ;;  %v1075_v3 = vadd.f32 %v1979_v1, %v2445_v13  ;;  %v1069_v5 = vpop.f32.mrb[61].mxu0 }
 0x167   : > { %v1395_v4 = vadd.f32 %v2075_v2, %v2445_v13  ;;  %v1389_v6 = vpop.f32.mrb[61].mxu1  ;;  %v1070_v7 = vadd.f32 %v2445_v13, %v1069_v5 }
 0x168   : > { %v1390_v8 = vadd.f32 %v2445_v13, %v1389_v6  ;;  %1469 = vst [vmem:[%s2452_s15 + $0x1e8] sm:$0xff] %v1075_v3 }
 0x169   : > { %1533 = vst [vmem:[%s2452_s15 + $0x3e8] sm:$0xff] %v1395_v4  ;;  %1468 = vst [vmem:[%s2452_s15 + $0x1e0] sm:$0xff] %v1070_v7  ;;  %v1982_v9 = vpop.f32.mrb[62].mxu0 }
 0x16a   : > { %1532 = vst [vmem:[%s2452_s15 + $0x3e0] sm:$0xff] %v1390_v8  ;;  %v2078_v10 = vpop.f32.mrb[62].mxu1  ;;  %v1085_v11 = vadd.f32 %v1982_v9, %v2445_v13  ;;  %v1079_v14 = vpop.f32.mrb[63].mxu0 }
 0x16b   : > { %v1405_v12 = vadd.f32 %v2078_v10, %v2445_v13  ;;  %v1399_v15 = vpop.f32.mrb[63].mxu1  ;;  %v1080_v16 = vadd.f32 %v2445_v13, %v1079_v14 }
 0x16c   : > { %v1400_v17 = vadd.f32 %v2445_v13, %v1399_v15  ;;  %1471 = vst [vmem:[%s2452_s15 + $0x1f8] sm:$0xff] %v1085_v11 }
 0x16d   : > { %1535 = vst [vmem:[%s2452_s15 + $0x3f8] sm:$0xff] %v1405_v12  ;;  %1470 = vst [vmem:[%s2452_s15 + $0x1f0] sm:$0xff] %v1080_v16 }
 0x16e   : > { %1534 = vst [vmem:[%s2452_s15 + $0x3f0] sm:$0xff] %v1400_v17 }
 0x16f PF: > { %s13_s12 = sadd.s32 1, %s2119_s12  }
 0x170   : > { %p10_p4 = scmp.ge.s32.totalorder %s13_s12, 4  }
 0x172   :  { %12 = sbr.rel (!%p10_p4) target bundleno = 1 (0x1), region = 62 }

// kernel: prithvi_seg_forward.22
= control target key start
LH: loop header
LB: loop body
LE: loop exit
PB: predicated region body
PF: predicated region fallthrough
CT: control target
= control target key end

     0   :  { %s2246_s12 = smov 0   ;;  %s2810_s0 = inlined_call_operand.vmem [shape: f32[2048,36], index: 0, kind: input, shape index: {}]   ;;  %s2811_s1 = inlined_call_operand.vmem [shape: f32[36,128], index: 1, kind: input, shape index: {}]   ;;  %s2812_s2 = inlined_call_operand.vmem [shape: f32[1,128], index: 2, kind: input, shape index: {}]   ;;  %s2813_s3 = inlined_call_operand.vmem [shape: f32[2048,128], index: 3, kind: output, shape index: {}]  }
   0x1 LB: > { %s1720_s13 = sadd.s32 4294967295, %s2224_s12   ;;  %p1724_p0 = scmp.ge.s32.totalorder %s2224_s12, 1  ;;  %s2224_s12 = sphi %s2246_s12, %s13_s12  }
   0x2   : > { %p138_p1 = scmp.lt.s32.totalorder %s2224_s12, 3 }
   0x4   : > { %p139_p2 = pnand %p1724_p0, %p138_p1 }
   0x5   : > { %v302_v0 = vld [vmem:[%s2811_s1] sm:$0xff] (!%p139_p2)  ;;  %v303_v1 = vld [vmem:[%s2811_s1 + $0x8] sm:$0xff] (!%p139_p2)  ;;  %v304_v2 = vld [vmem:[%s2811_s1 + $0x10] sm:$0xff] (!%p139_p2)  ;;  %s1725_s20 = sshll.u32 (!%p139_p2), %s1720_s13, 7  ;;  %vm699_vm0 = vcmask (!%p139_p2), 1043456   ;;  %vm314_vm1 = vcmask (!%p139_p2), 293888  }
   0x6   : > { %142 = sbr.rel (%p139_p2) target bundleno = 361 (0x169), region = 32  ;;  %v2196_v3 = vpack.c.bf16 (!%p139_p2), %v303_v1, %v302_v0  ;;  %v305_v4 = vld [vmem:[%s2811_s1 + $0x18] sm:$0xff] (!%p139_p2)  ;;  %p163_p3 = scmp.lt.s32.totalorder (!%p139_p2), %s1725_s20, 255  ;;  %v306_v6 = vld [vmem:[%s2811_s1 + $0x20] sm:$0xf] (!%p139_p2) }
   0x7   : > { %v2200_v5 = vpack.c.bf16 (!%p139_p2), %v305_v4, %v304_v2 }
   0x8   : > { %2197 = vmatprep.subr.bf16.mxu0 (!%p139_p2), %v2196_v3  ;;  %2204 = vmatprep.subr.bf16.mxu1 (!%p139_p2), %v2196_v3 }
   0x9   : > { %2199 = vmatpush3.bf16.msra.mxu0 (!%p139_p2), %v2196_v3  ;;  %2207 = vmatpush3.bf16.msra.mxu1 (!%p139_p2), %v2196_v3 }
   0xa   : > { %2201 = vmatprep.subr.bf16.mxu0 (!%p139_p2), %v2200_v5  ;;  %2205 = vmatprep.subr.bf16.mxu1 (!%p139_p2), %v2200_v5 }
   0xd   : > { %s2815_s20 = smov (!%p163_p3, %s1725_s20), 255  ;;  %2203 = vmatpush3.bf16.msra.mxu0 %v2200_v5  ;;  %2208 = vmatpush3.bf16.msra.mxu1 %v2200_v5 }
   0xe   : > { %s1726_s23 = sshll.u32 %s2815_s20, 3  ;;  %2002 = vmatprep.subr.msk.mxu0 %vm699_vm0, %v306_v6  ;;  %2206 = vmatprep.subr.msk.mxu1 %vm699_vm0, %v306_v6 }
   0xf   : > { %s2277_s28 = scalar_lea.vmem %s2810_s0, %s1726_s23  ;;  %s2551_s6 = scalar_lea.vmem %s2813_s3, %s1726_s23 }
  0x10   : > { %v174_v7 = vld [vmem:[%s2277_s28] sm:$0xff]  ;;  %v175_v9 = vld [vmem:[%s2277_s28 + $0x8] sm:$0xff]  ;;  %v176_v11 = vld [vmem:[%s2277_s28 + $0x10] sm:$0xff] }
  0x11   : > { %v238_v8 = vld [vmem:[%s2277_s28 + $0x200] sm:$0xff]  ;;  %2004 = vmatprep.mubr.msk.f32.mxu0 %vm314_vm1, %v174_v7  ;;  %v239_v10 = vld [vmem:[%s2277_s28 + $0x208] sm:$0xff]  ;;  %v240_v12 = vld [vmem:[%s2277_s28 + $0x210] sm:$0xff]  ;;  %2003 = vmatpush3.msk.msra.mxu0 %vm699_vm0, %v306_v6 }
  0x12   : > { %2100 = vmatprep.mubr.msk.f32.mxu1 %vm314_vm1, %v238_v8  ;;  %2209 = vmatpush3.msk.msra.mxu1 %vm699_vm0, %v306_v6  ;;  %v177_v13 = vld [vmem:[%s2277_s28 + $0x18] sm:$0xff]  ;;  %v178_v15 = vld [vmem:[%s2277_s28 + $0x20] sm:$0xff]  ;;  %v179_v17 = vld [vmem:[%s2277_s28 + $0x28] sm:$0xff] }
  0x13   : > { %2005 = vmatmul.mubr.msk.f32.vlgmr.msra.gmra.mrb[0].mxu0 %vm314_vm1, %v175_v9  ;;  %2101 = vmatmul.mubr.msk.f32.vlgmr.msra.gmra.mrb[0].mxu1 %vm314_vm1, %v239_v10  ;;  %v241_v14 = vld [vmem:[%s2277_s28 + $0x218] sm:$0xff]  ;;  %v242_v16 = vld [vmem:[%s2277_s28 + $0x220] sm:$0xff]  ;;  %v243_v18 = vld [vmem:[%s2277_s28 + $0x228] sm:$0xff] }
  0x14   : > { %2007 = vmatprep.mubr.msk.f32.mxu0 %vm314_vm1, %v176_v11  ;;  %2103 = vmatprep.mubr.msk.f32.mxu1 %vm314_vm1, %v240_v12  ;;  %v180_v19 = vld [vmem:[%s2277_s28 + $0x30] sm:$0xff]  ;;  %v181_v21 = vld [vmem:[%s2277_s28 + $0x38] sm:$0xff]  ;;  %v182_v23 = vld [vmem:[%s2277_s28 + $0x40] sm:$0xff] }
  0x15   : > { %v244_v20 = vld [vmem:[%s2277_s28 + $0x230] sm:$0xff]  ;;  %v245_v22 = vld [vmem:[%s2277_s28 + $0x238] sm:$0xff]  ;;  %v246_v24 = vld [vmem:[%s2277_s28 + $0x240] sm:$0xff] }
  0x16   : > { %v183_v25 = vld [vmem:[%s2277_s28 + $0x48] sm:$0xff]  ;;  %v184_v27 = vld [vmem:[%s2277_s28 + $0x50] sm:$0xff]  ;;  %v185_v29 = vld [vmem:[%s2277_s28 + $0x58] sm:$0xff] }
  0x17   : > { %2008 = vmatmul.mubr.msk.f32.gmra.mrb[2].mxu0 %vm314_vm1, %v177_v13  ;;  %2104 = vmatmul.mubr.msk.f32.gmra.mrb[2].mxu1 %vm314_vm1, %v241_v14  ;;  %v247_v26 = vld [vmem:[%s2277_s28 + $0x248] sm:$0xff]  ;;  %v248_v28 = vld [vmem:[%s2277_s28 + $0x250] sm:$0xff]  ;;  %v249_v30 = vld [vmem:[%s2277_s28 + $0x258] sm:$0xff] }
  0x18   : > { %2010 = vmatprep.mubr.msk.f32.mxu0 %vm314_vm1, %v178_v15  ;;  %2106 = vmatprep.mubr.msk.f32.mxu1 %vm314_vm1, %v242_v16  ;;  %v186_v31 = vld [vmem:[%s2277_s28 + $0x60] sm:$0xff]  ;;  %v187_v33 = vld [vmem:[%s2277_s28 + $0x68] sm:$0xff]  ;;  %v188_v35 = vld [vmem:[%s2277_s28 + $0x70] sm:$0xff] }
  0x19   : > { %v250_v32 = vld [vmem:[%s2277_s28 + $0x260] sm:$0xff]  ;;  %v251_v34 = vld [vmem:[%s2277_s28 + $0x268] sm:$0xff]  ;;  %v252_v36 = vld [vmem:[%s2277_s28 + $0x270] sm:$0xff] }
  0x1a   : > { %v189_v37 = vld [vmem:[%s2277_s28 + $0x78] sm:$0xff]  ;;  %v190_v39 = vld [vmem:[%s2277_s28 + $0x80] sm:$0xff]  ;;  %v191_v41 = vld [vmem:[%s2277_s28 + $0x88] sm:$0xff] }
  0x1b   : > { %2011 = vmatmul.mubr.msk.f32.gmra.mrb[4].mxu0 %vm314_vm1, %v179_v17  ;;  %2107 = vmatmul.mubr.msk.f32.gmra.mrb[4].mxu1 %vm314_vm1, %v243_v18  ;;  %v253_v38 = vld [vmem:[%s2277_s28 + $0x278] sm:$0xff]  ;;  %v254_v40 = vld [vmem:[%s2277_s28 + $0x280] sm:$0xff]  ;;  %v255_v42 = vld [vmem:[%s2277_s28 + $0x288] sm:$0xff] }
  0x1c   : > { %2013 = vmatprep.mubr.msk.f32.mxu0 %vm314_vm1, %v180_v19  ;;  %2109 = vmatprep.mubr.msk.f32.mxu1 %vm314_vm1, %v244_v20  ;;  %v192_v43 = vld [vmem:[%s2277_s28 + $0x90] sm:$0xff]  ;;  %v193_v45 = vld [vmem:[%s2277_s28 + $0x98] sm:$0xff]  ;;  %v194_v47 = vld [vmem:[%s2277_s28 + $0xa0] sm:$0xff] }
  0x1d   : > { %v256_v44 = vld [vmem:[%s2277_s28 + $0x290] sm:$0xff]  ;;  %v257_v46 = vld [vmem:[%s2277_s28 + $0x298] sm:$0xff]  ;;  %v258_v48 = vld [vmem:[%s2277_s28 + $0x2a0] sm:$0xff] }
  0x1e   : > { %v195_v49 = vld [vmem:[%s2277_s28 + $0xa8] sm:$0xff]  ;;  %v196_v51 = vld [vmem:[%s2277_s28 + $0xb0] sm:$0xff]  ;;  %v197_v53 = vld [vmem:[%s2277_s28 + $0xb8] sm:$0xff] }
  0x1f   : > { %2014 = vmatmul.mubr.msk.f32.gmra.mrb[6].mxu0 %vm314_vm1, %v181_v21  ;;  %2110 = vmatmul.mubr.msk.f32.gmra.mrb[6].mxu1 %vm314_vm1, %v245_v22  ;;  %v259_v50 = vld [vmem:[%s2277_s28 + $0x2a8] sm:$0xff]  ;;  %v260_v52 = vld [vmem:[%s2277_s28 + $0x2b0] sm:$0xff]  ;;  %v261_v54 = vld [vmem:[%s2277_s28 + $0x2b8] sm:$0xff] }
  0x20   : > { %2016 = vmatprep.mubr.msk.f32.mxu0 %vm314_vm1, %v182_v23  ;;  %2112 = vmatprep.mubr.msk.f32.mxu1 %vm314_vm1, %v246_v24  ;;  %v198_v55 = vld [vmem:[%s2277_s28 + $0xc0] sm:$0xff]  ;;  %v199_v57 = vld [vmem:[%s2277_s28 + $0xc8] sm:$0xff]  ;;  %v200_v59 = vld [vmem:[%s2277_s28 + $0xd0] sm:$0xff] }
  0x21   : > { %v262_v56 = vld [vmem:[%s2277_s28 + $0x2c0] sm:$0xff]  ;;  %v263_v58 = vld [vmem:[%s2277_s28 + $0x2c8] sm:$0xff]  ;;  %v264_v60 = vld [vmem:[%s2277_s28 + $0x2d0] sm:$0xff] }
  0x22   : > { %v201_v61 = vld [vmem:[%s2277_s28 + $0xd8] sm:$0xff]  ;;  %v202_v63 = vld [vmem:[%s2277_s28 + $0xe0] sm:$0xff]  ;;  %v203_v1 = vld [vmem:[%s2277_s28 + $0xe8] sm:$0xff] }
  0x23   : > { %2017 = vmatmul.mubr.msk.f32.gmra.mrb[8].mxu0 %vm314_vm1, %v183_v25  ;;  %2113 = vmatmul.mubr.msk.f32.gmra.mrb[8].mxu1 %vm314_vm1, %v247_v26  ;;  %v265_v62 = vld [vmem:[%s2277_s28 + $0x2d8] sm:$0xff]  ;;  %v266_v0 = vld [vmem:[%s2277_s28 + $0x2e0] sm:$0xff]  ;;  %v267_v2 = vld [vmem:[%s2277_s28 + $0x2e8] sm:$0xff] }
  0x24   : > { %2019 = vmatprep.mubr.msk.f32.mxu0 %vm314_vm1, %v184_v27  ;;  %2115 = vmatprep.mubr.msk.f32.mxu1 %vm314_vm1, %v248_v28  ;;  %v204_v3 = vld [vmem:[%s2277_s28 + $0xf0] sm:$0xff]  ;;  %v205_v5 = vld [vmem:[%s2277_s28 + $0xf8] sm:$0xff]  ;;  %v206_v7 = vld [vmem:[%s2277_s28 + $0x100] sm:$0xff] }
  0x25   : > { %v268_v4 = vld [vmem:[%s2277_s28 + $0x2f0] sm:$0xff]  ;;  %v269_v6 = vld [vmem:[%s2277_s28 + $0x2f8] sm:$0xff]  ;;  %v270_v8 = vld [vmem:[%s2277_s28 + $0x300] sm:$0xff] }
  0x26   : > { %v207_v9 = vld [vmem:[%s2277_s28 + $0x108] sm:$0xff]  ;;  %v208_v11 = vld [vmem:[%s2277_s28 + $0x110] sm:$0xff]  ;;  %v209_v13 = vld [vmem:[%s2277_s28 + $0x118] sm:$0xff] }
  0x27   : > { %2020 = vmatmul.mubr.msk.f32.gmra.mrb[10].mxu0 %vm314_vm1, %v185_v29  ;;  %2116 = vmatmul.mubr.msk.f32.gmra.mrb[10].mxu1 %vm314_vm1, %v249_v30  ;;  %v271_v10 = vld [vmem:[%s2277_s28 + $0x308] sm:$0xff]  ;;  %v272_v12 = vld [vmem:[%s2277_s28 + $0x310] sm:$0xff]  ;;  %v273_v14 = vld [vmem:[%s2277_s28 + $0x318] sm:$0xff] }
  0x28   : > { %2022 = vmatprep.mubr.msk.f32.mxu0 %vm314_vm1, %v186_v31  ;;  %2118 = vmatprep.mubr.msk.f32.mxu1 %vm314_vm1, %v250_v32  ;;  %v210_v15 = vld [vmem:[%s2277_s28 + $0x120] sm:$0xff]  ;;  %v211_v17 = vld [vmem:[%s2277_s28 + $0x128] sm:$0xff]  ;;  %v212_v19 = vld [vmem:[%s2277_s28 + $0x130] sm:$0xff] }
  0x29   : > { %v274_v16 = vld [vmem:[%s2277_s28 + $0x320] sm:$0xff]  ;;  %v275_v18 = vld [vmem:[%s2277_s28 + $0x328] sm:$0xff]  ;;  %v276_v20 = vld [vmem:[%s2277_s28 + $0x330] sm:$0xff] }
  0x2a   : > { %v213_v21 = vld [vmem:[%s2277_s28 + $0x138] sm:$0xff]  ;;  %v214_v23 = vld [vmem:[%s2277_s28 + $0x140] sm:$0xff]  ;;  %v215_v25 = vld [vmem:[%s2277_s28 + $0x148] sm:$0xff] }
  0x2b   : > { %2023 = vmatmul.mubr.msk.f32.gmra.mrb[12].mxu0 %vm314_vm1, %v187_v33  ;;  %2119 = vmatmul.mubr.msk.f32.gmra.mrb[12].mxu1 %vm314_vm1, %v251_v34  ;;  %v277_v22 = vld [vmem:[%s2277_s28 + $0x338] sm:$0xff]  ;;  %v278_v24 = vld [vmem:[%s2277_s28 + $0x340] sm:$0xff]  ;;  %v279_v26 = vld [vmem:[%s2277_s28 + $0x348] sm:$0xff] }
  0x2c   : > { %2025 = vmatprep.mubr.msk.f32.mxu0 %vm314_vm1, %v188_v35  ;;  %2121 = vmatprep.mubr.msk.f32.mxu1 %vm314_vm1, %v252_v36  ;;  %v216_v27 = vld [vmem:[%s2277_s28 + $0x150] sm:$0xff]  ;;  %v217_v29 = vld [vmem:[%s2277_s28 + $0x158] sm:$0xff]  ;;  %v218_v31 = vld [vmem:[%s2277_s28 + $0x160] sm:$0xff] }
  0x2d   : > { %v280_v28 = vld [vmem:[%s2277_s28 + $0x350] sm:$0xff]  ;;  %v281_v30 = vld [vmem:[%s2277_s28 + $0x358] sm:$0xff]  ;;  %v282_v32 = vld [vmem:[%s2277_s28 + $0x360] sm:$0xff] }
  0x2e   : > { %v219_v33 = vld [vmem:[%s2277_s28 + $0x168] sm:$0xff]  ;;  %v220_v35 = vld [vmem:[%s2277_s28 + $0x170] sm:$0xff] }
  0x2f   : > { %2026 = vmatmul.mubr.msk.f32.gmra.mrb[14].mxu0 %vm314_vm1, %v189_v37  ;;  %2122 = vmatmul.mubr.msk.f32.gmra.mrb[14].mxu1 %vm314_vm1, %v253_v38  ;;  %v283_v34 = vld [vmem:[%s2277_s28 + $0x368] sm:$0xff]  ;;  %v284_v36 = vld [vmem:[%s2277_s28 + $0x370] sm:$0xff]  ;;  %v221_v37 = vld [vmem:[%s2277_s28 + $0x178] sm:$0xff] }
  0x30   : > { %2028 = vmatprep.mubr.msk.f32.mxu0 %vm314_vm1, %v190_v39  ;;  %2124 = vmatprep.mubr.msk.f32.mxu1 %vm314_vm1, %v254_v40  ;;  %v285_v38 = vld [vmem:[%s2277_s28 + $0x378] sm:$0xff]  ;;  %v222_v39 = vld [vmem:[%s2277_s28 + $0x180] sm:$0xff] }
  0x31   : > { %v286_v40 = vld [vmem:[%s2277_s28 + $0x380] sm:$0xff] }
  0x33   : > { %2029 = vmatmul.mubr.msk.f32.gmra.mrb[16].mxu0 %vm314_vm1, %v191_v41  ;;  %2125 = vmatmul.mubr.msk.f32.gmra.mrb[16].mxu1 %vm314_vm1, %v255_v42  ;;  %v223_v41 = vld [vmem:[%s2277_s28 + $0x188] sm:$0xff] }
  0x34   : > { %2031 = vmatprep.mubr.msk.f32.mxu0 %vm314_vm1, %v192_v43  ;;  %2127 = vmatprep.mubr.msk.f32.mxu1 %vm314_vm1, %v256_v44  ;;  %v287_v42 = vld [vmem:[%s2277_s28 + $0x388] sm:$0xff]  ;;  %v224_v43 = vld [vmem:[%s2277_s28 + $0x190] sm:$0xff] }
  0x35   : > { %v288_v44 = vld [vmem:[%s2277_s28 + $0x390] sm:$0xff] }
  0x37   : > { %2032 = vmatmul.mubr.msk.f32.gmra.mrb[18].mxu0 %vm314_vm1, %v193_v45  ;;  %2128 = vmatmul.mubr.msk.f32.gmra.mrb[18].mxu1 %vm314_vm1, %v257_v46  ;;  %v225_v45 = vld [vmem:[%s2277_s28 + $0x198] sm:$0xff] }
  0x38   : > { %2034 = vmatprep.mubr.msk.f32.mxu0 %vm314_vm1, %v194_v47  ;;  %2130 = vmatprep.mubr.msk.f32.mxu1 %vm314_vm1, %v258_v48  ;;  %v289_v46 = vld [vmem:[%s2277_s28 + $0x398] sm:$0xff]  ;;  %v226_v47 = vld [vmem:[%s2277_s28 + $0x1a0] sm:$0xff] }
  0x39   : > { %v290_v48 = vld [vmem:[%s2277_s28 + $0x3a0] sm:$0xff] }
  0x3b   : > { %2035 = vmatmul.mubr.msk.f32.gmra.mrb[20].mxu0 %vm314_vm1, %v195_v49  ;;  %2131 = vmatmul.mubr.msk.f32.gmra.mrb[20].mxu1 %vm314_vm1, %v259_v50  ;;  %v227_v49 = vld [vmem:[%s2277_s28 + $0x1a8] sm:$0xff] }
  0x3c   : > { %2037 = vmatprep.mubr.msk.f32.mxu0 %vm314_vm1, %v196_v51  ;;  %2133 = vmatprep.mubr.msk.f32.mxu1 %vm314_vm1, %v260_v52  ;;  %v291_v50 = vld [vmem:[%s2277_s28 + $0x3a8] sm:$0xff]  ;;  %v228_v51 = vld [vmem:[%s2277_s28 + $0x1b0] sm:$0xff] }
  0x3d   : > { %v292_v52 = vld [vmem:[%s2277_s28 + $0x3b0] sm:$0xff] }
  0x3f   : > { %2038 = vmatmul.mubr.msk.f32.gmra.mrb[22].mxu0 %vm314_vm1, %v197_v53  ;;  %2134 = vmatmul.mubr.msk.f32.gmra.mrb[22].mxu1 %vm314_vm1, %v261_v54  ;;  %v229_v53 = vld [vmem:[%s2277_s28 + $0x1b8] sm:$0xff] }
  0x40   : > { %2040 = vmatprep.mubr.msk.f32.mxu0 %vm314_vm1, %v198_v55  ;;  %2136 = vmatprep.mubr.msk.f32.mxu1 %vm314_vm1, %v262_v56  ;;  %v293_v54 = vld [vmem:[%s2277_s28 + $0x3b8] sm:$0xff]  ;;  %v230_v55 = vld [vmem:[%s2277_s28 + $0x1c0] sm:$0xff] }
  0x41   : > { %v294_v56 = vld [vmem:[%s2277_s28 + $0x3c0] sm:$0xff] }
  0x43   : > { %2041 = vmatmul.mubr.msk.f32.gmra.mrb[24].mxu0 %vm314_vm1, %v199_v57  ;;  %2137 = vmatmul.mubr.msk.f32.gmra.mrb[24].mxu1 %vm314_vm1, %v263_v58  ;;  %v231_v57 = vld [vmem:[%s2277_s28 + $0x1c8] sm:$0xff] }
  0x44   : > { %2043 = vmatprep.mubr.msk.f32.mxu0 %vm314_vm1, %v200_v59  ;;  %2139 = vmatprep.mubr.msk.f32.mxu1 %vm314_vm1, %v264_v60  ;;  %v295_v58 = vld [vmem:[%s2277_s28 + $0x3c8] sm:$0xff]  ;;  %v232_v59 = vld [vmem:[%s2277_s28 + $0x1d0] sm:$0xff] }
  0x45   : > { %v296_v60 = vld [vmem:[%s2277_s28 + $0x3d0] sm:$0xff] }
  0x47   : > { %2044 = vmatmul.mubr.msk.f32.gmra.mrb[26].mxu0 %vm314_vm1, %v201_v61  ;;  %2140 = vmatmul.mubr.msk.f32.gmra.mrb[26].mxu1 %vm314_vm1, %v265_v62  ;;  %v233_v61 = vld [vmem:[%s2277_s28 + $0x1d8] sm:$0xff] }
  0x48   : > { %2046 = vmatprep.mubr.msk.f32.mxu0 %vm314_vm1, %v202_v63  ;;  %2142 = vmatprep.mubr.msk.f32.mxu1 %vm314_vm1, %v266_v0  ;;  %v297_v62 = vld [vmem:[%s2277_s28 + $0x3d8] sm:$0xff]  ;;  %v234_v63 = vld [vmem:[%s2277_s28 + $0x1e0] sm:$0xff] }
  0x49   : > { %v298_v0 = vld [vmem:[%s2277_s28 + $0x3e0] sm:$0xff] }
  0x4b   : > { %2047 = vmatmul.mubr.msk.f32.gmra.mrb[28].mxu0 %vm314_vm1, %v203_v1  ;;  %2143 = vmatmul.mubr.msk.f32.gmra.mrb[28].mxu1 %vm314_vm1, %v267_v2  ;;  %v235_v1 = vld [vmem:[%s2277_s28 + $0x1e8] sm:$0xff] }
  0x4c   : > { %2049 = vmatprep.mubr.msk.f32.mxu0 %vm314_vm1, %v204_v3  ;;  %2145 = vmatprep.mubr.msk.f32.mxu1 %vm314_vm1, %v268_v4  ;;  %v299_v2 = vld [vmem:[%s2277_s28 + $0x3e8] sm:$0xff]  ;;  %v236_v3 = vld [vmem:[%s2277_s28 + $0x1f0] sm:$0xff] }
  0x4d   : > { %v300_v4 = vld [vmem:[%s2277_s28 + $0x3f0] sm:$0xff] }
  0x4f   : > { %2050 = vmatmul.mubr.msk.f32.gmra.mrb[30].mxu0 %vm314_vm1, %v205_v5  ;;  %2146 = vmatmul.mubr.msk.f32.gmra.mrb[30].mxu1 %vm314_vm1, %v269_v6  ;;  %v237_v5 = vld [vmem:[%s2277_s28 + $0x1f8] sm:$0xff] }
  0x50   : > { %2052 = vmatprep.mubr.msk.f32.mxu0 %vm314_vm1, %v206_v7  ;;  %2148 = vmatprep.mubr.msk.f32.mxu1 %vm314_vm1, %v270_v8  ;;  %v301_v6 = vld [vmem:[%s2277_s28 + $0x3f8] sm:$0xff]  ;;  %v2542_v7 = vld [vmem:[%s2812_s2] ss:$0 sm:$0xff] }
  0x53   : > { %2053 = vmatmul.mubr.msk.f32.gmra.mrb[32].mxu0 %vm314_vm1, %v207_v9  ;;  %2149 = vmatmul.mubr.msk.f32.gmra.mrb[32].mxu1 %vm314_vm1, %v271_v10 }
  0x54   : > { %2055 = vmatprep.mubr.msk.f32.mxu0 %vm314_vm1, %v208_v11  ;;  %2151 = vmatprep.mubr.msk.f32.mxu1 %vm314_vm1, %v272_v12 }
  0x57   : > { %2056 = vmatmul.mubr.msk.f32.gmra.mrb[34].mxu0 %vm314_vm1, %v209_v13  ;;  %2152 = vmatmul.mubr.msk.f32.gmra.mrb[34].mxu1 %vm314_vm1, %v273_v14 }
  0x58   : > { %2058 = vmatprep.mubr.msk.f32.mxu0 %vm314_vm1, %v210_v15  ;;  %2154 = vmatprep.mubr.msk.f32.mxu1 %vm314_vm1, %v274_v16 }
  0x5b   : > { %2059 = vmatmul.mubr.msk.f32.gmra.mrb[36].mxu0 %vm314_vm1, %v211_v17  ;;  %2155 = vmatmul.mubr.msk.f32.gmra.mrb[36].mxu1 %vm314_vm1, %v275_v18 }
  0x5c   : > { %2061 = vmatprep.mubr.msk.f32.mxu0 %vm314_vm1, %v212_v19  ;;  %2157 = vmatprep.mubr.msk.f32.mxu1 %vm314_vm1, %v276_v20 }
  0x5f   : > { %2062 = vmatmul.mubr.msk.f32.gmra.mrb[38].mxu0 %vm314_vm1, %v213_v21  ;;  %2158 = vmatmul.mubr.msk.f32.gmra.mrb[38].mxu1 %vm314_vm1, %v277_v22 }
  0x60   : > { %2064 = vmatprep.mubr.msk.f32.mxu0 %vm314_vm1, %v214_v23  ;;  %2160 = vmatprep.mubr.msk.f32.mxu1 %vm314_vm1, %v278_v24 }
  0x63   : > { %2065 = vmatmul.mubr.msk.f32.gmra.mrb[40].mxu0 %vm314_vm1, %v215_v25  ;;  %2161 = vmatmul.mubr.msk.f32.gmra.mrb[40].mxu1 %vm314_vm1, %v279_v26 }
  0x64   : > { %2067 = vmatprep.mubr.msk.f32.mxu0 %vm314_vm1, %v216_v27  ;;  %2163 = vmatprep.mubr.msk.f32.mxu1 %vm314_vm1, %v280_v28 }
  0x67   : > { %2068 = vmatmul.mubr.msk.f32.gmra.mrb[42].mxu0 %vm314_vm1, %v217_v29  ;;  %2164 = vmatmul.mubr.msk.f32.gmra.mrb[42].mxu1 %vm314_vm1, %v281_v30 }
  0x68   : > { %2070 = vmatprep.mubr.msk.f32.mxu0 %vm314_vm1, %v218_v31  ;;  %2166 = vmatprep.mubr.msk.f32.mxu1 %vm314_vm1, %v282_v32 }
  0x6b   : > { %2071 = vmatmul.mubr.msk.f32.gmra.mrb[44].mxu0 %vm314_vm1, %v219_v33  ;;  %2167 = vmatmul.mubr.msk.f32.gmra.mrb[44].mxu1 %vm314_vm1, %v283_v34 }
  0x6c   : > { %2073 = vmatprep.mubr.msk.f32.mxu0 %vm314_vm1, %v220_v35  ;;  %2169 = vmatprep.mubr.msk.f32.mxu1 %vm314_vm1, %v284_v36 }
  0x6f   : > { %2074 = vmatmul.mubr.msk.f32.gmra.mrb[46].mxu0 %vm314_vm1, %v221_v37  ;;  %2170 = vmatmul.mubr.msk.f32.gmra.mrb[46].mxu1 %vm314_vm1, %v285_v38 }
  0x70   : > { %2076 = vmatprep.mubr.msk.f32.mxu0 %vm314_vm1, %v222_v39  ;;  %2172 = vmatprep.mubr.msk.f32.mxu1 %vm314_vm1, %v286_v40 }
  0x73   : > { %2077 = vmatmul.mubr.msk.f32.gmra.mrb[48].mxu0 %vm314_vm1, %v223_v41  ;;  %2173 = vmatmul.mubr.msk.f32.gmra.mrb[48].mxu1 %vm314_vm1, %v287_v42 }
  0x74   : > { %2079 = vmatprep.mubr.msk.f32.mxu0 %vm314_vm1, %v224_v43  ;;  %2175 = vmatprep.mubr.msk.f32.mxu1 %vm314_vm1, %v288_v44 }
  0x77   : > { %2080 = vmatmul.mubr.msk.f32.gmra.mrb[50].mxu0 %vm314_vm1, %v225_v45  ;;  %2176 = vmatmul.mubr.msk.f32.gmra.mrb[50].mxu1 %vm314_vm1, %v289_v46 }
  0x78   : > { %2082 = vmatprep.mubr.msk.f32.mxu0 %vm314_vm1, %v226_v47  ;;  %2178 = vmatprep.mubr.msk.f32.mxu1 %vm314_vm1, %v290_v48 }
  0x7b   : > { %2083 = vmatmul.mubr.msk.f32.gmra.mrb[52].mxu0 %vm314_vm1, %v227_v49  ;;  %2179 = vmatmul.mubr.msk.f32.gmra.mrb[52].mxu1 %vm314_vm1, %v291_v50 }
  0x7c   : > { %2085 = vmatprep.mubr.msk.f32.mxu0 %vm314_vm1, %v228_v51  ;;  %2181 = vmatprep.mubr.msk.f32.mxu1 %vm314_vm1, %v292_v52 }
  0x7f   : > { %2086 = vmatmul.mubr.msk.f32.gmra.mrb[54].mxu0 %vm314_vm1, %v229_v53  ;;  %2182 = vmatmul.mubr.msk.f32.gmra.mrb[54].mxu1 %vm314_vm1, %v293_v54 }
  0x80   : > { %2088 = vmatprep.mubr.msk.f32.mxu0 %vm314_vm1, %v230_v55  ;;  %2184 = vmatprep.mubr.msk.f32.mxu1 %vm314_vm1, %v294_v56 }
  0x83   : > { %2089 = vmatmul.mubr.msk.f32.gmra.mrb[56].mxu0 %vm314_vm1, %v231_v57  ;;  %2185 = vmatmul.mubr.msk.f32.gmra.mrb[56].mxu1 %vm314_vm1, %v295_v58 }
  0x84   : > { %2091 = vmatprep.mubr.msk.f32.mxu0 %vm314_vm1, %v232_v59  ;;  %2187 = vmatprep.mubr.msk.f32.mxu1 %vm314_vm1, %v296_v60 }
  0x87   : > { %2092 = vmatmul.mubr.msk.f32.gmra.mrb[58].mxu0 %vm314_vm1, %v233_v61  ;;  %2188 = vmatmul.mubr.msk.f32.gmra.mrb[58].mxu1 %vm314_vm1, %v297_v62 }
  0x88   : > { %2094 = vmatprep.mubr.msk.f32.mxu0 %vm314_vm1, %v234_v63  ;;  %2190 = vmatprep.mubr.msk.f32.mxu1 %vm314_vm1, %v298_v0 }
  0x8b   : > { %2095 = vmatmul.mubr.msk.f32.gmra.mrb[60].mxu0 %vm314_vm1, %v235_v1  ;;  %2191 = vmatmul.mubr.msk.f32.gmra.mrb[60].mxu1 %vm314_vm1, %v299_v2 }
  0x8c   : > { %2097 = vmatprep.mubr.msk.f32.mxu0 %vm314_vm1, %v236_v3  ;;  %2193 = vmatprep.mubr.msk.f32.mxu1 %vm314_vm1, %v300_v4 }
  0x8f   : > { %2098 = vmatmul.mubr.msk.f32.gmra.mrb[62].mxu0 %vm314_vm1, %v237_v5  ;;  %2194 = vmatmul.mubr.msk.f32.gmra.mrb[62].mxu1 %vm314_vm1, %v301_v6 }
  0xe6   : > { %v2006_v8 = vpop.f32.mrb[0].mxu0  ;;  %v2102_v9 = vpop.f32.mrb[0].mxu1 }
  0xe7   : > { %v775_v10 = vadd.f32 %v2006_v8, %v2542_v7  ;;  %v1095_v11 = vadd.f32 %v2102_v9, %v2542_v7  ;;  %v769_v12 = vpop.f32.mrb[1].mxu0  ;;  %v1089_v13 = vpop.f32.mrb[1].mxu1 }
  0xe8   : > { %v770_v14 = vadd.f32 %v2542_v7, %v769_v12  ;;  %v1090_v15 = vadd.f32 %v2542_v7, %v1089_v13 }
  0xe9   : > { %v1409_v16 = vmax.f32 %v775_v10, 0.0  ;;  %v1473_v17 = vmax.f32 %v1095_v11, 0.0 }
  0xea   : > { %v1408_v18 = vmax.f32 %v770_v14, 0.0  ;;  %v1472_v19 = vmax.f32 %v1090_v15, 0.0  ;;  %v2009_v20 = vpop.f32.mrb[2].mxu0  ;;  %v2105_v21 = vpop.f32.mrb[2].mxu1 }
  0xeb   : > { %1537 = vst [vmem:[%s2551_s6 + $0x8] sm:$0xff] %v1409_v16  ;;  %1601 = vst [vmem:[%s2551_s6 + $0x208] sm:$0xff] %v1473_v17  ;;  %v785_v22 = vadd.f32 %v2009_v20, %v2542_v7  ;;  %v1105_v23 = vadd.f32 %v2105_v21, %v2542_v7  ;;  %v779_v24 = vpop.f32.mrb[3].mxu0  ;;  %v1099_v25 = vpop.f32.mrb[3].mxu1 }
  0xec   : > { %1536 = vst [vmem:[%s2551_s6] sm:$0xff] %v1408_v18  ;;  %1600 = vst [vmem:[%s2551_s6 + $0x200] sm:$0xff] %v1472_v19  ;;  %v780_v26 = vadd.f32 %v2542_v7, %v779_v24  ;;  %v1100_v27 = vadd.f32 %v2542_v7, %v1099_v25 }
  0xed   : > { %v1411_v28 = vmax.f32 %v785_v22, 0.0  ;;  %v1475_v29 = vmax.f32 %v1105_v23, 0.0 }
  0xee   : > { %v1410_v30 = vmax.f32 %v780_v26, 0.0  ;;  %v1474_v31 = vmax.f32 %v1100_v27, 0.0  ;;  %v2012_v32 = vpop.f32.mrb[4].mxu0  ;;  %v2108_v33 = vpop.f32.mrb[4].mxu1 }
  0xef   : > { %1539 = vst [vmem:[%s2551_s6 + $0x18] sm:$0xff] %v1411_v28  ;;  %1603 = vst [vmem:[%s2551_s6 + $0x218] sm:$0xff] %v1475_v29  ;;  %v795_v34 = vadd.f32 %v2012_v32, %v2542_v7  ;;  %v1115_v35 = vadd.f32 %v2108_v33, %v2542_v7  ;;  %v789_v36 = vpop.f32.mrb[5].mxu0  ;;  %v1109_v37 = vpop.f32.mrb[5].mxu1 }
  0xf0   : > { %1538 = vst [vmem:[%s2551_s6 + $0x10] sm:$0xff] %v1410_v30  ;;  %1602 = vst [vmem:[%s2551_s6 + $0x210] sm:$0xff] %v1474_v31  ;;  %v790_v38 = vadd.f32 %v2542_v7, %v789_v36  ;;  %v1110_v39 = vadd.f32 %v2542_v7, %v1109_v37 }
  0xf1   : > { %v1413_v40 = vmax.f32 %v795_v34, 0.0  ;;  %v1477_v41 = vmax.f32 %v1115_v35, 0.0 }
  0xf2   : > { %v1412_v42 = vmax.f32 %v790_v38, 0.0  ;;  %v1476_v43 = vmax.f32 %v1110_v39, 0.0  ;;  %v2015_v44 = vpop.f32.mrb[6].mxu0  ;;  %v2111_v45 = vpop.f32.mrb[6].mxu1 }
  0xf3   : > { %1541 = vst [vmem:[%s2551_s6 + $0x28] sm:$0xff] %v1413_v40  ;;  %1605 = vst [vmem:[%s2551_s6 + $0x228] sm:$0xff] %v1477_v41  ;;  %v805_v46 = vadd.f32 %v2015_v44, %v2542_v7  ;;  %v1125_v47 = vadd.f32 %v2111_v45, %v2542_v7  ;;  %v799_v48 = vpop.f32.mrb[7].mxu0  ;;  %v1119_v49 = vpop.f32.mrb[7].mxu1 }
  0xf4   : > { %1540 = vst [vmem:[%s2551_s6 + $0x20] sm:$0xff] %v1412_v42  ;;  %1604 = vst [vmem:[%s2551_s6 + $0x220] sm:$0xff] %v1476_v43  ;;  %v800_v50 = vadd.f32 %v2542_v7, %v799_v48  ;;  %v1120_v51 = vadd.f32 %v2542_v7, %v1119_v49 }
  0xf5   : > { %v1415_v52 = vmax.f32 %v805_v46, 0.0  ;;  %v1479_v53 = vmax.f32 %v1125_v47, 0.0 }
  0xf6   : > { %v1414_v54 = vmax.f32 %v800_v50, 0.0  ;;  %v1478_v55 = vmax.f32 %v1120_v51, 0.0  ;;  %v2018_v56 = vpop.f32.mrb[8].mxu0  ;;  %v2114_v57 = vpop.f32.mrb[8].mxu1 }
  0xf7   : > { %1543 = vst [vmem:[%s2551_s6 + $0x38] sm:$0xff] %v1415_v52  ;;  %1607 = vst [vmem:[%s2551_s6 + $0x238] sm:$0xff] %v1479_v53  ;;  %v815_v58 = vadd.f32 %v2018_v56, %v2542_v7  ;;  %v1135_v59 = vadd.f32 %v2114_v57, %v2542_v7  ;;  %v809_v60 = vpop.f32.mrb[9].mxu0  ;;  %v1129_v61 = vpop.f32.mrb[9].mxu1 }
  0xf8   : > { %1542 = vst [vmem:[%s2551_s6 + $0x30] sm:$0xff] %v1414_v54  ;;  %1606 = vst [vmem:[%s2551_s6 + $0x230] sm:$0xff] %v1478_v55  ;;  %v810_v62 = vadd.f32 %v2542_v7, %v809_v60  ;;  %v1130_v63 = vadd.f32 %v2542_v7, %v1129_v61 }
  0xf9   : > { %v1417_v0 = vmax.f32 %v815_v58, 0.0  ;;  %v1481_v1 = vmax.f32 %v1135_v59, 0.0 }
  0xfa   : > { %v1416_v2 = vmax.f32 %v810_v62, 0.0  ;;  %v1480_v3 = vmax.f32 %v1130_v63, 0.0  ;;  %v2021_v4 = vpop.f32.mrb[10].mxu0  ;;  %v2117_v5 = vpop.f32.mrb[10].mxu1 }
  0xfb   : > { %1545 = vst [vmem:[%s2551_s6 + $0x48] sm:$0xff] %v1417_v0  ;;  %1609 = vst [vmem:[%s2551_s6 + $0x248] sm:$0xff] %v1481_v1  ;;  %v825_v6 = vadd.f32 %v2021_v4, %v2542_v7  ;;  %v1145_v8 = vadd.f32 %v2117_v5, %v2542_v7  ;;  %v819_v9 = vpop.f32.mrb[11].mxu0  ;;  %v1139_v10 = vpop.f32.mrb[11].mxu1 }
  0xfc   : > { %1544 = vst [vmem:[%s2551_s6 + $0x40] sm:$0xff] %v1416_v2  ;;  %1608 = vst [vmem:[%s2551_s6 + $0x240] sm:$0xff] %v1480_v3  ;;  %v820_v11 = vadd.f32 %v2542_v7, %v819_v9  ;;  %v1140_v12 = vadd.f32 %v2542_v7, %v1139_v10 }
  0xfd   : > { %v1419_v13 = vmax.f32 %v825_v6, 0.0  ;;  %v1483_v14 = vmax.f32 %v1145_v8, 0.0 }
  0xfe   : > { %v1418_v15 = vmax.f32 %v820_v11, 0.0  ;;  %v1482_v16 = vmax.f32 %v1140_v12, 0.0  ;;  %v2024_v17 = vpop.f32.mrb[12].mxu0  ;;  %v2120_v18 = vpop.f32.mrb[12].mxu1 }
  0xff   : > { %1547 = vst [vmem:[%s2551_s6 + $0x58] sm:$0xff] %v1419_v13  ;;  %1611 = vst [vmem:[%s2551_s6 + $0x258] sm:$0xff] %v1483_v14  ;;  %v835_v19 = vadd.f32 %v2024_v17, %v2542_v7  ;;  %v1155_v20 = vadd.f32 %v2120_v18, %v2542_v7  ;;  %v829_v21 = vpop.f32.mrb[13].mxu0  ;;  %v1149_v22 = vpop.f32.mrb[13].mxu1 }
 0x100   : > { %1546 = vst [vmem:[%s2551_s6 + $0x50] sm:$0xff] %v1418_v15  ;;  %1610 = vst [vmem:[%s2551_s6 + $0x250] sm:$0xff] %v1482_v16  ;;  %v830_v23 = vadd.f32 %v2542_v7, %v829_v21  ;;  %v1150_v24 = vadd.f32 %v2542_v7, %v1149_v22 }
 0x101   : > { %v1421_v25 = vmax.f32 %v835_v19, 0.0  ;;  %v1485_v26 = vmax.f32 %v1155_v20, 0.0 }
 0x102   : > { %v1420_v27 = vmax.f32 %v830_v23, 0.0  ;;  %v1484_v28 = vmax.f32 %v1150_v24, 0.0  ;;  %v2027_v29 = vpop.f32.mrb[14].mxu0  ;;  %v2123_v30 = vpop.f32.mrb[14].mxu1 }
 0x103   : > { %1549 = vst [vmem:[%s2551_s6 + $0x68] sm:$0xff] %v1421_v25  ;;  %1613 = vst [vmem:[%s2551_s6 + $0x268] sm:$0xff] %v1485_v26  ;;  %v845_v31 = vadd.f32 %v2027_v29, %v2542_v7  ;;  %v1165_v32 = vadd.f32 %v2123_v30, %v2542_v7  ;;  %v839_v33 = vpop.f32.mrb[15].mxu0  ;;  %v1159_v34 = vpop.f32.mrb[15].mxu1 }
 0x104   : > { %1548 = vst [vmem:[%s2551_s6 + $0x60] sm:$0xff] %v1420_v27  ;;  %1612 = vst [vmem:[%s2551_s6 + $0x260] sm:$0xff] %v1484_v28  ;;  %v840_v35 = vadd.f32 %v2542_v7, %v839_v33  ;;  %v1160_v36 = vadd.f32 %v2542_v7, %v1159_v34 }
 0x105   : > { %v1423_v37 = vmax.f32 %v845_v31, 0.0  ;;  %v1487_v38 = vmax.f32 %v1165_v32, 0.0 }
 0x106   : > { %v1422_v39 = vmax.f32 %v840_v35, 0.0  ;;  %v1486_v40 = vmax.f32 %v1160_v36, 0.0  ;;  %v2030_v41 = vpop.f32.mrb[16].mxu0  ;;  %v2126_v42 = vpop.f32.mrb[16].mxu1 }
 0x107   : > { %1551 = vst [vmem:[%s2551_s6 + $0x78] sm:$0xff] %v1423_v37  ;;  %1615 = vst [vmem:[%s2551_s6 + $0x278] sm:$0xff] %v1487_v38  ;;  %v855_v43 = vadd.f32 %v2030_v41, %v2542_v7  ;;  %v1175_v44 = vadd.f32 %v2126_v42, %v2542_v7  ;;  %v849_v45 = vpop.f32.mrb[17].mxu0  ;;  %v1169_v46 = vpop.f32.mrb[17].mxu1 }
 0x108   : > { %1550 = vst [vmem:[%s2551_s6 + $0x70] sm:$0xff] %v1422_v39  ;;  %1614 = vst [vmem:[%s2551_s6 + $0x270] sm:$0xff] %v1486_v40  ;;  %v850_v47 = vadd.f32 %v2542_v7, %v849_v45  ;;  %v1170_v48 = vadd.f32 %v2542_v7, %v1169_v46 }
 0x109   : > { %v1425_v49 = vmax.f32 %v855_v43, 0.0  ;;  %v1489_v50 = vmax.f32 %v1175_v44, 0.0 }
 0x10a   : > { %v1424_v51 = vmax.f32 %v850_v47, 0.0  ;;  %v1488_v52 = vmax.f32 %v1170_v48, 0.0  ;;  %v2033_v53 = vpop.f32.mrb[18].mxu0  ;;  %v2129_v54 = vpop.f32.mrb[18].mxu1 }
 0x10b   : > { %1553 = vst [vmem:[%s2551_s6 + $0x88] sm:$0xff] %v1425_v49  ;;  %1617 = vst [vmem:[%s2551_s6 + $0x288] sm:$0xff] %v1489_v50  ;;  %v865_v55 = vadd.f32 %v2033_v53, %v2542_v7  ;;  %v1185_v56 = vadd.f32 %v2129_v54, %v2542_v7  ;;  %v859_v57 = vpop.f32.mrb[19].mxu0  ;;  %v1179_v58 = vpop.f32.mrb[19].mxu1 }
 0x10c   : > { %1552 = vst [vmem:[%s2551_s6 + $0x80] sm:$0xff] %v1424_v51  ;;  %1616 = vst [vmem:[%s2551_s6 + $0x280] sm:$0xff] %v1488_v52  ;;  %v860_v59 = vadd.f32 %v2542_v7, %v859_v57  ;;  %v1180_v60 = vadd.f32 %v2542_v7, %v1179_v58 }
 0x10d   : > { %v1427_v61 = vmax.f32 %v865_v55, 0.0  ;;  %v1491_v62 = vmax.f32 %v1185_v56, 0.0 }
 0x10e   : > { %v1426_v63 = vmax.f32 %v860_v59, 0.0  ;;  %v1490_v0 = vmax.f32 %v1180_v60, 0.0  ;;  %v2036_v1 = vpop.f32.mrb[20].mxu0  ;;  %v2132_v2 = vpop.f32.mrb[20].mxu1 }
 0x10f   : > { %1555 = vst [vmem:[%s2551_s6 + $0x98] sm:$0xff] %v1427_v61  ;;  %1619 = vst [vmem:[%s2551_s6 + $0x298] sm:$0xff] %v1491_v62  ;;  %v875_v3 = vadd.f32 %v2036_v1, %v2542_v7  ;;  %v1195_v4 = vadd.f32 %v2132_v2, %v2542_v7  ;;  %v869_v5 = vpop.f32.mrb[21].mxu0  ;;  %v1189_v6 = vpop.f32.mrb[21].mxu1 }
 0x110   : > { %1554 = vst [vmem:[%s2551_s6 + $0x90] sm:$0xff] %v1426_v63  ;;  %1618 = vst [vmem:[%s2551_s6 + $0x290] sm:$0xff] %v1490_v0  ;;  %v870_v8 = vadd.f32 %v2542_v7, %v869_v5  ;;  %v1190_v9 = vadd.f32 %v2542_v7, %v1189_v6 }
 0x111   : > { %v1429_v10 = vmax.f32 %v875_v3, 0.0  ;;  %v1493_v11 = vmax.f32 %v1195_v4, 0.0 }
 0x112   : > { %v1428_v12 = vmax.f32 %v870_v8, 0.0  ;;  %v1492_v13 = vmax.f32 %v1190_v9, 0.0  ;;  %v2039_v14 = vpop.f32.mrb[22].mxu0  ;;  %v2135_v15 = vpop.f32.mrb[22].mxu1 }
 0x113   : > { %1557 = vst [vmem:[%s2551_s6 + $0xa8] sm:$0xff] %v1429_v10  ;;  %1621 = vst [vmem:[%s2551_s6 + $0x2a8] sm:$0xff] %v1493_v11  ;;  %v885_v16 = vadd.f32 %v2039_v14, %v2542_v7  ;;  %v1205_v17 = vadd.f32 %v2135_v15, %v2542_v7  ;;  %v879_v18 = vpop.f32.mrb[23].mxu0  ;;  %v1199_v19 = vpop.f32.mrb[23].mxu1 }
 0x114   : > { %1556 = vst [vmem:[%s2551_s6 + $0xa0] sm:$0xff] %v1428_v12  ;;  %1620 = vst [vmem:[%s2551_s6 + $0x2a0] sm:$0xff] %v1492_v13  ;;  %v880_v20 = vadd.f32 %v2542_v7, %v879_v18  ;;  %v1200_v21 = vadd.f32 %v2542_v7, %v1199_v19 }
 0x115   : > { %v1431_v22 = vmax.f32 %v885_v16, 0.0  ;;  %v1495_v23 = vmax.f32 %v1205_v17, 0.0 }
 0x116   : > { %v1430_v24 = vmax.f32 %v880_v20, 0.0  ;;  %v1494_v25 = vmax.f32 %v1200_v21, 0.0  ;;  %v2042_v26 = vpop.f32.mrb[24].mxu0  ;;  %v2138_v27 = vpop.f32.mrb[24].mxu1 }
 0x117   : > { %1559 = vst [vmem:[%s2551_s6 + $0xb8] sm:$0xff] %v1431_v22  ;;  %1623 = vst [vmem:[%s2551_s6 + $0x2b8] sm:$0xff] %v1495_v23  ;;  %v895_v28 = vadd.f32 %v2042_v26, %v2542_v7  ;;  %v1215_v29 = vadd.f32 %v2138_v27, %v2542_v7  ;;  %v889_v30 = vpop.f32.mrb[25].mxu0  ;;  %v1209_v31 = vpop.f32.mrb[25].mxu1 }
 0x118   : > { %1558 = vst [vmem:[%s2551_s6 + $0xb0] sm:$0xff] %v1430_v24  ;;  %1622 = vst [vmem:[%s2551_s6 + $0x2b0] sm:$0xff] %v1494_v25  ;;  %v890_v32 = vadd.f32 %v2542_v7, %v889_v30  ;;  %v1210_v33 = vadd.f32 %v2542_v7, %v1209_v31 }
 0x119   : > { %v1433_v34 = vmax.f32 %v895_v28, 0.0  ;;  %v1497_v35 = vmax.f32 %v1215_v29, 0.0 }
 0x11a   : > { %v1432_v36 = vmax.f32 %v890_v32, 0.0  ;;  %v1496_v37 = vmax.f32 %v1210_v33, 0.0  ;;  %v2045_v38 = vpop.f32.mrb[26].mxu0  ;;  %v2141_v39 = vpop.f32.mrb[26].mxu1 }
 0x11b   : > { %1561 = vst [vmem:[%s2551_s6 + $0xc8] sm:$0xff] %v1433_v34  ;;  %1625 = vst [vmem:[%s2551_s6 + $0x2c8] sm:$0xff] %v1497_v35  ;;  %v905_v40 = vadd.f32 %v2045_v38, %v2542_v7  ;;  %v1225_v41 = vadd.f32 %v2141_v39, %v2542_v7  ;;  %v899_v42 = vpop.f32.mrb[27].mxu0  ;;  %v1219_v43 = vpop.f32.mrb[27].mxu1 }
 0x11c   : > { %1560 = vst [vmem:[%s2551_s6 + $0xc0] sm:$0xff] %v1432_v36  ;;  %1624 = vst [vmem:[%s2551_s6 + $0x2c0] sm:$0xff] %v1496_v37  ;;  %v900_v44 = vadd.f32 %v2542_v7, %v899_v42  ;;  %v1220_v45 = vadd.f32 %v2542_v7, %v1219_v43 }
 0x11d   : > { %v1435_v46 = vmax.f32 %v905_v40, 0.0  ;;  %v1499_v47 = vmax.f32 %v1225_v41, 0.0 }
 0x11e   : > { %v1434_v48 = vmax.f32 %v900_v44, 0.0  ;;  %v1498_v49 = vmax.f32 %v1220_v45, 0.0  ;;  %v2048_v50 = vpop.f32.mrb[28].mxu0  ;;  %v2144_v51 = vpop.f32.mrb[28].mxu1 }
 0x11f   : > { %1563 = vst [vmem:[%s2551_s6 + $0xd8] sm:$0xff] %v1435_v46  ;;  %1627 = vst [vmem:[%s2551_s6 + $0x2d8] sm:$0xff] %v1499_v47  ;;  %v915_v52 = vadd.f32 %v2048_v50, %v2542_v7  ;;  %v1235_v53 = vadd.f32 %v2144_v51, %v2542_v7  ;;  %v909_v54 = vpop.f32.mrb[29].mxu0  ;;  %v1229_v55 = vpop.f32.mrb[29].mxu1 }
 0x120   : > { %1562 = vst [vmem:[%s2551_s6 + $0xd0] sm:$0xff] %v1434_v48  ;;  %1626 = vst [vmem:[%s2551_s6 + $0x2d0] sm:$0xff] %v1498_v49  ;;  %v910_v56 = vadd.f32 %v2542_v7, %v909_v54  ;;  %v1230_v57 = vadd.f32 %v2542_v7, %v1229_v55 }
 0x121   : > { %v1437_v58 = vmax.f32 %v915_v52, 0.0  ;;  %v1501_v59 = vmax.f32 %v1235_v53, 0.0 }
 0x122   : > { %v1436_v60 = vmax.f32 %v910_v56, 0.0  ;;  %v1500_v61 = vmax.f32 %v1230_v57, 0.0  ;;  %v2051_v62 = vpop.f32.mrb[30].mxu0  ;;  %v2147_v63 = vpop.f32.mrb[30].mxu1 }
 0x123   : > { %1565 = vst [vmem:[%s2551_s6 + $0xe8] sm:$0xff] %v1437_v58  ;;  %1629 = vst [vmem:[%s2551_s6 + $0x2e8] sm:$0xff] %v1501_v59  ;;  %v925_v0 = vadd.f32 %v2051_v62, %v2542_v7  ;;  %v1245_v1 = vadd.f32 %v2147_v63, %v2542_v7  ;;  %v919_v2 = vpop.f32.mrb[31].mxu0  ;;  %v1239_v3 = vpop.f32.mrb[31].mxu1 }
 0x124   : > { %1564 = vst [vmem:[%s2551_s6 + $0xe0] sm:$0xff] %v1436_v60  ;;  %1628 = vst [vmem:[%s2551_s6 + $0x2e0] sm:$0xff] %v1500_v61  ;;  %v920_v4 = vadd.f32 %v2542_v7, %v919_v2  ;;  %v1240_v5 = vadd.f32 %v2542_v7, %v1239_v3 }
 0x125   : > { %v1439_v6 = vmax.f32 %v925_v0, 0.0  ;;  %v1503_v8 = vmax.f32 %v1245_v1, 0.0 }
 0x126   : > { %v1438_v9 = vmax.f32 %v920_v4, 0.0  ;;  %v1502_v10 = vmax.f32 %v1240_v5, 0.0  ;;  %v2054_v11 = vpop.f32.mrb[32].mxu0  ;;  %v2150_v12 = vpop.f32.mrb[32].mxu1 }
 0x127   : > { %1567 = vst [vmem:[%s2551_s6 + $0xf8] sm:$0xff] %v1439_v6  ;;  %1631 = vst [vmem:[%s2551_s6 + $0x2f8] sm:$0xff] %v1503_v8  ;;  %v935_v13 = vadd.f32 %v2054_v11, %v2542_v7  ;;  %v1255_v14 = vadd.f32 %v2150_v12, %v2542_v7  ;;  %v929_v15 = vpop.f32.mrb[33].mxu0  ;;  %v1249_v16 = vpop.f32.mrb[33].mxu1 }
 0x128   : > { %1566 = vst [vmem:[%s2551_s6 + $0xf0] sm:$0xff] %v1438_v9  ;;  %1630 = vst [vmem:[%s2551_s6 + $0x2f0] sm:$0xff] %v1502_v10  ;;  %v930_v17 = vadd.f32 %v2542_v7, %v929_v15  ;;  %v1250_v18 = vadd.f32 %v2542_v7, %v1249_v16 }
 0x129   : > { %v1441_v19 = vmax.f32 %v935_v13, 0.0  ;;  %v1505_v20 = vmax.f32 %v1255_v14, 0.0 }
 0x12a   : > { %v1440_v21 = vmax.f32 %v930_v17, 0.0  ;;  %v1504_v22 = vmax.f32 %v1250_v18, 0.0  ;;  %v2057_v23 = vpop.f32.mrb[34].mxu0  ;;  %v2153_v24 = vpop.f32.mrb[34].mxu1 }
 0x12b   : > { %1569 = vst [vmem:[%s2551_s6 + $0x108] sm:$0xff] %v1441_v19  ;;  %1633 = vst [vmem:[%s2551_s6 + $0x308] sm:$0xff] %v1505_v20  ;;  %v945_v25 = vadd.f32 %v2057_v23, %v2542_v7  ;;  %v1265_v26 = vadd.f32 %v2153_v24, %v2542_v7  ;;  %v939_v27 = vpop.f32.mrb[35].mxu0  ;;  %v1259_v28 = vpop.f32.mrb[35].mxu1 }
 0x12c   : > { %1568 = vst [vmem:[%s2551_s6 + $0x100] sm:$0xff] %v1440_v21  ;;  %1632 = vst [vmem:[%s2551_s6 + $0x300] sm:$0xff] %v1504_v22  ;;  %v940_v29 = vadd.f32 %v2542_v7, %v939_v27  ;;  %v1260_v30 = vadd.f32 %v2542_v7, %v1259_v28 }
 0x12d   : > { %v1443_v31 = vmax.f32 %v945_v25, 0.0  ;;  %v1507_v32 = vmax.f32 %v1265_v26, 0.0 }
 0x12e   : > { %v1442_v33 = vmax.f32 %v940_v29, 0.0  ;;  %v1506_v34 = vmax.f32 %v1260_v30, 0.0  ;;  %v2060_v35 = vpop.f32.mrb[36].mxu0  ;;  %v2156_v36 = vpop.f32.mrb[36].mxu1 }
 0x12f   : > { %1571 = vst [vmem:[%s2551_s6 + $0x118] sm:$0xff] %v1443_v31  ;;  %1635 = vst [vmem:[%s2551_s6 + $0x318] sm:$0xff] %v1507_v32  ;;  %v955_v37 = vadd.f32 %v2060_v35, %v2542_v7  ;;  %v1275_v38 = vadd.f32 %v2156_v36, %v2542_v7  ;;  %v949_v39 = vpop.f32.mrb[37].mxu0  ;;  %v1269_v40 = vpop.f32.mrb[37].mxu1 }
 0x130   : > { %1570 = vst [vmem:[%s2551_s6 + $0x110] sm:$0xff] %v1442_v33  ;;  %1634 = vst [vmem:[%s2551_s6 + $0x310] sm:$0xff] %v1506_v34  ;;  %v950_v41 = vadd.f32 %v2542_v7, %v949_v39  ;;  %v1270_v42 = vadd.f32 %v2542_v7, %v1269_v40 }
 0x131   : > { %v1445_v43 = vmax.f32 %v955_v37, 0.0  ;;  %v1509_v44 = vmax.f32 %v1275_v38, 0.0 }
 0x132   : > { %v1444_v45 = vmax.f32 %v950_v41, 0.0  ;;  %v1508_v46 = vmax.f32 %v1270_v42, 0.0  ;;  %v2063_v47 = vpop.f32.mrb[38].mxu0  ;;  %v2159_v48 = vpop.f32.mrb[38].mxu1 }
 0x133   : > { %1573 = vst [vmem:[%s2551_s6 + $0x128] sm:$0xff] %v1445_v43  ;;  %1637 = vst [vmem:[%s2551_s6 + $0x328] sm:$0xff] %v1509_v44  ;;  %v965_v49 = vadd.f32 %v2063_v47, %v2542_v7  ;;  %v1285_v50 = vadd.f32 %v2159_v48, %v2542_v7  ;;  %v959_v51 = vpop.f32.mrb[39].mxu0  ;;  %v1279_v52 = vpop.f32.mrb[39].mxu1 }
 0x134   : > { %1572 = vst [vmem:[%s2551_s6 + $0x120] sm:$0xff] %v1444_v45  ;;  %1636 = vst [vmem:[%s2551_s6 + $0x320] sm:$0xff] %v1508_v46  ;;  %v960_v53 = vadd.f32 %v2542_v7, %v959_v51  ;;  %v1280_v54 = vadd.f32 %v2542_v7, %v1279_v52 }
 0x135   : > { %v1447_v55 = vmax.f32 %v965_v49, 0.0  ;;  %v1511_v56 = vmax.f32 %v1285_v50, 0.0 }
 0x136   : > { %v1446_v57 = vmax.f32 %v960_v53, 0.0  ;;  %v1510_v58 = vmax.f32 %v1280_v54, 0.0  ;;  %v2066_v59 = vpop.f32.mrb[40].mxu0  ;;  %v2162_v60 = vpop.f32.mrb[40].mxu1 }
 0x137   : > { %1575 = vst [vmem:[%s2551_s6 + $0x138] sm:$0xff] %v1447_v55  ;;  %1639 = vst [vmem:[%s2551_s6 + $0x338] sm:$0xff] %v1511_v56  ;;  %v975_v61 = vadd.f32 %v2066_v59, %v2542_v7  ;;  %v1295_v62 = vadd.f32 %v2162_v60, %v2542_v7  ;;  %v969_v63 = vpop.f32.mrb[41].mxu0  ;;  %v1289_v0 = vpop.f32.mrb[41].mxu1 }
 0x138   : > { %1574 = vst [vmem:[%s2551_s6 + $0x130] sm:$0xff] %v1446_v57  ;;  %1638 = vst [vmem:[%s2551_s6 + $0x330] sm:$0xff] %v1510_v58  ;;  %v970_v1 = vadd.f32 %v2542_v7, %v969_v63  ;;  %v1290_v2 = vadd.f32 %v2542_v7, %v1289_v0 }
 0x139   : > { %v1449_v3 = vmax.f32 %v975_v61, 0.0  ;;  %v1513_v4 = vmax.f32 %v1295_v62, 0.0 }
 0x13a   : > { %v1448_v5 = vmax.f32 %v970_v1, 0.0  ;;  %v1512_v6 = vmax.f32 %v1290_v2, 0.0  ;;  %v2069_v8 = vpop.f32.mrb[42].mxu0  ;;  %v2165_v9 = vpop.f32.mrb[42].mxu1 }
 0x13b   : > { %1577 = vst [vmem:[%s2551_s6 + $0x148] sm:$0xff] %v1449_v3  ;;  %1641 = vst [vmem:[%s2551_s6 + $0x348] sm:$0xff] %v1513_v4  ;;  %v985_v10 = vadd.f32 %v2069_v8, %v2542_v7  ;;  %v1305_v11 = vadd.f32 %v2165_v9, %v2542_v7  ;;  %v979_v12 = vpop.f32.mrb[43].mxu0  ;;  %v1299_v13 = vpop.f32.mrb[43].mxu1 }
 0x13c   : > { %1576 = vst [vmem:[%s2551_s6 + $0x140] sm:$0xff] %v1448_v5  ;;  %1640 = vst [vmem:[%s2551_s6 + $0x340] sm:$0xff] %v1512_v6  ;;  %v980_v14 = vadd.f32 %v2542_v7, %v979_v12  ;;  %v1300_v15 = vadd.f32 %v2542_v7, %v1299_v13 }
 0x13d   : > { %v1451_v16 = vmax.f32 %v985_v10, 0.0  ;;  %v1515_v17 = vmax.f32 %v1305_v11, 0.0 }
 0x13e   : > { %v1450_v18 = vmax.f32 %v980_v14, 0.0  ;;  %v1514_v19 = vmax.f32 %v1300_v15, 0.0  ;;  %v2072_v20 = vpop.f32.mrb[44].mxu0  ;;  %v2168_v21 = vpop.f32.mrb[44].mxu1 }
 0x13f   : > { %1579 = vst [vmem:[%s2551_s6 + $0x158] sm:$0xff] %v1451_v16  ;;  %1643 = vst [vmem:[%s2551_s6 + $0x358] sm:$0xff] %v1515_v17  ;;  %v995_v22 = vadd.f32 %v2072_v20, %v2542_v7  ;;  %v1315_v23 = vadd.f32 %v2168_v21, %v2542_v7  ;;  %v989_v24 = vpop.f32.mrb[45].mxu0  ;;  %v1309_v25 = vpop.f32.mrb[45].mxu1 }
 0x140   : > { %1578 = vst [vmem:[%s2551_s6 + $0x150] sm:$0xff] %v1450_v18  ;;  %1642 = vst [vmem:[%s2551_s6 + $0x350] sm:$0xff] %v1514_v19  ;;  %v990_v26 = vadd.f32 %v2542_v7, %v989_v24  ;;  %v1310_v27 = vadd.f32 %v2542_v7, %v1309_v25 }
 0x141   : > { %v1453_v28 = vmax.f32 %v995_v22, 0.0  ;;  %v1517_v29 = vmax.f32 %v1315_v23, 0.0 }
 0x142   : > { %v1452_v30 = vmax.f32 %v990_v26, 0.0  ;;  %v1516_v31 = vmax.f32 %v1310_v27, 0.0  ;;  %v2075_v32 = vpop.f32.mrb[46].mxu0  ;;  %v2171_v33 = vpop.f32.mrb[46].mxu1 }
 0x143   : > { %1581 = vst [vmem:[%s2551_s6 + $0x168] sm:$0xff] %v1453_v28  ;;  %1645 = vst [vmem:[%s2551_s6 + $0x368] sm:$0xff] %v1517_v29  ;;  %v1005_v34 = vadd.f32 %v2075_v32, %v2542_v7  ;;  %v1325_v35 = vadd.f32 %v2171_v33, %v2542_v7  ;;  %v999_v36 = vpop.f32.mrb[47].mxu0  ;;  %v1319_v37 = vpop.f32.mrb[47].mxu1 }
 0x144   : > { %1580 = vst [vmem:[%s2551_s6 + $0x160] sm:$0xff] %v1452_v30  ;;  %1644 = vst [vmem:[%s2551_s6 + $0x360] sm:$0xff] %v1516_v31  ;;  %v1000_v38 = vadd.f32 %v2542_v7, %v999_v36  ;;  %v1320_v39 = vadd.f32 %v2542_v7, %v1319_v37 }
 0x145   : > { %v1455_v40 = vmax.f32 %v1005_v34, 0.0  ;;  %v1519_v41 = vmax.f32 %v1325_v35, 0.0 }
 0x146   : > { %v1454_v42 = vmax.f32 %v1000_v38, 0.0  ;;  %v1518_v43 = vmax.f32 %v1320_v39, 0.0  ;;  %v2078_v44 = vpop.f32.mrb[48].mxu0  ;;  %v2174_v45 = vpop.f32.mrb[48].mxu1 }
 0x147   : > { %1583 = vst [vmem:[%s2551_s6 + $0x178] sm:$0xff] %v1455_v40  ;;  %1647 = vst [vmem:[%s2551_s6 + $0x378] sm:$0xff] %v1519_v41  ;;  %v1015_v46 = vadd.f32 %v2078_v44, %v2542_v7  ;;  %v1335_v47 = vadd.f32 %v2174_v45, %v2542_v7  ;;  %v1009_v48 = vpop.f32.mrb[49].mxu0  ;;  %v1329_v49 = vpop.f32.mrb[49].mxu1 }
 0x148   : > { %1582 = vst [vmem:[%s2551_s6 + $0x170] sm:$0xff] %v1454_v42  ;;  %1646 = vst [vmem:[%s2551_s6 + $0x370] sm:$0xff] %v1518_v43  ;;  %v1010_v50 = vadd.f32 %v2542_v7, %v1009_v48  ;;  %v1330_v51 = vadd.f32 %v2542_v7, %v1329_v49 }
 0x149   : > { %v1457_v52 = vmax.f32 %v1015_v46, 0.0  ;;  %v1521_v53 = vmax.f32 %v1335_v47, 0.0 }
 0x14a   : > { %v1456_v54 = vmax.f32 %v1010_v50, 0.0  ;;  %v1520_v55 = vmax.f32 %v1330_v51, 0.0  ;;  %v2081_v56 = vpop.f32.mrb[50].mxu0  ;;  %v2177_v57 = vpop.f32.mrb[50].mxu1 }
 0x14b   : > { %1585 = vst [vmem:[%s2551_s6 + $0x188] sm:$0xff] %v1457_v52  ;;  %1649 = vst [vmem:[%s2551_s6 + $0x388] sm:$0xff] %v1521_v53  ;;  %v1025_v58 = vadd.f32 %v2081_v56, %v2542_v7  ;;  %v1345_v59 = vadd.f32 %v2177_v57, %v2542_v7  ;;  %v1019_v60 = vpop.f32.mrb[51].mxu0  ;;  %v1339_v61 = vpop.f32.mrb[51].mxu1 }
 0x14c   : > { %1584 = vst [vmem:[%s2551_s6 + $0x180] sm:$0xff] %v1456_v54  ;;  %1648 = vst [vmem:[%s2551_s6 + $0x380] sm:$0xff] %v1520_v55  ;;  %v1020_v62 = vadd.f32 %v2542_v7, %v1019_v60  ;;  %v1340_v63 = vadd.f32 %v2542_v7, %v1339_v61 }
 0x14d   : > { %v1459_v0 = vmax.f32 %v1025_v58, 0.0  ;;  %v1523_v1 = vmax.f32 %v1345_v59, 0.0 }
 0x14e   : > { %v1458_v2 = vmax.f32 %v1020_v62, 0.0  ;;  %v1522_v3 = vmax.f32 %v1340_v63, 0.0  ;;  %v2084_v4 = vpop.f32.mrb[52].mxu0  ;;  %v2180_v5 = vpop.f32.mrb[52].mxu1 }
 0x14f   : > { %1587 = vst [vmem:[%s2551_s6 + $0x198] sm:$0xff] %v1459_v0  ;;  %1651 = vst [vmem:[%s2551_s6 + $0x398] sm:$0xff] %v1523_v1  ;;  %v1035_v6 = vadd.f32 %v2084_v4, %v2542_v7  ;;  %v1355_v8 = vadd.f32 %v2180_v5, %v2542_v7  ;;  %v1029_v9 = vpop.f32.mrb[53].mxu0  ;;  %v1349_v10 = vpop.f32.mrb[53].mxu1 }
 0x150   : > { %1586 = vst [vmem:[%s2551_s6 + $0x190] sm:$0xff] %v1458_v2  ;;  %1650 = vst [vmem:[%s2551_s6 + $0x390] sm:$0xff] %v1522_v3  ;;  %v1030_v11 = vadd.f32 %v2542_v7, %v1029_v9  ;;  %v1350_v12 = vadd.f32 %v2542_v7, %v1349_v10 }
 0x151   : > { %v1461_v13 = vmax.f32 %v1035_v6, 0.0  ;;  %v1525_v14 = vmax.f32 %v1355_v8, 0.0 }
 0x152   : > { %v1460_v15 = vmax.f32 %v1030_v11, 0.0  ;;  %v1524_v16 = vmax.f32 %v1350_v12, 0.0  ;;  %v2087_v17 = vpop.f32.mrb[54].mxu0  ;;  %v2183_v18 = vpop.f32.mrb[54].mxu1 }
 0x153   : > { %1589 = vst [vmem:[%s2551_s6 + $0x1a8] sm:$0xff] %v1461_v13  ;;  %1653 = vst [vmem:[%s2551_s6 + $0x3a8] sm:$0xff] %v1525_v14  ;;  %v1045_v19 = vadd.f32 %v2087_v17, %v2542_v7  ;;  %v1365_v20 = vadd.f32 %v2183_v18, %v2542_v7  ;;  %v1039_v21 = vpop.f32.mrb[55].mxu0  ;;  %v1359_v22 = vpop.f32.mrb[55].mxu1 }
 0x154   : > { %1588 = vst [vmem:[%s2551_s6 + $0x1a0] sm:$0xff] %v1460_v15  ;;  %1652 = vst [vmem:[%s2551_s6 + $0x3a0] sm:$0xff] %v1524_v16  ;;  %v1040_v23 = vadd.f32 %v2542_v7, %v1039_v21  ;;  %v1360_v24 = vadd.f32 %v2542_v7, %v1359_v22 }
 0x155   : > { %v1463_v25 = vmax.f32 %v1045_v19, 0.0  ;;  %v1527_v26 = vmax.f32 %v1365_v20, 0.0 }
 0x156   : > { %v1462_v27 = vmax.f32 %v1040_v23, 0.0  ;;  %v1526_v28 = vmax.f32 %v1360_v24, 0.0  ;;  %v2090_v29 = vpop.f32.mrb[56].mxu0  ;;  %v2186_v30 = vpop.f32.mrb[56].mxu1 }
 0x157   : > { %1591 = vst [vmem:[%s2551_s6 + $0x1b8] sm:$0xff] %v1463_v25  ;;  %1655 = vst [vmem:[%s2551_s6 + $0x3b8] sm:$0xff] %v1527_v26  ;;  %v1055_v31 = vadd.f32 %v2090_v29, %v2542_v7  ;;  %v1375_v32 = vadd.f32 %v2186_v30, %v2542_v7  ;;  %v1049_v33 = vpop.f32.mrb[57].mxu0  ;;  %v1369_v34 = vpop.f32.mrb[57].mxu1 }
 0x158   : > { %1590 = vst [vmem:[%s2551_s6 + $0x1b0] sm:$0xff] %v1462_v27  ;;  %1654 = vst [vmem:[%s2551_s6 + $0x3b0] sm:$0xff] %v1526_v28  ;;  %v1050_v35 = vadd.f32 %v2542_v7, %v1049_v33  ;;  %v1370_v36 = vadd.f32 %v2542_v7, %v1369_v34 }
 0x159   : > { %v1465_v37 = vmax.f32 %v1055_v31, 0.0  ;;  %v1529_v38 = vmax.f32 %v1375_v32, 0.0 }
 0x15a   : > { %v1464_v39 = vmax.f32 %v1050_v35, 0.0  ;;  %v1528_v40 = vmax.f32 %v1370_v36, 0.0  ;;  %v2093_v41 = vpop.f32.mrb[58].mxu0  ;;  %v2189_v42 = vpop.f32.mrb[58].mxu1 }
 0x15b   : > { %1593 = vst [vmem:[%s2551_s6 + $0x1c8] sm:$0xff] %v1465_v37  ;;  %1657 = vst [vmem:[%s2551_s6 + $0x3c8] sm:$0xff] %v1529_v38  ;;  %v1065_v43 = vadd.f32 %v2093_v41, %v2542_v7  ;;  %v1385_v44 = vadd.f32 %v2189_v42, %v2542_v7  ;;  %v1059_v45 = vpop.f32.mrb[59].mxu0  ;;  %v1379_v46 = vpop.f32.mrb[59].mxu1 }
 0x15c   : > { %1592 = vst [vmem:[%s2551_s6 + $0x1c0] sm:$0xff] %v1464_v39  ;;  %1656 = vst [vmem:[%s2551_s6 + $0x3c0] sm:$0xff] %v1528_v40  ;;  %v1060_v47 = vadd.f32 %v2542_v7, %v1059_v45  ;;  %v1380_v48 = vadd.f32 %v2542_v7, %v1379_v46 }
 0x15d   : > { %v1467_v49 = vmax.f32 %v1065_v43, 0.0  ;;  %v1531_v50 = vmax.f32 %v1385_v44, 0.0 }
 0x15e   : > { %v1466_v51 = vmax.f32 %v1060_v47, 0.0  ;;  %v1530_v52 = vmax.f32 %v1380_v48, 0.0  ;;  %v2096_v53 = vpop.f32.mrb[60].mxu0  ;;  %v2192_v54 = vpop.f32.mrb[60].mxu1 }
 0x15f   : > { %1595 = vst [vmem:[%s2551_s6 + $0x1d8] sm:$0xff] %v1467_v49  ;;  %1659 = vst [vmem:[%s2551_s6 + $0x3d8] sm:$0xff] %v1531_v50  ;;  %v1075_v55 = vadd.f32 %v2096_v53, %v2542_v7  ;;  %v1395_v56 = vadd.f32 %v2192_v54, %v2542_v7  ;;  %v1069_v57 = vpop.f32.mrb[61].mxu0  ;;  %v1389_v58 = vpop.f32.mrb[61].mxu1 }
 0x160   : > { %1594 = vst [vmem:[%s2551_s6 + $0x1d0] sm:$0xff] %v1466_v51  ;;  %1658 = vst [vmem:[%s2551_s6 + $0x3d0] sm:$0xff] %v1530_v52  ;;  %v1070_v59 = vadd.f32 %v2542_v7, %v1069_v57  ;;  %v1390_v60 = vadd.f32 %v2542_v7, %v1389_v58 }
 0x161   : > { %v1469_v61 = vmax.f32 %v1075_v55, 0.0  ;;  %v1533_v62 = vmax.f32 %v1395_v56, 0.0 }
 0x162   : > { %v1468_v63 = vmax.f32 %v1070_v59, 0.0  ;;  %v1532_v0 = vmax.f32 %v1390_v60, 0.0  ;;  %v2099_v1 = vpop.f32.mrb[62].mxu0  ;;  %v2195_v2 = vpop.f32.mrb[62].mxu1 }
 0x163   : > { %1597 = vst [vmem:[%s2551_s6 + $0x1e8] sm:$0xff] %v1469_v61  ;;  %1661 = vst [vmem:[%s2551_s6 + $0x3e8] sm:$0xff] %v1533_v62  ;;  %v1085_v3 = vadd.f32 %v2099_v1, %v2542_v7  ;;  %v1405_v4 = vadd.f32 %v2195_v2, %v2542_v7  ;;  %v1079_v5 = vpop.f32.mrb[63].mxu0  ;;  %v1399_v6 = vpop.f32.mrb[63].mxu1 }
 0x164   : > { %1596 = vst [vmem:[%s2551_s6 + $0x1e0] sm:$0xff] %v1468_v63  ;;  %1660 = vst [vmem:[%s2551_s6 + $0x3e0] sm:$0xff] %v1532_v0  ;;  %v1080_v8 = vadd.f32 %v2542_v7, %v1079_v5  ;;  %v1400_v9 = vadd.f32 %v2542_v7, %v1399_v6 }
 0x165   : > { %v1471_v10 = vmax.f32 %v1085_v3, 0.0  ;;  %v1535_v11 = vmax.f32 %v1405_v4, 0.0 }
 0x166   : > { %v1470_v12 = vmax.f32 %v1080_v8, 0.0  ;;  %v1534_v13 = vmax.f32 %v1400_v9, 0.0 }
 0x167   : > { %1599 = vst [vmem:[%s2551_s6 + $0x1f8] sm:$0xff] %v1471_v10  ;;  %1663 = vst [vmem:[%s2551_s6 + $0x3f8] sm:$0xff] %v1535_v11 }
 0x168   : > { %1598 = vst [vmem:[%s2551_s6 + $0x1f0] sm:$0xff] %v1470_v12  ;;  %1662 = vst [vmem:[%s2551_s6 + $0x3f0] sm:$0xff] %v1534_v13 }
 0x169 PF: > { %s13_s12 = sadd.s32 1, %s2224_s12  }
 0x16a   : > { %p10_p4 = scmp.ge.s32.totalorder %s13_s12, 4  }
 0x16c   :  { %12 = sbr.rel (!%p10_p4) target bundleno = 1 (0x1), region = 62 }

// kernel: prithvi_seg_forward.23
= control target key start
LH: loop header
LB: loop body
LE: loop exit
PB: predicated region body
PF: predicated region fallthrough
CT: control target
= control target key end

     0   :  { %s2118_s12 = smov 0   ;;  %s2682_s0 = inlined_call_operand.vmem [shape: f32[8192,36], index: 0, kind: input, shape index: {}]   ;;  %s2683_s1 = inlined_call_operand.vmem [shape: f32[36,128], index: 1, kind: input, shape index: {}]   ;;  %s2684_s2 = inlined_call_operand.vmem [shape: f32[1,128], index: 2, kind: input, shape index: {}]   ;;  %s2685_s3 = inlined_call_operand.vmem [shape: f32[8192,128], index: 3, kind: output, shape index: {}]  }
   0x1 LB: > { %s1592_s13 = sadd.s32 4294967295, %s2096_s12   ;;  %p1596_p0 = scmp.ge.s32.totalorder %s2096_s12, 1  ;;  %s2096_s12 = sphi %s2118_s12, %s13_s12  }
   0x2   : > { %p138_p1 = scmp.lt.s32.totalorder %s2096_s12, 9 }
   0x4   : > { %p139_p2 = pnand %p1596_p0, %p138_p1 }
   0x5   : > { %v302_v0 = vld [vmem:[%s2683_s1] sm:$0xff] (!%p139_p2)  ;;  %v303_v1 = vld [vmem:[%s2683_s1 + $0x8] sm:$0xff] (!%p139_p2)  ;;  %v304_v2 = vld [vmem:[%s2683_s1 + $0x10] sm:$0xff] (!%p139_p2)  ;;  %s1597_s20 = sshll.u32 (!%p139_p2), %s1592_s13, 7  ;;  %vm699_vm0 = vcmask (!%p139_p2), 1043456   ;;  %vm314_vm1 = vcmask (!%p139_p2), 293888  }
   0x6   : > { %142 = sbr.rel (%p139_p2) target bundleno = 359 (0x167), region = 32  ;;  %v2068_v3 = vpack.c.bf16 (!%p139_p2), %v303_v1, %v302_v0  ;;  %v305_v4 = vld [vmem:[%s2683_s1 + $0x18] sm:$0xff] (!%p139_p2)  ;;  %p163_p3 = scmp.lt.s32.totalorder (!%p139_p2), %s1597_s20, 1023  ;;  %v306_v6 = vld [vmem:[%s2683_s1 + $0x20] sm:$0xf] (!%p139_p2) }
   0x7   : > { %v2072_v5 = vpack.c.bf16 (!%p139_p2), %v305_v4, %v304_v2 }
   0x8   : > { %2069 = vmatprep.subr.bf16.mxu0 (!%p139_p2), %v2068_v3  ;;  %2076 = vmatprep.subr.bf16.mxu1 (!%p139_p2), %v2068_v3 }
   0x9   : > { %2071 = vmatpush3.bf16.msra.mxu0 (!%p139_p2), %v2068_v3  ;;  %2079 = vmatpush3.bf16.msra.mxu1 (!%p139_p2), %v2068_v3 }
   0xa   : > { %2073 = vmatprep.subr.bf16.mxu0 (!%p139_p2), %v2072_v5  ;;  %2077 = vmatprep.subr.bf16.mxu1 (!%p139_p2), %v2072_v5 }
   0xd   : > { %s2687_s20 = smov (!%p163_p3, %s1597_s20), 1023  ;;  %2075 = vmatpush3.bf16.msra.mxu0 %v2072_v5  ;;  %2080 = vmatpush3.bf16.msra.mxu1 %v2072_v5 }
   0xe   : > { %s1598_s23 = sshll.u32 %s2687_s20, 3  ;;  %1874 = vmatprep.subr.msk.mxu0 %vm699_vm0, %v306_v6  ;;  %2078 = vmatprep.subr.msk.mxu1 %vm699_vm0, %v306_v6 }
   0xf   : > { %s2149_s28 = scalar_lea.vmem %s2682_s0, %s1598_s23  ;;  %s2421_s6 = scalar_lea.vmem %s2685_s3, %s1598_s23 }
  0x10   : > { %v174_v7 = vld [vmem:[%s2149_s28] sm:$0xff]  ;;  %v175_v9 = vld [vmem:[%s2149_s28 + $0x8] sm:$0xff]  ;;  %v176_v11 = vld [vmem:[%s2149_s28 + $0x10] sm:$0xff] }
  0x11   : > { %v238_v8 = vld [vmem:[%s2149_s28 + $0x200] sm:$0xff]  ;;  %1876 = vmatprep.mubr.msk.f32.mxu0 %vm314_vm1, %v174_v7  ;;  %v239_v10 = vld [vmem:[%s2149_s28 + $0x208] sm:$0xff]  ;;  %v240_v12 = vld [vmem:[%s2149_s28 + $0x210] sm:$0xff]  ;;  %1875 = vmatpush3.msk.msra.mxu0 %vm699_vm0, %v306_v6 }
  0x12   : > { %1972 = vmatprep.mubr.msk.f32.mxu1 %vm314_vm1, %v238_v8  ;;  %2081 = vmatpush3.msk.msra.mxu1 %vm699_vm0, %v306_v6  ;;  %v177_v13 = vld [vmem:[%s2149_s28 + $0x18] sm:$0xff]  ;;  %v178_v15 = vld [vmem:[%s2149_s28 + $0x20] sm:$0xff]  ;;  %v179_v17 = vld [vmem:[%s2149_s28 + $0x28] sm:$0xff] }
  0x13   : > { %1877 = vmatmul.mubr.msk.f32.vlgmr.msra.gmra.mrb[0].mxu0 %vm314_vm1, %v175_v9  ;;  %1973 = vmatmul.mubr.msk.f32.vlgmr.msra.gmra.mrb[0].mxu1 %vm314_vm1, %v239_v10  ;;  %v241_v14 = vld [vmem:[%s2149_s28 + $0x218] sm:$0xff]  ;;  %v242_v16 = vld [vmem:[%s2149_s28 + $0x220] sm:$0xff]  ;;  %v243_v18 = vld [vmem:[%s2149_s28 + $0x228] sm:$0xff] }
  0x14   : > { %1879 = vmatprep.mubr.msk.f32.mxu0 %vm314_vm1, %v176_v11  ;;  %1975 = vmatprep.mubr.msk.f32.mxu1 %vm314_vm1, %v240_v12  ;;  %v180_v19 = vld [vmem:[%s2149_s28 + $0x30] sm:$0xff]  ;;  %v181_v21 = vld [vmem:[%s2149_s28 + $0x38] sm:$0xff]  ;;  %v182_v23 = vld [vmem:[%s2149_s28 + $0x40] sm:$0xff] }
  0x15   : > { %v244_v20 = vld [vmem:[%s2149_s28 + $0x230] sm:$0xff]  ;;  %v245_v22 = vld [vmem:[%s2149_s28 + $0x238] sm:$0xff]  ;;  %v246_v24 = vld [vmem:[%s2149_s28 + $0x240] sm:$0xff] }
  0x16   : > { %v183_v25 = vld [vmem:[%s2149_s28 + $0x48] sm:$0xff]  ;;  %v184_v27 = vld [vmem:[%s2149_s28 + $0x50] sm:$0xff]  ;;  %v185_v29 = vld [vmem:[%s2149_s28 + $0x58] sm:$0xff] }
  0x17   : > { %1880 = vmatmul.mubr.msk.f32.gmra.mrb[2].mxu0 %vm314_vm1, %v177_v13  ;;  %1976 = vmatmul.mubr.msk.f32.gmra.mrb[2].mxu1 %vm314_vm1, %v241_v14  ;;  %v247_v26 = vld [vmem:[%s2149_s28 + $0x248] sm:$0xff]  ;;  %v248_v28 = vld [vmem:[%s2149_s28 + $0x250] sm:$0xff]  ;;  %v249_v30 = vld [vmem:[%s2149_s28 + $0x258] sm:$0xff] }
  0x18   : > { %1882 = vmatprep.mubr.msk.f32.mxu0 %vm314_vm1, %v178_v15  ;;  %1978 = vmatprep.mubr.msk.f32.mxu1 %vm314_vm1, %v242_v16  ;;  %v186_v31 = vld [vmem:[%s2149_s28 + $0x60] sm:$0xff]  ;;  %v187_v33 = vld [vmem:[%s2149_s28 + $0x68] sm:$0xff]  ;;  %v188_v35 = vld [vmem:[%s2149_s28 + $0x70] sm:$0xff] }
  0x19   : > { %v250_v32 = vld [vmem:[%s2149_s28 + $0x260] sm:$0xff]  ;;  %v251_v34 = vld [vmem:[%s2149_s28 + $0x268] sm:$0xff]  ;;  %v252_v36 = vld [vmem:[%s2149_s28 + $0x270] sm:$0xff] }
  0x1a   : > { %v189_v37 = vld [vmem:[%s2149_s28 + $0x78] sm:$0xff]  ;;  %v190_v39 = vld [vmem:[%s2149_s28 + $0x80] sm:$0xff]  ;;  %v191_v41 = vld [vmem:[%s2149_s28 + $0x88] sm:$0xff] }
  0x1b   : > { %1883 = vmatmul.mubr.msk.f32.gmra.mrb[4].mxu0 %vm314_vm1, %v179_v17  ;;  %1979 = vmatmul.mubr.msk.f32.gmra.mrb[4].mxu1 %vm314_vm1, %v243_v18  ;;  %v253_v38 = vld [vmem:[%s2149_s28 + $0x278] sm:$0xff]  ;;  %v254_v40 = vld [vmem:[%s2149_s28 + $0x280] sm:$0xff]  ;;  %v255_v42 = vld [vmem:[%s2149_s28 + $0x288] sm:$0xff] }
  0x1c   : > { %1885 = vmatprep.mubr.msk.f32.mxu0 %vm314_vm1, %v180_v19  ;;  %1981 = vmatprep.mubr.msk.f32.mxu1 %vm314_vm1, %v244_v20  ;;  %v192_v43 = vld [vmem:[%s2149_s28 + $0x90] sm:$0xff]  ;;  %v193_v45 = vld [vmem:[%s2149_s28 + $0x98] sm:$0xff]  ;;  %v194_v47 = vld [vmem:[%s2149_s28 + $0xa0] sm:$0xff] }
  0x1d   : > { %v256_v44 = vld [vmem:[%s2149_s28 + $0x290] sm:$0xff]  ;;  %v257_v46 = vld [vmem:[%s2149_s28 + $0x298] sm:$0xff]  ;;  %v258_v48 = vld [vmem:[%s2149_s28 + $0x2a0] sm:$0xff] }
  0x1e   : > { %v195_v49 = vld [vmem:[%s2149_s28 + $0xa8] sm:$0xff]  ;;  %v196_v51 = vld [vmem:[%s2149_s28 + $0xb0] sm:$0xff]  ;;  %v197_v53 = vld [vmem:[%s2149_s28 + $0xb8] sm:$0xff] }
  0x1f   : > { %1886 = vmatmul.mubr.msk.f32.gmra.mrb[6].mxu0 %vm314_vm1, %v181_v21  ;;  %1982 = vmatmul.mubr.msk.f32.gmra.mrb[6].mxu1 %vm314_vm1, %v245_v22  ;;  %v259_v50 = vld [vmem:[%s2149_s28 + $0x2a8] sm:$0xff]  ;;  %v260_v52 = vld [vmem:[%s2149_s28 + $0x2b0] sm:$0xff]  ;;  %v261_v54 = vld [vmem:[%s2149_s28 + $0x2b8] sm:$0xff] }
  0x20   : > { %1888 = vmatprep.mubr.msk.f32.mxu0 %vm314_vm1, %v182_v23  ;;  %1984 = vmatprep.mubr.msk.f32.mxu1 %vm314_vm1, %v246_v24  ;;  %v198_v55 = vld [vmem:[%s2149_s28 + $0xc0] sm:$0xff]  ;;  %v199_v57 = vld [vmem:[%s2149_s28 + $0xc8] sm:$0xff]  ;;  %v200_v59 = vld [vmem:[%s2149_s28 + $0xd0] sm:$0xff] }
  0x21   : > { %v262_v56 = vld [vmem:[%s2149_s28 + $0x2c0] sm:$0xff]  ;;  %v263_v58 = vld [vmem:[%s2149_s28 + $0x2c8] sm:$0xff]  ;;  %v264_v60 = vld [vmem:[%s2149_s28 + $0x2d0] sm:$0xff] }
  0x22   : > { %v201_v61 = vld [vmem:[%s2149_s28 + $0xd8] sm:$0xff]  ;;  %v202_v63 = vld [vmem:[%s2149_s28 + $0xe0] sm:$0xff]  ;;  %v203_v1 = vld [vmem:[%s2149_s28 + $0xe8] sm:$0xff] }
  0x23   : > { %1889 = vmatmul.mubr.msk.f32.gmra.mrb[8].mxu0 %vm314_vm1, %v183_v25  ;;  %1985 = vmatmul.mubr.msk.f32.gmra.mrb[8].mxu1 %vm314_vm1, %v247_v26  ;;  %v265_v62 = vld [vmem:[%s2149_s28 + $0x2d8] sm:$0xff]  ;;  %v266_v0 = vld [vmem:[%s2149_s28 + $0x2e0] sm:$0xff]  ;;  %v267_v2 = vld [vmem:[%s2149_s28 + $0x2e8] sm:$0xff] }
  0x24   : > { %1891 = vmatprep.mubr.msk.f32.mxu0 %vm314_vm1, %v184_v27  ;;  %1987 = vmatprep.mubr.msk.f32.mxu1 %vm314_vm1, %v248_v28  ;;  %v204_v3 = vld [vmem:[%s2149_s28 + $0xf0] sm:$0xff]  ;;  %v205_v5 = vld [vmem:[%s2149_s28 + $0xf8] sm:$0xff]  ;;  %v206_v7 = vld [vmem:[%s2149_s28 + $0x100] sm:$0xff] }
  0x25   : > { %v268_v4 = vld [vmem:[%s2149_s28 + $0x2f0] sm:$0xff]  ;;  %v269_v6 = vld [vmem:[%s2149_s28 + $0x2f8] sm:$0xff]  ;;  %v270_v8 = vld [vmem:[%s2149_s28 + $0x300] sm:$0xff] }
  0x26   : > { %v207_v9 = vld [vmem:[%s2149_s28 + $0x108] sm:$0xff]  ;;  %v208_v11 = vld [vmem:[%s2149_s28 + $0x110] sm:$0xff]  ;;  %v209_v13 = vld [vmem:[%s2149_s28 + $0x118] sm:$0xff] }
  0x27   : > { %1892 = vmatmul.mubr.msk.f32.gmra.mrb[10].mxu0 %vm314_vm1, %v185_v29  ;;  %1988 = vmatmul.mubr.msk.f32.gmra.mrb[10].mxu1 %vm314_vm1, %v249_v30  ;;  %v271_v10 = vld [vmem:[%s2149_s28 + $0x308] sm:$0xff]  ;;  %v272_v12 = vld [vmem:[%s2149_s28 + $0x310] sm:$0xff]  ;;  %v273_v14 = vld [vmem:[%s2149_s28 + $0x318] sm:$0xff] }
  0x28   : > { %1894 = vmatprep.mubr.msk.f32.mxu0 %vm314_vm1, %v186_v31  ;;  %1990 = vmatprep.mubr.msk.f32.mxu1 %vm314_vm1, %v250_v32  ;;  %v210_v15 = vld [vmem:[%s2149_s28 + $0x120] sm:$0xff]  ;;  %v211_v17 = vld [vmem:[%s2149_s28 + $0x128] sm:$0xff]  ;;  %v212_v19 = vld [vmem:[%s2149_s28 + $0x130] sm:$0xff] }
  0x29   : > { %v274_v16 = vld [vmem:[%s2149_s28 + $0x320] sm:$0xff]  ;;  %v275_v18 = vld [vmem:[%s2149_s28 + $0x328] sm:$0xff]  ;;  %v276_v20 = vld [vmem:[%s2149_s28 + $0x330] sm:$0xff] }
  0x2a   : > { %v213_v21 = vld [vmem:[%s2149_s28 + $0x138] sm:$0xff]  ;;  %v214_v23 = vld [vmem:[%s2149_s28 + $0x140] sm:$0xff]  ;;  %v215_v25 = vld [vmem:[%s2149_s28 + $0x148] sm:$0xff] }
  0x2b   : > { %1895 = vmatmul.mubr.msk.f32.gmra.mrb[12].mxu0 %vm314_vm1, %v187_v33  ;;  %1991 = vmatmul.mubr.msk.f32.gmra.mrb[12].mxu1 %vm314_vm1, %v251_v34  ;;  %v277_v22 = vld [vmem:[%s2149_s28 + $0x338] sm:$0xff]  ;;  %v278_v24 = vld [vmem:[%s2149_s28 + $0x340] sm:$0xff]  ;;  %v279_v26 = vld [vmem:[%s2149_s28 + $0x348] sm:$0xff] }
  0x2c   : > { %1897 = vmatprep.mubr.msk.f32.mxu0 %vm314_vm1, %v188_v35  ;;  %1993 = vmatprep.mubr.msk.f32.mxu1 %vm314_vm1, %v252_v36  ;;  %v216_v27 = vld [vmem:[%s2149_s28 + $0x150] sm:$0xff]  ;;  %v217_v29 = vld [vmem:[%s2149_s28 + $0x158] sm:$0xff]  ;;  %v218_v31 = vld [vmem:[%s2149_s28 + $0x160] sm:$0xff] }
  0x2d   : > { %v280_v28 = vld [vmem:[%s2149_s28 + $0x350] sm:$0xff]  ;;  %v281_v30 = vld [vmem:[%s2149_s28 + $0x358] sm:$0xff]  ;;  %v282_v32 = vld [vmem:[%s2149_s28 + $0x360] sm:$0xff] }
  0x2e   : > { %v219_v33 = vld [vmem:[%s2149_s28 + $0x168] sm:$0xff]  ;;  %v220_v35 = vld [vmem:[%s2149_s28 + $0x170] sm:$0xff] }
  0x2f   : > { %1898 = vmatmul.mubr.msk.f32.gmra.mrb[14].mxu0 %vm314_vm1, %v189_v37  ;;  %1994 = vmatmul.mubr.msk.f32.gmra.mrb[14].mxu1 %vm314_vm1, %v253_v38  ;;  %v283_v34 = vld [vmem:[%s2149_s28 + $0x368] sm:$0xff]  ;;  %v284_v36 = vld [vmem:[%s2149_s28 + $0x370] sm:$0xff]  ;;  %v221_v37 = vld [vmem:[%s2149_s28 + $0x178] sm:$0xff] }
  0x30   : > { %1900 = vmatprep.mubr.msk.f32.mxu0 %vm314_vm1, %v190_v39  ;;  %1996 = vmatprep.mubr.msk.f32.mxu1 %vm314_vm1, %v254_v40  ;;  %v285_v38 = vld [vmem:[%s2149_s28 + $0x378] sm:$0xff]  ;;  %v222_v39 = vld [vmem:[%s2149_s28 + $0x180] sm:$0xff] }
  0x31   : > { %v286_v40 = vld [vmem:[%s2149_s28 + $0x380] sm:$0xff] }
  0x33   : > { %1901 = vmatmul.mubr.msk.f32.gmra.mrb[16].mxu0 %vm314_vm1, %v191_v41  ;;  %1997 = vmatmul.mubr.msk.f32.gmra.mrb[16].mxu1 %vm314_vm1, %v255_v42  ;;  %v223_v41 = vld [vmem:[%s2149_s28 + $0x188] sm:$0xff] }
  0x34   : > { %1903 = vmatprep.mubr.msk.f32.mxu0 %vm314_vm1, %v192_v43  ;;  %1999 = vmatprep.mubr.msk.f32.mxu1 %vm314_vm1, %v256_v44  ;;  %v287_v42 = vld [vmem:[%s2149_s28 + $0x388] sm:$0xff]  ;;  %v224_v43 = vld [vmem:[%s2149_s28 + $0x190] sm:$0xff] }
  0x35   : > { %v288_v44 = vld [vmem:[%s2149_s28 + $0x390] sm:$0xff] }
  0x37   : > { %1904 = vmatmul.mubr.msk.f32.gmra.mrb[18].mxu0 %vm314_vm1, %v193_v45  ;;  %2000 = vmatmul.mubr.msk.f32.gmra.mrb[18].mxu1 %vm314_vm1, %v257_v46  ;;  %v225_v45 = vld [vmem:[%s2149_s28 + $0x198] sm:$0xff] }
  0x38   : > { %1906 = vmatprep.mubr.msk.f32.mxu0 %vm314_vm1, %v194_v47  ;;  %2002 = vmatprep.mubr.msk.f32.mxu1 %vm314_vm1, %v258_v48  ;;  %v289_v46 = vld [vmem:[%s2149_s28 + $0x398] sm:$0xff]  ;;  %v226_v47 = vld [vmem:[%s2149_s28 + $0x1a0] sm:$0xff] }
  0x39   : > { %v290_v48 = vld [vmem:[%s2149_s28 + $0x3a0] sm:$0xff] }
  0x3b   : > { %1907 = vmatmul.mubr.msk.f32.gmra.mrb[20].mxu0 %vm314_vm1, %v195_v49  ;;  %2003 = vmatmul.mubr.msk.f32.gmra.mrb[20].mxu1 %vm314_vm1, %v259_v50  ;;  %v227_v49 = vld [vmem:[%s2149_s28 + $0x1a8] sm:$0xff] }
  0x3c   : > { %1909 = vmatprep.mubr.msk.f32.mxu0 %vm314_vm1, %v196_v51  ;;  %2005 = vmatprep.mubr.msk.f32.mxu1 %vm314_vm1, %v260_v52  ;;  %v291_v50 = vld [vmem:[%s2149_s28 + $0x3a8] sm:$0xff]  ;;  %v228_v51 = vld [vmem:[%s2149_s28 + $0x1b0] sm:$0xff] }
  0x3d   : > { %v292_v52 = vld [vmem:[%s2149_s28 + $0x3b0] sm:$0xff] }
  0x3f   : > { %1910 = vmatmul.mubr.msk.f32.gmra.mrb[22].mxu0 %vm314_vm1, %v197_v53  ;;  %2006 = vmatmul.mubr.msk.f32.gmra.mrb[22].mxu1 %vm314_vm1, %v261_v54  ;;  %v229_v53 = vld [vmem:[%s2149_s28 + $0x1b8] sm:$0xff] }
  0x40   : > { %1912 = vmatprep.mubr.msk.f32.mxu0 %vm314_vm1, %v198_v55  ;;  %2008 = vmatprep.mubr.msk.f32.mxu1 %vm314_vm1, %v262_v56  ;;  %v293_v54 = vld [vmem:[%s2149_s28 + $0x3b8] sm:$0xff]  ;;  %v230_v55 = vld [vmem:[%s2149_s28 + $0x1c0] sm:$0xff] }
  0x41   : > { %v294_v56 = vld [vmem:[%s2149_s28 + $0x3c0] sm:$0xff] }
  0x43   : > { %1913 = vmatmul.mubr.msk.f32.gmra.mrb[24].mxu0 %vm314_vm1, %v199_v57  ;;  %2009 = vmatmul.mubr.msk.f32.gmra.mrb[24].mxu1 %vm314_vm1, %v263_v58  ;;  %v231_v57 = vld [vmem:[%s2149_s28 + $0x1c8] sm:$0xff] }
  0x44   : > { %1915 = vmatprep.mubr.msk.f32.mxu0 %vm314_vm1, %v200_v59  ;;  %2011 = vmatprep.mubr.msk.f32.mxu1 %vm314_vm1, %v264_v60  ;;  %v295_v58 = vld [vmem:[%s2149_s28 + $0x3c8] sm:$0xff]  ;;  %v232_v59 = vld [vmem:[%s2149_s28 + $0x1d0] sm:$0xff] }
  0x45   : > { %v296_v60 = vld [vmem:[%s2149_s28 + $0x3d0] sm:$0xff] }
  0x47   : > { %1916 = vmatmul.mubr.msk.f32.gmra.mrb[26].mxu0 %vm314_vm1, %v201_v61  ;;  %2012 = vmatmul.mubr.msk.f32.gmra.mrb[26].mxu1 %vm314_vm1, %v265_v62  ;;  %v233_v61 = vld [vmem:[%s2149_s28 + $0x1d8] sm:$0xff] }
  0x48   : > { %1918 = vmatprep.mubr.msk.f32.mxu0 %vm314_vm1, %v202_v63  ;;  %2014 = vmatprep.mubr.msk.f32.mxu1 %vm314_vm1, %v266_v0  ;;  %v297_v62 = vld [vmem:[%s2149_s28 + $0x3d8] sm:$0xff]  ;;  %v234_v63 = vld [vmem:[%s2149_s28 + $0x1e0] sm:$0xff] }
  0x49   : > { %v298_v0 = vld [vmem:[%s2149_s28 + $0x3e0] sm:$0xff] }
  0x4b   : > { %1919 = vmatmul.mubr.msk.f32.gmra.mrb[28].mxu0 %vm314_vm1, %v203_v1  ;;  %2015 = vmatmul.mubr.msk.f32.gmra.mrb[28].mxu1 %vm314_vm1, %v267_v2  ;;  %v235_v1 = vld [vmem:[%s2149_s28 + $0x1e8] sm:$0xff] }
  0x4c   : > { %1921 = vmatprep.mubr.msk.f32.mxu0 %vm314_vm1, %v204_v3  ;;  %2017 = vmatprep.mubr.msk.f32.mxu1 %vm314_vm1, %v268_v4  ;;  %v299_v2 = vld [vmem:[%s2149_s28 + $0x3e8] sm:$0xff]  ;;  %v236_v3 = vld [vmem:[%s2149_s28 + $0x1f0] sm:$0xff] }
  0x4d   : > { %v300_v4 = vld [vmem:[%s2149_s28 + $0x3f0] sm:$0xff] }
  0x4f   : > { %1922 = vmatmul.mubr.msk.f32.gmra.mrb[30].mxu0 %vm314_vm1, %v205_v5  ;;  %2018 = vmatmul.mubr.msk.f32.gmra.mrb[30].mxu1 %vm314_vm1, %v269_v6  ;;  %v237_v5 = vld [vmem:[%s2149_s28 + $0x1f8] sm:$0xff] }
  0x50   : > { %1924 = vmatprep.mubr.msk.f32.mxu0 %vm314_vm1, %v206_v7  ;;  %2020 = vmatprep.mubr.msk.f32.mxu1 %vm314_vm1, %v270_v8  ;;  %v301_v6 = vld [vmem:[%s2149_s28 + $0x3f8] sm:$0xff]  ;;  %v2414_v7 = vld [vmem:[%s2684_s2] ss:$0 sm:$0xff] }
  0x53   : > { %1925 = vmatmul.mubr.msk.f32.gmra.mrb[32].mxu0 %vm314_vm1, %v207_v9  ;;  %2021 = vmatmul.mubr.msk.f32.gmra.mrb[32].mxu1 %vm314_vm1, %v271_v10 }
  0x54   : > { %1927 = vmatprep.mubr.msk.f32.mxu0 %vm314_vm1, %v208_v11  ;;  %2023 = vmatprep.mubr.msk.f32.mxu1 %vm314_vm1, %v272_v12 }
  0x57   : > { %1928 = vmatmul.mubr.msk.f32.gmra.mrb[34].mxu0 %vm314_vm1, %v209_v13  ;;  %2024 = vmatmul.mubr.msk.f32.gmra.mrb[34].mxu1 %vm314_vm1, %v273_v14 }
  0x58   : > { %1930 = vmatprep.mubr.msk.f32.mxu0 %vm314_vm1, %v210_v15  ;;  %2026 = vmatprep.mubr.msk.f32.mxu1 %vm314_vm1, %v274_v16 }
  0x5b   : > { %1931 = vmatmul.mubr.msk.f32.gmra.mrb[36].mxu0 %vm314_vm1, %v211_v17  ;;  %2027 = vmatmul.mubr.msk.f32.gmra.mrb[36].mxu1 %vm314_vm1, %v275_v18 }
  0x5c   : > { %1933 = vmatprep.mubr.msk.f32.mxu0 %vm314_vm1, %v212_v19  ;;  %2029 = vmatprep.mubr.msk.f32.mxu1 %vm314_vm1, %v276_v20 }
  0x5f   : > { %1934 = vmatmul.mubr.msk.f32.gmra.mrb[38].mxu0 %vm314_vm1, %v213_v21  ;;  %2030 = vmatmul.mubr.msk.f32.gmra.mrb[38].mxu1 %vm314_vm1, %v277_v22 }
  0x60   : > { %1936 = vmatprep.mubr.msk.f32.mxu0 %vm314_vm1, %v214_v23  ;;  %2032 = vmatprep.mubr.msk.f32.mxu1 %vm314_vm1, %v278_v24 }
  0x63   : > { %1937 = vmatmul.mubr.msk.f32.gmra.mrb[40].mxu0 %vm314_vm1, %v215_v25  ;;  %2033 = vmatmul.mubr.msk.f32.gmra.mrb[40].mxu1 %vm314_vm1, %v279_v26 }
  0x64   : > { %1939 = vmatprep.mubr.msk.f32.mxu0 %vm314_vm1, %v216_v27  ;;  %2035 = vmatprep.mubr.msk.f32.mxu1 %vm314_vm1, %v280_v28 }
  0x67   : > { %1940 = vmatmul.mubr.msk.f32.gmra.mrb[42].mxu0 %vm314_vm1, %v217_v29  ;;  %2036 = vmatmul.mubr.msk.f32.gmra.mrb[42].mxu1 %vm314_vm1, %v281_v30 }
  0x68   : > { %1942 = vmatprep.mubr.msk.f32.mxu0 %vm314_vm1, %v218_v31  ;;  %2038 = vmatprep.mubr.msk.f32.mxu1 %vm314_vm1, %v282_v32 }
  0x6b   : > { %1943 = vmatmul.mubr.msk.f32.gmra.mrb[44].mxu0 %vm314_vm1, %v219_v33  ;;  %2039 = vmatmul.mubr.msk.f32.gmra.mrb[44].mxu1 %vm314_vm1, %v283_v34 }
  0x6c   : > { %1945 = vmatprep.mubr.msk.f32.mxu0 %vm314_vm1, %v220_v35  ;;  %2041 = vmatprep.mubr.msk.f32.mxu1 %vm314_vm1, %v284_v36 }
  0x6f   : > { %1946 = vmatmul.mubr.msk.f32.gmra.mrb[46].mxu0 %vm314_vm1, %v221_v37  ;;  %2042 = vmatmul.mubr.msk.f32.gmra.mrb[46].mxu1 %vm314_vm1, %v285_v38 }
  0x70   : > { %1948 = vmatprep.mubr.msk.f32.mxu0 %vm314_vm1, %v222_v39  ;;  %2044 = vmatprep.mubr.msk.f32.mxu1 %vm314_vm1, %v286_v40 }
  0x73   : > { %1949 = vmatmul.mubr.msk.f32.gmra.mrb[48].mxu0 %vm314_vm1, %v223_v41  ;;  %2045 = vmatmul.mubr.msk.f32.gmra.mrb[48].mxu1 %vm314_vm1, %v287_v42 }
  0x74   : > { %1951 = vmatprep.mubr.msk.f32.mxu0 %vm314_vm1, %v224_v43  ;;  %2047 = vmatprep.mubr.msk.f32.mxu1 %vm314_vm1, %v288_v44 }
  0x77   : > { %1952 = vmatmul.mubr.msk.f32.gmra.mrb[50].mxu0 %vm314_vm1, %v225_v45  ;;  %2048 = vmatmul.mubr.msk.f32.gmra.mrb[50].mxu1 %vm314_vm1, %v289_v46 }
  0x78   : > { %1954 = vmatprep.mubr.msk.f32.mxu0 %vm314_vm1, %v226_v47  ;;  %2050 = vmatprep.mubr.msk.f32.mxu1 %vm314_vm1, %v290_v48 }
  0x7b   : > { %1955 = vmatmul.mubr.msk.f32.gmra.mrb[52].mxu0 %vm314_vm1, %v227_v49  ;;  %2051 = vmatmul.mubr.msk.f32.gmra.mrb[52].mxu1 %vm314_vm1, %v291_v50 }
  0x7c   : > { %1957 = vmatprep.mubr.msk.f32.mxu0 %vm314_vm1, %v228_v51  ;;  %2053 = vmatprep.mubr.msk.f32.mxu1 %vm314_vm1, %v292_v52 }
  0x7f   : > { %1958 = vmatmul.mubr.msk.f32.gmra.mrb[54].mxu0 %vm314_vm1, %v229_v53  ;;  %2054 = vmatmul.mubr.msk.f32.gmra.mrb[54].mxu1 %vm314_vm1, %v293_v54 }
  0x80   : > { %1960 = vmatprep.mubr.msk.f32.mxu0 %vm314_vm1, %v230_v55  ;;  %2056 = vmatprep.mubr.msk.f32.mxu1 %vm314_vm1, %v294_v56 }
  0x83   : > { %1961 = vmatmul.mubr.msk.f32.gmra.mrb[56].mxu0 %vm314_vm1, %v231_v57  ;;  %2057 = vmatmul.mubr.msk.f32.gmra.mrb[56].mxu1 %vm314_vm1, %v295_v58 }
  0x84   : > { %1963 = vmatprep.mubr.msk.f32.mxu0 %vm314_vm1, %v232_v59  ;;  %2059 = vmatprep.mubr.msk.f32.mxu1 %vm314_vm1, %v296_v60 }
  0x87   : > { %1964 = vmatmul.mubr.msk.f32.gmra.mrb[58].mxu0 %vm314_vm1, %v233_v61  ;;  %2060 = vmatmul.mubr.msk.f32.gmra.mrb[58].mxu1 %vm314_vm1, %v297_v62 }
  0x88   : > { %1966 = vmatprep.mubr.msk.f32.mxu0 %vm314_vm1, %v234_v63  ;;  %2062 = vmatprep.mubr.msk.f32.mxu1 %vm314_vm1, %v298_v0 }
  0x8b   : > { %1967 = vmatmul.mubr.msk.f32.gmra.mrb[60].mxu0 %vm314_vm1, %v235_v1  ;;  %2063 = vmatmul.mubr.msk.f32.gmra.mrb[60].mxu1 %vm314_vm1, %v299_v2 }
  0x8c   : > { %1969 = vmatprep.mubr.msk.f32.mxu0 %vm314_vm1, %v236_v3  ;;  %2065 = vmatprep.mubr.msk.f32.mxu1 %vm314_vm1, %v300_v4 }
  0x8f   : > { %1970 = vmatmul.mubr.msk.f32.gmra.mrb[62].mxu0 %vm314_vm1, %v237_v5  ;;  %2066 = vmatmul.mubr.msk.f32.gmra.mrb[62].mxu1 %vm314_vm1, %v301_v6 }
  0xe6   : > { %v1878_v8 = vpop.f32.mrb[0].mxu0  ;;  %v1974_v9 = vpop.f32.mrb[0].mxu1 }
  0xe7   : > { %v775_v10 = vadd.f32 %v1878_v8, %v2414_v7  ;;  %v1095_v11 = vadd.f32 %v1974_v9, %v2414_v7  ;;  %v769_v12 = vpop.f32.mrb[1].mxu0  ;;  %v1089_v13 = vpop.f32.mrb[1].mxu1 }
  0xe8   : > { %v770_v14 = vadd.f32 %v2414_v7, %v769_v12  ;;  %v1090_v15 = vadd.f32 %v2414_v7, %v1089_v13 }
  0xe9   : > { %1409 = vst [vmem:[%s2421_s6 + $0x8] sm:$0xff] %v775_v10  ;;  %1473 = vst [vmem:[%s2421_s6 + $0x208] sm:$0xff] %v1095_v11 }
  0xea   : > { %1408 = vst [vmem:[%s2421_s6] sm:$0xff] %v770_v14  ;;  %1472 = vst [vmem:[%s2421_s6 + $0x200] sm:$0xff] %v1090_v15  ;;  %v1881_v16 = vpop.f32.mrb[2].mxu0  ;;  %v1977_v17 = vpop.f32.mrb[2].mxu1 }
  0xeb   : > { %v785_v18 = vadd.f32 %v1881_v16, %v2414_v7  ;;  %v1105_v19 = vadd.f32 %v1977_v17, %v2414_v7  ;;  %v779_v20 = vpop.f32.mrb[3].mxu0  ;;  %v1099_v21 = vpop.f32.mrb[3].mxu1 }
  0xec   : > { %v780_v22 = vadd.f32 %v2414_v7, %v779_v20  ;;  %v1100_v23 = vadd.f32 %v2414_v7, %v1099_v21 }
  0xed   : > { %1411 = vst [vmem:[%s2421_s6 + $0x18] sm:$0xff] %v785_v18  ;;  %1475 = vst [vmem:[%s2421_s6 + $0x218] sm:$0xff] %v1105_v19 }
  0xee   : > { %1410 = vst [vmem:[%s2421_s6 + $0x10] sm:$0xff] %v780_v22  ;;  %1474 = vst [vmem:[%s2421_s6 + $0x210] sm:$0xff] %v1100_v23  ;;  %v1884_v24 = vpop.f32.mrb[4].mxu0  ;;  %v1980_v25 = vpop.f32.mrb[4].mxu1 }
  0xef   : > { %v795_v26 = vadd.f32 %v1884_v24, %v2414_v7  ;;  %v1115_v27 = vadd.f32 %v1980_v25, %v2414_v7  ;;  %v789_v28 = vpop.f32.mrb[5].mxu0  ;;  %v1109_v29 = vpop.f32.mrb[5].mxu1 }
  0xf0   : > { %v790_v30 = vadd.f32 %v2414_v7, %v789_v28  ;;  %v1110_v31 = vadd.f32 %v2414_v7, %v1109_v29 }
  0xf1   : > { %1413 = vst [vmem:[%s2421_s6 + $0x28] sm:$0xff] %v795_v26  ;;  %1477 = vst [vmem:[%s2421_s6 + $0x228] sm:$0xff] %v1115_v27 }
  0xf2   : > { %1412 = vst [vmem:[%s2421_s6 + $0x20] sm:$0xff] %v790_v30  ;;  %1476 = vst [vmem:[%s2421_s6 + $0x220] sm:$0xff] %v1110_v31  ;;  %v1887_v32 = vpop.f32.mrb[6].mxu0  ;;  %v1983_v33 = vpop.f32.mrb[6].mxu1 }
  0xf3   : > { %v805_v34 = vadd.f32 %v1887_v32, %v2414_v7  ;;  %v1125_v35 = vadd.f32 %v1983_v33, %v2414_v7  ;;  %v799_v36 = vpop.f32.mrb[7].mxu0  ;;  %v1119_v37 = vpop.f32.mrb[7].mxu1 }
  0xf4   : > { %v800_v38 = vadd.f32 %v2414_v7, %v799_v36  ;;  %v1120_v39 = vadd.f32 %v2414_v7, %v1119_v37 }
  0xf5   : > { %1415 = vst [vmem:[%s2421_s6 + $0x38] sm:$0xff] %v805_v34  ;;  %1479 = vst [vmem:[%s2421_s6 + $0x238] sm:$0xff] %v1125_v35 }
  0xf6   : > { %1414 = vst [vmem:[%s2421_s6 + $0x30] sm:$0xff] %v800_v38  ;;  %1478 = vst [vmem:[%s2421_s6 + $0x230] sm:$0xff] %v1120_v39  ;;  %v1890_v40 = vpop.f32.mrb[8].mxu0  ;;  %v1986_v41 = vpop.f32.mrb[8].mxu1 }
  0xf7   : > { %v815_v42 = vadd.f32 %v1890_v40, %v2414_v7  ;;  %v1135_v43 = vadd.f32 %v1986_v41, %v2414_v7  ;;  %v809_v44 = vpop.f32.mrb[9].mxu0  ;;  %v1129_v45 = vpop.f32.mrb[9].mxu1 }
  0xf8   : > { %v810_v46 = vadd.f32 %v2414_v7, %v809_v44  ;;  %v1130_v47 = vadd.f32 %v2414_v7, %v1129_v45 }
  0xf9   : > { %1417 = vst [vmem:[%s2421_s6 + $0x48] sm:$0xff] %v815_v42  ;;  %1481 = vst [vmem:[%s2421_s6 + $0x248] sm:$0xff] %v1135_v43 }
  0xfa   : > { %1416 = vst [vmem:[%s2421_s6 + $0x40] sm:$0xff] %v810_v46  ;;  %1480 = vst [vmem:[%s2421_s6 + $0x240] sm:$0xff] %v1130_v47  ;;  %v1893_v48 = vpop.f32.mrb[10].mxu0  ;;  %v1989_v49 = vpop.f32.mrb[10].mxu1 }
  0xfb   : > { %v825_v50 = vadd.f32 %v1893_v48, %v2414_v7  ;;  %v1145_v51 = vadd.f32 %v1989_v49, %v2414_v7  ;;  %v819_v52 = vpop.f32.mrb[11].mxu0  ;;  %v1139_v53 = vpop.f32.mrb[11].mxu1 }
  0xfc   : > { %v820_v54 = vadd.f32 %v2414_v7, %v819_v52  ;;  %v1140_v55 = vadd.f32 %v2414_v7, %v1139_v53 }
  0xfd   : > { %1419 = vst [vmem:[%s2421_s6 + $0x58] sm:$0xff] %v825_v50  ;;  %1483 = vst [vmem:[%s2421_s6 + $0x258] sm:$0xff] %v1145_v51 }
  0xfe   : > { %1418 = vst [vmem:[%s2421_s6 + $0x50] sm:$0xff] %v820_v54  ;;  %1482 = vst [vmem:[%s2421_s6 + $0x250] sm:$0xff] %v1140_v55  ;;  %v1896_v56 = vpop.f32.mrb[12].mxu0  ;;  %v1992_v57 = vpop.f32.mrb[12].mxu1 }
  0xff   : > { %v835_v58 = vadd.f32 %v1896_v56, %v2414_v7  ;;  %v1155_v59 = vadd.f32 %v1992_v57, %v2414_v7  ;;  %v829_v60 = vpop.f32.mrb[13].mxu0  ;;  %v1149_v61 = vpop.f32.mrb[13].mxu1 }
 0x100   : > { %v830_v62 = vadd.f32 %v2414_v7, %v829_v60  ;;  %v1150_v63 = vadd.f32 %v2414_v7, %v1149_v61 }
 0x101   : > { %1421 = vst [vmem:[%s2421_s6 + $0x68] sm:$0xff] %v835_v58  ;;  %1485 = vst [vmem:[%s2421_s6 + $0x268] sm:$0xff] %v1155_v59 }
 0x102   : > { %1420 = vst [vmem:[%s2421_s6 + $0x60] sm:$0xff] %v830_v62  ;;  %1484 = vst [vmem:[%s2421_s6 + $0x260] sm:$0xff] %v1150_v63  ;;  %v1899_v0 = vpop.f32.mrb[14].mxu0  ;;  %v1995_v1 = vpop.f32.mrb[14].mxu1 }
 0x103   : > { %v845_v2 = vadd.f32 %v1899_v0, %v2414_v7  ;;  %v1165_v3 = vadd.f32 %v1995_v1, %v2414_v7  ;;  %v839_v4 = vpop.f32.mrb[15].mxu0  ;;  %v1159_v5 = vpop.f32.mrb[15].mxu1 }
 0x104   : > { %v840_v6 = vadd.f32 %v2414_v7, %v839_v4  ;;  %v1160_v8 = vadd.f32 %v2414_v7, %v1159_v5 }
 0x105   : > { %1423 = vst [vmem:[%s2421_s6 + $0x78] sm:$0xff] %v845_v2  ;;  %1487 = vst [vmem:[%s2421_s6 + $0x278] sm:$0xff] %v1165_v3 }
 0x106   : > { %1422 = vst [vmem:[%s2421_s6 + $0x70] sm:$0xff] %v840_v6  ;;  %1486 = vst [vmem:[%s2421_s6 + $0x270] sm:$0xff] %v1160_v8  ;;  %v1902_v9 = vpop.f32.mrb[16].mxu0  ;;  %v1998_v10 = vpop.f32.mrb[16].mxu1 }
 0x107   : > { %v855_v11 = vadd.f32 %v1902_v9, %v2414_v7  ;;  %v1175_v12 = vadd.f32 %v1998_v10, %v2414_v7  ;;  %v849_v13 = vpop.f32.mrb[17].mxu0  ;;  %v1169_v14 = vpop.f32.mrb[17].mxu1 }
 0x108   : > { %v850_v15 = vadd.f32 %v2414_v7, %v849_v13  ;;  %v1170_v16 = vadd.f32 %v2414_v7, %v1169_v14 }
 0x109   : > { %1425 = vst [vmem:[%s2421_s6 + $0x88] sm:$0xff] %v855_v11  ;;  %1489 = vst [vmem:[%s2421_s6 + $0x288] sm:$0xff] %v1175_v12 }
 0x10a   : > { %1424 = vst [vmem:[%s2421_s6 + $0x80] sm:$0xff] %v850_v15  ;;  %1488 = vst [vmem:[%s2421_s6 + $0x280] sm:$0xff] %v1170_v16  ;;  %v1905_v17 = vpop.f32.mrb[18].mxu0  ;;  %v2001_v18 = vpop.f32.mrb[18].mxu1 }
 0x10b   : > { %v865_v19 = vadd.f32 %v1905_v17, %v2414_v7  ;;  %v1185_v20 = vadd.f32 %v2001_v18, %v2414_v7  ;;  %v859_v21 = vpop.f32.mrb[19].mxu0  ;;  %v1179_v22 = vpop.f32.mrb[19].mxu1 }
 0x10c   : > { %v860_v23 = vadd.f32 %v2414_v7, %v859_v21  ;;  %v1180_v24 = vadd.f32 %v2414_v7, %v1179_v22 }
 0x10d   : > { %1427 = vst [vmem:[%s2421_s6 + $0x98] sm:$0xff] %v865_v19  ;;  %1491 = vst [vmem:[%s2421_s6 + $0x298] sm:$0xff] %v1185_v20 }
 0x10e   : > { %1426 = vst [vmem:[%s2421_s6 + $0x90] sm:$0xff] %v860_v23  ;;  %1490 = vst [vmem:[%s2421_s6 + $0x290] sm:$0xff] %v1180_v24  ;;  %v1908_v25 = vpop.f32.mrb[20].mxu0  ;;  %v2004_v26 = vpop.f32.mrb[20].mxu1 }
 0x10f   : > { %v875_v27 = vadd.f32 %v1908_v25, %v2414_v7  ;;  %v1195_v28 = vadd.f32 %v2004_v26, %v2414_v7  ;;  %v869_v29 = vpop.f32.mrb[21].mxu0  ;;  %v1189_v30 = vpop.f32.mrb[21].mxu1 }
 0x110   : > { %v870_v31 = vadd.f32 %v2414_v7, %v869_v29  ;;  %v1190_v32 = vadd.f32 %v2414_v7, %v1189_v30 }
 0x111   : > { %1429 = vst [vmem:[%s2421_s6 + $0xa8] sm:$0xff] %v875_v27  ;;  %1493 = vst [vmem:[%s2421_s6 + $0x2a8] sm:$0xff] %v1195_v28 }
 0x112   : > { %1428 = vst [vmem:[%s2421_s6 + $0xa0] sm:$0xff] %v870_v31  ;;  %1492 = vst [vmem:[%s2421_s6 + $0x2a0] sm:$0xff] %v1190_v32  ;;  %v1911_v33 = vpop.f32.mrb[22].mxu0  ;;  %v2007_v34 = vpop.f32.mrb[22].mxu1 }
 0x113   : > { %v885_v35 = vadd.f32 %v1911_v33, %v2414_v7  ;;  %v1205_v36 = vadd.f32 %v2007_v34, %v2414_v7  ;;  %v879_v37 = vpop.f32.mrb[23].mxu0  ;;  %v1199_v38 = vpop.f32.mrb[23].mxu1 }
 0x114   : > { %v880_v39 = vadd.f32 %v2414_v7, %v879_v37  ;;  %v1200_v40 = vadd.f32 %v2414_v7, %v1199_v38 }
 0x115   : > { %1431 = vst [vmem:[%s2421_s6 + $0xb8] sm:$0xff] %v885_v35  ;;  %1495 = vst [vmem:[%s2421_s6 + $0x2b8] sm:$0xff] %v1205_v36 }
 0x116   : > { %1430 = vst [vmem:[%s2421_s6 + $0xb0] sm:$0xff] %v880_v39  ;;  %1494 = vst [vmem:[%s2421_s6 + $0x2b0] sm:$0xff] %v1200_v40  ;;  %v1914_v41 = vpop.f32.mrb[24].mxu0  ;;  %v2010_v42 = vpop.f32.mrb[24].mxu1 }
 0x117   : > { %v895_v43 = vadd.f32 %v1914_v41, %v2414_v7  ;;  %v1215_v44 = vadd.f32 %v2010_v42, %v2414_v7  ;;  %v889_v45 = vpop.f32.mrb[25].mxu0  ;;  %v1209_v46 = vpop.f32.mrb[25].mxu1 }
 0x118   : > { %v890_v47 = vadd.f32 %v2414_v7, %v889_v45  ;;  %v1210_v48 = vadd.f32 %v2414_v7, %v1209_v46 }
 0x119   : > { %1433 = vst [vmem:[%s2421_s6 + $0xc8] sm:$0xff] %v895_v43  ;;  %1497 = vst [vmem:[%s2421_s6 + $0x2c8] sm:$0xff] %v1215_v44 }
 0x11a   : > { %1432 = vst [vmem:[%s2421_s6 + $0xc0] sm:$0xff] %v890_v47  ;;  %1496 = vst [vmem:[%s2421_s6 + $0x2c0] sm:$0xff] %v1210_v48  ;;  %v1917_v49 = vpop.f32.mrb[26].mxu0  ;;  %v2013_v50 = vpop.f32.mrb[26].mxu1 }
 0x11b   : > { %v905_v51 = vadd.f32 %v1917_v49, %v2414_v7  ;;  %v1225_v52 = vadd.f32 %v2013_v50, %v2414_v7  ;;  %v899_v53 = vpop.f32.mrb[27].mxu0  ;;  %v1219_v54 = vpop.f32.mrb[27].mxu1 }
 0x11c   : > { %v900_v55 = vadd.f32 %v2414_v7, %v899_v53  ;;  %v1220_v56 = vadd.f32 %v2414_v7, %v1219_v54 }
 0x11d   : > { %1435 = vst [vmem:[%s2421_s6 + $0xd8] sm:$0xff] %v905_v51  ;;  %1499 = vst [vmem:[%s2421_s6 + $0x2d8] sm:$0xff] %v1225_v52 }
 0x11e   : > { %1434 = vst [vmem:[%s2421_s6 + $0xd0] sm:$0xff] %v900_v55  ;;  %1498 = vst [vmem:[%s2421_s6 + $0x2d0] sm:$0xff] %v1220_v56  ;;  %v1920_v57 = vpop.f32.mrb[28].mxu0  ;;  %v2016_v58 = vpop.f32.mrb[28].mxu1 }
 0x11f   : > { %v915_v59 = vadd.f32 %v1920_v57, %v2414_v7  ;;  %v1235_v60 = vadd.f32 %v2016_v58, %v2414_v7  ;;  %v909_v61 = vpop.f32.mrb[29].mxu0  ;;  %v1229_v62 = vpop.f32.mrb[29].mxu1 }
 0x120   : > { %v910_v63 = vadd.f32 %v2414_v7, %v909_v61  ;;  %v1230_v0 = vadd.f32 %v2414_v7, %v1229_v62 }
 0x121   : > { %1437 = vst [vmem:[%s2421_s6 + $0xe8] sm:$0xff] %v915_v59  ;;  %1501 = vst [vmem:[%s2421_s6 + $0x2e8] sm:$0xff] %v1235_v60 }
 0x122   : > { %1436 = vst [vmem:[%s2421_s6 + $0xe0] sm:$0xff] %v910_v63  ;;  %1500 = vst [vmem:[%s2421_s6 + $0x2e0] sm:$0xff] %v1230_v0  ;;  %v1923_v1 = vpop.f32.mrb[30].mxu0  ;;  %v2019_v2 = vpop.f32.mrb[30].mxu1 }
 0x123   : > { %v925_v3 = vadd.f32 %v1923_v1, %v2414_v7  ;;  %v1245_v4 = vadd.f32 %v2019_v2, %v2414_v7  ;;  %v919_v5 = vpop.f32.mrb[31].mxu0  ;;  %v1239_v6 = vpop.f32.mrb[31].mxu1 }
 0x124   : > { %v920_v8 = vadd.f32 %v2414_v7, %v919_v5  ;;  %v1240_v9 = vadd.f32 %v2414_v7, %v1239_v6 }
 0x125   : > { %1439 = vst [vmem:[%s2421_s6 + $0xf8] sm:$0xff] %v925_v3  ;;  %1503 = vst [vmem:[%s2421_s6 + $0x2f8] sm:$0xff] %v1245_v4 }
 0x126   : > { %1438 = vst [vmem:[%s2421_s6 + $0xf0] sm:$0xff] %v920_v8  ;;  %1502 = vst [vmem:[%s2421_s6 + $0x2f0] sm:$0xff] %v1240_v9  ;;  %v1926_v10 = vpop.f32.mrb[32].mxu0  ;;  %v2022_v11 = vpop.f32.mrb[32].mxu1 }
 0x127   : > { %v935_v12 = vadd.f32 %v1926_v10, %v2414_v7  ;;  %v1255_v13 = vadd.f32 %v2022_v11, %v2414_v7  ;;  %v929_v14 = vpop.f32.mrb[33].mxu0  ;;  %v1249_v15 = vpop.f32.mrb[33].mxu1 }
 0x128   : > { %v930_v16 = vadd.f32 %v2414_v7, %v929_v14  ;;  %v1250_v17 = vadd.f32 %v2414_v7, %v1249_v15 }
 0x129   : > { %1441 = vst [vmem:[%s2421_s6 + $0x108] sm:$0xff] %v935_v12  ;;  %1505 = vst [vmem:[%s2421_s6 + $0x308] sm:$0xff] %v1255_v13 }
 0x12a   : > { %1440 = vst [vmem:[%s2421_s6 + $0x100] sm:$0xff] %v930_v16  ;;  %1504 = vst [vmem:[%s2421_s6 + $0x300] sm:$0xff] %v1250_v17  ;;  %v1929_v18 = vpop.f32.mrb[34].mxu0  ;;  %v2025_v19 = vpop.f32.mrb[34].mxu1 }
 0x12b   : > { %v945_v20 = vadd.f32 %v1929_v18, %v2414_v7  ;;  %v1265_v21 = vadd.f32 %v2025_v19, %v2414_v7  ;;  %v939_v22 = vpop.f32.mrb[35].mxu0  ;;  %v1259_v23 = vpop.f32.mrb[35].mxu1 }
 0x12c   : > { %v940_v24 = vadd.f32 %v2414_v7, %v939_v22  ;;  %v1260_v25 = vadd.f32 %v2414_v7, %v1259_v23 }
 0x12d   : > { %1443 = vst [vmem:[%s2421_s6 + $0x118] sm:$0xff] %v945_v20  ;;  %1507 = vst [vmem:[%s2421_s6 + $0x318] sm:$0xff] %v1265_v21 }
 0x12e   : > { %1442 = vst [vmem:[%s2421_s6 + $0x110] sm:$0xff] %v940_v24  ;;  %1506 = vst [vmem:[%s2421_s6 + $0x310] sm:$0xff] %v1260_v25  ;;  %v1932_v26 = vpop.f32.mrb[36].mxu0  ;;  %v2028_v27 = vpop.f32.mrb[36].mxu1 }
 0x12f   : > { %v955_v28 = vadd.f32 %v1932_v26, %v2414_v7  ;;  %v1275_v29 = vadd.f32 %v2028_v27, %v2414_v7  ;;  %v949_v30 = vpop.f32.mrb[37].mxu0  ;;  %v1269_v31 = vpop.f32.mrb[37].mxu1 }
 0x130   : > { %v950_v32 = vadd.f32 %v2414_v7, %v949_v30  ;;  %v1270_v33 = vadd.f32 %v2414_v7, %v1269_v31 }
 0x131   : > { %1445 = vst [vmem:[%s2421_s6 + $0x128] sm:$0xff] %v955_v28  ;;  %1509 = vst [vmem:[%s2421_s6 + $0x328] sm:$0xff] %v1275_v29 }
 0x132   : > { %1444 = vst [vmem:[%s2421_s6 + $0x120] sm:$0xff] %v950_v32  ;;  %1508 = vst [vmem:[%s2421_s6 + $0x320] sm:$0xff] %v1270_v33  ;;  %v1935_v34 = vpop.f32.mrb[38].mxu0  ;;  %v2031_v35 = vpop.f32.mrb[38].mxu1 }
 0x133   : > { %v965_v36 = vadd.f32 %v1935_v34, %v2414_v7  ;;  %v1285_v37 = vadd.f32 %v2031_v35, %v2414_v7  ;;  %v959_v38 = vpop.f32.mrb[39].mxu0  ;;  %v1279_v39 = vpop.f32.mrb[39].mxu1 }
 0x134   : > { %v960_v40 = vadd.f32 %v2414_v7, %v959_v38  ;;  %v1280_v41 = vadd.f32 %v2414_v7, %v1279_v39 }
 0x135   : > { %1447 = vst [vmem:[%s2421_s6 + $0x138] sm:$0xff] %v965_v36  ;;  %1511 = vst [vmem:[%s2421_s6 + $0x338] sm:$0xff] %v1285_v37 }
 0x136   : > { %1446 = vst [vmem:[%s2421_s6 + $0x130] sm:$0xff] %v960_v40  ;;  %1510 = vst [vmem:[%s2421_s6 + $0x330] sm:$0xff] %v1280_v41  ;;  %v1938_v42 = vpop.f32.mrb[40].mxu0  ;;  %v2034_v43 = vpop.f32.mrb[40].mxu1 }
 0x137   : > { %v975_v44 = vadd.f32 %v1938_v42, %v2414_v7  ;;  %v1295_v45 = vadd.f32 %v2034_v43, %v2414_v7  ;;  %v969_v46 = vpop.f32.mrb[41].mxu0  ;;  %v1289_v47 = vpop.f32.mrb[41].mxu1 }
 0x138   : > { %v970_v48 = vadd.f32 %v2414_v7, %v969_v46  ;;  %v1290_v49 = vadd.f32 %v2414_v7, %v1289_v47 }
 0x139   : > { %1449 = vst [vmem:[%s2421_s6 + $0x148] sm:$0xff] %v975_v44  ;;  %1513 = vst [vmem:[%s2421_s6 + $0x348] sm:$0xff] %v1295_v45 }
 0x13a   : > { %1448 = vst [vmem:[%s2421_s6 + $0x140] sm:$0xff] %v970_v48  ;;  %1512 = vst [vmem:[%s2421_s6 + $0x340] sm:$0xff] %v1290_v49  ;;  %v1941_v50 = vpop.f32.mrb[42].mxu0  ;;  %v2037_v51 = vpop.f32.mrb[42].mxu1 }
 0x13b   : > { %v985_v52 = vadd.f32 %v1941_v50, %v2414_v7  ;;  %v1305_v53 = vadd.f32 %v2037_v51, %v2414_v7  ;;  %v979_v54 = vpop.f32.mrb[43].mxu0  ;;  %v1299_v55 = vpop.f32.mrb[43].mxu1 }
 0x13c   : > { %v980_v56 = vadd.f32 %v2414_v7, %v979_v54  ;;  %v1300_v57 = vadd.f32 %v2414_v7, %v1299_v55 }
 0x13d   : > { %1451 = vst [vmem:[%s2421_s6 + $0x158] sm:$0xff] %v985_v52  ;;  %1515 = vst [vmem:[%s2421_s6 + $0x358] sm:$0xff] %v1305_v53 }
 0x13e   : > { %1450 = vst [vmem:[%s2421_s6 + $0x150] sm:$0xff] %v980_v56  ;;  %1514 = vst [vmem:[%s2421_s6 + $0x350] sm:$0xff] %v1300_v57  ;;  %v1944_v58 = vpop.f32.mrb[44].mxu0  ;;  %v2040_v59 = vpop.f32.mrb[44].mxu1 }
 0x13f   : > { %v995_v60 = vadd.f32 %v1944_v58, %v2414_v7  ;;  %v1315_v61 = vadd.f32 %v2040_v59, %v2414_v7  ;;  %v989_v62 = vpop.f32.mrb[45].mxu0  ;;  %v1309_v63 = vpop.f32.mrb[45].mxu1 }
 0x140   : > { %v990_v0 = vadd.f32 %v2414_v7, %v989_v62  ;;  %v1310_v1 = vadd.f32 %v2414_v7, %v1309_v63 }
 0x141   : > { %1453 = vst [vmem:[%s2421_s6 + $0x168] sm:$0xff] %v995_v60  ;;  %1517 = vst [vmem:[%s2421_s6 + $0x368] sm:$0xff] %v1315_v61 }
 0x142   : > { %1452 = vst [vmem:[%s2421_s6 + $0x160] sm:$0xff] %v990_v0  ;;  %1516 = vst [vmem:[%s2421_s6 + $0x360] sm:$0xff] %v1310_v1  ;;  %v1947_v2 = vpop.f32.mrb[46].mxu0  ;;  %v2043_v3 = vpop.f32.mrb[46].mxu1 }
 0x143   : > { %v1005_v4 = vadd.f32 %v1947_v2, %v2414_v7  ;;  %v1325_v5 = vadd.f32 %v2043_v3, %v2414_v7  ;;  %v999_v6 = vpop.f32.mrb[47].mxu0  ;;  %v1319_v8 = vpop.f32.mrb[47].mxu1 }
 0x144   : > { %v1000_v9 = vadd.f32 %v2414_v7, %v999_v6  ;;  %v1320_v10 = vadd.f32 %v2414_v7, %v1319_v8 }
 0x145   : > { %1455 = vst [vmem:[%s2421_s6 + $0x178] sm:$0xff] %v1005_v4  ;;  %1519 = vst [vmem:[%s2421_s6 + $0x378] sm:$0xff] %v1325_v5 }
 0x146   : > { %1454 = vst [vmem:[%s2421_s6 + $0x170] sm:$0xff] %v1000_v9  ;;  %1518 = vst [vmem:[%s2421_s6 + $0x370] sm:$0xff] %v1320_v10  ;;  %v1950_v11 = vpop.f32.mrb[48].mxu0  ;;  %v2046_v12 = vpop.f32.mrb[48].mxu1 }
 0x147   : > { %v1015_v13 = vadd.f32 %v1950_v11, %v2414_v7  ;;  %v1335_v14 = vadd.f32 %v2046_v12, %v2414_v7  ;;  %v1009_v15 = vpop.f32.mrb[49].mxu0  ;;  %v1329_v16 = vpop.f32.mrb[49].mxu1 }
 0x148   : > { %v1010_v17 = vadd.f32 %v2414_v7, %v1009_v15  ;;  %v1330_v18 = vadd.f32 %v2414_v7, %v1329_v16 }
 0x149   : > { %1457 = vst [vmem:[%s2421_s6 + $0x188] sm:$0xff] %v1015_v13  ;;  %1521 = vst [vmem:[%s2421_s6 + $0x388] sm:$0xff] %v1335_v14 }
 0x14a   : > { %1456 = vst [vmem:[%s2421_s6 + $0x180] sm:$0xff] %v1010_v17  ;;  %1520 = vst [vmem:[%s2421_s6 + $0x380] sm:$0xff] %v1330_v18  ;;  %v1953_v19 = vpop.f32.mrb[50].mxu0  ;;  %v2049_v20 = vpop.f32.mrb[50].mxu1 }
 0x14b   : > { %v1025_v21 = vadd.f32 %v1953_v19, %v2414_v7  ;;  %v1345_v22 = vadd.f32 %v2049_v20, %v2414_v7  ;;  %v1019_v23 = vpop.f32.mrb[51].mxu0  ;;  %v1339_v24 = vpop.f32.mrb[51].mxu1 }
 0x14c   : > { %v1020_v25 = vadd.f32 %v2414_v7, %v1019_v23  ;;  %v1340_v26 = vadd.f32 %v2414_v7, %v1339_v24 }
 0x14d   : > { %1459 = vst [vmem:[%s2421_s6 + $0x198] sm:$0xff] %v1025_v21  ;;  %1523 = vst [vmem:[%s2421_s6 + $0x398] sm:$0xff] %v1345_v22 }
 0x14e   : > { %1458 = vst [vmem:[%s2421_s6 + $0x190] sm:$0xff] %v1020_v25  ;;  %1522 = vst [vmem:[%s2421_s6 + $0x390] sm:$0xff] %v1340_v26  ;;  %v1956_v27 = vpop.f32.mrb[52].mxu0  ;;  %v2052_v28 = vpop.f32.mrb[52].mxu1 }
 0x14f   : > { %v1035_v29 = vadd.f32 %v1956_v27, %v2414_v7  ;;  %v1355_v30 = vadd.f32 %v2052_v28, %v2414_v7  ;;  %v1029_v31 = vpop.f32.mrb[53].mxu0  ;;  %v1349_v32 = vpop.f32.mrb[53].mxu1 }
 0x150   : > { %v1030_v33 = vadd.f32 %v2414_v7, %v1029_v31  ;;  %v1350_v34 = vadd.f32 %v2414_v7, %v1349_v32 }
 0x151   : > { %1461 = vst [vmem:[%s2421_s6 + $0x1a8] sm:$0xff] %v1035_v29  ;;  %1525 = vst [vmem:[%s2421_s6 + $0x3a8] sm:$0xff] %v1355_v30 }
 0x152   : > { %1460 = vst [vmem:[%s2421_s6 + $0x1a0] sm:$0xff] %v1030_v33  ;;  %1524 = vst [vmem:[%s2421_s6 + $0x3a0] sm:$0xff] %v1350_v34  ;;  %v1959_v35 = vpop.f32.mrb[54].mxu0  ;;  %v2055_v36 = vpop.f32.mrb[54].mxu1 }
 0x153   : > { %v1045_v37 = vadd.f32 %v1959_v35, %v2414_v7  ;;  %v1365_v38 = vadd.f32 %v2055_v36, %v2414_v7  ;;  %v1039_v39 = vpop.f32.mrb[55].mxu0  ;;  %v1359_v40 = vpop.f32.mrb[55].mxu1 }
 0x154   : > { %v1040_v41 = vadd.f32 %v2414_v7, %v1039_v39  ;;  %v1360_v42 = vadd.f32 %v2414_v7, %v1359_v40 }
 0x155   : > { %1463 = vst [vmem:[%s2421_s6 + $0x1b8] sm:$0xff] %v1045_v37  ;;  %1527 = vst [vmem:[%s2421_s6 + $0x3b8] sm:$0xff] %v1365_v38 }
 0x156   : > { %1462 = vst [vmem:[%s2421_s6 + $0x1b0] sm:$0xff] %v1040_v41  ;;  %1526 = vst [vmem:[%s2421_s6 + $0x3b0] sm:$0xff] %v1360_v42  ;;  %v1962_v43 = vpop.f32.mrb[56].mxu0  ;;  %v2058_v44 = vpop.f32.mrb[56].mxu1 }
 0x157   : > { %v1055_v45 = vadd.f32 %v1962_v43, %v2414_v7  ;;  %v1375_v46 = vadd.f32 %v2058_v44, %v2414_v7  ;;  %v1049_v47 = vpop.f32.mrb[57].mxu0  ;;  %v1369_v48 = vpop.f32.mrb[57].mxu1 }
 0x158   : > { %v1050_v49 = vadd.f32 %v2414_v7, %v1049_v47  ;;  %v1370_v50 = vadd.f32 %v2414_v7, %v1369_v48 }
 0x159   : > { %1465 = vst [vmem:[%s2421_s6 + $0x1c8] sm:$0xff] %v1055_v45  ;;  %1529 = vst [vmem:[%s2421_s6 + $0x3c8] sm:$0xff] %v1375_v46 }
 0x15a   : > { %1464 = vst [vmem:[%s2421_s6 + $0x1c0] sm:$0xff] %v1050_v49  ;;  %1528 = vst [vmem:[%s2421_s6 + $0x3c0] sm:$0xff] %v1370_v50  ;;  %v1965_v51 = vpop.f32.mrb[58].mxu0  ;;  %v2061_v52 = vpop.f32.mrb[58].mxu1 }
 0x15b   : > { %v1065_v53 = vadd.f32 %v1965_v51, %v2414_v7  ;;  %v1385_v54 = vadd.f32 %v2061_v52, %v2414_v7  ;;  %v1059_v55 = vpop.f32.mrb[59].mxu0  ;;  %v1379_v56 = vpop.f32.mrb[59].mxu1 }
 0x15c   : > { %v1060_v57 = vadd.f32 %v2414_v7, %v1059_v55  ;;  %v1380_v58 = vadd.f32 %v2414_v7, %v1379_v56 }
 0x15d   : > { %1467 = vst [vmem:[%s2421_s6 + $0x1d8] sm:$0xff] %v1065_v53  ;;  %1531 = vst [vmem:[%s2421_s6 + $0x3d8] sm:$0xff] %v1385_v54 }
 0x15e   : > { %1466 = vst [vmem:[%s2421_s6 + $0x1d0] sm:$0xff] %v1060_v57  ;;  %1530 = vst [vmem:[%s2421_s6 + $0x3d0] sm:$0xff] %v1380_v58  ;;  %v1968_v59 = vpop.f32.mrb[60].mxu0  ;;  %v2064_v60 = vpop.f32.mrb[60].mxu1 }
 0x15f   : > { %v1075_v61 = vadd.f32 %v1968_v59, %v2414_v7  ;;  %v1395_v62 = vadd.f32 %v2064_v60, %v2414_v7  ;;  %v1069_v63 = vpop.f32.mrb[61].mxu0  ;;  %v1389_v0 = vpop.f32.mrb[61].mxu1 }
 0x160   : > { %v1070_v1 = vadd.f32 %v2414_v7, %v1069_v63  ;;  %v1390_v2 = vadd.f32 %v2414_v7, %v1389_v0 }
 0x161   : > { %1469 = vst [vmem:[%s2421_s6 + $0x1e8] sm:$0xff] %v1075_v61  ;;  %1533 = vst [vmem:[%s2421_s6 + $0x3e8] sm:$0xff] %v1395_v62 }
 0x162   : > { %1468 = vst [vmem:[%s2421_s6 + $0x1e0] sm:$0xff] %v1070_v1  ;;  %1532 = vst [vmem:[%s2421_s6 + $0x3e0] sm:$0xff] %v1390_v2  ;;  %v1971_v3 = vpop.f32.mrb[62].mxu0  ;;  %v2067_v4 = vpop.f32.mrb[62].mxu1 }
 0x163   : > { %v1085_v5 = vadd.f32 %v1971_v3, %v2414_v7  ;;  %v1405_v6 = vadd.f32 %v2067_v4, %v2414_v7  ;;  %v1079_v8 = vpop.f32.mrb[63].mxu0  ;;  %v1399_v9 = vpop.f32.mrb[63].mxu1 }
 0x164   : > { %v1080_v10 = vadd.f32 %v2414_v7, %v1079_v8  ;;  %v1400_v11 = vadd.f32 %v2414_v7, %v1399_v9 }
 0x165   : > { %1471 = vst [vmem:[%s2421_s6 + $0x1f8] sm:$0xff] %v1085_v5  ;;  %1535 = vst [vmem:[%s2421_s6 + $0x3f8] sm:$0xff] %v1405_v6 }
 0x166   : > { %1470 = vst [vmem:[%s2421_s6 + $0x1f0] sm:$0xff] %v1080_v10  ;;  %1534 = vst [vmem:[%s2421_s6 + $0x3f0] sm:$0xff] %v1400_v11 }
 0x167 PF: > { %s13_s12 = sadd.s32 1, %s2096_s12  }
 0x168   : > { %p10_p4 = scmp.ge.s32.totalorder %s13_s12, 10  }
 0x16a   :  { %12 = sbr.rel (!%p10_p4) target bundleno = 1 (0x1), region = 62 }

// kernel: prithvi_seg_forward.25
= control target key start
LH: loop header
LB: loop body
LE: loop exit
PB: predicated region body
PF: predicated region fallthrough
CT: control target
= control target key end

     0   :  { %s2090_s12 = smov 0   ;;  %s2638_s0 = inlined_call_operand.vmem [shape: f32[8192,2], index: 0, kind: input, shape index: {}]   ;;  %s2639_s1 = inlined_call_operand.vmem [shape: f32[2,128], index: 1, kind: input, shape index: {}]   ;;  %s2640_s2 = inlined_call_operand.vmem [shape: f32[1,128], index: 2, kind: input, shape index: {}]   ;;  %s2641_s3 = inlined_call_operand.vmem [shape: f32[8192,128], index: 3, kind: output, shape index: {}]  }
   0x1 LB: > { %s1588_s13 = sadd.s32 4294967295, %s2068_s12   ;;  %p1592_p0 = scmp.ge.s32.totalorder %s2068_s12, 1  ;;  %s2068_s12 = sphi %s2090_s12, %s13_s12  }
   0x2   : > { %p138_p1 = scmp.lt.s32.totalorder %s2068_s12, 9 }
   0x4   : > { %p139_p2 = pnand %p1592_p0, %p138_p1 }
   0x5   : > { %v302_v0 = vld [vmem:[%s2639_s1] sm:$0x3] (!%p139_p2)  ;;  %vm695_vm0 = vcmask (!%p139_p2), 1041408   ;;  %s1593_s16 = sshll.u32 (!%p139_p2), %s1588_s13, 7  ;;  %vm310_vm1 = vcmask (!%p139_p2), 15360  }
   0x6   : > { %142 = sbr.rel (%p139_p2) target bundleno = 359 (0x167), region = 32  ;;  %1858 = vmatprep.subr.msk.mxu0 (!%p139_p2), %vm695_vm0, %v302_v0  ;;  %2052 = vmatprep.subr.msk.mxu1 (!%p139_p2), %vm695_vm0, %v302_v0  ;;  %p163_p3 = scmp.lt.s32.totalorder (!%p139_p2), %s1593_s16, 1023 }
   0x7   : > { %1859 = vmatpush3.msk.msra.mxu0 (!%p139_p2), %vm695_vm0, %v302_v0  ;;  %2053 = vmatpush3.msk.msra.mxu1 (!%p139_p2), %vm695_vm0, %v302_v0 }
   0xd   : > { %s2643_s16 = smov (!%p163_p3, %s1593_s16), 1023 }
   0xe   : > { %s1594_s17 = sshll.u32 %s2643_s16, 3 }
   0xf   : > { %s2109_s20 = scalar_lea.vmem %s2638_s0, %s1594_s17  ;;  %s2377_s25 = scalar_lea.vmem %s2641_s3, %s1594_s17 }
  0x10   : > { %v174_v1 = vld [vmem:[%s2109_s20] sm:$0xff]  ;;  %v175_v3 = vld [vmem:[%s2109_s20 + $0x8] sm:$0xff]  ;;  %v176_v5 = vld [vmem:[%s2109_s20 + $0x10] sm:$0xff] }
  0x11   : > { %v238_v2 = vld [vmem:[%s2109_s20 + $0x200] sm:$0xff]  ;;  %1860 = vmatprep.mubr.msk.f32.mxu0 %vm310_vm1, %v174_v1  ;;  %v239_v4 = vld [vmem:[%s2109_s20 + $0x208] sm:$0xff]  ;;  %v240_v6 = vld [vmem:[%s2109_s20 + $0x210] sm:$0xff] }
  0x12   : > { %1956 = vmatprep.mubr.msk.f32.mxu1 %vm310_vm1, %v238_v2  ;;  %1861 = vmatmul.mubr.msk.f32.vlgmr.msra.gmra.mrb[0].mxu0 %vm310_vm1, %v175_v3  ;;  %v177_v7 = vld [vmem:[%s2109_s20 + $0x18] sm:$0xff]  ;;  %v178_v9 = vld [vmem:[%s2109_s20 + $0x20] sm:$0xff]  ;;  %v179_v11 = vld [vmem:[%s2109_s20 + $0x28] sm:$0xff] }
  0x13   : > { %1957 = vmatmul.mubr.msk.f32.vlgmr.msra.gmra.mrb[0].mxu1 %vm310_vm1, %v239_v4  ;;  %1863 = vmatprep.mubr.msk.f32.mxu0 %vm310_vm1, %v176_v5  ;;  %v241_v8 = vld [vmem:[%s2109_s20 + $0x218] sm:$0xff]  ;;  %v242_v10 = vld [vmem:[%s2109_s20 + $0x220] sm:$0xff]  ;;  %v243_v12 = vld [vmem:[%s2109_s20 + $0x228] sm:$0xff] }
  0x14   : > { %1959 = vmatprep.mubr.msk.f32.mxu1 %vm310_vm1, %v240_v6  ;;  %v180_v13 = vld [vmem:[%s2109_s20 + $0x30] sm:$0xff]  ;;  %v181_v15 = vld [vmem:[%s2109_s20 + $0x38] sm:$0xff]  ;;  %v182_v17 = vld [vmem:[%s2109_s20 + $0x40] sm:$0xff] }
  0x15   : > { %v244_v14 = vld [vmem:[%s2109_s20 + $0x230] sm:$0xff]  ;;  %v245_v16 = vld [vmem:[%s2109_s20 + $0x238] sm:$0xff]  ;;  %v246_v18 = vld [vmem:[%s2109_s20 + $0x240] sm:$0xff] }
  0x16   : > { %1864 = vmatmul.mubr.msk.f32.gmra.mrb[2].mxu0 %vm310_vm1, %v177_v7  ;;  %v183_v19 = vld [vmem:[%s2109_s20 + $0x48] sm:$0xff]  ;;  %v184_v21 = vld [vmem:[%s2109_s20 + $0x50] sm:$0xff]  ;;  %v185_v23 = vld [vmem:[%s2109_s20 + $0x58] sm:$0xff] }
  0x17   : > { %1960 = vmatmul.mubr.msk.f32.gmra.mrb[2].mxu1 %vm310_vm1, %v241_v8  ;;  %1866 = vmatprep.mubr.msk.f32.mxu0 %vm310_vm1, %v178_v9  ;;  %v247_v20 = vld [vmem:[%s2109_s20 + $0x248] sm:$0xff]  ;;  %v248_v22 = vld [vmem:[%s2109_s20 + $0x250] sm:$0xff]  ;;  %v249_v24 = vld [vmem:[%s2109_s20 + $0x258] sm:$0xff] }
  0x18   : > { %1962 = vmatprep.mubr.msk.f32.mxu1 %vm310_vm1, %v242_v10  ;;  %v186_v25 = vld [vmem:[%s2109_s20 + $0x60] sm:$0xff]  ;;  %v187_v27 = vld [vmem:[%s2109_s20 + $0x68] sm:$0xff]  ;;  %v188_v29 = vld [vmem:[%s2109_s20 + $0x70] sm:$0xff] }
  0x19   : > { %v250_v26 = vld [vmem:[%s2109_s20 + $0x260] sm:$0xff]  ;;  %v251_v28 = vld [vmem:[%s2109_s20 + $0x268] sm:$0xff]  ;;  %v252_v30 = vld [vmem:[%s2109_s20 + $0x270] sm:$0xff] }
  0x1a   : > { %1867 = vmatmul.mubr.msk.f32.gmra.mrb[4].mxu0 %vm310_vm1, %v179_v11  ;;  %v189_v31 = vld [vmem:[%s2109_s20 + $0x78] sm:$0xff]  ;;  %v190_v33 = vld [vmem:[%s2109_s20 + $0x80] sm:$0xff]  ;;  %v191_v35 = vld [vmem:[%s2109_s20 + $0x88] sm:$0xff] }
  0x1b   : > { %1963 = vmatmul.mubr.msk.f32.gmra.mrb[4].mxu1 %vm310_vm1, %v243_v12  ;;  %1869 = vmatprep.mubr.msk.f32.mxu0 %vm310_vm1, %v180_v13  ;;  %v253_v32 = vld [vmem:[%s2109_s20 + $0x278] sm:$0xff]  ;;  %v254_v34 = vld [vmem:[%s2109_s20 + $0x280] sm:$0xff]  ;;  %v255_v36 = vld [vmem:[%s2109_s20 + $0x288] sm:$0xff] }
  0x1c   : > { %1965 = vmatprep.mubr.msk.f32.mxu1 %vm310_vm1, %v244_v14  ;;  %v192_v37 = vld [vmem:[%s2109_s20 + $0x90] sm:$0xff]  ;;  %v193_v39 = vld [vmem:[%s2109_s20 + $0x98] sm:$0xff]  ;;  %v194_v41 = vld [vmem:[%s2109_s20 + $0xa0] sm:$0xff] }
  0x1d   : > { %v256_v38 = vld [vmem:[%s2109_s20 + $0x290] sm:$0xff]  ;;  %v257_v40 = vld [vmem:[%s2109_s20 + $0x298] sm:$0xff]  ;;  %v258_v42 = vld [vmem:[%s2109_s20 + $0x2a0] sm:$0xff] }
  0x1e   : > { %1870 = vmatmul.mubr.msk.f32.gmra.mrb[6].mxu0 %vm310_vm1, %v181_v15  ;;  %v195_v43 = vld [vmem:[%s2109_s20 + $0xa8] sm:$0xff]  ;;  %v196_v45 = vld [vmem:[%s2109_s20 + $0xb0] sm:$0xff]  ;;  %v197_v47 = vld [vmem:[%s2109_s20 + $0xb8] sm:$0xff] }
  0x1f   : > { %1966 = vmatmul.mubr.msk.f32.gmra.mrb[6].mxu1 %vm310_vm1, %v245_v16  ;;  %1872 = vmatprep.mubr.msk.f32.mxu0 %vm310_vm1, %v182_v17  ;;  %v259_v44 = vld [vmem:[%s2109_s20 + $0x2a8] sm:$0xff]  ;;  %v260_v46 = vld [vmem:[%s2109_s20 + $0x2b0] sm:$0xff]  ;;  %v261_v48 = vld [vmem:[%s2109_s20 + $0x2b8] sm:$0xff] }
  0x20   : > { %1968 = vmatprep.mubr.msk.f32.mxu1 %vm310_vm1, %v246_v18  ;;  %v198_v49 = vld [vmem:[%s2109_s20 + $0xc0] sm:$0xff]  ;;  %v199_v51 = vld [vmem:[%s2109_s20 + $0xc8] sm:$0xff]  ;;  %v200_v53 = vld [vmem:[%s2109_s20 + $0xd0] sm:$0xff] }
  0x21   : > { %v262_v50 = vld [vmem:[%s2109_s20 + $0x2c0] sm:$0xff]  ;;  %v263_v52 = vld [vmem:[%s2109_s20 + $0x2c8] sm:$0xff]  ;;  %v264_v54 = vld [vmem:[%s2109_s20 + $0x2d0] sm:$0xff] }
  0x22   : > { %1873 = vmatmul.mubr.msk.f32.gmra.mrb[8].mxu0 %vm310_vm1, %v183_v19  ;;  %v201_v55 = vld [vmem:[%s2109_s20 + $0xd8] sm:$0xff]  ;;  %v202_v57 = vld [vmem:[%s2109_s20 + $0xe0] sm:$0xff]  ;;  %v203_v59 = vld [vmem:[%s2109_s20 + $0xe8] sm:$0xff] }
  0x23   : > { %1969 = vmatmul.mubr.msk.f32.gmra.mrb[8].mxu1 %vm310_vm1, %v247_v20  ;;  %1875 = vmatprep.mubr.msk.f32.mxu0 %vm310_vm1, %v184_v21  ;;  %v265_v56 = vld [vmem:[%s2109_s20 + $0x2d8] sm:$0xff]  ;;  %v266_v58 = vld [vmem:[%s2109_s20 + $0x2e0] sm:$0xff]  ;;  %v267_v60 = vld [vmem:[%s2109_s20 + $0x2e8] sm:$0xff] }
  0x24   : > { %1971 = vmatprep.mubr.msk.f32.mxu1 %vm310_vm1, %v248_v22  ;;  %v204_v61 = vld [vmem:[%s2109_s20 + $0xf0] sm:$0xff]  ;;  %v205_v63 = vld [vmem:[%s2109_s20 + $0xf8] sm:$0xff]  ;;  %v206_v1 = vld [vmem:[%s2109_s20 + $0x100] sm:$0xff] }
  0x25   : > { %v268_v62 = vld [vmem:[%s2109_s20 + $0x2f0] sm:$0xff]  ;;  %v269_v0 = vld [vmem:[%s2109_s20 + $0x2f8] sm:$0xff]  ;;  %v270_v2 = vld [vmem:[%s2109_s20 + $0x300] sm:$0xff] }
  0x26   : > { %1876 = vmatmul.mubr.msk.f32.gmra.mrb[10].mxu0 %vm310_vm1, %v185_v23  ;;  %v207_v3 = vld [vmem:[%s2109_s20 + $0x108] sm:$0xff]  ;;  %v208_v5 = vld [vmem:[%s2109_s20 + $0x110] sm:$0xff]  ;;  %v209_v7 = vld [vmem:[%s2109_s20 + $0x118] sm:$0xff] }
  0x27   : > { %1972 = vmatmul.mubr.msk.f32.gmra.mrb[10].mxu1 %vm310_vm1, %v249_v24  ;;  %1878 = vmatprep.mubr.msk.f32.mxu0 %vm310_vm1, %v186_v25  ;;  %v271_v4 = vld [vmem:[%s2109_s20 + $0x308] sm:$0xff]  ;;  %v272_v6 = vld [vmem:[%s2109_s20 + $0x310] sm:$0xff]  ;;  %v273_v8 = vld [vmem:[%s2109_s20 + $0x318] sm:$0xff] }
  0x28   : > { %1974 = vmatprep.mubr.msk.f32.mxu1 %vm310_vm1, %v250_v26  ;;  %v210_v9 = vld [vmem:[%s2109_s20 + $0x120] sm:$0xff]  ;;  %v211_v11 = vld [vmem:[%s2109_s20 + $0x128] sm:$0xff]  ;;  %v212_v13 = vld [vmem:[%s2109_s20 + $0x130] sm:$0xff] }
  0x29   : > { %v274_v10 = vld [vmem:[%s2109_s20 + $0x320] sm:$0xff]  ;;  %v275_v12 = vld [vmem:[%s2109_s20 + $0x328] sm:$0xff]  ;;  %v276_v14 = vld [vmem:[%s2109_s20 + $0x330] sm:$0xff] }
  0x2a   : > { %1879 = vmatmul.mubr.msk.f32.gmra.mrb[12].mxu0 %vm310_vm1, %v187_v27  ;;  %v213_v15 = vld [vmem:[%s2109_s20 + $0x138] sm:$0xff]  ;;  %v214_v17 = vld [vmem:[%s2109_s20 + $0x140] sm:$0xff]  ;;  %v215_v19 = vld [vmem:[%s2109_s20 + $0x148] sm:$0xff] }
  0x2b   : > { %1975 = vmatmul.mubr.msk.f32.gmra.mrb[12].mxu1 %vm310_vm1, %v251_v28  ;;  %1881 = vmatprep.mubr.msk.f32.mxu0 %vm310_vm1, %v188_v29  ;;  %v277_v16 = vld [vmem:[%s2109_s20 + $0x338] sm:$0xff]  ;;  %v278_v18 = vld [vmem:[%s2109_s20 + $0x340] sm:$0xff]  ;;  %v279_v20 = vld [vmem:[%s2109_s20 + $0x348] sm:$0xff] }
  0x2c   : > { %1977 = vmatprep.mubr.msk.f32.mxu1 %vm310_vm1, %v252_v30  ;;  %v216_v21 = vld [vmem:[%s2109_s20 + $0x150] sm:$0xff]  ;;  %v217_v23 = vld [vmem:[%s2109_s20 + $0x158] sm:$0xff]  ;;  %v218_v25 = vld [vmem:[%s2109_s20 + $0x160] sm:$0xff] }
  0x2d   : > { %v280_v22 = vld [vmem:[%s2109_s20 + $0x350] sm:$0xff]  ;;  %v281_v24 = vld [vmem:[%s2109_s20 + $0x358] sm:$0xff]  ;;  %v282_v26 = vld [vmem:[%s2109_s20 + $0x360] sm:$0xff] }
  0x2e   : > { %1882 = vmatmul.mubr.msk.f32.gmra.mrb[14].mxu0 %vm310_vm1, %v189_v31  ;;  %v219_v27 = vld [vmem:[%s2109_s20 + $0x168] sm:$0xff]  ;;  %v220_v29 = vld [vmem:[%s2109_s20 + $0x170] sm:$0xff]  ;;  %v221_v31 = vld [vmem:[%s2109_s20 + $0x178] sm:$0xff] }
  0x2f   : > { %1978 = vmatmul.mubr.msk.f32.gmra.mrb[14].mxu1 %vm310_vm1, %v253_v32  ;;  %1884 = vmatprep.mubr.msk.f32.mxu0 %vm310_vm1, %v190_v33  ;;  %v283_v28 = vld [vmem:[%s2109_s20 + $0x368] sm:$0xff]  ;;  %v284_v30 = vld [vmem:[%s2109_s20 + $0x370] sm:$0xff]  ;;  %v285_v32 = vld [vmem:[%s2109_s20 + $0x378] sm:$0xff] }
  0x30   : > { %1980 = vmatprep.mubr.msk.f32.mxu1 %vm310_vm1, %v254_v34  ;;  %v222_v33 = vld [vmem:[%s2109_s20 + $0x180] sm:$0xff] }
  0x31   : > { %v286_v34 = vld [vmem:[%s2109_s20 + $0x380] sm:$0xff] }
  0x32   : > { %1885 = vmatmul.mubr.msk.f32.gmra.mrb[16].mxu0 %vm310_vm1, %v191_v35  ;;  %v223_v35 = vld [vmem:[%s2109_s20 + $0x188] sm:$0xff] }
  0x33   : > { %1981 = vmatmul.mubr.msk.f32.gmra.mrb[16].mxu1 %vm310_vm1, %v255_v36  ;;  %1887 = vmatprep.mubr.msk.f32.mxu0 %vm310_vm1, %v192_v37  ;;  %v287_v36 = vld [vmem:[%s2109_s20 + $0x388] sm:$0xff]  ;;  %v224_v37 = vld [vmem:[%s2109_s20 + $0x190] sm:$0xff] }
  0x34   : > { %1983 = vmatprep.mubr.msk.f32.mxu1 %vm310_vm1, %v256_v38  ;;  %v288_v38 = vld [vmem:[%s2109_s20 + $0x390] sm:$0xff] }
  0x36   : > { %1888 = vmatmul.mubr.msk.f32.gmra.mrb[18].mxu0 %vm310_vm1, %v193_v39  ;;  %v225_v39 = vld [vmem:[%s2109_s20 + $0x198] sm:$0xff] }
  0x37   : > { %1984 = vmatmul.mubr.msk.f32.gmra.mrb[18].mxu1 %vm310_vm1, %v257_v40  ;;  %1890 = vmatprep.mubr.msk.f32.mxu0 %vm310_vm1, %v194_v41  ;;  %v289_v40 = vld [vmem:[%s2109_s20 + $0x398] sm:$0xff]  ;;  %v226_v41 = vld [vmem:[%s2109_s20 + $0x1a0] sm:$0xff] }
  0x38   : > { %1986 = vmatprep.mubr.msk.f32.mxu1 %vm310_vm1, %v258_v42  ;;  %v290_v42 = vld [vmem:[%s2109_s20 + $0x3a0] sm:$0xff] }
  0x3a   : > { %1891 = vmatmul.mubr.msk.f32.gmra.mrb[20].mxu0 %vm310_vm1, %v195_v43  ;;  %v227_v43 = vld [vmem:[%s2109_s20 + $0x1a8] sm:$0xff] }
  0x3b   : > { %1987 = vmatmul.mubr.msk.f32.gmra.mrb[20].mxu1 %vm310_vm1, %v259_v44  ;;  %1893 = vmatprep.mubr.msk.f32.mxu0 %vm310_vm1, %v196_v45  ;;  %v291_v44 = vld [vmem:[%s2109_s20 + $0x3a8] sm:$0xff]  ;;  %v228_v45 = vld [vmem:[%s2109_s20 + $0x1b0] sm:$0xff] }
  0x3c   : > { %1989 = vmatprep.mubr.msk.f32.mxu1 %vm310_vm1, %v260_v46  ;;  %v292_v46 = vld [vmem:[%s2109_s20 + $0x3b0] sm:$0xff] }
  0x3e   : > { %1894 = vmatmul.mubr.msk.f32.gmra.mrb[22].mxu0 %vm310_vm1, %v197_v47  ;;  %v229_v47 = vld [vmem:[%s2109_s20 + $0x1b8] sm:$0xff] }
  0x3f   : > { %1990 = vmatmul.mubr.msk.f32.gmra.mrb[22].mxu1 %vm310_vm1, %v261_v48  ;;  %1896 = vmatprep.mubr.msk.f32.mxu0 %vm310_vm1, %v198_v49  ;;  %v293_v48 = vld [vmem:[%s2109_s20 + $0x3b8] sm:$0xff]  ;;  %v230_v49 = vld [vmem:[%s2109_s20 + $0x1c0] sm:$0xff] }
  0x40   : > { %1992 = vmatprep.mubr.msk.f32.mxu1 %vm310_vm1, %v262_v50  ;;  %v294_v50 = vld [vmem:[%s2109_s20 + $0x3c0] sm:$0xff] }
  0x42   : > { %1897 = vmatmul.mubr.msk.f32.gmra.mrb[24].mxu0 %vm310_vm1, %v199_v51  ;;  %v231_v51 = vld [vmem:[%s2109_s20 + $0x1c8] sm:$0xff] }
  0x43   : > { %1993 = vmatmul.mubr.msk.f32.gmra.mrb[24].mxu1 %vm310_vm1, %v263_v52  ;;  %1899 = vmatprep.mubr.msk.f32.mxu0 %vm310_vm1, %v200_v53  ;;  %v295_v52 = vld [vmem:[%s2109_s20 + $0x3c8] sm:$0xff]  ;;  %v232_v53 = vld [vmem:[%s2109_s20 + $0x1d0] sm:$0xff] }
  0x44   : > { %1995 = vmatprep.mubr.msk.f32.mxu1 %vm310_vm1, %v264_v54  ;;  %v296_v54 = vld [vmem:[%s2109_s20 + $0x3d0] sm:$0xff] }
  0x46   : > { %1900 = vmatmul.mubr.msk.f32.gmra.mrb[26].mxu0 %vm310_vm1, %v201_v55  ;;  %v233_v55 = vld [vmem:[%s2109_s20 + $0x1d8] sm:$0xff] }
  0x47   : > { %1996 = vmatmul.mubr.msk.f32.gmra.mrb[26].mxu1 %vm310_vm1, %v265_v56  ;;  %1902 = vmatprep.mubr.msk.f32.mxu0 %vm310_vm1, %v202_v57  ;;  %v297_v56 = vld [vmem:[%s2109_s20 + $0x3d8] sm:$0xff]  ;;  %v234_v57 = vld [vmem:[%s2109_s20 + $0x1e0] sm:$0xff] }
  0x48   : > { %1998 = vmatprep.mubr.msk.f32.mxu1 %vm310_vm1, %v266_v58  ;;  %v298_v58 = vld [vmem:[%s2109_s20 + $0x3e0] sm:$0xff] }
  0x4a   : > { %1903 = vmatmul.mubr.msk.f32.gmra.mrb[28].mxu0 %vm310_vm1, %v203_v59  ;;  %v235_v59 = vld [vmem:[%s2109_s20 + $0x1e8] sm:$0xff] }
  0x4b   : > { %1999 = vmatmul.mubr.msk.f32.gmra.mrb[28].mxu1 %vm310_vm1, %v267_v60  ;;  %1905 = vmatprep.mubr.msk.f32.mxu0 %vm310_vm1, %v204_v61  ;;  %v299_v60 = vld [vmem:[%s2109_s20 + $0x3e8] sm:$0xff]  ;;  %v236_v61 = vld [vmem:[%s2109_s20 + $0x1f0] sm:$0xff] }
  0x4c   : > { %2001 = vmatprep.mubr.msk.f32.mxu1 %vm310_vm1, %v268_v62  ;;  %v300_v62 = vld [vmem:[%s2109_s20 + $0x3f0] sm:$0xff] }
  0x4e   : > { %1906 = vmatmul.mubr.msk.f32.gmra.mrb[30].mxu0 %vm310_vm1, %v205_v63  ;;  %v237_v63 = vld [vmem:[%s2109_s20 + $0x1f8] sm:$0xff] }
  0x4f   : > { %2002 = vmatmul.mubr.msk.f32.gmra.mrb[30].mxu1 %vm310_vm1, %v269_v0  ;;  %1908 = vmatprep.mubr.msk.f32.mxu0 %vm310_vm1, %v206_v1  ;;  %v301_v0 = vld [vmem:[%s2109_s20 + $0x3f8] sm:$0xff]  ;;  %v2370_v1 = vld [vmem:[%s2640_s2] ss:$0 sm:$0xff] }
  0x50   : > { %2004 = vmatprep.mubr.msk.f32.mxu1 %vm310_vm1, %v270_v2 }
  0x52   : > { %1909 = vmatmul.mubr.msk.f32.gmra.mrb[32].mxu0 %vm310_vm1, %v207_v3 }
  0x53   : > { %2005 = vmatmul.mubr.msk.f32.gmra.mrb[32].mxu1 %vm310_vm1, %v271_v4  ;;  %1911 = vmatprep.mubr.msk.f32.mxu0 %vm310_vm1, %v208_v5 }
  0x54   : > { %2007 = vmatprep.mubr.msk.f32.mxu1 %vm310_vm1, %v272_v6 }
  0x56   : > { %1912 = vmatmul.mubr.msk.f32.gmra.mrb[34].mxu0 %vm310_vm1, %v209_v7 }
  0x57   : > { %2008 = vmatmul.mubr.msk.f32.gmra.mrb[34].mxu1 %vm310_vm1, %v273_v8  ;;  %1914 = vmatprep.mubr.msk.f32.mxu0 %vm310_vm1, %v210_v9 }
  0x58   : > { %2010 = vmatprep.mubr.msk.f32.mxu1 %vm310_vm1, %v274_v10 }
  0x5a   : > { %1915 = vmatmul.mubr.msk.f32.gmra.mrb[36].mxu0 %vm310_vm1, %v211_v11 }
  0x5b   : > { %2011 = vmatmul.mubr.msk.f32.gmra.mrb[36].mxu1 %vm310_vm1, %v275_v12  ;;  %1917 = vmatprep.mubr.msk.f32.mxu0 %vm310_vm1, %v212_v13 }
  0x5c   : > { %2013 = vmatprep.mubr.msk.f32.mxu1 %vm310_vm1, %v276_v14 }
  0x5e   : > { %1918 = vmatmul.mubr.msk.f32.gmra.mrb[38].mxu0 %vm310_vm1, %v213_v15 }
  0x5f   : > { %2014 = vmatmul.mubr.msk.f32.gmra.mrb[38].mxu1 %vm310_vm1, %v277_v16  ;;  %1920 = vmatprep.mubr.msk.f32.mxu0 %vm310_vm1, %v214_v17 }
  0x60   : > { %2016 = vmatprep.mubr.msk.f32.mxu1 %vm310_vm1, %v278_v18 }
  0x62   : > { %1921 = vmatmul.mubr.msk.f32.gmra.mrb[40].mxu0 %vm310_vm1, %v215_v19 }
  0x63   : > { %2017 = vmatmul.mubr.msk.f32.gmra.mrb[40].mxu1 %vm310_vm1, %v279_v20  ;;  %1923 = vmatprep.mubr.msk.f32.mxu0 %vm310_vm1, %v216_v21 }
  0x64   : > { %2019 = vmatprep.mubr.msk.f32.mxu1 %vm310_vm1, %v280_v22 }
  0x66   : > { %1924 = vmatmul.mubr.msk.f32.gmra.mrb[42].mxu0 %vm310_vm1, %v217_v23 }
  0x67   : > { %2020 = vmatmul.mubr.msk.f32.gmra.mrb[42].mxu1 %vm310_vm1, %v281_v24  ;;  %1926 = vmatprep.mubr.msk.f32.mxu0 %vm310_vm1, %v218_v25 }
  0x68   : > { %2022 = vmatprep.mubr.msk.f32.mxu1 %vm310_vm1, %v282_v26 }
  0x6a   : > { %1927 = vmatmul.mubr.msk.f32.gmra.mrb[44].mxu0 %vm310_vm1, %v219_v27 }
  0x6b   : > { %2023 = vmatmul.mubr.msk.f32.gmra.mrb[44].mxu1 %vm310_vm1, %v283_v28  ;;  %1929 = vmatprep.mubr.msk.f32.mxu0 %vm310_vm1, %v220_v29 }
  0x6c   : > { %2025 = vmatprep.mubr.msk.f32.mxu1 %vm310_vm1, %v284_v30 }
  0x6e   : > { %1930 = vmatmul.mubr.msk.f32.gmra.mrb[46].mxu0 %vm310_vm1, %v221_v31 }
  0x6f   : > { %2026 = vmatmul.mubr.msk.f32.gmra.mrb[46].mxu1 %vm310_vm1, %v285_v32  ;;  %1932 = vmatprep.mubr.msk.f32.mxu0 %vm310_vm1, %v222_v33 }
  0x70   : > { %2028 = vmatprep.mubr.msk.f32.mxu1 %vm310_vm1, %v286_v34 }
  0x72   : > { %1933 = vmatmul.mubr.msk.f32.gmra.mrb[48].mxu0 %vm310_vm1, %v223_v35 }
  0x73   : > { %2029 = vmatmul.mubr.msk.f32.gmra.mrb[48].mxu1 %vm310_vm1, %v287_v36  ;;  %1935 = vmatprep.mubr.msk.f32.mxu0 %vm310_vm1, %v224_v37 }
  0x74   : > { %2031 = vmatprep.mubr.msk.f32.mxu1 %vm310_vm1, %v288_v38 }
  0x76   : > { %1936 = vmatmul.mubr.msk.f32.gmra.mrb[50].mxu0 %vm310_vm1, %v225_v39 }
  0x77   : > { %2032 = vmatmul.mubr.msk.f32.gmra.mrb[50].mxu1 %vm310_vm1, %v289_v40  ;;  %1938 = vmatprep.mubr.msk.f32.mxu0 %vm310_vm1, %v226_v41 }
  0x78   : > { %2034 = vmatprep.mubr.msk.f32.mxu1 %vm310_vm1, %v290_v42 }
  0x7a   : > { %1939 = vmatmul.mubr.msk.f32.gmra.mrb[52].mxu0 %vm310_vm1, %v227_v43 }
  0x7b   : > { %2035 = vmatmul.mubr.msk.f32.gmra.mrb[52].mxu1 %vm310_vm1, %v291_v44  ;;  %1941 = vmatprep.mubr.msk.f32.mxu0 %vm310_vm1, %v228_v45 }
  0x7c   : > { %2037 = vmatprep.mubr.msk.f32.mxu1 %vm310_vm1, %v292_v46 }
  0x7e   : > { %1942 = vmatmul.mubr.msk.f32.gmra.mrb[54].mxu0 %vm310_vm1, %v229_v47 }
  0x7f   : > { %2038 = vmatmul.mubr.msk.f32.gmra.mrb[54].mxu1 %vm310_vm1, %v293_v48  ;;  %1944 = vmatprep.mubr.msk.f32.mxu0 %vm310_vm1, %v230_v49 }
  0x80   : > { %2040 = vmatprep.mubr.msk.f32.mxu1 %vm310_vm1, %v294_v50 }
  0x82   : > { %1945 = vmatmul.mubr.msk.f32.gmra.mrb[56].mxu0 %vm310_vm1, %v231_v51 }
  0x83   : > { %2041 = vmatmul.mubr.msk.f32.gmra.mrb[56].mxu1 %vm310_vm1, %v295_v52  ;;  %1947 = vmatprep.mubr.msk.f32.mxu0 %vm310_vm1, %v232_v53 }
  0x84   : > { %2043 = vmatprep.mubr.msk.f32.mxu1 %vm310_vm1, %v296_v54 }
  0x86   : > { %1948 = vmatmul.mubr.msk.f32.gmra.mrb[58].mxu0 %vm310_vm1, %v233_v55 }
  0x87   : > { %2044 = vmatmul.mubr.msk.f32.gmra.mrb[58].mxu1 %vm310_vm1, %v297_v56  ;;  %1950 = vmatprep.mubr.msk.f32.mxu0 %vm310_vm1, %v234_v57 }
  0x88   : > { %2046 = vmatprep.mubr.msk.f32.mxu1 %vm310_vm1, %v298_v58 }
  0x8a   : > { %1951 = vmatmul.mubr.msk.f32.gmra.mrb[60].mxu0 %vm310_vm1, %v235_v59 }
  0x8b   : > { %2047 = vmatmul.mubr.msk.f32.gmra.mrb[60].mxu1 %vm310_vm1, %v299_v60  ;;  %1953 = vmatprep.mubr.msk.f32.mxu0 %vm310_vm1, %v236_v61 }
  0x8c   : > { %2049 = vmatprep.mubr.msk.f32.mxu1 %vm310_vm1, %v300_v62 }
  0x8e   : > { %1954 = vmatmul.mubr.msk.f32.gmra.mrb[62].mxu0 %vm310_vm1, %v237_v63 }
  0x8f   : > { %2050 = vmatmul.mubr.msk.f32.gmra.mrb[62].mxu1 %vm310_vm1, %v301_v0 }
  0xe5   : > { %v1862_v2 = vpop.f32.mrb[0].mxu0 }
  0xe6   : > { %v1958_v3 = vpop.f32.mrb[0].mxu1  ;;  %v771_v4 = vadd.f32 %v1862_v2, %v2370_v1  ;;  %v765_v6 = vpop.f32.mrb[1].mxu0 }
  0xe7   : > { %v1091_v5 = vadd.f32 %v1958_v3, %v2370_v1  ;;  %v1085_v7 = vpop.f32.mrb[1].mxu1  ;;  %v766_v8 = vadd.f32 %v2370_v1, %v765_v6 }
  0xe8   : > { %v1086_v9 = vadd.f32 %v2370_v1, %v1085_v7  ;;  %1405 = vst [vmem:[%s2377_s25 + $0x8] sm:$0xff] %v771_v4 }
  0xe9   : > { %1469 = vst [vmem:[%s2377_s25 + $0x208] sm:$0xff] %v1091_v5  ;;  %1404 = vst [vmem:[%s2377_s25] sm:$0xff] %v766_v8  ;;  %v1865_v10 = vpop.f32.mrb[2].mxu0 }
  0xea   : > { %1468 = vst [vmem:[%s2377_s25 + $0x200] sm:$0xff] %v1086_v9  ;;  %v1961_v11 = vpop.f32.mrb[2].mxu1  ;;  %v781_v12 = vadd.f32 %v1865_v10, %v2370_v1  ;;  %v775_v14 = vpop.f32.mrb[3].mxu0 }
  0xeb   : > { %v1101_v13 = vadd.f32 %v1961_v11, %v2370_v1  ;;  %v1095_v15 = vpop.f32.mrb[3].mxu1  ;;  %v776_v16 = vadd.f32 %v2370_v1, %v775_v14 }
  0xec   : > { %v1096_v17 = vadd.f32 %v2370_v1, %v1095_v15  ;;  %1407 = vst [vmem:[%s2377_s25 + $0x18] sm:$0xff] %v781_v12 }
  0xed   : > { %1471 = vst [vmem:[%s2377_s25 + $0x218] sm:$0xff] %v1101_v13  ;;  %1406 = vst [vmem:[%s2377_s25 + $0x10] sm:$0xff] %v776_v16  ;;  %v1868_v18 = vpop.f32.mrb[4].mxu0 }
  0xee   : > { %1470 = vst [vmem:[%s2377_s25 + $0x210] sm:$0xff] %v1096_v17  ;;  %v1964_v19 = vpop.f32.mrb[4].mxu1  ;;  %v791_v20 = vadd.f32 %v1868_v18, %v2370_v1  ;;  %v785_v22 = vpop.f32.mrb[5].mxu0 }
  0xef   : > { %v1111_v21 = vadd.f32 %v1964_v19, %v2370_v1  ;;  %v1105_v23 = vpop.f32.mrb[5].mxu1  ;;  %v786_v24 = vadd.f32 %v2370_v1, %v785_v22 }
  0xf0   : > { %v1106_v25 = vadd.f32 %v2370_v1, %v1105_v23  ;;  %1409 = vst [vmem:[%s2377_s25 + $0x28] sm:$0xff] %v791_v20 }
  0xf1   : > { %1473 = vst [vmem:[%s2377_s25 + $0x228] sm:$0xff] %v1111_v21  ;;  %1408 = vst [vmem:[%s2377_s25 + $0x20] sm:$0xff] %v786_v24  ;;  %v1871_v26 = vpop.f32.mrb[6].mxu0 }
  0xf2   : > { %1472 = vst [vmem:[%s2377_s25 + $0x220] sm:$0xff] %v1106_v25  ;;  %v1967_v27 = vpop.f32.mrb[6].mxu1  ;;  %v801_v28 = vadd.f32 %v1871_v26, %v2370_v1  ;;  %v795_v30 = vpop.f32.mrb[7].mxu0 }
  0xf3   : > { %v1121_v29 = vadd.f32 %v1967_v27, %v2370_v1  ;;  %v1115_v31 = vpop.f32.mrb[7].mxu1  ;;  %v796_v32 = vadd.f32 %v2370_v1, %v795_v30 }
  0xf4   : > { %v1116_v33 = vadd.f32 %v2370_v1, %v1115_v31  ;;  %1411 = vst [vmem:[%s2377_s25 + $0x38] sm:$0xff] %v801_v28 }
  0xf5   : > { %1475 = vst [vmem:[%s2377_s25 + $0x238] sm:$0xff] %v1121_v29  ;;  %1410 = vst [vmem:[%s2377_s25 + $0x30] sm:$0xff] %v796_v32  ;;  %v1874_v34 = vpop.f32.mrb[8].mxu0 }
  0xf6   : > { %1474 = vst [vmem:[%s2377_s25 + $0x230] sm:$0xff] %v1116_v33  ;;  %v1970_v35 = vpop.f32.mrb[8].mxu1  ;;  %v811_v36 = vadd.f32 %v1874_v34, %v2370_v1  ;;  %v805_v38 = vpop.f32.mrb[9].mxu0 }
  0xf7   : > { %v1131_v37 = vadd.f32 %v1970_v35, %v2370_v1  ;;  %v1125_v39 = vpop.f32.mrb[9].mxu1  ;;  %v806_v40 = vadd.f32 %v2370_v1, %v805_v38 }
  0xf8   : > { %v1126_v41 = vadd.f32 %v2370_v1, %v1125_v39  ;;  %1413 = vst [vmem:[%s2377_s25 + $0x48] sm:$0xff] %v811_v36 }
  0xf9   : > { %1477 = vst [vmem:[%s2377_s25 + $0x248] sm:$0xff] %v1131_v37  ;;  %1412 = vst [vmem:[%s2377_s25 + $0x40] sm:$0xff] %v806_v40  ;;  %v1877_v42 = vpop.f32.mrb[10].mxu0 }
  0xfa   : > { %1476 = vst [vmem:[%s2377_s25 + $0x240] sm:$0xff] %v1126_v41  ;;  %v1973_v43 = vpop.f32.mrb[10].mxu1  ;;  %v821_v44 = vadd.f32 %v1877_v42, %v2370_v1  ;;  %v815_v46 = vpop.f32.mrb[11].mxu0 }
  0xfb   : > { %v1141_v45 = vadd.f32 %v1973_v43, %v2370_v1  ;;  %v1135_v47 = vpop.f32.mrb[11].mxu1  ;;  %v816_v48 = vadd.f32 %v2370_v1, %v815_v46 }
  0xfc   : > { %v1136_v49 = vadd.f32 %v2370_v1, %v1135_v47  ;;  %1415 = vst [vmem:[%s2377_s25 + $0x58] sm:$0xff] %v821_v44 }
  0xfd   : > { %1479 = vst [vmem:[%s2377_s25 + $0x258] sm:$0xff] %v1141_v45  ;;  %1414 = vst [vmem:[%s2377_s25 + $0x50] sm:$0xff] %v816_v48  ;;  %v1880_v50 = vpop.f32.mrb[12].mxu0 }
  0xfe   : > { %1478 = vst [vmem:[%s2377_s25 + $0x250] sm:$0xff] %v1136_v49  ;;  %v1976_v51 = vpop.f32.mrb[12].mxu1  ;;  %v831_v52 = vadd.f32 %v1880_v50, %v2370_v1  ;;  %v825_v54 = vpop.f32.mrb[13].mxu0 }
  0xff   : > { %v1151_v53 = vadd.f32 %v1976_v51, %v2370_v1  ;;  %v1145_v55 = vpop.f32.mrb[13].mxu1  ;;  %v826_v56 = vadd.f32 %v2370_v1, %v825_v54 }
 0x100   : > { %v1146_v57 = vadd.f32 %v2370_v1, %v1145_v55  ;;  %1417 = vst [vmem:[%s2377_s25 + $0x68] sm:$0xff] %v831_v52 }
 0x101   : > { %1481 = vst [vmem:[%s2377_s25 + $0x268] sm:$0xff] %v1151_v53  ;;  %1416 = vst [vmem:[%s2377_s25 + $0x60] sm:$0xff] %v826_v56  ;;  %v1883_v58 = vpop.f32.mrb[14].mxu0 }
 0x102   : > { %1480 = vst [vmem:[%s2377_s25 + $0x260] sm:$0xff] %v1146_v57  ;;  %v1979_v59 = vpop.f32.mrb[14].mxu1  ;;  %v841_v60 = vadd.f32 %v1883_v58, %v2370_v1  ;;  %v835_v62 = vpop.f32.mrb[15].mxu0 }
 0x103   : > { %v1161_v61 = vadd.f32 %v1979_v59, %v2370_v1  ;;  %v1155_v63 = vpop.f32.mrb[15].mxu1  ;;  %v836_v0 = vadd.f32 %v2370_v1, %v835_v62 }
 0x104   : > { %v1156_v2 = vadd.f32 %v2370_v1, %v1155_v63  ;;  %1419 = vst [vmem:[%s2377_s25 + $0x78] sm:$0xff] %v841_v60 }
 0x105   : > { %1483 = vst [vmem:[%s2377_s25 + $0x278] sm:$0xff] %v1161_v61  ;;  %1418 = vst [vmem:[%s2377_s25 + $0x70] sm:$0xff] %v836_v0  ;;  %v1886_v3 = vpop.f32.mrb[16].mxu0 }
 0x106   : > { %1482 = vst [vmem:[%s2377_s25 + $0x270] sm:$0xff] %v1156_v2  ;;  %v1982_v4 = vpop.f32.mrb[16].mxu1  ;;  %v851_v5 = vadd.f32 %v1886_v3, %v2370_v1  ;;  %v845_v7 = vpop.f32.mrb[17].mxu0 }
 0x107   : > { %v1171_v6 = vadd.f32 %v1982_v4, %v2370_v1  ;;  %v1165_v8 = vpop.f32.mrb[17].mxu1  ;;  %v846_v9 = vadd.f32 %v2370_v1, %v845_v7 }
 0x108   : > { %v1166_v10 = vadd.f32 %v2370_v1, %v1165_v8  ;;  %1421 = vst [vmem:[%s2377_s25 + $0x88] sm:$0xff] %v851_v5 }
 0x109   : > { %1485 = vst [vmem:[%s2377_s25 + $0x288] sm:$0xff] %v1171_v6  ;;  %1420 = vst [vmem:[%s2377_s25 + $0x80] sm:$0xff] %v846_v9  ;;  %v1889_v11 = vpop.f32.mrb[18].mxu0 }
 0x10a   : > { %1484 = vst [vmem:[%s2377_s25 + $0x280] sm:$0xff] %v1166_v10  ;;  %v1985_v12 = vpop.f32.mrb[18].mxu1  ;;  %v861_v13 = vadd.f32 %v1889_v11, %v2370_v1  ;;  %v855_v15 = vpop.f32.mrb[19].mxu0 }
 0x10b   : > { %v1181_v14 = vadd.f32 %v1985_v12, %v2370_v1  ;;  %v1175_v16 = vpop.f32.mrb[19].mxu1  ;;  %v856_v17 = vadd.f32 %v2370_v1, %v855_v15 }
 0x10c   : > { %v1176_v18 = vadd.f32 %v2370_v1, %v1175_v16  ;;  %1423 = vst [vmem:[%s2377_s25 + $0x98] sm:$0xff] %v861_v13 }
 0x10d   : > { %1487 = vst [vmem:[%s2377_s25 + $0x298] sm:$0xff] %v1181_v14  ;;  %1422 = vst [vmem:[%s2377_s25 + $0x90] sm:$0xff] %v856_v17  ;;  %v1892_v19 = vpop.f32.mrb[20].mxu0 }
 0x10e   : > { %1486 = vst [vmem:[%s2377_s25 + $0x290] sm:$0xff] %v1176_v18  ;;  %v1988_v20 = vpop.f32.mrb[20].mxu1  ;;  %v871_v21 = vadd.f32 %v1892_v19, %v2370_v1  ;;  %v865_v23 = vpop.f32.mrb[21].mxu0 }
 0x10f   : > { %v1191_v22 = vadd.f32 %v1988_v20, %v2370_v1  ;;  %v1185_v24 = vpop.f32.mrb[21].mxu1  ;;  %v866_v25 = vadd.f32 %v2370_v1, %v865_v23 }
 0x110   : > { %v1186_v26 = vadd.f32 %v2370_v1, %v1185_v24  ;;  %1425 = vst [vmem:[%s2377_s25 + $0xa8] sm:$0xff] %v871_v21 }
 0x111   : > { %1489 = vst [vmem:[%s2377_s25 + $0x2a8] sm:$0xff] %v1191_v22  ;;  %1424 = vst [vmem:[%s2377_s25 + $0xa0] sm:$0xff] %v866_v25  ;;  %v1895_v27 = vpop.f32.mrb[22].mxu0 }
 0x112   : > { %1488 = vst [vmem:[%s2377_s25 + $0x2a0] sm:$0xff] %v1186_v26  ;;  %v1991_v28 = vpop.f32.mrb[22].mxu1  ;;  %v881_v29 = vadd.f32 %v1895_v27, %v2370_v1  ;;  %v875_v31 = vpop.f32.mrb[23].mxu0 }
 0x113   : > { %v1201_v30 = vadd.f32 %v1991_v28, %v2370_v1  ;;  %v1195_v32 = vpop.f32.mrb[23].mxu1  ;;  %v876_v33 = vadd.f32 %v2370_v1, %v875_v31 }
 0x114   : > { %v1196_v34 = vadd.f32 %v2370_v1, %v1195_v32  ;;  %1427 = vst [vmem:[%s2377_s25 + $0xb8] sm:$0xff] %v881_v29 }
 0x115   : > { %1491 = vst [vmem:[%s2377_s25 + $0x2b8] sm:$0xff] %v1201_v30  ;;  %1426 = vst [vmem:[%s2377_s25 + $0xb0] sm:$0xff] %v876_v33  ;;  %v1898_v35 = vpop.f32.mrb[24].mxu0 }
 0x116   : > { %1490 = vst [vmem:[%s2377_s25 + $0x2b0] sm:$0xff] %v1196_v34  ;;  %v1994_v36 = vpop.f32.mrb[24].mxu1  ;;  %v891_v37 = vadd.f32 %v1898_v35, %v2370_v1  ;;  %v885_v39 = vpop.f32.mrb[25].mxu0 }
 0x117   : > { %v1211_v38 = vadd.f32 %v1994_v36, %v2370_v1  ;;  %v1205_v40 = vpop.f32.mrb[25].mxu1  ;;  %v886_v41 = vadd.f32 %v2370_v1, %v885_v39 }
 0x118   : > { %v1206_v42 = vadd.f32 %v2370_v1, %v1205_v40  ;;  %1429 = vst [vmem:[%s2377_s25 + $0xc8] sm:$0xff] %v891_v37 }
 0x119   : > { %1493 = vst [vmem:[%s2377_s25 + $0x2c8] sm:$0xff] %v1211_v38  ;;  %1428 = vst [vmem:[%s2377_s25 + $0xc0] sm:$0xff] %v886_v41  ;;  %v1901_v43 = vpop.f32.mrb[26].mxu0 }
 0x11a   : > { %1492 = vst [vmem:[%s2377_s25 + $0x2c0] sm:$0xff] %v1206_v42  ;;  %v1997_v44 = vpop.f32.mrb[26].mxu1  ;;  %v901_v45 = vadd.f32 %v1901_v43, %v2370_v1  ;;  %v895_v47 = vpop.f32.mrb[27].mxu0 }
 0x11b   : > { %v1221_v46 = vadd.f32 %v1997_v44, %v2370_v1  ;;  %v1215_v48 = vpop.f32.mrb[27].mxu1  ;;  %v896_v49 = vadd.f32 %v2370_v1, %v895_v47 }
 0x11c   : > { %v1216_v50 = vadd.f32 %v2370_v1, %v1215_v48  ;;  %1431 = vst [vmem:[%s2377_s25 + $0xd8] sm:$0xff] %v901_v45 }
 0x11d   : > { %1495 = vst [vmem:[%s2377_s25 + $0x2d8] sm:$0xff] %v1221_v46  ;;  %1430 = vst [vmem:[%s2377_s25 + $0xd0] sm:$0xff] %v896_v49  ;;  %v1904_v51 = vpop.f32.mrb[28].mxu0 }
 0x11e   : > { %1494 = vst [vmem:[%s2377_s25 + $0x2d0] sm:$0xff] %v1216_v50  ;;  %v2000_v52 = vpop.f32.mrb[28].mxu1  ;;  %v911_v53 = vadd.f32 %v1904_v51, %v2370_v1  ;;  %v905_v55 = vpop.f32.mrb[29].mxu0 }
 0x11f   : > { %v1231_v54 = vadd.f32 %v2000_v52, %v2370_v1  ;;  %v1225_v56 = vpop.f32.mrb[29].mxu1  ;;  %v906_v57 = vadd.f32 %v2370_v1, %v905_v55 }
 0x120   : > { %v1226_v58 = vadd.f32 %v2370_v1, %v1225_v56  ;;  %1433 = vst [vmem:[%s2377_s25 + $0xe8] sm:$0xff] %v911_v53 }
 0x121   : > { %1497 = vst [vmem:[%s2377_s25 + $0x2e8] sm:$0xff] %v1231_v54  ;;  %1432 = vst [vmem:[%s2377_s25 + $0xe0] sm:$0xff] %v906_v57  ;;  %v1907_v59 = vpop.f32.mrb[30].mxu0 }
 0x122   : > { %1496 = vst [vmem:[%s2377_s25 + $0x2e0] sm:$0xff] %v1226_v58  ;;  %v2003_v60 = vpop.f32.mrb[30].mxu1  ;;  %v921_v61 = vadd.f32 %v1907_v59, %v2370_v1  ;;  %v915_v63 = vpop.f32.mrb[31].mxu0 }
 0x123   : > { %v1241_v62 = vadd.f32 %v2003_v60, %v2370_v1  ;;  %v1235_v0 = vpop.f32.mrb[31].mxu1  ;;  %v916_v2 = vadd.f32 %v2370_v1, %v915_v63 }
 0x124   : > { %v1236_v3 = vadd.f32 %v2370_v1, %v1235_v0  ;;  %1435 = vst [vmem:[%s2377_s25 + $0xf8] sm:$0xff] %v921_v61 }
 0x125   : > { %1499 = vst [vmem:[%s2377_s25 + $0x2f8] sm:$0xff] %v1241_v62  ;;  %1434 = vst [vmem:[%s2377_s25 + $0xf0] sm:$0xff] %v916_v2  ;;  %v1910_v4 = vpop.f32.mrb[32].mxu0 }
 0x126   : > { %1498 = vst [vmem:[%s2377_s25 + $0x2f0] sm:$0xff] %v1236_v3  ;;  %v2006_v5 = vpop.f32.mrb[32].mxu1  ;;  %v931_v6 = vadd.f32 %v1910_v4, %v2370_v1  ;;  %v925_v8 = vpop.f32.mrb[33].mxu0 }
 0x127   : > { %v1251_v7 = vadd.f32 %v2006_v5, %v2370_v1  ;;  %v1245_v9 = vpop.f32.mrb[33].mxu1  ;;  %v926_v10 = vadd.f32 %v2370_v1, %v925_v8 }
 0x128   : > { %v1246_v11 = vadd.f32 %v2370_v1, %v1245_v9  ;;  %1437 = vst [vmem:[%s2377_s25 + $0x108] sm:$0xff] %v931_v6 }
 0x129   : > { %1501 = vst [vmem:[%s2377_s25 + $0x308] sm:$0xff] %v1251_v7  ;;  %1436 = vst [vmem:[%s2377_s25 + $0x100] sm:$0xff] %v926_v10  ;;  %v1913_v12 = vpop.f32.mrb[34].mxu0 }
 0x12a   : > { %1500 = vst [vmem:[%s2377_s25 + $0x300] sm:$0xff] %v1246_v11  ;;  %v2009_v13 = vpop.f32.mrb[34].mxu1  ;;  %v941_v14 = vadd.f32 %v1913_v12, %v2370_v1  ;;  %v935_v16 = vpop.f32.mrb[35].mxu0 }
 0x12b   : > { %v1261_v15 = vadd.f32 %v2009_v13, %v2370_v1  ;;  %v1255_v17 = vpop.f32.mrb[35].mxu1  ;;  %v936_v18 = vadd.f32 %v2370_v1, %v935_v16 }
 0x12c   : > { %v1256_v19 = vadd.f32 %v2370_v1, %v1255_v17  ;;  %1439 = vst [vmem:[%s2377_s25 + $0x118] sm:$0xff] %v941_v14 }
 0x12d   : > { %1503 = vst [vmem:[%s2377_s25 + $0x318] sm:$0xff] %v1261_v15  ;;  %1438 = vst [vmem:[%s2377_s25 + $0x110] sm:$0xff] %v936_v18  ;;  %v1916_v20 = vpop.f32.mrb[36].mxu0 }
 0x12e   : > { %1502 = vst [vmem:[%s2377_s25 + $0x310] sm:$0xff] %v1256_v19  ;;  %v2012_v21 = vpop.f32.mrb[36].mxu1  ;;  %v951_v22 = vadd.f32 %v1916_v20, %v2370_v1  ;;  %v945_v24 = vpop.f32.mrb[37].mxu0 }
 0x12f   : > { %v1271_v23 = vadd.f32 %v2012_v21, %v2370_v1  ;;  %v1265_v25 = vpop.f32.mrb[37].mxu1  ;;  %v946_v26 = vadd.f32 %v2370_v1, %v945_v24 }
 0x130   : > { %v1266_v27 = vadd.f32 %v2370_v1, %v1265_v25  ;;  %1441 = vst [vmem:[%s2377_s25 + $0x128] sm:$0xff] %v951_v22 }
 0x131   : > { %1505 = vst [vmem:[%s2377_s25 + $0x328] sm:$0xff] %v1271_v23  ;;  %1440 = vst [vmem:[%s2377_s25 + $0x120] sm:$0xff] %v946_v26  ;;  %v1919_v28 = vpop.f32.mrb[38].mxu0 }
 0x132   : > { %1504 = vst [vmem:[%s2377_s25 + $0x320] sm:$0xff] %v1266_v27  ;;  %v2015_v29 = vpop.f32.mrb[38].mxu1  ;;  %v961_v30 = vadd.f32 %v1919_v28, %v2370_v1  ;;  %v955_v32 = vpop.f32.mrb[39].mxu0 }
 0x133   : > { %v1281_v31 = vadd.f32 %v2015_v29, %v2370_v1  ;;  %v1275_v33 = vpop.f32.mrb[39].mxu1  ;;  %v956_v34 = vadd.f32 %v2370_v1, %v955_v32 }
 0x134   : > { %v1276_v35 = vadd.f32 %v2370_v1, %v1275_v33  ;;  %1443 = vst [vmem:[%s2377_s25 + $0x138] sm:$0xff] %v961_v30 }
 0x135   : > { %1507 = vst [vmem:[%s2377_s25 + $0x338] sm:$0xff] %v1281_v31  ;;  %1442 = vst [vmem:[%s2377_s25 + $0x130] sm:$0xff] %v956_v34  ;;  %v1922_v36 = vpop.f32.mrb[40].mxu0 }
 0x136   : > { %1506 = vst [vmem:[%s2377_s25 + $0x330] sm:$0xff] %v1276_v35  ;;  %v2018_v37 = vpop.f32.mrb[40].mxu1  ;;  %v971_v38 = vadd.f32 %v1922_v36, %v2370_v1  ;;  %v965_v40 = vpop.f32.mrb[41].mxu0 }
 0x137   : > { %v1291_v39 = vadd.f32 %v2018_v37, %v2370_v1  ;;  %v1285_v41 = vpop.f32.mrb[41].mxu1  ;;  %v966_v42 = vadd.f32 %v2370_v1, %v965_v40 }
 0x138   : > { %v1286_v43 = vadd.f32 %v2370_v1, %v1285_v41  ;;  %1445 = vst [vmem:[%s2377_s25 + $0x148] sm:$0xff] %v971_v38 }
 0x139   : > { %1509 = vst [vmem:[%s2377_s25 + $0x348] sm:$0xff] %v1291_v39  ;;  %1444 = vst [vmem:[%s2377_s25 + $0x140] sm:$0xff] %v966_v42  ;;  %v1925_v44 = vpop.f32.mrb[42].mxu0 }
 0x13a   : > { %1508 = vst [vmem:[%s2377_s25 + $0x340] sm:$0xff] %v1286_v43  ;;  %v2021_v45 = vpop.f32.mrb[42].mxu1  ;;  %v981_v46 = vadd.f32 %v1925_v44, %v2370_v1  ;;  %v975_v48 = vpop.f32.mrb[43].mxu0 }
 0x13b   : > { %v1301_v47 = vadd.f32 %v2021_v45, %v2370_v1  ;;  %v1295_v49 = vpop.f32.mrb[43].mxu1  ;;  %v976_v50 = vadd.f32 %v2370_v1, %v975_v48 }
 0x13c   : > { %v1296_v51 = vadd.f32 %v2370_v1, %v1295_v49  ;;  %1447 = vst [vmem:[%s2377_s25 + $0x158] sm:$0xff] %v981_v46 }
 0x13d   : > { %1511 = vst [vmem:[%s2377_s25 + $0x358] sm:$0xff] %v1301_v47  ;;  %1446 = vst [vmem:[%s2377_s25 + $0x150] sm:$0xff] %v976_v50  ;;  %v1928_v52 = vpop.f32.mrb[44].mxu0 }
 0x13e   : > { %1510 = vst [vmem:[%s2377_s25 + $0x350] sm:$0xff] %v1296_v51  ;;  %v2024_v53 = vpop.f32.mrb[44].mxu1  ;;  %v991_v54 = vadd.f32 %v1928_v52, %v2370_v1  ;;  %v985_v56 = vpop.f32.mrb[45].mxu0 }
 0x13f   : > { %v1311_v55 = vadd.f32 %v2024_v53, %v2370_v1  ;;  %v1305_v57 = vpop.f32.mrb[45].mxu1  ;;  %v986_v58 = vadd.f32 %v2370_v1, %v985_v56 }
 0x140   : > { %v1306_v59 = vadd.f32 %v2370_v1, %v1305_v57  ;;  %1449 = vst [vmem:[%s2377_s25 + $0x168] sm:$0xff] %v991_v54 }
 0x141   : > { %1513 = vst [vmem:[%s2377_s25 + $0x368] sm:$0xff] %v1311_v55  ;;  %1448 = vst [vmem:[%s2377_s25 + $0x160] sm:$0xff] %v986_v58  ;;  %v1931_v60 = vpop.f32.mrb[46].mxu0 }
 0x142   : > { %1512 = vst [vmem:[%s2377_s25 + $0x360] sm:$0xff] %v1306_v59  ;;  %v2027_v61 = vpop.f32.mrb[46].mxu1  ;;  %v1001_v62 = vadd.f32 %v1931_v60, %v2370_v1  ;;  %v995_v0 = vpop.f32.mrb[47].mxu0 }
 0x143   : > { %v1321_v63 = vadd.f32 %v2027_v61, %v2370_v1  ;;  %v1315_v2 = vpop.f32.mrb[47].mxu1  ;;  %v996_v3 = vadd.f32 %v2370_v1, %v995_v0 }
 0x144   : > { %v1316_v4 = vadd.f32 %v2370_v1, %v1315_v2  ;;  %1451 = vst [vmem:[%s2377_s25 + $0x178] sm:$0xff] %v1001_v62 }
 0x145   : > { %1515 = vst [vmem:[%s2377_s25 + $0x378] sm:$0xff] %v1321_v63  ;;  %1450 = vst [vmem:[%s2377_s25 + $0x170] sm:$0xff] %v996_v3  ;;  %v1934_v5 = vpop.f32.mrb[48].mxu0 }
 0x146   : > { %1514 = vst [vmem:[%s2377_s25 + $0x370] sm:$0xff] %v1316_v4  ;;  %v2030_v6 = vpop.f32.mrb[48].mxu1  ;;  %v1011_v7 = vadd.f32 %v1934_v5, %v2370_v1  ;;  %v1005_v9 = vpop.f32.mrb[49].mxu0 }
 0x147   : > { %v1331_v8 = vadd.f32 %v2030_v6, %v2370_v1  ;;  %v1325_v10 = vpop.f32.mrb[49].mxu1  ;;  %v1006_v11 = vadd.f32 %v2370_v1, %v1005_v9 }
 0x148   : > { %v1326_v12 = vadd.f32 %v2370_v1, %v1325_v10  ;;  %1453 = vst [vmem:[%s2377_s25 + $0x188] sm:$0xff] %v1011_v7 }
 0x149   : > { %1517 = vst [vmem:[%s2377_s25 + $0x388] sm:$0xff] %v1331_v8  ;;  %1452 = vst [vmem:[%s2377_s25 + $0x180] sm:$0xff] %v1006_v11  ;;  %v1937_v13 = vpop.f32.mrb[50].mxu0 }
 0x14a   : > { %1516 = vst [vmem:[%s2377_s25 + $0x380] sm:$0xff] %v1326_v12  ;;  %v2033_v14 = vpop.f32.mrb[50].mxu1  ;;  %v1021_v15 = vadd.f32 %v1937_v13, %v2370_v1  ;;  %v1015_v17 = vpop.f32.mrb[51].mxu0 }
 0x14b   : > { %v1341_v16 = vadd.f32 %v2033_v14, %v2370_v1  ;;  %v1335_v18 = vpop.f32.mrb[51].mxu1  ;;  %v1016_v19 = vadd.f32 %v2370_v1, %v1015_v17 }
 0x14c   : > { %v1336_v20 = vadd.f32 %v2370_v1, %v1335_v18  ;;  %1455 = vst [vmem:[%s2377_s25 + $0x198] sm:$0xff] %v1021_v15 }
 0x14d   : > { %1519 = vst [vmem:[%s2377_s25 + $0x398] sm:$0xff] %v1341_v16  ;;  %1454 = vst [vmem:[%s2377_s25 + $0x190] sm:$0xff] %v1016_v19  ;;  %v1940_v21 = vpop.f32.mrb[52].mxu0 }
 0x14e   : > { %1518 = vst [vmem:[%s2377_s25 + $0x390] sm:$0xff] %v1336_v20  ;;  %v2036_v22 = vpop.f32.mrb[52].mxu1  ;;  %v1031_v23 = vadd.f32 %v1940_v21, %v2370_v1  ;;  %v1025_v25 = vpop.f32.mrb[53].mxu0 }
 0x14f   : > { %v1351_v24 = vadd.f32 %v2036_v22, %v2370_v1  ;;  %v1345_v26 = vpop.f32.mrb[53].mxu1  ;;  %v1026_v27 = vadd.f32 %v2370_v1, %v1025_v25 }
 0x150   : > { %v1346_v28 = vadd.f32 %v2370_v1, %v1345_v26  ;;  %1457 = vst [vmem:[%s2377_s25 + $0x1a8] sm:$0xff] %v1031_v23 }
 0x151   : > { %1521 = vst [vmem:[%s2377_s25 + $0x3a8] sm:$0xff] %v1351_v24  ;;  %1456 = vst [vmem:[%s2377_s25 + $0x1a0] sm:$0xff] %v1026_v27  ;;  %v1943_v29 = vpop.f32.mrb[54].mxu0 }
 0x152   : > { %1520 = vst [vmem:[%s2377_s25 + $0x3a0] sm:$0xff] %v1346_v28  ;;  %v2039_v30 = vpop.f32.mrb[54].mxu1  ;;  %v1041_v31 = vadd.f32 %v1943_v29, %v2370_v1  ;;  %v1035_v33 = vpop.f32.mrb[55].mxu0 }
 0x153   : > { %v1361_v32 = vadd.f32 %v2039_v30, %v2370_v1  ;;  %v1355_v34 = vpop.f32.mrb[55].mxu1  ;;  %v1036_v35 = vadd.f32 %v2370_v1, %v1035_v33 }
 0x154   : > { %v1356_v36 = vadd.f32 %v2370_v1, %v1355_v34  ;;  %1459 = vst [vmem:[%s2377_s25 + $0x1b8] sm:$0xff] %v1041_v31 }
 0x155   : > { %1523 = vst [vmem:[%s2377_s25 + $0x3b8] sm:$0xff] %v1361_v32  ;;  %1458 = vst [vmem:[%s2377_s25 + $0x1b0] sm:$0xff] %v1036_v35  ;;  %v1946_v37 = vpop.f32.mrb[56].mxu0 }
 0x156   : > { %1522 = vst [vmem:[%s2377_s25 + $0x3b0] sm:$0xff] %v1356_v36  ;;  %v2042_v38 = vpop.f32.mrb[56].mxu1  ;;  %v1051_v39 = vadd.f32 %v1946_v37, %v2370_v1  ;;  %v1045_v41 = vpop.f32.mrb[57].mxu0 }
 0x157   : > { %v1371_v40 = vadd.f32 %v2042_v38, %v2370_v1  ;;  %v1365_v42 = vpop.f32.mrb[57].mxu1  ;;  %v1046_v43 = vadd.f32 %v2370_v1, %v1045_v41 }
 0x158   : > { %v1366_v44 = vadd.f32 %v2370_v1, %v1365_v42  ;;  %1461 = vst [vmem:[%s2377_s25 + $0x1c8] sm:$0xff] %v1051_v39 }
 0x159   : > { %1525 = vst [vmem:[%s2377_s25 + $0x3c8] sm:$0xff] %v1371_v40  ;;  %1460 = vst [vmem:[%s2377_s25 + $0x1c0] sm:$0xff] %v1046_v43  ;;  %v1949_v45 = vpop.f32.mrb[58].mxu0 }
 0x15a   : > { %1524 = vst [vmem:[%s2377_s25 + $0x3c0] sm:$0xff] %v1366_v44  ;;  %v2045_v46 = vpop.f32.mrb[58].mxu1  ;;  %v1061_v47 = vadd.f32 %v1949_v45, %v2370_v1  ;;  %v1055_v49 = vpop.f32.mrb[59].mxu0 }
 0x15b   : > { %v1381_v48 = vadd.f32 %v2045_v46, %v2370_v1  ;;  %v1375_v50 = vpop.f32.mrb[59].mxu1  ;;  %v1056_v51 = vadd.f32 %v2370_v1, %v1055_v49 }
 0x15c   : > { %v1376_v52 = vadd.f32 %v2370_v1, %v1375_v50  ;;  %1463 = vst [vmem:[%s2377_s25 + $0x1d8] sm:$0xff] %v1061_v47 }
 0x15d   : > { %1527 = vst [vmem:[%s2377_s25 + $0x3d8] sm:$0xff] %v1381_v48  ;;  %1462 = vst [vmem:[%s2377_s25 + $0x1d0] sm:$0xff] %v1056_v51  ;;  %v1952_v53 = vpop.f32.mrb[60].mxu0 }
 0x15e   : > { %1526 = vst [vmem:[%s2377_s25 + $0x3d0] sm:$0xff] %v1376_v52  ;;  %v2048_v54 = vpop.f32.mrb[60].mxu1  ;;  %v1071_v55 = vadd.f32 %v1952_v53, %v2370_v1  ;;  %v1065_v57 = vpop.f32.mrb[61].mxu0 }
 0x15f   : > { %v1391_v56 = vadd.f32 %v2048_v54, %v2370_v1  ;;  %v1385_v58 = vpop.f32.mrb[61].mxu1  ;;  %v1066_v59 = vadd.f32 %v2370_v1, %v1065_v57 }
 0x160   : > { %v1386_v60 = vadd.f32 %v2370_v1, %v1385_v58  ;;  %1465 = vst [vmem:[%s2377_s25 + $0x1e8] sm:$0xff] %v1071_v55 }
 0x161   : > { %1529 = vst [vmem:[%s2377_s25 + $0x3e8] sm:$0xff] %v1391_v56  ;;  %1464 = vst [vmem:[%s2377_s25 + $0x1e0] sm:$0xff] %v1066_v59  ;;  %v1955_v61 = vpop.f32.mrb[62].mxu0 }
 0x162   : > { %1528 = vst [vmem:[%s2377_s25 + $0x3e0] sm:$0xff] %v1386_v60  ;;  %v2051_v62 = vpop.f32.mrb[62].mxu1  ;;  %v1081_v63 = vadd.f32 %v1955_v61, %v2370_v1  ;;  %v1075_v2 = vpop.f32.mrb[63].mxu0 }
 0x163   : > { %v1401_v0 = vadd.f32 %v2051_v62, %v2370_v1  ;;  %v1395_v3 = vpop.f32.mrb[63].mxu1  ;;  %v1076_v4 = vadd.f32 %v2370_v1, %v1075_v2 }
 0x164   : > { %v1396_v5 = vadd.f32 %v2370_v1, %v1395_v3  ;;  %1467 = vst [vmem:[%s2377_s25 + $0x1f8] sm:$0xff] %v1081_v63 }
 0x165   : > { %1531 = vst [vmem:[%s2377_s25 + $0x3f8] sm:$0xff] %v1401_v0  ;;  %1466 = vst [vmem:[%s2377_s25 + $0x1f0] sm:$0xff] %v1076_v4 }
 0x166   : > { %1530 = vst [vmem:[%s2377_s25 + $0x3f0] sm:$0xff] %v1396_v5 }
 0x167 PF: > { %s13_s12 = sadd.s32 1, %s2068_s12  }
 0x168   : > { %p10_p4 = scmp.ge.s32.totalorder %s13_s12, 10  }
 0x16a   :  { %12 = sbr.rel (!%p10_p4) target bundleno = 1 (0x1), region = 62 }

// kernel: prithvi_seg_forward.24
= control target key start
LH: loop header
LB: loop body
LE: loop exit
PB: predicated region body
PF: predicated region fallthrough
CT: control target
= control target key end

     0   :  { %s2232_s12 = smov 0   ;;  %s2786_s0 = inlined_call_operand.vmem [shape: f32[8192,18], index: 0, kind: input, shape index: {}]   ;;  %s2787_s1 = inlined_call_operand.vmem [shape: f32[18,128], index: 1, kind: input, shape index: {}]   ;;  %s2788_s2 = inlined_call_operand.vmem [shape: f32[1,128], index: 2, kind: input, shape index: {}]   ;;  %s2789_s3 = inlined_call_operand.vmem [shape: f32[8192,128], index: 3, kind: output, shape index: {}]  }
   0x1 LB: > { %s1718_s13 = sadd.s32 4294967295, %s2210_s12   ;;  %p1722_p0 = scmp.ge.s32.totalorder %s2210_s12, 1  ;;  %s2210_s12 = sphi %s2232_s12, %s13_s12  }
   0x2   : > { %p138_p1 = scmp.lt.s32.totalorder %s2210_s12, 9 }
   0x4   : > { %p139_p2 = pnand %p1722_p0, %p138_p1 }
   0x5   : > { %v302_v0 = vld [vmem:[%s2787_s1] sm:$0xff] (!%p139_p2)  ;;  %v303_v1 = vld [vmem:[%s2787_s1 + $0x8] sm:$0xff] (!%p139_p2)  ;;  %s1723_s18 = sshll.u32 (!%p139_p2), %s1718_s13, 7  ;;  %v304_v3 = vld [vmem:[%s2787_s1 + $0x10] sm:$0x3] (!%p139_p2)  ;;  %vm697_vm0 = vcmask (!%p139_p2), 1041408  }
   0x6   : > { %142 = sbr.rel (%p139_p2) target bundleno = 361 (0x169), region = 32  ;;  %v2188_v2 = vpack.c.bf16 (!%p139_p2), %v303_v1, %v302_v0  ;;  %p163_p3 = scmp.lt.s32.totalorder (!%p139_p2), %s1723_s18, 1023  ;;  %vm312_vm1 = vcmask (!%p139_p2), 146432  }
   0x8   : > { %2189 = vmatprep.subr.bf16.mxu0 (!%p139_p2), %v2188_v2  ;;  %2192 = vmatprep.subr.bf16.mxu1 (!%p139_p2), %v2188_v2 }
   0x9   : > { %2191 = vmatpush3.bf16.msra.mxu0 (!%p139_p2), %v2188_v2  ;;  %2194 = vmatpush3.bf16.msra.mxu1 (!%p139_p2), %v2188_v2 }
   0xa   : > { %1994 = vmatprep.subr.msk.mxu0 (!%p139_p2), %vm697_vm0, %v304_v3  ;;  %2193 = vmatprep.subr.msk.mxu1 (!%p139_p2), %vm697_vm0, %v304_v3 }
   0xd   : > { %s2791_s18 = smov (!%p163_p3, %s1723_s18), 1023  ;;  %1995 = vmatpush3.msk.msra.mxu0 %vm697_vm0, %v304_v3  ;;  %2195 = vmatpush3.msk.msra.mxu1 %vm697_vm0, %v304_v3 }
   0xe   : > { %s1724_s21 = sshll.u32 %s2791_s18, 3 }
   0xf   : > { %s2257_s24 = scalar_lea.vmem %s2786_s0, %s1724_s21  ;;  %s2527_s29 = scalar_lea.vmem %s2789_s3, %s1724_s21 }
  0x10   : > { %v174_v4 = vld [vmem:[%s2257_s24] sm:$0xff]  ;;  %v175_v6 = vld [vmem:[%s2257_s24 + $0x8] sm:$0xff]  ;;  %v176_v8 = vld [vmem:[%s2257_s24 + $0x10] sm:$0xff] }
  0x11   : > { %v238_v5 = vld [vmem:[%s2257_s24 + $0x200] sm:$0xff]  ;;  %v239_v7 = vld [vmem:[%s2257_s24 + $0x208] sm:$0xff]  ;;  %v240_v9 = vld [vmem:[%s2257_s24 + $0x210] sm:$0xff]  ;;  %1996 = vmatprep.mubr.msk.f32.mxu0 %vm312_vm1, %v174_v4 }
  0x12   : > { %2092 = vmatprep.mubr.msk.f32.mxu1 %vm312_vm1, %v238_v5  ;;  %1997 = vmatmul.mubr.msk.f32.vlgmr.msra.gmra.mrb[0].mxu0 %vm312_vm1, %v175_v6  ;;  %v177_v10 = vld [vmem:[%s2257_s24 + $0x18] sm:$0xff]  ;;  %v178_v12 = vld [vmem:[%s2257_s24 + $0x20] sm:$0xff]  ;;  %v179_v14 = vld [vmem:[%s2257_s24 + $0x28] sm:$0xff] }
  0x13   : > { %2093 = vmatmul.mubr.msk.f32.vlgmr.msra.gmra.mrb[0].mxu1 %vm312_vm1, %v239_v7  ;;  %1999 = vmatprep.mubr.msk.f32.mxu0 %vm312_vm1, %v176_v8  ;;  %v241_v11 = vld [vmem:[%s2257_s24 + $0x218] sm:$0xff]  ;;  %v242_v13 = vld [vmem:[%s2257_s24 + $0x220] sm:$0xff]  ;;  %v243_v15 = vld [vmem:[%s2257_s24 + $0x228] sm:$0xff] }
  0x14   : > { %2095 = vmatprep.mubr.msk.f32.mxu1 %vm312_vm1, %v240_v9  ;;  %v180_v16 = vld [vmem:[%s2257_s24 + $0x30] sm:$0xff]  ;;  %v181_v18 = vld [vmem:[%s2257_s24 + $0x38] sm:$0xff]  ;;  %v182_v20 = vld [vmem:[%s2257_s24 + $0x40] sm:$0xff] }
  0x15   : > { %v244_v17 = vld [vmem:[%s2257_s24 + $0x230] sm:$0xff]  ;;  %v245_v19 = vld [vmem:[%s2257_s24 + $0x238] sm:$0xff]  ;;  %v246_v21 = vld [vmem:[%s2257_s24 + $0x240] sm:$0xff] }
  0x16   : > { %2000 = vmatmul.mubr.msk.f32.gmra.mrb[2].mxu0 %vm312_vm1, %v177_v10  ;;  %v183_v22 = vld [vmem:[%s2257_s24 + $0x48] sm:$0xff]  ;;  %v184_v24 = vld [vmem:[%s2257_s24 + $0x50] sm:$0xff]  ;;  %v185_v26 = vld [vmem:[%s2257_s24 + $0x58] sm:$0xff] }
  0x17   : > { %2096 = vmatmul.mubr.msk.f32.gmra.mrb[2].mxu1 %vm312_vm1, %v241_v11  ;;  %2002 = vmatprep.mubr.msk.f32.mxu0 %vm312_vm1, %v178_v12  ;;  %v247_v23 = vld [vmem:[%s2257_s24 + $0x248] sm:$0xff]  ;;  %v248_v25 = vld [vmem:[%s2257_s24 + $0x250] sm:$0xff]  ;;  %v249_v27 = vld [vmem:[%s2257_s24 + $0x258] sm:$0xff] }
  0x18   : > { %2098 = vmatprep.mubr.msk.f32.mxu1 %vm312_vm1, %v242_v13  ;;  %v186_v28 = vld [vmem:[%s2257_s24 + $0x60] sm:$0xff]  ;;  %v187_v30 = vld [vmem:[%s2257_s24 + $0x68] sm:$0xff]  ;;  %v188_v32 = vld [vmem:[%s2257_s24 + $0x70] sm:$0xff] }
  0x19   : > { %v250_v29 = vld [vmem:[%s2257_s24 + $0x260] sm:$0xff]  ;;  %v251_v31 = vld [vmem:[%s2257_s24 + $0x268] sm:$0xff]  ;;  %v252_v33 = vld [vmem:[%s2257_s24 + $0x270] sm:$0xff] }
  0x1a   : > { %2003 = vmatmul.mubr.msk.f32.gmra.mrb[4].mxu0 %vm312_vm1, %v179_v14  ;;  %v189_v34 = vld [vmem:[%s2257_s24 + $0x78] sm:$0xff]  ;;  %v190_v36 = vld [vmem:[%s2257_s24 + $0x80] sm:$0xff]  ;;  %v191_v38 = vld [vmem:[%s2257_s24 + $0x88] sm:$0xff] }
  0x1b   : > { %2099 = vmatmul.mubr.msk.f32.gmra.mrb[4].mxu1 %vm312_vm1, %v243_v15  ;;  %2005 = vmatprep.mubr.msk.f32.mxu0 %vm312_vm1, %v180_v16  ;;  %v253_v35 = vld [vmem:[%s2257_s24 + $0x278] sm:$0xff]  ;;  %v254_v37 = vld [vmem:[%s2257_s24 + $0x280] sm:$0xff]  ;;  %v255_v39 = vld [vmem:[%s2257_s24 + $0x288] sm:$0xff] }
  0x1c   : > { %2101 = vmatprep.mubr.msk.f32.mxu1 %vm312_vm1, %v244_v17  ;;  %v192_v40 = vld [vmem:[%s2257_s24 + $0x90] sm:$0xff]  ;;  %v193_v42 = vld [vmem:[%s2257_s24 + $0x98] sm:$0xff]  ;;  %v194_v44 = vld [vmem:[%s2257_s24 + $0xa0] sm:$0xff] }
  0x1d   : > { %v256_v41 = vld [vmem:[%s2257_s24 + $0x290] sm:$0xff]  ;;  %v257_v43 = vld [vmem:[%s2257_s24 + $0x298] sm:$0xff]  ;;  %v258_v45 = vld [vmem:[%s2257_s24 + $0x2a0] sm:$0xff] }
  0x1e   : > { %2006 = vmatmul.mubr.msk.f32.gmra.mrb[6].mxu0 %vm312_vm1, %v181_v18  ;;  %v195_v46 = vld [vmem:[%s2257_s24 + $0xa8] sm:$0xff]  ;;  %v196_v48 = vld [vmem:[%s2257_s24 + $0xb0] sm:$0xff]  ;;  %v197_v50 = vld [vmem:[%s2257_s24 + $0xb8] sm:$0xff] }
  0x1f   : > { %2102 = vmatmul.mubr.msk.f32.gmra.mrb[6].mxu1 %vm312_vm1, %v245_v19  ;;  %2008 = vmatprep.mubr.msk.f32.mxu0 %vm312_vm1, %v182_v20  ;;  %v259_v47 = vld [vmem:[%s2257_s24 + $0x2a8] sm:$0xff]  ;;  %v260_v49 = vld [vmem:[%s2257_s24 + $0x2b0] sm:$0xff]  ;;  %v261_v51 = vld [vmem:[%s2257_s24 + $0x2b8] sm:$0xff] }
  0x20   : > { %2104 = vmatprep.mubr.msk.f32.mxu1 %vm312_vm1, %v246_v21  ;;  %v198_v52 = vld [vmem:[%s2257_s24 + $0xc0] sm:$0xff]  ;;  %v199_v54 = vld [vmem:[%s2257_s24 + $0xc8] sm:$0xff]  ;;  %v200_v56 = vld [vmem:[%s2257_s24 + $0xd0] sm:$0xff] }
  0x21   : > { %v262_v53 = vld [vmem:[%s2257_s24 + $0x2c0] sm:$0xff]  ;;  %v263_v55 = vld [vmem:[%s2257_s24 + $0x2c8] sm:$0xff]  ;;  %v264_v57 = vld [vmem:[%s2257_s24 + $0x2d0] sm:$0xff] }
  0x22   : > { %2009 = vmatmul.mubr.msk.f32.gmra.mrb[8].mxu0 %vm312_vm1, %v183_v22  ;;  %v201_v58 = vld [vmem:[%s2257_s24 + $0xd8] sm:$0xff]  ;;  %v202_v60 = vld [vmem:[%s2257_s24 + $0xe0] sm:$0xff]  ;;  %v203_v62 = vld [vmem:[%s2257_s24 + $0xe8] sm:$0xff] }
  0x23   : > { %2105 = vmatmul.mubr.msk.f32.gmra.mrb[8].mxu1 %vm312_vm1, %v247_v23  ;;  %2011 = vmatprep.mubr.msk.f32.mxu0 %vm312_vm1, %v184_v24  ;;  %v265_v59 = vld [vmem:[%s2257_s24 + $0x2d8] sm:$0xff]  ;;  %v266_v61 = vld [vmem:[%s2257_s24 + $0x2e0] sm:$0xff]  ;;  %v267_v63 = vld [vmem:[%s2257_s24 + $0x2e8] sm:$0xff] }
  0x24   : > { %2107 = vmatprep.mubr.msk.f32.mxu1 %vm312_vm1, %v248_v25  ;;  %v204_v0 = vld [vmem:[%s2257_s24 + $0xf0] sm:$0xff]  ;;  %v205_v2 = vld [vmem:[%s2257_s24 + $0xf8] sm:$0xff]  ;;  %v206_v4 = vld [vmem:[%s2257_s24 + $0x100] sm:$0xff] }
  0x25   : > { %v268_v1 = vld [vmem:[%s2257_s24 + $0x2f0] sm:$0xff]  ;;  %v269_v3 = vld [vmem:[%s2257_s24 + $0x2f8] sm:$0xff]  ;;  %v270_v5 = vld [vmem:[%s2257_s24 + $0x300] sm:$0xff] }
  0x26   : > { %2012 = vmatmul.mubr.msk.f32.gmra.mrb[10].mxu0 %vm312_vm1, %v185_v26  ;;  %v207_v6 = vld [vmem:[%s2257_s24 + $0x108] sm:$0xff]  ;;  %v208_v8 = vld [vmem:[%s2257_s24 + $0x110] sm:$0xff]  ;;  %v209_v10 = vld [vmem:[%s2257_s24 + $0x118] sm:$0xff] }
  0x27   : > { %2108 = vmatmul.mubr.msk.f32.gmra.mrb[10].mxu1 %vm312_vm1, %v249_v27  ;;  %2014 = vmatprep.mubr.msk.f32.mxu0 %vm312_vm1, %v186_v28  ;;  %v271_v7 = vld [vmem:[%s2257_s24 + $0x308] sm:$0xff]  ;;  %v272_v9 = vld [vmem:[%s2257_s24 + $0x310] sm:$0xff]  ;;  %v273_v11 = vld [vmem:[%s2257_s24 + $0x318] sm:$0xff] }
  0x28   : > { %2110 = vmatprep.mubr.msk.f32.mxu1 %vm312_vm1, %v250_v29  ;;  %v210_v12 = vld [vmem:[%s2257_s24 + $0x120] sm:$0xff]  ;;  %v211_v14 = vld [vmem:[%s2257_s24 + $0x128] sm:$0xff]  ;;  %v212_v16 = vld [vmem:[%s2257_s24 + $0x130] sm:$0xff] }
  0x29   : > { %v274_v13 = vld [vmem:[%s2257_s24 + $0x320] sm:$0xff]  ;;  %v275_v15 = vld [vmem:[%s2257_s24 + $0x328] sm:$0xff]  ;;  %v276_v17 = vld [vmem:[%s2257_s24 + $0x330] sm:$0xff] }
  0x2a   : > { %2015 = vmatmul.mubr.msk.f32.gmra.mrb[12].mxu0 %vm312_vm1, %v187_v30  ;;  %v213_v18 = vld [vmem:[%s2257_s24 + $0x138] sm:$0xff]  ;;  %v214_v20 = vld [vmem:[%s2257_s24 + $0x140] sm:$0xff]  ;;  %v215_v22 = vld [vmem:[%s2257_s24 + $0x148] sm:$0xff] }
  0x2b   : > { %2111 = vmatmul.mubr.msk.f32.gmra.mrb[12].mxu1 %vm312_vm1, %v251_v31  ;;  %2017 = vmatprep.mubr.msk.f32.mxu0 %vm312_vm1, %v188_v32  ;;  %v277_v19 = vld [vmem:[%s2257_s24 + $0x338] sm:$0xff]  ;;  %v278_v21 = vld [vmem:[%s2257_s24 + $0x340] sm:$0xff]  ;;  %v279_v23 = vld [vmem:[%s2257_s24 + $0x348] sm:$0xff] }
  0x2c   : > { %2113 = vmatprep.mubr.msk.f32.mxu1 %vm312_vm1, %v252_v33  ;;  %v216_v24 = vld [vmem:[%s2257_s24 + $0x150] sm:$0xff]  ;;  %v217_v26 = vld [vmem:[%s2257_s24 + $0x158] sm:$0xff]  ;;  %v218_v28 = vld [vmem:[%s2257_s24 + $0x160] sm:$0xff] }
  0x2d   : > { %v280_v25 = vld [vmem:[%s2257_s24 + $0x350] sm:$0xff]  ;;  %v281_v27 = vld [vmem:[%s2257_s24 + $0x358] sm:$0xff]  ;;  %v282_v29 = vld [vmem:[%s2257_s24 + $0x360] sm:$0xff] }
  0x2e   : > { %2018 = vmatmul.mubr.msk.f32.gmra.mrb[14].mxu0 %vm312_vm1, %v189_v34  ;;  %v219_v30 = vld [vmem:[%s2257_s24 + $0x168] sm:$0xff]  ;;  %v220_v32 = vld [vmem:[%s2257_s24 + $0x170] sm:$0xff]  ;;  %v221_v34 = vld [vmem:[%s2257_s24 + $0x178] sm:$0xff] }
  0x2f   : > { %2114 = vmatmul.mubr.msk.f32.gmra.mrb[14].mxu1 %vm312_vm1, %v253_v35  ;;  %2020 = vmatprep.mubr.msk.f32.mxu0 %vm312_vm1, %v190_v36  ;;  %v283_v31 = vld [vmem:[%s2257_s24 + $0x368] sm:$0xff]  ;;  %v284_v33 = vld [vmem:[%s2257_s24 + $0x370] sm:$0xff]  ;;  %v285_v35 = vld [vmem:[%s2257_s24 + $0x378] sm:$0xff] }
  0x30   : > { %2116 = vmatprep.mubr.msk.f32.mxu1 %vm312_vm1, %v254_v37  ;;  %v222_v36 = vld [vmem:[%s2257_s24 + $0x180] sm:$0xff] }
  0x31   : > { %v286_v37 = vld [vmem:[%s2257_s24 + $0x380] sm:$0xff] }
  0x32   : > { %2021 = vmatmul.mubr.msk.f32.gmra.mrb[16].mxu0 %vm312_vm1, %v191_v38  ;;  %v223_v38 = vld [vmem:[%s2257_s24 + $0x188] sm:$0xff] }
  0x33   : > { %2117 = vmatmul.mubr.msk.f32.gmra.mrb[16].mxu1 %vm312_vm1, %v255_v39  ;;  %2023 = vmatprep.mubr.msk.f32.mxu0 %vm312_vm1, %v192_v40  ;;  %v287_v39 = vld [vmem:[%s2257_s24 + $0x388] sm:$0xff]  ;;  %v224_v40 = vld [vmem:[%s2257_s24 + $0x190] sm:$0xff] }
  0x34   : > { %2119 = vmatprep.mubr.msk.f32.mxu1 %vm312_vm1, %v256_v41  ;;  %v288_v41 = vld [vmem:[%s2257_s24 + $0x390] sm:$0xff] }
  0x36   : > { %2024 = vmatmul.mubr.msk.f32.gmra.mrb[18].mxu0 %vm312_vm1, %v193_v42  ;;  %v225_v42 = vld [vmem:[%s2257_s24 + $0x198] sm:$0xff] }
  0x37   : > { %2120 = vmatmul.mubr.msk.f32.gmra.mrb[18].mxu1 %vm312_vm1, %v257_v43  ;;  %2026 = vmatprep.mubr.msk.f32.mxu0 %vm312_vm1, %v194_v44  ;;  %v289_v43 = vld [vmem:[%s2257_s24 + $0x398] sm:$0xff]  ;;  %v226_v44 = vld [vmem:[%s2257_s24 + $0x1a0] sm:$0xff] }
  0x38   : > { %2122 = vmatprep.mubr.msk.f32.mxu1 %vm312_vm1, %v258_v45  ;;  %v290_v45 = vld [vmem:[%s2257_s24 + $0x3a0] sm:$0xff] }
  0x3a   : > { %2027 = vmatmul.mubr.msk.f32.gmra.mrb[20].mxu0 %vm312_vm1, %v195_v46  ;;  %v227_v46 = vld [vmem:[%s2257_s24 + $0x1a8] sm:$0xff] }
  0x3b   : > { %2123 = vmatmul.mubr.msk.f32.gmra.mrb[20].mxu1 %vm312_vm1, %v259_v47  ;;  %2029 = vmatprep.mubr.msk.f32.mxu0 %vm312_vm1, %v196_v48  ;;  %v291_v47 = vld [vmem:[%s2257_s24 + $0x3a8] sm:$0xff]  ;;  %v228_v48 = vld [vmem:[%s2257_s24 + $0x1b0] sm:$0xff] }
  0x3c   : > { %2125 = vmatprep.mubr.msk.f32.mxu1 %vm312_vm1, %v260_v49  ;;  %v292_v49 = vld [vmem:[%s2257_s24 + $0x3b0] sm:$0xff] }
  0x3e   : > { %2030 = vmatmul.mubr.msk.f32.gmra.mrb[22].mxu0 %vm312_vm1, %v197_v50  ;;  %v229_v50 = vld [vmem:[%s2257_s24 + $0x1b8] sm:$0xff] }
  0x3f   : > { %2126 = vmatmul.mubr.msk.f32.gmra.mrb[22].mxu1 %vm312_vm1, %v261_v51  ;;  %2032 = vmatprep.mubr.msk.f32.mxu0 %vm312_vm1, %v198_v52  ;;  %v293_v51 = vld [vmem:[%s2257_s24 + $0x3b8] sm:$0xff]  ;;  %v230_v52 = vld [vmem:[%s2257_s24 + $0x1c0] sm:$0xff] }
  0x40   : > { %2128 = vmatprep.mubr.msk.f32.mxu1 %vm312_vm1, %v262_v53  ;;  %v294_v53 = vld [vmem:[%s2257_s24 + $0x3c0] sm:$0xff] }
  0x42   : > { %2033 = vmatmul.mubr.msk.f32.gmra.mrb[24].mxu0 %vm312_vm1, %v199_v54  ;;  %v231_v54 = vld [vmem:[%s2257_s24 + $0x1c8] sm:$0xff] }
  0x43   : > { %2129 = vmatmul.mubr.msk.f32.gmra.mrb[24].mxu1 %vm312_vm1, %v263_v55  ;;  %2035 = vmatprep.mubr.msk.f32.mxu0 %vm312_vm1, %v200_v56  ;;  %v295_v55 = vld [vmem:[%s2257_s24 + $0x3c8] sm:$0xff]  ;;  %v232_v56 = vld [vmem:[%s2257_s24 + $0x1d0] sm:$0xff] }
  0x44   : > { %2131 = vmatprep.mubr.msk.f32.mxu1 %vm312_vm1, %v264_v57  ;;  %v296_v57 = vld [vmem:[%s2257_s24 + $0x3d0] sm:$0xff] }
  0x46   : > { %2036 = vmatmul.mubr.msk.f32.gmra.mrb[26].mxu0 %vm312_vm1, %v201_v58  ;;  %v233_v58 = vld [vmem:[%s2257_s24 + $0x1d8] sm:$0xff] }
  0x47   : > { %2132 = vmatmul.mubr.msk.f32.gmra.mrb[26].mxu1 %vm312_vm1, %v265_v59  ;;  %2038 = vmatprep.mubr.msk.f32.mxu0 %vm312_vm1, %v202_v60  ;;  %v297_v59 = vld [vmem:[%s2257_s24 + $0x3d8] sm:$0xff]  ;;  %v234_v60 = vld [vmem:[%s2257_s24 + $0x1e0] sm:$0xff] }
  0x48   : > { %2134 = vmatprep.mubr.msk.f32.mxu1 %vm312_vm1, %v266_v61  ;;  %v298_v61 = vld [vmem:[%s2257_s24 + $0x3e0] sm:$0xff] }
  0x4a   : > { %2039 = vmatmul.mubr.msk.f32.gmra.mrb[28].mxu0 %vm312_vm1, %v203_v62  ;;  %v235_v62 = vld [vmem:[%s2257_s24 + $0x1e8] sm:$0xff] }
  0x4b   : > { %2135 = vmatmul.mubr.msk.f32.gmra.mrb[28].mxu1 %vm312_vm1, %v267_v63  ;;  %2041 = vmatprep.mubr.msk.f32.mxu0 %vm312_vm1, %v204_v0  ;;  %v299_v63 = vld [vmem:[%s2257_s24 + $0x3e8] sm:$0xff]  ;;  %v236_v0 = vld [vmem:[%s2257_s24 + $0x1f0] sm:$0xff] }
  0x4c   : > { %2137 = vmatprep.mubr.msk.f32.mxu1 %vm312_vm1, %v268_v1  ;;  %v300_v1 = vld [vmem:[%s2257_s24 + $0x3f0] sm:$0xff] }
  0x4e   : > { %2042 = vmatmul.mubr.msk.f32.gmra.mrb[30].mxu0 %vm312_vm1, %v205_v2  ;;  %v237_v2 = vld [vmem:[%s2257_s24 + $0x1f8] sm:$0xff] }
  0x4f   : > { %2138 = vmatmul.mubr.msk.f32.gmra.mrb[30].mxu1 %vm312_vm1, %v269_v3  ;;  %2044 = vmatprep.mubr.msk.f32.mxu0 %vm312_vm1, %v206_v4  ;;  %v301_v3 = vld [vmem:[%s2257_s24 + $0x3f8] sm:$0xff]  ;;  %v2518_v4 = vld [vmem:[%s2788_s2] ss:$0 sm:$0xff] }
  0x50   : > { %2140 = vmatprep.mubr.msk.f32.mxu1 %vm312_vm1, %v270_v5 }
  0x52   : > { %2045 = vmatmul.mubr.msk.f32.gmra.mrb[32].mxu0 %vm312_vm1, %v207_v6 }
  0x53   : > { %2141 = vmatmul.mubr.msk.f32.gmra.mrb[32].mxu1 %vm312_vm1, %v271_v7  ;;  %2047 = vmatprep.mubr.msk.f32.mxu0 %vm312_vm1, %v208_v8 }
  0x54   : > { %2143 = vmatprep.mubr.msk.f32.mxu1 %vm312_vm1, %v272_v9 }
  0x56   : > { %2048 = vmatmul.mubr.msk.f32.gmra.mrb[34].mxu0 %vm312_vm1, %v209_v10 }
  0x57   : > { %2144 = vmatmul.mubr.msk.f32.gmra.mrb[34].mxu1 %vm312_vm1, %v273_v11  ;;  %2050 = vmatprep.mubr.msk.f32.mxu0 %vm312_vm1, %v210_v12 }
  0x58   : > { %2146 = vmatprep.mubr.msk.f32.mxu1 %vm312_vm1, %v274_v13 }
  0x5a   : > { %2051 = vmatmul.mubr.msk.f32.gmra.mrb[36].mxu0 %vm312_vm1, %v211_v14 }
  0x5b   : > { %2147 = vmatmul.mubr.msk.f32.gmra.mrb[36].mxu1 %vm312_vm1, %v275_v15  ;;  %2053 = vmatprep.mubr.msk.f32.mxu0 %vm312_vm1, %v212_v16 }
  0x5c   : > { %2149 = vmatprep.mubr.msk.f32.mxu1 %vm312_vm1, %v276_v17 }
  0x5e   : > { %2054 = vmatmul.mubr.msk.f32.gmra.mrb[38].mxu0 %vm312_vm1, %v213_v18 }
  0x5f   : > { %2150 = vmatmul.mubr.msk.f32.gmra.mrb[38].mxu1 %vm312_vm1, %v277_v19  ;;  %2056 = vmatprep.mubr.msk.f32.mxu0 %vm312_vm1, %v214_v20 }
  0x60   : > { %2152 = vmatprep.mubr.msk.f32.mxu1 %vm312_vm1, %v278_v21 }
  0x62   : > { %2057 = vmatmul.mubr.msk.f32.gmra.mrb[40].mxu0 %vm312_vm1, %v215_v22 }
  0x63   : > { %2153 = vmatmul.mubr.msk.f32.gmra.mrb[40].mxu1 %vm312_vm1, %v279_v23  ;;  %2059 = vmatprep.mubr.msk.f32.mxu0 %vm312_vm1, %v216_v24 }
  0x64   : > { %2155 = vmatprep.mubr.msk.f32.mxu1 %vm312_vm1, %v280_v25 }
  0x66   : > { %2060 = vmatmul.mubr.msk.f32.gmra.mrb[42].mxu0 %vm312_vm1, %v217_v26 }
  0x67   : > { %2156 = vmatmul.mubr.msk.f32.gmra.mrb[42].mxu1 %vm312_vm1, %v281_v27  ;;  %2062 = vmatprep.mubr.msk.f32.mxu0 %vm312_vm1, %v218_v28 }
  0x68   : > { %2158 = vmatprep.mubr.msk.f32.mxu1 %vm312_vm1, %v282_v29 }
  0x6a   : > { %2063 = vmatmul.mubr.msk.f32.gmra.mrb[44].mxu0 %vm312_vm1, %v219_v30 }
  0x6b   : > { %2159 = vmatmul.mubr.msk.f32.gmra.mrb[44].mxu1 %vm312_vm1, %v283_v31  ;;  %2065 = vmatprep.mubr.msk.f32.mxu0 %vm312_vm1, %v220_v32 }
  0x6c   : > { %2161 = vmatprep.mubr.msk.f32.mxu1 %vm312_vm1, %v284_v33 }
  0x6e   : > { %2066 = vmatmul.mubr.msk.f32.gmra.mrb[46].mxu0 %vm312_vm1, %v221_v34 }
  0x6f   : > { %2162 = vmatmul.mubr.msk.f32.gmra.mrb[46].mxu1 %vm312_vm1, %v285_v35  ;;  %2068 = vmatprep.mubr.msk.f32.mxu0 %vm312_vm1, %v222_v36 }
  0x70   : > { %2164 = vmatprep.mubr.msk.f32.mxu1 %vm312_vm1, %v286_v37 }
  0x72   : > { %2069 = vmatmul.mubr.msk.f32.gmra.mrb[48].mxu0 %vm312_vm1, %v223_v38 }
  0x73   : > { %2165 = vmatmul.mubr.msk.f32.gmra.mrb[48].mxu1 %vm312_vm1, %v287_v39  ;;  %2071 = vmatprep.mubr.msk.f32.mxu0 %vm312_vm1, %v224_v40 }
  0x74   : > { %2167 = vmatprep.mubr.msk.f32.mxu1 %vm312_vm1, %v288_v41 }
  0x76   : > { %2072 = vmatmul.mubr.msk.f32.gmra.mrb[50].mxu0 %vm312_vm1, %v225_v42 }
  0x77   : > { %2168 = vmatmul.mubr.msk.f32.gmra.mrb[50].mxu1 %vm312_vm1, %v289_v43  ;;  %2074 = vmatprep.mubr.msk.f32.mxu0 %vm312_vm1, %v226_v44 }
  0x78   : > { %2170 = vmatprep.mubr.msk.f32.mxu1 %vm312_vm1, %v290_v45 }
  0x7a   : > { %2075 = vmatmul.mubr.msk.f32.gmra.mrb[52].mxu0 %vm312_vm1, %v227_v46 }
  0x7b   : > { %2171 = vmatmul.mubr.msk.f32.gmra.mrb[52].mxu1 %vm312_vm1, %v291_v47  ;;  %2077 = vmatprep.mubr.msk.f32.mxu0 %vm312_vm1, %v228_v48 }
  0x7c   : > { %2173 = vmatprep.mubr.msk.f32.mxu1 %vm312_vm1, %v292_v49 }
  0x7e   : > { %2078 = vmatmul.mubr.msk.f32.gmra.mrb[54].mxu0 %vm312_vm1, %v229_v50 }
  0x7f   : > { %2174 = vmatmul.mubr.msk.f32.gmra.mrb[54].mxu1 %vm312_vm1, %v293_v51  ;;  %2080 = vmatprep.mubr.msk.f32.mxu0 %vm312_vm1, %v230_v52 }
  0x80   : > { %2176 = vmatprep.mubr.msk.f32.mxu1 %vm312_vm1, %v294_v53 }
  0x82   : > { %2081 = vmatmul.mubr.msk.f32.gmra.mrb[56].mxu0 %vm312_vm1, %v231_v54 }
  0x83   : > { %2177 = vmatmul.mubr.msk.f32.gmra.mrb[56].mxu1 %vm312_vm1, %v295_v55  ;;  %2083 = vmatprep.mubr.msk.f32.mxu0 %vm312_vm1, %v232_v56 }
  0x84   : > { %2179 = vmatprep.mubr.msk.f32.mxu1 %vm312_vm1, %v296_v57 }
  0x86   : > { %2084 = vmatmul.mubr.msk.f32.gmra.mrb[58].mxu0 %vm312_vm1, %v233_v58 }
  0x87   : > { %2180 = vmatmul.mubr.msk.f32.gmra.mrb[58].mxu1 %vm312_vm1, %v297_v59  ;;  %2086 = vmatprep.mubr.msk.f32.mxu0 %vm312_vm1, %v234_v60 }
  0x88   : > { %2182 = vmatprep.mubr.msk.f32.mxu1 %vm312_vm1, %v298_v61 }
  0x8a   : > { %2087 = vmatmul.mubr.msk.f32.gmra.mrb[60].mxu0 %vm312_vm1, %v235_v62 }
  0x8b   : > { %2183 = vmatmul.mubr.msk.f32.gmra.mrb[60].mxu1 %vm312_vm1, %v299_v63  ;;  %2089 = vmatprep.mubr.msk.f32.mxu0 %vm312_vm1, %v236_v0 }
  0x8c   : > { %2185 = vmatprep.mubr.msk.f32.mxu1 %vm312_vm1, %v300_v1 }
  0x8e   : > { %2090 = vmatmul.mubr.msk.f32.gmra.mrb[62].mxu0 %vm312_vm1, %v237_v2 }
  0x8f   : > { %2186 = vmatmul.mubr.msk.f32.gmra.mrb[62].mxu1 %vm312_vm1, %v301_v3 }
  0xe5   : > { %v1998_v5 = vpop.f32.mrb[0].mxu0 }
  0xe6   : > { %v2094_v6 = vpop.f32.mrb[0].mxu1  ;;  %v773_v7 = vadd.f32 %v1998_v5, %v2518_v4  ;;  %v767_v9 = vpop.f32.mrb[1].mxu0 }
  0xe7   : > { %v1093_v8 = vadd.f32 %v2094_v6, %v2518_v4  ;;  %v1087_v10 = vpop.f32.mrb[1].mxu1  ;;  %v768_v11 = vadd.f32 %v2518_v4, %v767_v9 }
  0xe8   : > { %v1088_v12 = vadd.f32 %v2518_v4, %v1087_v10  ;;  %v1407_v13 = vmax.f32 %v773_v7, 0.0 }
  0xe9   : > { %v1471_v14 = vmax.f32 %v1093_v8, 0.0  ;;  %v1406_v15 = vmax.f32 %v768_v11, 0.0  ;;  %v2001_v17 = vpop.f32.mrb[2].mxu0 }
  0xea   : > { %v1470_v16 = vmax.f32 %v1088_v12, 0.0  ;;  %v2097_v18 = vpop.f32.mrb[2].mxu1  ;;  %1535 = vst [vmem:[%s2527_s29 + $0x8] sm:$0xff] %v1407_v13  ;;  %v783_v19 = vadd.f32 %v2001_v17, %v2518_v4  ;;  %v777_v21 = vpop.f32.mrb[3].mxu0 }
  0xeb   : > { %1599 = vst [vmem:[%s2527_s29 + $0x208] sm:$0xff] %v1471_v14  ;;  %v1103_v20 = vadd.f32 %v2097_v18, %v2518_v4  ;;  %v1097_v22 = vpop.f32.mrb[3].mxu1  ;;  %1534 = vst [vmem:[%s2527_s29] sm:$0xff] %v1406_v15  ;;  %v778_v23 = vadd.f32 %v2518_v4, %v777_v21 }
  0xec   : > { %1598 = vst [vmem:[%s2527_s29 + $0x200] sm:$0xff] %v1470_v16  ;;  %v1098_v24 = vadd.f32 %v2518_v4, %v1097_v22  ;;  %v1409_v25 = vmax.f32 %v783_v19, 0.0 }
  0xed   : > { %v1473_v26 = vmax.f32 %v1103_v20, 0.0  ;;  %v1408_v27 = vmax.f32 %v778_v23, 0.0  ;;  %v2004_v29 = vpop.f32.mrb[4].mxu0 }
  0xee   : > { %v1472_v28 = vmax.f32 %v1098_v24, 0.0  ;;  %v2100_v30 = vpop.f32.mrb[4].mxu1  ;;  %1537 = vst [vmem:[%s2527_s29 + $0x18] sm:$0xff] %v1409_v25  ;;  %v793_v31 = vadd.f32 %v2004_v29, %v2518_v4  ;;  %v787_v33 = vpop.f32.mrb[5].mxu0 }
  0xef   : > { %1601 = vst [vmem:[%s2527_s29 + $0x218] sm:$0xff] %v1473_v26  ;;  %v1113_v32 = vadd.f32 %v2100_v30, %v2518_v4  ;;  %v1107_v34 = vpop.f32.mrb[5].mxu1  ;;  %1536 = vst [vmem:[%s2527_s29 + $0x10] sm:$0xff] %v1408_v27  ;;  %v788_v35 = vadd.f32 %v2518_v4, %v787_v33 }
  0xf0   : > { %1600 = vst [vmem:[%s2527_s29 + $0x210] sm:$0xff] %v1472_v28  ;;  %v1108_v36 = vadd.f32 %v2518_v4, %v1107_v34  ;;  %v1411_v37 = vmax.f32 %v793_v31, 0.0 }
  0xf1   : > { %v1475_v38 = vmax.f32 %v1113_v32, 0.0  ;;  %v1410_v39 = vmax.f32 %v788_v35, 0.0  ;;  %v2007_v41 = vpop.f32.mrb[6].mxu0 }
  0xf2   : > { %v1474_v40 = vmax.f32 %v1108_v36, 0.0  ;;  %v2103_v42 = vpop.f32.mrb[6].mxu1  ;;  %1539 = vst [vmem:[%s2527_s29 + $0x28] sm:$0xff] %v1411_v37  ;;  %v803_v43 = vadd.f32 %v2007_v41, %v2518_v4  ;;  %v797_v45 = vpop.f32.mrb[7].mxu0 }
  0xf3   : > { %1603 = vst [vmem:[%s2527_s29 + $0x228] sm:$0xff] %v1475_v38  ;;  %v1123_v44 = vadd.f32 %v2103_v42, %v2518_v4  ;;  %v1117_v46 = vpop.f32.mrb[7].mxu1  ;;  %1538 = vst [vmem:[%s2527_s29 + $0x20] sm:$0xff] %v1410_v39  ;;  %v798_v47 = vadd.f32 %v2518_v4, %v797_v45 }
  0xf4   : > { %1602 = vst [vmem:[%s2527_s29 + $0x220] sm:$0xff] %v1474_v40  ;;  %v1118_v48 = vadd.f32 %v2518_v4, %v1117_v46  ;;  %v1413_v49 = vmax.f32 %v803_v43, 0.0 }
  0xf5   : > { %v1477_v50 = vmax.f32 %v1123_v44, 0.0  ;;  %v1412_v51 = vmax.f32 %v798_v47, 0.0  ;;  %v2010_v53 = vpop.f32.mrb[8].mxu0 }
  0xf6   : > { %v1476_v52 = vmax.f32 %v1118_v48, 0.0  ;;  %v2106_v54 = vpop.f32.mrb[8].mxu1  ;;  %1541 = vst [vmem:[%s2527_s29 + $0x38] sm:$0xff] %v1413_v49  ;;  %v813_v55 = vadd.f32 %v2010_v53, %v2518_v4  ;;  %v807_v57 = vpop.f32.mrb[9].mxu0 }
  0xf7   : > { %1605 = vst [vmem:[%s2527_s29 + $0x238] sm:$0xff] %v1477_v50  ;;  %v1133_v56 = vadd.f32 %v2106_v54, %v2518_v4  ;;  %v1127_v58 = vpop.f32.mrb[9].mxu1  ;;  %1540 = vst [vmem:[%s2527_s29 + $0x30] sm:$0xff] %v1412_v51  ;;  %v808_v59 = vadd.f32 %v2518_v4, %v807_v57 }
  0xf8   : > { %1604 = vst [vmem:[%s2527_s29 + $0x230] sm:$0xff] %v1476_v52  ;;  %v1128_v60 = vadd.f32 %v2518_v4, %v1127_v58  ;;  %v1415_v61 = vmax.f32 %v813_v55, 0.0 }
  0xf9   : > { %v1479_v62 = vmax.f32 %v1133_v56, 0.0  ;;  %v1414_v63 = vmax.f32 %v808_v59, 0.0  ;;  %v2013_v1 = vpop.f32.mrb[10].mxu0 }
  0xfa   : > { %v1478_v0 = vmax.f32 %v1128_v60, 0.0  ;;  %v2109_v2 = vpop.f32.mrb[10].mxu1  ;;  %1543 = vst [vmem:[%s2527_s29 + $0x48] sm:$0xff] %v1415_v61  ;;  %v823_v3 = vadd.f32 %v2013_v1, %v2518_v4  ;;  %v817_v6 = vpop.f32.mrb[11].mxu0 }
  0xfb   : > { %1607 = vst [vmem:[%s2527_s29 + $0x248] sm:$0xff] %v1479_v62  ;;  %v1143_v5 = vadd.f32 %v2109_v2, %v2518_v4  ;;  %v1137_v7 = vpop.f32.mrb[11].mxu1  ;;  %1542 = vst [vmem:[%s2527_s29 + $0x40] sm:$0xff] %v1414_v63  ;;  %v818_v8 = vadd.f32 %v2518_v4, %v817_v6 }
  0xfc   : > { %1606 = vst [vmem:[%s2527_s29 + $0x240] sm:$0xff] %v1478_v0  ;;  %v1138_v9 = vadd.f32 %v2518_v4, %v1137_v7  ;;  %v1417_v10 = vmax.f32 %v823_v3, 0.0 }
  0xfd   : > { %v1481_v11 = vmax.f32 %v1143_v5, 0.0  ;;  %v1416_v12 = vmax.f32 %v818_v8, 0.0  ;;  %v2016_v14 = vpop.f32.mrb[12].mxu0 }
  0xfe   : > { %v1480_v13 = vmax.f32 %v1138_v9, 0.0  ;;  %v2112_v15 = vpop.f32.mrb[12].mxu1  ;;  %1545 = vst [vmem:[%s2527_s29 + $0x58] sm:$0xff] %v1417_v10  ;;  %v833_v16 = vadd.f32 %v2016_v14, %v2518_v4  ;;  %v827_v18 = vpop.f32.mrb[13].mxu0 }
  0xff   : > { %1609 = vst [vmem:[%s2527_s29 + $0x258] sm:$0xff] %v1481_v11  ;;  %v1153_v17 = vadd.f32 %v2112_v15, %v2518_v4  ;;  %v1147_v19 = vpop.f32.mrb[13].mxu1  ;;  %1544 = vst [vmem:[%s2527_s29 + $0x50] sm:$0xff] %v1416_v12  ;;  %v828_v20 = vadd.f32 %v2518_v4, %v827_v18 }
 0x100   : > { %1608 = vst [vmem:[%s2527_s29 + $0x250] sm:$0xff] %v1480_v13  ;;  %v1148_v21 = vadd.f32 %v2518_v4, %v1147_v19  ;;  %v1419_v22 = vmax.f32 %v833_v16, 0.0 }
 0x101   : > { %v1483_v23 = vmax.f32 %v1153_v17, 0.0  ;;  %v1418_v24 = vmax.f32 %v828_v20, 0.0  ;;  %v2019_v26 = vpop.f32.mrb[14].mxu0 }
 0x102   : > { %v1482_v25 = vmax.f32 %v1148_v21, 0.0  ;;  %v2115_v27 = vpop.f32.mrb[14].mxu1  ;;  %1547 = vst [vmem:[%s2527_s29 + $0x68] sm:$0xff] %v1419_v22  ;;  %v843_v28 = vadd.f32 %v2019_v26, %v2518_v4  ;;  %v837_v30 = vpop.f32.mrb[15].mxu0 }
 0x103   : > { %1611 = vst [vmem:[%s2527_s29 + $0x268] sm:$0xff] %v1483_v23  ;;  %v1163_v29 = vadd.f32 %v2115_v27, %v2518_v4  ;;  %v1157_v31 = vpop.f32.mrb[15].mxu1  ;;  %1546 = vst [vmem:[%s2527_s29 + $0x60] sm:$0xff] %v1418_v24  ;;  %v838_v32 = vadd.f32 %v2518_v4, %v837_v30 }
 0x104   : > { %1610 = vst [vmem:[%s2527_s29 + $0x260] sm:$0xff] %v1482_v25  ;;  %v1158_v33 = vadd.f32 %v2518_v4, %v1157_v31  ;;  %v1421_v34 = vmax.f32 %v843_v28, 0.0 }
 0x105   : > { %v1485_v35 = vmax.f32 %v1163_v29, 0.0  ;;  %v1420_v36 = vmax.f32 %v838_v32, 0.0  ;;  %v2022_v38 = vpop.f32.mrb[16].mxu0 }
 0x106   : > { %v1484_v37 = vmax.f32 %v1158_v33, 0.0  ;;  %v2118_v39 = vpop.f32.mrb[16].mxu1  ;;  %1549 = vst [vmem:[%s2527_s29 + $0x78] sm:$0xff] %v1421_v34  ;;  %v853_v40 = vadd.f32 %v2022_v38, %v2518_v4  ;;  %v847_v42 = vpop.f32.mrb[17].mxu0 }
 0x107   : > { %1613 = vst [vmem:[%s2527_s29 + $0x278] sm:$0xff] %v1485_v35  ;;  %v1173_v41 = vadd.f32 %v2118_v39, %v2518_v4  ;;  %v1167_v43 = vpop.f32.mrb[17].mxu1  ;;  %1548 = vst [vmem:[%s2527_s29 + $0x70] sm:$0xff] %v1420_v36  ;;  %v848_v44 = vadd.f32 %v2518_v4, %v847_v42 }
 0x108   : > { %1612 = vst [vmem:[%s2527_s29 + $0x270] sm:$0xff] %v1484_v37  ;;  %v1168_v45 = vadd.f32 %v2518_v4, %v1167_v43  ;;  %v1423_v46 = vmax.f32 %v853_v40, 0.0 }
 0x109   : > { %v1487_v47 = vmax.f32 %v1173_v41, 0.0  ;;  %v1422_v48 = vmax.f32 %v848_v44, 0.0  ;;  %v2025_v50 = vpop.f32.mrb[18].mxu0 }
 0x10a   : > { %v1486_v49 = vmax.f32 %v1168_v45, 0.0  ;;  %v2121_v51 = vpop.f32.mrb[18].mxu1  ;;  %1551 = vst [vmem:[%s2527_s29 + $0x88] sm:$0xff] %v1423_v46  ;;  %v863_v52 = vadd.f32 %v2025_v50, %v2518_v4  ;;  %v857_v54 = vpop.f32.mrb[19].mxu0 }
 0x10b   : > { %1615 = vst [vmem:[%s2527_s29 + $0x288] sm:$0xff] %v1487_v47  ;;  %v1183_v53 = vadd.f32 %v2121_v51, %v2518_v4  ;;  %v1177_v55 = vpop.f32.mrb[19].mxu1  ;;  %1550 = vst [vmem:[%s2527_s29 + $0x80] sm:$0xff] %v1422_v48  ;;  %v858_v56 = vadd.f32 %v2518_v4, %v857_v54 }
 0x10c   : > { %1614 = vst [vmem:[%s2527_s29 + $0x280] sm:$0xff] %v1486_v49  ;;  %v1178_v57 = vadd.f32 %v2518_v4, %v1177_v55  ;;  %v1425_v58 = vmax.f32 %v863_v52, 0.0 }
 0x10d   : > { %v1489_v59 = vmax.f32 %v1183_v53, 0.0  ;;  %v1424_v60 = vmax.f32 %v858_v56, 0.0  ;;  %v2028_v62 = vpop.f32.mrb[20].mxu0 }
 0x10e   : > { %v1488_v61 = vmax.f32 %v1178_v57, 0.0  ;;  %v2124_v63 = vpop.f32.mrb[20].mxu1  ;;  %1553 = vst [vmem:[%s2527_s29 + $0x98] sm:$0xff] %v1425_v58  ;;  %v873_v0 = vadd.f32 %v2028_v62, %v2518_v4  ;;  %v867_v2 = vpop.f32.mrb[21].mxu0 }
 0x10f   : > { %1617 = vst [vmem:[%s2527_s29 + $0x298] sm:$0xff] %v1489_v59  ;;  %v1193_v1 = vadd.f32 %v2124_v63, %v2518_v4  ;;  %v1187_v3 = vpop.f32.mrb[21].mxu1  ;;  %1552 = vst [vmem:[%s2527_s29 + $0x90] sm:$0xff] %v1424_v60  ;;  %v868_v5 = vadd.f32 %v2518_v4, %v867_v2 }
 0x110   : > { %1616 = vst [vmem:[%s2527_s29 + $0x290] sm:$0xff] %v1488_v61  ;;  %v1188_v6 = vadd.f32 %v2518_v4, %v1187_v3  ;;  %v1427_v7 = vmax.f32 %v873_v0, 0.0 }
 0x111   : > { %v1491_v8 = vmax.f32 %v1193_v1, 0.0  ;;  %v1426_v9 = vmax.f32 %v868_v5, 0.0  ;;  %v2031_v11 = vpop.f32.mrb[22].mxu0 }
 0x112   : > { %v1490_v10 = vmax.f32 %v1188_v6, 0.0  ;;  %v2127_v12 = vpop.f32.mrb[22].mxu1  ;;  %1555 = vst [vmem:[%s2527_s29 + $0xa8] sm:$0xff] %v1427_v7  ;;  %v883_v13 = vadd.f32 %v2031_v11, %v2518_v4  ;;  %v877_v15 = vpop.f32.mrb[23].mxu0 }
 0x113   : > { %1619 = vst [vmem:[%s2527_s29 + $0x2a8] sm:$0xff] %v1491_v8  ;;  %v1203_v14 = vadd.f32 %v2127_v12, %v2518_v4  ;;  %v1197_v16 = vpop.f32.mrb[23].mxu1  ;;  %1554 = vst [vmem:[%s2527_s29 + $0xa0] sm:$0xff] %v1426_v9  ;;  %v878_v17 = vadd.f32 %v2518_v4, %v877_v15 }
 0x114   : > { %1618 = vst [vmem:[%s2527_s29 + $0x2a0] sm:$0xff] %v1490_v10  ;;  %v1198_v18 = vadd.f32 %v2518_v4, %v1197_v16  ;;  %v1429_v19 = vmax.f32 %v883_v13, 0.0 }
 0x115   : > { %v1493_v20 = vmax.f32 %v1203_v14, 0.0  ;;  %v1428_v21 = vmax.f32 %v878_v17, 0.0  ;;  %v2034_v23 = vpop.f32.mrb[24].mxu0 }
 0x116   : > { %v1492_v22 = vmax.f32 %v1198_v18, 0.0  ;;  %v2130_v24 = vpop.f32.mrb[24].mxu1  ;;  %1557 = vst [vmem:[%s2527_s29 + $0xb8] sm:$0xff] %v1429_v19  ;;  %v893_v25 = vadd.f32 %v2034_v23, %v2518_v4  ;;  %v887_v27 = vpop.f32.mrb[25].mxu0 }
 0x117   : > { %1621 = vst [vmem:[%s2527_s29 + $0x2b8] sm:$0xff] %v1493_v20  ;;  %v1213_v26 = vadd.f32 %v2130_v24, %v2518_v4  ;;  %v1207_v28 = vpop.f32.mrb[25].mxu1  ;;  %1556 = vst [vmem:[%s2527_s29 + $0xb0] sm:$0xff] %v1428_v21  ;;  %v888_v29 = vadd.f32 %v2518_v4, %v887_v27 }
 0x118   : > { %1620 = vst [vmem:[%s2527_s29 + $0x2b0] sm:$0xff] %v1492_v22  ;;  %v1208_v30 = vadd.f32 %v2518_v4, %v1207_v28  ;;  %v1431_v31 = vmax.f32 %v893_v25, 0.0 }
 0x119   : > { %v1495_v32 = vmax.f32 %v1213_v26, 0.0  ;;  %v1430_v33 = vmax.f32 %v888_v29, 0.0  ;;  %v2037_v35 = vpop.f32.mrb[26].mxu0 }
 0x11a   : > { %v1494_v34 = vmax.f32 %v1208_v30, 0.0  ;;  %v2133_v36 = vpop.f32.mrb[26].mxu1  ;;  %1559 = vst [vmem:[%s2527_s29 + $0xc8] sm:$0xff] %v1431_v31  ;;  %v903_v37 = vadd.f32 %v2037_v35, %v2518_v4  ;;  %v897_v39 = vpop.f32.mrb[27].mxu0 }
 0x11b   : > { %1623 = vst [vmem:[%s2527_s29 + $0x2c8] sm:$0xff] %v1495_v32  ;;  %v1223_v38 = vadd.f32 %v2133_v36, %v2518_v4  ;;  %v1217_v40 = vpop.f32.mrb[27].mxu1  ;;  %1558 = vst [vmem:[%s2527_s29 + $0xc0] sm:$0xff] %v1430_v33  ;;  %v898_v41 = vadd.f32 %v2518_v4, %v897_v39 }
 0x11c   : > { %1622 = vst [vmem:[%s2527_s29 + $0x2c0] sm:$0xff] %v1494_v34  ;;  %v1218_v42 = vadd.f32 %v2518_v4, %v1217_v40  ;;  %v1433_v43 = vmax.f32 %v903_v37, 0.0 }
 0x11d   : > { %v1497_v44 = vmax.f32 %v1223_v38, 0.0  ;;  %v1432_v45 = vmax.f32 %v898_v41, 0.0  ;;  %v2040_v47 = vpop.f32.mrb[28].mxu0 }
 0x11e   : > { %v1496_v46 = vmax.f32 %v1218_v42, 0.0  ;;  %v2136_v48 = vpop.f32.mrb[28].mxu1  ;;  %1561 = vst [vmem:[%s2527_s29 + $0xd8] sm:$0xff] %v1433_v43  ;;  %v913_v49 = vadd.f32 %v2040_v47, %v2518_v4  ;;  %v907_v51 = vpop.f32.mrb[29].mxu0 }
 0x11f   : > { %1625 = vst [vmem:[%s2527_s29 + $0x2d8] sm:$0xff] %v1497_v44  ;;  %v1233_v50 = vadd.f32 %v2136_v48, %v2518_v4  ;;  %v1227_v52 = vpop.f32.mrb[29].mxu1  ;;  %1560 = vst [vmem:[%s2527_s29 + $0xd0] sm:$0xff] %v1432_v45  ;;  %v908_v53 = vadd.f32 %v2518_v4, %v907_v51 }
 0x120   : > { %1624 = vst [vmem:[%s2527_s29 + $0x2d0] sm:$0xff] %v1496_v46  ;;  %v1228_v54 = vadd.f32 %v2518_v4, %v1227_v52  ;;  %v1435_v55 = vmax.f32 %v913_v49, 0.0 }
 0x121   : > { %v1499_v56 = vmax.f32 %v1233_v50, 0.0  ;;  %v1434_v57 = vmax.f32 %v908_v53, 0.0  ;;  %v2043_v59 = vpop.f32.mrb[30].mxu0 }
 0x122   : > { %v1498_v58 = vmax.f32 %v1228_v54, 0.0  ;;  %v2139_v60 = vpop.f32.mrb[30].mxu1  ;;  %1563 = vst [vmem:[%s2527_s29 + $0xe8] sm:$0xff] %v1435_v55  ;;  %v923_v61 = vadd.f32 %v2043_v59, %v2518_v4  ;;  %v917_v63 = vpop.f32.mrb[31].mxu0 }
 0x123   : > { %1627 = vst [vmem:[%s2527_s29 + $0x2e8] sm:$0xff] %v1499_v56  ;;  %v1243_v62 = vadd.f32 %v2139_v60, %v2518_v4  ;;  %v1237_v0 = vpop.f32.mrb[31].mxu1  ;;  %1562 = vst [vmem:[%s2527_s29 + $0xe0] sm:$0xff] %v1434_v57  ;;  %v918_v1 = vadd.f32 %v2518_v4, %v917_v63 }
 0x124   : > { %1626 = vst [vmem:[%s2527_s29 + $0x2e0] sm:$0xff] %v1498_v58  ;;  %v1238_v2 = vadd.f32 %v2518_v4, %v1237_v0  ;;  %v1437_v3 = vmax.f32 %v923_v61, 0.0 }
 0x125   : > { %v1501_v5 = vmax.f32 %v1243_v62, 0.0  ;;  %v1436_v6 = vmax.f32 %v918_v1, 0.0  ;;  %v2046_v8 = vpop.f32.mrb[32].mxu0 }
 0x126   : > { %v1500_v7 = vmax.f32 %v1238_v2, 0.0  ;;  %v2142_v9 = vpop.f32.mrb[32].mxu1  ;;  %1565 = vst [vmem:[%s2527_s29 + $0xf8] sm:$0xff] %v1437_v3  ;;  %v933_v10 = vadd.f32 %v2046_v8, %v2518_v4  ;;  %v927_v12 = vpop.f32.mrb[33].mxu0 }
 0x127   : > { %1629 = vst [vmem:[%s2527_s29 + $0x2f8] sm:$0xff] %v1501_v5  ;;  %v1253_v11 = vadd.f32 %v2142_v9, %v2518_v4  ;;  %v1247_v13 = vpop.f32.mrb[33].mxu1  ;;  %1564 = vst [vmem:[%s2527_s29 + $0xf0] sm:$0xff] %v1436_v6  ;;  %v928_v14 = vadd.f32 %v2518_v4, %v927_v12 }
 0x128   : > { %1628 = vst [vmem:[%s2527_s29 + $0x2f0] sm:$0xff] %v1500_v7  ;;  %v1248_v15 = vadd.f32 %v2518_v4, %v1247_v13  ;;  %v1439_v16 = vmax.f32 %v933_v10, 0.0 }
 0x129   : > { %v1503_v17 = vmax.f32 %v1253_v11, 0.0  ;;  %v1438_v18 = vmax.f32 %v928_v14, 0.0  ;;  %v2049_v20 = vpop.f32.mrb[34].mxu0 }
 0x12a   : > { %v1502_v19 = vmax.f32 %v1248_v15, 0.0  ;;  %v2145_v21 = vpop.f32.mrb[34].mxu1  ;;  %1567 = vst [vmem:[%s2527_s29 + $0x108] sm:$0xff] %v1439_v16  ;;  %v943_v22 = vadd.f32 %v2049_v20, %v2518_v4  ;;  %v937_v24 = vpop.f32.mrb[35].mxu0 }
 0x12b   : > { %1631 = vst [vmem:[%s2527_s29 + $0x308] sm:$0xff] %v1503_v17  ;;  %v1263_v23 = vadd.f32 %v2145_v21, %v2518_v4  ;;  %v1257_v25 = vpop.f32.mrb[35].mxu1  ;;  %1566 = vst [vmem:[%s2527_s29 + $0x100] sm:$0xff] %v1438_v18  ;;  %v938_v26 = vadd.f32 %v2518_v4, %v937_v24 }
 0x12c   : > { %1630 = vst [vmem:[%s2527_s29 + $0x300] sm:$0xff] %v1502_v19  ;;  %v1258_v27 = vadd.f32 %v2518_v4, %v1257_v25  ;;  %v1441_v28 = vmax.f32 %v943_v22, 0.0 }
 0x12d   : > { %v1505_v29 = vmax.f32 %v1263_v23, 0.0  ;;  %v1440_v30 = vmax.f32 %v938_v26, 0.0  ;;  %v2052_v32 = vpop.f32.mrb[36].mxu0 }
 0x12e   : > { %v1504_v31 = vmax.f32 %v1258_v27, 0.0  ;;  %v2148_v33 = vpop.f32.mrb[36].mxu1  ;;  %1569 = vst [vmem:[%s2527_s29 + $0x118] sm:$0xff] %v1441_v28  ;;  %v953_v34 = vadd.f32 %v2052_v32, %v2518_v4  ;;  %v947_v36 = vpop.f32.mrb[37].mxu0 }
 0x12f   : > { %1633 = vst [vmem:[%s2527_s29 + $0x318] sm:$0xff] %v1505_v29  ;;  %v1273_v35 = vadd.f32 %v2148_v33, %v2518_v4  ;;  %v1267_v37 = vpop.f32.mrb[37].mxu1  ;;  %1568 = vst [vmem:[%s2527_s29 + $0x110] sm:$0xff] %v1440_v30  ;;  %v948_v38 = vadd.f32 %v2518_v4, %v947_v36 }
 0x130   : > { %1632 = vst [vmem:[%s2527_s29 + $0x310] sm:$0xff] %v1504_v31  ;;  %v1268_v39 = vadd.f32 %v2518_v4, %v1267_v37  ;;  %v1443_v40 = vmax.f32 %v953_v34, 0.0 }
 0x131   : > { %v1507_v41 = vmax.f32 %v1273_v35, 0.0  ;;  %v1442_v42 = vmax.f32 %v948_v38, 0.0  ;;  %v2055_v44 = vpop.f32.mrb[38].mxu0 }
 0x132   : > { %v1506_v43 = vmax.f32 %v1268_v39, 0.0  ;;  %v2151_v45 = vpop.f32.mrb[38].mxu1  ;;  %1571 = vst [vmem:[%s2527_s29 + $0x128] sm:$0xff] %v1443_v40  ;;  %v963_v46 = vadd.f32 %v2055_v44, %v2518_v4  ;;  %v957_v48 = vpop.f32.mrb[39].mxu0 }
 0x133   : > { %1635 = vst [vmem:[%s2527_s29 + $0x328] sm:$0xff] %v1507_v41  ;;  %v1283_v47 = vadd.f32 %v2151_v45, %v2518_v4  ;;  %v1277_v49 = vpop.f32.mrb[39].mxu1  ;;  %1570 = vst [vmem:[%s2527_s29 + $0x120] sm:$0xff] %v1442_v42  ;;  %v958_v50 = vadd.f32 %v2518_v4, %v957_v48 }
 0x134   : > { %1634 = vst [vmem:[%s2527_s29 + $0x320] sm:$0xff] %v1506_v43  ;;  %v1278_v51 = vadd.f32 %v2518_v4, %v1277_v49  ;;  %v1445_v52 = vmax.f32 %v963_v46, 0.0 }
 0x135   : > { %v1509_v53 = vmax.f32 %v1283_v47, 0.0  ;;  %v1444_v54 = vmax.f32 %v958_v50, 0.0  ;;  %v2058_v56 = vpop.f32.mrb[40].mxu0 }
 0x136   : > { %v1508_v55 = vmax.f32 %v1278_v51, 0.0  ;;  %v2154_v57 = vpop.f32.mrb[40].mxu1  ;;  %1573 = vst [vmem:[%s2527_s29 + $0x138] sm:$0xff] %v1445_v52  ;;  %v973_v58 = vadd.f32 %v2058_v56, %v2518_v4  ;;  %v967_v60 = vpop.f32.mrb[41].mxu0 }
 0x137   : > { %1637 = vst [vmem:[%s2527_s29 + $0x338] sm:$0xff] %v1509_v53  ;;  %v1293_v59 = vadd.f32 %v2154_v57, %v2518_v4  ;;  %v1287_v61 = vpop.f32.mrb[41].mxu1  ;;  %1572 = vst [vmem:[%s2527_s29 + $0x130] sm:$0xff] %v1444_v54  ;;  %v968_v62 = vadd.f32 %v2518_v4, %v967_v60 }
 0x138   : > { %1636 = vst [vmem:[%s2527_s29 + $0x330] sm:$0xff] %v1508_v55  ;;  %v1288_v63 = vadd.f32 %v2518_v4, %v1287_v61  ;;  %v1447_v0 = vmax.f32 %v973_v58, 0.0 }
 0x139   : > { %v1511_v1 = vmax.f32 %v1293_v59, 0.0  ;;  %v1446_v2 = vmax.f32 %v968_v62, 0.0  ;;  %v2061_v5 = vpop.f32.mrb[42].mxu0 }
 0x13a   : > { %v1510_v3 = vmax.f32 %v1288_v63, 0.0  ;;  %v2157_v6 = vpop.f32.mrb[42].mxu1  ;;  %1575 = vst [vmem:[%s2527_s29 + $0x148] sm:$0xff] %v1447_v0  ;;  %v983_v7 = vadd.f32 %v2061_v5, %v2518_v4  ;;  %v977_v9 = vpop.f32.mrb[43].mxu0 }
 0x13b   : > { %1639 = vst [vmem:[%s2527_s29 + $0x348] sm:$0xff] %v1511_v1  ;;  %v1303_v8 = vadd.f32 %v2157_v6, %v2518_v4  ;;  %v1297_v10 = vpop.f32.mrb[43].mxu1  ;;  %1574 = vst [vmem:[%s2527_s29 + $0x140] sm:$0xff] %v1446_v2  ;;  %v978_v11 = vadd.f32 %v2518_v4, %v977_v9 }
 0x13c   : > { %1638 = vst [vmem:[%s2527_s29 + $0x340] sm:$0xff] %v1510_v3  ;;  %v1298_v12 = vadd.f32 %v2518_v4, %v1297_v10  ;;  %v1449_v13 = vmax.f32 %v983_v7, 0.0 }
 0x13d   : > { %v1513_v14 = vmax.f32 %v1303_v8, 0.0  ;;  %v1448_v15 = vmax.f32 %v978_v11, 0.0  ;;  %v2064_v17 = vpop.f32.mrb[44].mxu0 }
 0x13e   : > { %v1512_v16 = vmax.f32 %v1298_v12, 0.0  ;;  %v2160_v18 = vpop.f32.mrb[44].mxu1  ;;  %1577 = vst [vmem:[%s2527_s29 + $0x158] sm:$0xff] %v1449_v13  ;;  %v993_v19 = vadd.f32 %v2064_v17, %v2518_v4  ;;  %v987_v21 = vpop.f32.mrb[45].mxu0 }
 0x13f   : > { %1641 = vst [vmem:[%s2527_s29 + $0x358] sm:$0xff] %v1513_v14  ;;  %v1313_v20 = vadd.f32 %v2160_v18, %v2518_v4  ;;  %v1307_v22 = vpop.f32.mrb[45].mxu1  ;;  %1576 = vst [vmem:[%s2527_s29 + $0x150] sm:$0xff] %v1448_v15  ;;  %v988_v23 = vadd.f32 %v2518_v4, %v987_v21 }
 0x140   : > { %1640 = vst [vmem:[%s2527_s29 + $0x350] sm:$0xff] %v1512_v16  ;;  %v1308_v24 = vadd.f32 %v2518_v4, %v1307_v22  ;;  %v1451_v25 = vmax.f32 %v993_v19, 0.0 }
 0x141   : > { %v1515_v26 = vmax.f32 %v1313_v20, 0.0  ;;  %v1450_v27 = vmax.f32 %v988_v23, 0.0  ;;  %v2067_v29 = vpop.f32.mrb[46].mxu0 }
 0x142   : > { %v1514_v28 = vmax.f32 %v1308_v24, 0.0  ;;  %v2163_v30 = vpop.f32.mrb[46].mxu1  ;;  %1579 = vst [vmem:[%s2527_s29 + $0x168] sm:$0xff] %v1451_v25  ;;  %v1003_v31 = vadd.f32 %v2067_v29, %v2518_v4  ;;  %v997_v33 = vpop.f32.mrb[47].mxu0 }
 0x143   : > { %1643 = vst [vmem:[%s2527_s29 + $0x368] sm:$0xff] %v1515_v26  ;;  %v1323_v32 = vadd.f32 %v2163_v30, %v2518_v4  ;;  %v1317_v34 = vpop.f32.mrb[47].mxu1  ;;  %1578 = vst [vmem:[%s2527_s29 + $0x160] sm:$0xff] %v1450_v27  ;;  %v998_v35 = vadd.f32 %v2518_v4, %v997_v33 }
 0x144   : > { %1642 = vst [vmem:[%s2527_s29 + $0x360] sm:$0xff] %v1514_v28  ;;  %v1318_v36 = vadd.f32 %v2518_v4, %v1317_v34  ;;  %v1453_v37 = vmax.f32 %v1003_v31, 0.0 }
 0x145   : > { %v1517_v38 = vmax.f32 %v1323_v32, 0.0  ;;  %v1452_v39 = vmax.f32 %v998_v35, 0.0  ;;  %v2070_v41 = vpop.f32.mrb[48].mxu0 }
 0x146   : > { %v1516_v40 = vmax.f32 %v1318_v36, 0.0  ;;  %v2166_v42 = vpop.f32.mrb[48].mxu1  ;;  %1581 = vst [vmem:[%s2527_s29 + $0x178] sm:$0xff] %v1453_v37  ;;  %v1013_v43 = vadd.f32 %v2070_v41, %v2518_v4  ;;  %v1007_v45 = vpop.f32.mrb[49].mxu0 }
 0x147   : > { %1645 = vst [vmem:[%s2527_s29 + $0x378] sm:$0xff] %v1517_v38  ;;  %v1333_v44 = vadd.f32 %v2166_v42, %v2518_v4  ;;  %v1327_v46 = vpop.f32.mrb[49].mxu1  ;;  %1580 = vst [vmem:[%s2527_s29 + $0x170] sm:$0xff] %v1452_v39  ;;  %v1008_v47 = vadd.f32 %v2518_v4, %v1007_v45 }
 0x148   : > { %1644 = vst [vmem:[%s2527_s29 + $0x370] sm:$0xff] %v1516_v40  ;;  %v1328_v48 = vadd.f32 %v2518_v4, %v1327_v46  ;;  %v1455_v49 = vmax.f32 %v1013_v43, 0.0 }
 0x149   : > { %v1519_v50 = vmax.f32 %v1333_v44, 0.0  ;;  %v1454_v51 = vmax.f32 %v1008_v47, 0.0  ;;  %v2073_v53 = vpop.f32.mrb[50].mxu0 }
 0x14a   : > { %v1518_v52 = vmax.f32 %v1328_v48, 0.0  ;;  %v2169_v54 = vpop.f32.mrb[50].mxu1  ;;  %1583 = vst [vmem:[%s2527_s29 + $0x188] sm:$0xff] %v1455_v49  ;;  %v1023_v55 = vadd.f32 %v2073_v53, %v2518_v4  ;;  %v1017_v57 = vpop.f32.mrb[51].mxu0 }
 0x14b   : > { %1647 = vst [vmem:[%s2527_s29 + $0x388] sm:$0xff] %v1519_v50  ;;  %v1343_v56 = vadd.f32 %v2169_v54, %v2518_v4  ;;  %v1337_v58 = vpop.f32.mrb[51].mxu1  ;;  %1582 = vst [vmem:[%s2527_s29 + $0x180] sm:$0xff] %v1454_v51  ;;  %v1018_v59 = vadd.f32 %v2518_v4, %v1017_v57 }
 0x14c   : > { %1646 = vst [vmem:[%s2527_s29 + $0x380] sm:$0xff] %v1518_v52  ;;  %v1338_v60 = vadd.f32 %v2518_v4, %v1337_v58  ;;  %v1457_v61 = vmax.f32 %v1023_v55, 0.0 }
 0x14d   : > { %v1521_v62 = vmax.f32 %v1343_v56, 0.0  ;;  %v1456_v63 = vmax.f32 %v1018_v59, 0.0  ;;  %v2076_v1 = vpop.f32.mrb[52].mxu0 }
 0x14e   : > { %v1520_v0 = vmax.f32 %v1338_v60, 0.0  ;;  %v2172_v2 = vpop.f32.mrb[52].mxu1  ;;  %1585 = vst [vmem:[%s2527_s29 + $0x198] sm:$0xff] %v1457_v61  ;;  %v1033_v3 = vadd.f32 %v2076_v1, %v2518_v4  ;;  %v1027_v6 = vpop.f32.mrb[53].mxu0 }
 0x14f   : > { %1649 = vst [vmem:[%s2527_s29 + $0x398] sm:$0xff] %v1521_v62  ;;  %v1353_v5 = vadd.f32 %v2172_v2, %v2518_v4  ;;  %v1347_v7 = vpop.f32.mrb[53].mxu1  ;;  %1584 = vst [vmem:[%s2527_s29 + $0x190] sm:$0xff] %v1456_v63  ;;  %v1028_v8 = vadd.f32 %v2518_v4, %v1027_v6 }
 0x150   : > { %1648 = vst [vmem:[%s2527_s29 + $0x390] sm:$0xff] %v1520_v0  ;;  %v1348_v9 = vadd.f32 %v2518_v4, %v1347_v7  ;;  %v1459_v10 = vmax.f32 %v1033_v3, 0.0 }
 0x151   : > { %v1523_v11 = vmax.f32 %v1353_v5, 0.0  ;;  %v1458_v12 = vmax.f32 %v1028_v8, 0.0  ;;  %v2079_v14 = vpop.f32.mrb[54].mxu0 }
 0x152   : > { %v1522_v13 = vmax.f32 %v1348_v9, 0.0  ;;  %v2175_v15 = vpop.f32.mrb[54].mxu1  ;;  %1587 = vst [vmem:[%s2527_s29 + $0x1a8] sm:$0xff] %v1459_v10  ;;  %v1043_v16 = vadd.f32 %v2079_v14, %v2518_v4  ;;  %v1037_v18 = vpop.f32.mrb[55].mxu0 }
 0x153   : > { %1651 = vst [vmem:[%s2527_s29 + $0x3a8] sm:$0xff] %v1523_v11  ;;  %v1363_v17 = vadd.f32 %v2175_v15, %v2518_v4  ;;  %v1357_v19 = vpop.f32.mrb[55].mxu1  ;;  %1586 = vst [vmem:[%s2527_s29 + $0x1a0] sm:$0xff] %v1458_v12  ;;  %v1038_v20 = vadd.f32 %v2518_v4, %v1037_v18 }
 0x154   : > { %1650 = vst [vmem:[%s2527_s29 + $0x3a0] sm:$0xff] %v1522_v13  ;;  %v1358_v21 = vadd.f32 %v2518_v4, %v1357_v19  ;;  %v1461_v22 = vmax.f32 %v1043_v16, 0.0 }
 0x155   : > { %v1525_v23 = vmax.f32 %v1363_v17, 0.0  ;;  %v1460_v24 = vmax.f32 %v1038_v20, 0.0  ;;  %v2082_v26 = vpop.f32.mrb[56].mxu0 }
 0x156   : > { %v1524_v25 = vmax.f32 %v1358_v21, 0.0  ;;  %v2178_v27 = vpop.f32.mrb[56].mxu1  ;;  %1589 = vst [vmem:[%s2527_s29 + $0x1b8] sm:$0xff] %v1461_v22  ;;  %v1053_v28 = vadd.f32 %v2082_v26, %v2518_v4  ;;  %v1047_v30 = vpop.f32.mrb[57].mxu0 }
 0x157   : > { %1653 = vst [vmem:[%s2527_s29 + $0x3b8] sm:$0xff] %v1525_v23  ;;  %v1373_v29 = vadd.f32 %v2178_v27, %v2518_v4  ;;  %v1367_v31 = vpop.f32.mrb[57].mxu1  ;;  %1588 = vst [vmem:[%s2527_s29 + $0x1b0] sm:$0xff] %v1460_v24  ;;  %v1048_v32 = vadd.f32 %v2518_v4, %v1047_v30 }
 0x158   : > { %1652 = vst [vmem:[%s2527_s29 + $0x3b0] sm:$0xff] %v1524_v25  ;;  %v1368_v33 = vadd.f32 %v2518_v4, %v1367_v31  ;;  %v1463_v34 = vmax.f32 %v1053_v28, 0.0 }
 0x159   : > { %v1527_v35 = vmax.f32 %v1373_v29, 0.0  ;;  %v1462_v36 = vmax.f32 %v1048_v32, 0.0  ;;  %v2085_v38 = vpop.f32.mrb[58].mxu0 }
 0x15a   : > { %v1526_v37 = vmax.f32 %v1368_v33, 0.0  ;;  %v2181_v39 = vpop.f32.mrb[58].mxu1  ;;  %1591 = vst [vmem:[%s2527_s29 + $0x1c8] sm:$0xff] %v1463_v34  ;;  %v1063_v40 = vadd.f32 %v2085_v38, %v2518_v4  ;;  %v1057_v42 = vpop.f32.mrb[59].mxu0 }
 0x15b   : > { %1655 = vst [vmem:[%s2527_s29 + $0x3c8] sm:$0xff] %v1527_v35  ;;  %v1383_v41 = vadd.f32 %v2181_v39, %v2518_v4  ;;  %v1377_v43 = vpop.f32.mrb[59].mxu1  ;;  %1590 = vst [vmem:[%s2527_s29 + $0x1c0] sm:$0xff] %v1462_v36  ;;  %v1058_v44 = vadd.f32 %v2518_v4, %v1057_v42 }
 0x15c   : > { %1654 = vst [vmem:[%s2527_s29 + $0x3c0] sm:$0xff] %v1526_v37  ;;  %v1378_v45 = vadd.f32 %v2518_v4, %v1377_v43  ;;  %v1465_v46 = vmax.f32 %v1063_v40, 0.0 }
 0x15d   : > { %v1529_v47 = vmax.f32 %v1383_v41, 0.0  ;;  %v1464_v48 = vmax.f32 %v1058_v44, 0.0  ;;  %v2088_v50 = vpop.f32.mrb[60].mxu0 }
 0x15e   : > { %v1528_v49 = vmax.f32 %v1378_v45, 0.0  ;;  %v2184_v51 = vpop.f32.mrb[60].mxu1  ;;  %1593 = vst [vmem:[%s2527_s29 + $0x1d8] sm:$0xff] %v1465_v46  ;;  %v1073_v52 = vadd.f32 %v2088_v50, %v2518_v4  ;;  %v1067_v54 = vpop.f32.mrb[61].mxu0 }
 0x15f   : > { %1657 = vst [vmem:[%s2527_s29 + $0x3d8] sm:$0xff] %v1529_v47  ;;  %v1393_v53 = vadd.f32 %v2184_v51, %v2518_v4  ;;  %v1387_v55 = vpop.f32.mrb[61].mxu1  ;;  %1592 = vst [vmem:[%s2527_s29 + $0x1d0] sm:$0xff] %v1464_v48  ;;  %v1068_v56 = vadd.f32 %v2518_v4, %v1067_v54 }
 0x160   : > { %1656 = vst [vmem:[%s2527_s29 + $0x3d0] sm:$0xff] %v1528_v49  ;;  %v1388_v57 = vadd.f32 %v2518_v4, %v1387_v55  ;;  %v1467_v58 = vmax.f32 %v1073_v52, 0.0 }
 0x161   : > { %v1531_v59 = vmax.f32 %v1393_v53, 0.0  ;;  %v1466_v60 = vmax.f32 %v1068_v56, 0.0  ;;  %v2091_v62 = vpop.f32.mrb[62].mxu0 }
 0x162   : > { %v1530_v61 = vmax.f32 %v1388_v57, 0.0  ;;  %v2187_v63 = vpop.f32.mrb[62].mxu1  ;;  %1595 = vst [vmem:[%s2527_s29 + $0x1e8] sm:$0xff] %v1467_v58  ;;  %v1083_v0 = vadd.f32 %v2091_v62, %v2518_v4  ;;  %v1077_v2 = vpop.f32.mrb[63].mxu0 }
 0x163   : > { %1659 = vst [vmem:[%s2527_s29 + $0x3e8] sm:$0xff] %v1531_v59  ;;  %v1403_v1 = vadd.f32 %v2187_v63, %v2518_v4  ;;  %v1397_v3 = vpop.f32.mrb[63].mxu1  ;;  %1594 = vst [vmem:[%s2527_s29 + $0x1e0] sm:$0xff] %v1466_v60  ;;  %v1078_v5 = vadd.f32 %v2518_v4, %v1077_v2 }
 0x164   : > { %1658 = vst [vmem:[%s2527_s29 + $0x3e0] sm:$0xff] %v1530_v61  ;;  %v1398_v6 = vadd.f32 %v2518_v4, %v1397_v3  ;;  %v1469_v7 = vmax.f32 %v1083_v0, 0.0 }
 0x165   : > { %v1533_v8 = vmax.f32 %v1403_v1, 0.0  ;;  %v1468_v9 = vmax.f32 %v1078_v5, 0.0 }
 0x166   : > { %v1532_v10 = vmax.f32 %v1398_v6, 0.0  ;;  %1597 = vst [vmem:[%s2527_s29 + $0x1f8] sm:$0xff] %v1469_v7 }
 0x167   : > { %1661 = vst [vmem:[%s2527_s29 + $0x3f8] sm:$0xff] %v1533_v8  ;;  %1596 = vst [vmem:[%s2527_s29 + $0x1f0] sm:$0xff] %v1468_v9 }
 0x168   : > { %1660 = vst [vmem:[%s2527_s29 + $0x3f0] sm:$0xff] %v1532_v10 }
 0x169 PF: > { %s13_s12 = sadd.s32 1, %s2210_s12  }
 0x16a   : > { %p10_p4 = scmp.ge.s32.totalorder %s13_s12, 10  }
 0x16c   :  { %12 = sbr.rel (!%p10_p4) target bundleno = 1 (0x1), region = 62 }

</bundles_post_ra>
